<compile_context>
chip_gen: v7x
topology: tpu7x:2x2x1
jax: 0.10.0
libtpu: 0.0.40
codegen_flags: <defaults>
</compile_context>

<pallas_src>
import functools

import jax
import jax.numpy as jnp
from jax.experimental import pallas as pl
from jax.experimental.pallas import tpu as pltpu

# ---------------- scaled-down ViT-Base configuration ----------------
IMG = 16            # spatial size        (224 in ViT-Base)
IN_CH = 3
PATCH = 8           # patch size          (16 in ViT-Base)
EMBED = 64          # embed dim           (768)
HEADS = 4           # attention heads     (12)
HEAD_DIM = EMBED // HEADS
MLP_HIDDEN = 4 * EMBED
DEPTH = 2           # transformer blocks  (12)
NUM_CLASSES = 10
NUM_CLASSES_PAD = 128        # lane-dense logits buffer; sliced to NUM_CLASSES outside
LN_EPS = 1e-6
N_PATCH = (IMG // PATCH) ** 2
SEQ = N_PATCH + 1            # +1 for cls token (197 in ViT-Base)
SEQ_PAD = ((SEQ + 7) // 8) * 8   # pad sequence up to a full sublane (5 -> 8)
CPP = IN_CH * PATCH * PATCH
# rows per grid step = BATCH_BLOCK * SEQ_PAD = 128 -> full MXU row fill (v5e),
# use 32 (-> 256 rows) on v6e/v7x at real scale.  Batch is zero-padded to a
# multiple of BATCH_BLOCK in the wrapper (no cross-batch reduction, so padded
# rows cannot affect real results).
BATCH_BLOCK = 16
NEG_INF = -1e30


# ---------------- in-kernel helpers ----------------
def _layernorm(x, w, b, eps=LN_EPS):
    mu = jnp.mean(x, axis=-1, keepdims=True)
    xc = x - mu
    var = jnp.mean(xc * xc, axis=-1, keepdims=True)
    return xc * jax.lax.rsqrt(var + eps) * w + b


def _erf(z):
    # Abramowitz & Stegun 7.1.26 polynomial (exact-GELU semantics without a
    # lax.erf lowering); the divide goes through the EUP via pl.reciprocal.
    a1, a2, a3, a4, a5 = 0.254829592, -0.284496736, 1.421413741, -1.453152027, 1.061405429
    p = 0.3275911
    az = jnp.abs(z)
    t = pl.reciprocal(1.0 + p * az, approx=True)
    poly = ((((a5 * t + a4) * t + a3) * t + a2) * t + a1) * t
    y = 1.0 - poly * jnp.exp(-az * az)
    return jnp.where(z >= 0, y, -y)


def _gelu_exact(x):
    return 0.5 * x * (1.0 + _erf(x * 0.7071067811865476))


def _bf16(x):
    return x.astype(jnp.bfloat16)


# ---------------- fused ViT kernel ----------------
def _vit_fused_kernel(patches_ref,
                      patch_w_ref, patch_b_ref, cls_ref, pos_ref,
                      ln1w_ref, ln1b_ref,
                      qw_ref, qb_ref, kw_ref, kb_ref, vw_ref, vb_ref,
                      projw_ref, projb_ref,
                      ln2w_ref, ln2b_ref, fc1w_ref, fc1b_ref, fc2w_ref, fc2b_ref,
                      norm_w_ref, norm_b_ref, head_w_ref, head_b_ref,
                      logits_ref, x_scr,
                      *, num_heads, head_dim, seq, seq_pad, n_patch):
    layer = pl.program_id(1)
    d_model = num_heads * head_dim
    bb = x_scr.shape[0]
    rows = bb * seq_pad

    # ---- depth step 0: patch embed + cls token + pos embed (ONE full store) ----
    @pl.when(layer == 0)
    def _init():
        flat = patches_ref[...].reshape(bb * n_patch, -1)          # (B*N, C*P*P)
        emb = jnp.dot(_bf16(flat), patch_w_ref[...],
                      preferred_element_type=jnp.float32) + patch_b_ref[...]
        cls = jnp.zeros((bb, 1, d_model), jnp.float32) + cls_ref[...][None, :, :]
        pieces = [cls, emb.reshape(bb, n_patch, d_model)]
        if seq_pad > seq:
            pieces.append(jnp.zeros((bb, seq_pad - seq, d_model), jnp.float32))
        x0 = jnp.concatenate(pieces, axis=1)                       # (bb, S_pad, D)
        x_scr[...] = x0 + pos_ref[...]                             # single full-tile store

    # ---- transformer block `layer` (activations resident in VMEM scratch) ----
    xf = x_scr[...].reshape(rows, d_model)                         # (B*S, D) f32

    # attention: x = x + proj(attn(LN1(x)))
    h = _layernorm(xf, ln1w_ref[0], ln1b_ref[0])
    hb = _bf16(h)
    q = jnp.dot(hb, qw_ref[0], preferred_element_type=jnp.float32) + qb_ref[0]
    k = jnp.dot(hb, kw_ref[0], preferred_element_type=jnp.float32) + kb_ref[0]
    v = jnp.dot(hb, vw_ref[0], preferred_element_type=jnp.float32) + vb_ref[0]

    def heads_to_batch(t):
        # (rows, D) -> (H*bb, S, Dh): heads folded into the einsum batch axis.
        return jnp.concatenate(
            [t[:, hh * head_dim:(hh + 1) * head_dim].reshape(bb, seq_pad, head_dim)
             for hh in range(num_heads)], axis=0)

    qh = heads_to_batch(q)
    kh = heads_to_batch(k)
    vh = heads_to_batch(v)

    # additive key mask for the padded sequence tail (built from an iota)
    kmask = jax.lax.broadcasted_iota(jnp.int32, (1, 1, seq_pad), 2)
    attn_bias = jnp.where(kmask < seq, 0.0, NEG_INF)

    scale = head_dim ** -0.5
    s = jnp.einsum('bqd,bkd->bqk', _bf16(qh), _bf16(kh),
                   preferred_element_type=jnp.float32) * scale + attn_bias
    s = s - jnp.max(s, axis=-1, keepdims=True)
    p = jnp.exp(s)
    p = p * pl.reciprocal(jnp.sum(p, axis=-1, keepdims=True), approx=True)
    o = jnp.einsum('bqk,bkd->bqd', _bf16(p), _bf16(vh),
                   preferred_element_type=jnp.float32)             # (H*bb, S, Dh)
    # heads back to lanes: column order [h0 | h1 | ...] matches proj weight rows.
    o = jnp.concatenate(
        [o[hh * bb:(hh + 1) * bb].reshape(rows, head_dim) for hh in range(num_heads)],
        axis=-1)
    xf = xf + jnp.dot(_bf16(o), projw_ref[0],
                      preferred_element_type=jnp.float32) + projb_ref[0]

    # MLP: x = x + fc2(gelu(fc1(LN2(x))))
    h2 = _layernorm(xf, ln2w_ref[0], ln2b_ref[0])
    m = jnp.dot(_bf16(h2), fc1w_ref[0],
                preferred_element_type=jnp.float32) + fc1b_ref[0]
    m = _gelu_exact(m)
    m = jnp.dot(_bf16(m), fc2w_ref[0],
                preferred_element_type=jnp.float32) + fc2b_ref[0]
    xf = xf + m

    xnew = xf.reshape(bb, seq_pad, d_model)
    x_scr[...] = xnew

    # ---- last depth step: model.norm (row-wise; cls row only is exact) + head ----
    @pl.when(layer == pl.num_programs(1) - 1)
    def _head():
        cls_tok = xnew[:, 0:1, :].reshape(bb, d_model)
        hn = _layernorm(cls_tok, norm_w_ref[...], norm_b_ref[...])
        logits_ref[...] = jnp.dot(_bf16(hn), head_w_ref[...],
                                  preferred_element_type=jnp.float32) + head_b_ref[...]


# ---------------- JAX glue ----------------
def patchify(x):
    # NCHW -> (B, N_patches, C*P*P), scanning patch rows then cols (timm order)
    b, c, h, w = x.shape
    hp, wp = h // PATCH, w // PATCH
    x = x.reshape(b, c, hp, PATCH, wp, PATCH)
    x = jnp.transpose(x, (0, 2, 4, 1, 3, 5))        # (B, hp, wp, C, P, P)
    return x.reshape(b, hp * wp, c * PATCH * PATCH)


@jax.jit
def vit_forward(x, params):
    b = x.shape[0]
    nb = pl.cdiv(b, BATCH_BLOCK)
    b_pad = nb * BATCH_BLOCK
    patches = patchify(x).astype(jnp.float32)       # (B, N_PATCH, C*P*P)
    if b_pad > b:
        # pad batch so every grid step gets a full 128-row slab (padded rows
        # are independent of real rows; sliced off below).
        patches = jnp.pad(patches, ((0, b_pad - b), (0, 0), (0, 0)))

    kernel = functools.partial(_vit_fused_kernel, num_heads=HEADS, head_dim=HEAD_DIM,
                               seq=SEQ, seq_pad=SEQ_PAD, n_patch=N_PATCH)

    def const2(shape):
        return pl.BlockSpec(shape, lambda bi, li: (0, 0))

    def const3(shape):
        return pl.BlockSpec(shape, lambda bi, li: (0, 0, 0))

    def depth3(arr):
        # stacked-over-depth params: block index advances with the depth grid
        # axis so layer l+1 weights prefetch behind layer l compute.
        # TODO(synk): at real ViT-Base scale on v5e, consider
        # pipeline_mode=pl.Buffered(3) for fc1w/fc2w if weight DMA is exposed.
        return pl.BlockSpec((1,) + arr.shape[1:], lambda bi, li: (li, 0, 0))

    in_specs = [
        pl.BlockSpec((BATCH_BLOCK, N_PATCH, CPP), lambda bi, li: (bi, 0, 0)),  # patches
        const2((CPP, EMBED)), const2((1, EMBED)),                              # patch w/b
        const2((1, EMBED)),                                                    # cls token
        const3((1, SEQ_PAD, EMBED)),                                           # pos embed
        depth3(params["ln1w"]), depth3(params["ln1b"]),
        depth3(params["qw"]), depth3(params["qb"]),
        depth3(params["kw"]), depth3(params["kb"]),
        depth3(params["vw"]), depth3(params["vb"]),
        depth3(params["projw"]), depth3(params["projb"]),
        depth3(params["ln2w"]), depth3(params["ln2b"]),
        depth3(params["fc1w"]), depth3(params["fc1b"]),
        depth3(params["fc2w"]), depth3(params["fc2b"]),
        const2((1, EMBED)), const2((1, EMBED)),                                # final norm
        const2((EMBED, NUM_CLASSES_PAD)), const2((1, NUM_CLASSES_PAD)),        # head w/b
    ]

    # advisory cost estimate so XLA schedules ops around the fused kernel
    rows = BATCH_BLOCK * SEQ_PAD
    per_layer_flops = (3 * 2 * rows * EMBED * EMBED                        # q,k,v
                       + 2 * 2 * BATCH_BLOCK * HEADS * SEQ_PAD * SEQ_PAD * HEAD_DIM
                       + 2 * rows * EMBED * EMBED                          # proj
                       + 2 * 2 * rows * EMBED * MLP_HIDDEN)                # fc1+fc2
    flops = nb * (2 * BATCH_BLOCK * N_PATCH * CPP * EMBED
                  + DEPTH * per_layer_flops
                  + 2 * BATCH_BLOCK * EMBED * NUM_CLASSES_PAD)
    transcendentals = nb * DEPTH * (rows * MLP_HIDDEN
                                    + BATCH_BLOCK * HEADS * SEQ_PAD * SEQ_PAD)
    param_bytes = sum(int(v.size) * v.dtype.itemsize
                      for v in jax.tree_util.tree_leaves(params))
    bytes_accessed = (nb * param_bytes + int(patches.size) * 4
                      + b_pad * NUM_CLASSES_PAD * 4)

    logits_pad = pl.pallas_call(
        kernel,
        out_shape=jax.ShapeDtypeStruct((b_pad, NUM_CLASSES_PAD), jnp.float32),
        grid=(nb, DEPTH),
        in_specs=in_specs,
        out_specs=pl.BlockSpec((BATCH_BLOCK, NUM_CLASSES_PAD), lambda bi, li: (bi, 0)),
        scratch_shapes=[pltpu.VMEM((BATCH_BLOCK, SEQ_PAD, EMBED), jnp.float32)],
        compiler_params=pltpu.CompilerParams(
            dimension_semantics=("parallel", "arbitrary"),
            # explicit VMEM budget; fits 64 MiB v7x as well as 128 MiB v5e/v6e
            vmem_limit_bytes=64 * 1024 * 1024),
        cost_estimate=pl.CostEstimate(flops=int(flops),
                                      transcendentals=int(transcendentals),
                                      bytes_accessed=int(bytes_accessed)),
    )(patches,
      params["patch_w"], params["patch_b"], params["cls_token"], params["pos_embed"],
      params["ln1w"], params["ln1b"],
      params["qw"], params["qb"], params["kw"], params["kb"], params["vw"], params["vb"],
      params["projw"], params["projb"], params["ln2w"], params["ln2b"],
      params["fc1w"], params["fc1b"], params["fc2w"], params["fc2b"],
      params["norm_w"], params["norm_b"], params["head_w"], params["head_b"])

    # model.patch_drop / model.norm_pre are Identity; R / C permutation branches
    # are disabled (module defaults r=False, c=False).
    # TODO(synk): torch.load('keys/key_m.pt') permutation keys not reproducible in-script.
    return logits_pad[:b, :NUM_CLASSES]


# ---------------- deterministic parameter init ----------------
def init_params(key):
    def normal(k, shape, scale=0.02):
        return scale * jax.random.normal(k, shape, jnp.float32)

    keys = iter(jax.random.split(key, 64))

    pos = normal(next(keys), (1, SEQ, EMBED))
    pos = jnp.pad(pos, ((0, 0), (0, SEQ_PAD - SEQ), (0, 0)))          # padded rows = 0
    head_w = normal(next(keys), (EMBED, NUM_CLASSES))
    head_w = jnp.pad(head_w, ((0, 0), (0, NUM_CLASSES_PAD - NUM_CLASSES)))

    params = {
        "patch_w": normal(next(keys), (CPP, EMBED)).astype(jnp.bfloat16),
        "patch_b": jnp.zeros((1, EMBED), jnp.float32),
        "cls_token": normal(next(keys), (1, EMBED)),
        "pos_embed": pos,
        "norm_w": jnp.ones((1, EMBED), jnp.float32),
        "norm_b": jnp.zeros((1, EMBED), jnp.float32),
        "head_w": head_w.astype(jnp.bfloat16),
        "head_b": jnp.zeros((1, NUM_CLASSES_PAD), jnp.float32),
        # per-block params stacked over depth -> single fused pallas_call.
        # qkv weight is stored as three lane-dense (in, out) matrices so the
        # kernel never slices a 3*EMBED-wide output at unaligned lane offsets.
        "ln1w": jnp.ones((DEPTH, 1, EMBED), jnp.float32),
        "ln1b": jnp.zeros((DEPTH, 1, EMBED), jnp.float32),
        "qw": normal(next(keys), (DEPTH, EMBED, EMBED)).astype(jnp.bfloat16),
        "qb": jnp.zeros((DEPTH, 1, EMBED), jnp.float32),
        "kw": normal(next(keys), (DEPTH, EMBED, EMBED)).astype(jnp.bfloat16),
        "kb": jnp.zeros((DEPTH, 1, EMBED), jnp.float32),
        "vw": normal(next(keys), (DEPTH, EMBED, EMBED)).astype(jnp.bfloat16),
        "vb": jnp.zeros((DEPTH, 1, EMBED), jnp.float32),
        "projw": normal(next(keys), (DEPTH, EMBED, EMBED)).astype(jnp.bfloat16),
        "projb": jnp.zeros((DEPTH, 1, EMBED), jnp.float32),
        "ln2w": jnp.ones((DEPTH, 1, EMBED), jnp.float32),
        "ln2b": jnp.zeros((DEPTH, 1, EMBED), jnp.float32),
        "fc1w": normal(next(keys), (DEPTH, EMBED, MLP_HIDDEN)).astype(jnp.bfloat16),
        "fc1b": jnp.zeros((DEPTH, 1, MLP_HIDDEN), jnp.float32),
        "fc2w": normal(next(keys), (DEPTH, MLP_HIDDEN, EMBED)).astype(jnp.bfloat16),
        "fc2b": jnp.zeros((DEPTH, 1, EMBED), jnp.float32),
    }
    return params


if __name__ == "__main__":
    key = jax.random.PRNGKey(0)
    params = init_params(key)
    x = jax.random.normal(jax.random.fold_in(key, 999),
                          (2, IN_CH, IMG, IMG), jnp.float32)   # NCHW
    logits = vit_forward(x, params)
    logits = jax.block_until_ready(logits)
    assert logits.shape == (2, NUM_CLASSES)
    assert bool(jnp.all(jnp.isfinite(logits)))
    print("KERNEL_OK")
</pallas_src>

<mosaic_0001>
module attributes {stable_mosaic.version = 11 : i64} {
  func.func @_vit_fused_kernel(%arg0: i32, %arg1: i32, %arg2: memref<16x4x192xf32, #tpu.memory_space<vmem>>, %arg3: memref<192x64xbf16, #tpu.memory_space<vmem>>, %arg4: memref<1x64xf32, #tpu.memory_space<vmem>>, %arg5: memref<1x64xf32, #tpu.memory_space<vmem>>, %arg6: memref<1x8x64xf32, #tpu.memory_space<vmem>>, %arg7: memref<1x1x64xf32, #tpu.memory_space<vmem>>, %arg8: memref<1x1x64xf32, #tpu.memory_space<vmem>>, %arg9: memref<1x64x64xbf16, #tpu.memory_space<vmem>>, %arg10: memref<1x1x64xf32, #tpu.memory_space<vmem>>, %arg11: memref<1x64x64xbf16, #tpu.memory_space<vmem>>, %arg12: memref<1x1x64xf32, #tpu.memory_space<vmem>>, %arg13: memref<1x64x64xbf16, #tpu.memory_space<vmem>>, %arg14: memref<1x1x64xf32, #tpu.memory_space<vmem>>, %arg15: memref<1x64x64xbf16, #tpu.memory_space<vmem>>, %arg16: memref<1x1x64xf32, #tpu.memory_space<vmem>>, %arg17: memref<1x1x64xf32, #tpu.memory_space<vmem>>, %arg18: memref<1x1x64xf32, #tpu.memory_space<vmem>>, %arg19: memref<1x64x256xbf16, #tpu.memory_space<vmem>>, %arg20: memref<1x1x256xf32, #tpu.memory_space<vmem>>, %arg21: memref<1x256x64xbf16, #tpu.memory_space<vmem>>, %arg22: memref<1x1x64xf32, #tpu.memory_space<vmem>>, %arg23: memref<1x64xf32, #tpu.memory_space<vmem>>, %arg24: memref<1x64xf32, #tpu.memory_space<vmem>>, %arg25: memref<64x128xbf16, #tpu.memory_space<vmem>>, %arg26: memref<1x128xf32, #tpu.memory_space<vmem>>, %arg27: memref<16x128xf32, #tpu.memory_space<vmem>>, %arg28: memref<16x8x64xf32, #tpu.memory_space<vmem>>) attributes {dimension_semantics = [#tpu.dimension_semantics<parallel>, #tpu.dimension_semantics<arbitrary>], iteration_bounds = array<i64: 1, 2>, scalar_prefetch = 0 : i64, scratch_operands = 1 : i64, tpu.core_type = #tpu.core_type<tc>, window_params = [{transform_indices = @transform_0, window_bounds = array<i64: 16, 4, 192>}, {pipeline_mode = #tpu.pipeline_mode<synchronous>, transform_indices = @transform_1, window_bounds = array<i64: 192, 64>}, {pipeline_mode = #tpu.pipeline_mode<synchronous>, transform_indices = @transform_2, window_bounds = array<i64: 1, 64>}, {pipeline_mode = #tpu.pipeline_mode<synchronous>, transform_indices = @transform_3, window_bounds = array<i64: 1, 64>}, {pipeline_mode = #tpu.pipeline_mode<synchronous>, transform_indices = @transform_4, window_bounds = array<i64: 1, 8, 64>}, {transform_indices = @transform_5, window_bounds = array<i64: 1, 1, 64>}, {transform_indices = @transform_6, window_bounds = array<i64: 1, 1, 64>}, {transform_indices = @transform_7, window_bounds = array<i64: 1, 64, 64>}, {transform_indices = @transform_8, window_bounds = array<i64: 1, 1, 64>}, {transform_indices = @transform_9, window_bounds = array<i64: 1, 64, 64>}, {transform_indices = @transform_10, window_bounds = array<i64: 1, 1, 64>}, {transform_indices = @transform_11, window_bounds = array<i64: 1, 64, 64>}, {transform_indices = @transform_12, window_bounds = array<i64: 1, 1, 64>}, {transform_indices = @transform_13, window_bounds = array<i64: 1, 64, 64>}, {transform_indices = @transform_14, window_bounds = array<i64: 1, 1, 64>}, {transform_indices = @transform_15, window_bounds = array<i64: 1, 1, 64>}, {transform_indices = @transform_16, window_bounds = array<i64: 1, 1, 64>}, {transform_indices = @transform_17, window_bounds = array<i64: 1, 64, 256>}, {transform_indices = @transform_18, window_bounds = array<i64: 1, 1, 256>}, {transform_indices = @transform_19, window_bounds = array<i64: 1, 256, 64>}, {transform_indices = @transform_20, window_bounds = array<i64: 1, 1, 64>}, {pipeline_mode = #tpu.pipeline_mode<synchronous>, transform_indices = @transform_21, window_bounds = array<i64: 1, 64>}, {pipeline_mode = #tpu.pipeline_mode<synchronous>, transform_indices = @transform_22, window_bounds = array<i64: 1, 64>}, {pipeline_mode = #tpu.pipeline_mode<synchronous>, transform_indices = @transform_23, window_bounds = array<i64: 64, 128>}, {pipeline_mode = #tpu.pipeline_mode<synchronous>, transform_indices = @transform_24, window_bounds = array<i64: 1, 128>}, {transform_indices = @transform_25, window_bounds = array<i64: 16, 128>}]} {
    %c0_i32 = arith.constant 0 : i32
    %0 = arith.cmpi eq, %arg1, %c0_i32 : i32
    %1 = arith.extui %0 : i1 to i32
    %c0_i32_0 = arith.constant 0 : i32
    %2 = arith.cmpi ne, %1, %c0_i32_0 : i32
    scf.if %2 {
      %c0_91 = arith.constant 0 : index
      %c0_92 = arith.constant 0 : index
      %c0_93 = arith.constant 0 : index
      %207 = vector.load %arg2[%c0_91, %c0_92, %c0_93] : memref<16x4x192xf32, #tpu.memory_space<vmem>>, vector<16x4x192xf32>
      %208 = vector.shape_cast %207 : vector<16x4x192xf32> to vector<64x192xf32>
      %209 = arith.truncf %208 : vector<64x192xf32> to vector<64x192xbf16>
      %c0_94 = arith.constant 0 : index
      %c0_95 = arith.constant 0 : index
      %210 = vector.load %arg3[%c0_94, %c0_95] : memref<192x64xbf16, #tpu.memory_space<vmem>>, vector<192x64xbf16>
      %cst_96 = arith.constant dense<0.000000e+00> : vector<64x64xf32>
      %211 = tpu.matmul %209, %210, %cst_96 {dimension_numbers = #tpu.dot_dimension_numbers<[1], [0], [0], [1], [0, 0, 1, 1], [], []>} : vector<64x192xbf16>, vector<192x64xbf16>, vector<64x64xf32> -> vector<64x64xf32>
      %c0_97 = arith.constant 0 : index
      %c0_98 = arith.constant 0 : index
      %212 = vector.load %arg4[%c0_97, %c0_98] : memref<1x64xf32, #tpu.memory_space<vmem>>, vector<1x64xf32>
      %213 = vector.broadcast %212 : vector<1x64xf32> to vector<64x64xf32>
      %214 = arith.addf %211, %213 : vector<64x64xf32>
      %cst_99 = arith.constant 0.000000e+00 : f32
      %215 = vector.broadcast %cst_99 : f32 to vector<16x1x64xf32>
      %c0_100 = arith.constant 0 : index
      %c0_101 = arith.constant 0 : index
      %216 = vector.load %arg5[%c0_100, %c0_101] : memref<1x64xf32, #tpu.memory_space<vmem>>, vector<1x64xf32>
      %217 = vector.shape_cast %216 : vector<1x64xf32> to vector<1x1x64xf32>
      %218 = vector.broadcast %217 : vector<1x1x64xf32> to vector<16x1x64xf32>
      %219 = arith.addf %215, %218 : vector<16x1x64xf32>
      %220 = vector.shape_cast %214 : vector<64x64xf32> to vector<16x4x64xf32>
      %cst_102 = arith.constant 0.000000e+00 : f32
      %221 = vector.broadcast %cst_102 : f32 to vector<16x3x64xf32>
      %222 = tpu.concatenate %219, %220, %221 in 1 : vector<16x1x64xf32>, vector<16x4x64xf32>, vector<16x3x64xf32> -> vector<16x8x64xf32>
      %c0_103 = arith.constant 0 : index
      %c0_104 = arith.constant 0 : index
      %c0_105 = arith.constant 0 : index
      %223 = vector.load %arg6[%c0_103, %c0_104, %c0_105] : memref<1x8x64xf32, #tpu.memory_space<vmem>>, vector<1x8x64xf32>
      %224 = vector.broadcast %223 : vector<1x8x64xf32> to vector<16x8x64xf32>
      %225 = arith.addf %222, %224 : vector<16x8x64xf32>
      %c0_106 = arith.constant 0 : index
      %c0_107 = arith.constant 0 : index
      %c0_108 = arith.constant 0 : index
      %226 = vector.load %arg28[%c0_106, %c0_107, %c0_108] : memref<16x8x64xf32, #tpu.memory_space<vmem>>, vector<16x8x64xf32>
      tpu.vector_store %arg28[%c0_106, %c0_107, %c0_108], %225 {strides = array<i32>} : memref<16x8x64xf32, #tpu.memory_space<vmem>>, vector<16x8x64xf32>,
    } else {
    }
    %c0 = arith.constant 0 : index
    %c0_1 = arith.constant 0 : index
    %c0_2 = arith.constant 0 : index
    %3 = vector.load %arg28[%c0, %c0_1, %c0_2] : memref<16x8x64xf32, #tpu.memory_space<vmem>>, vector<16x8x64xf32>
    %4 = vector.shape_cast %3 : vector<16x8x64xf32> to vector<128x64xf32>
    %c0_3 = arith.constant 0 : index
    %c0_4 = arith.constant 0 : index
    %c0_5 = arith.constant 0 : index
    %5 = vector.load %arg7[%c0_3, %c0_4, %c0_5] : memref<1x1x64xf32, #tpu.memory_space<vmem>>, vector<1x1x64xf32>
    %6 = vector.shape_cast %5 : vector<1x1x64xf32> to vector<1x64xf32>
    %c0_6 = arith.constant 0 : index
    %c0_7 = arith.constant 0 : index
    %c0_8 = arith.constant 0 : index
    %7 = vector.load %arg8[%c0_6, %c0_7, %c0_8] : memref<1x1x64xf32, #tpu.memory_space<vmem>>, vector<1x1x64xf32>
    %8 = vector.shape_cast %7 : vector<1x1x64xf32> to vector<1x64xf32>
    %cst = arith.constant dense<0.000000e+00> : vector<128xf32>
    %9 = vector.multi_reduction <add>, %4, %cst [1] : vector<128x64xf32> to vector<128xf32>
    %10 = vector.shape_cast %9 : vector<128xf32> to vector<128x1xf32>
    %cst_9 = arith.constant 6.400000e+01 : f32
    %11 = vector.broadcast %cst_9 : f32 to vector<128x1xf32>
    %12 = arith.divf %10, %11 : vector<128x1xf32>
    %13 = vector.broadcast %12 : vector<128x1xf32> to vector<128x64xf32>
    %14 = arith.subf %4, %13 : vector<128x64xf32>
    %15 = arith.mulf %14, %14 : vector<128x64xf32>
    %cst_10 = arith.constant dense<0.000000e+00> : vector<128xf32>
    %16 = vector.multi_reduction <add>, %15, %cst_10 [1] : vector<128x64xf32> to vector<128xf32>
    %17 = vector.shape_cast %16 : vector<128xf32> to vector<128x1xf32>
    %cst_11 = arith.constant 6.400000e+01 : f32
    %18 = vector.broadcast %cst_11 : f32 to vector<128x1xf32>
    %19 = arith.divf %17, %18 : vector<128x1xf32>
    %cst_12 = arith.constant 9.99999997E-7 : f32
    %20 = vector.broadcast %cst_12 : f32 to vector<128x1xf32>
    %21 = arith.addf %19, %20 : vector<128x1xf32>
    %22 = math.rsqrt %21 : vector<128x1xf32>
    %23 = vector.broadcast %22 : vector<128x1xf32> to vector<128x64xf32>
    %24 = arith.mulf %14, %23 : vector<128x64xf32>
    %25 = vector.broadcast %6 : vector<1x64xf32> to vector<128x64xf32>
    %26 = arith.mulf %24, %25 : vector<128x64xf32>
    %27 = vector.broadcast %8 : vector<1x64xf32> to vector<128x64xf32>
    %28 = arith.addf %26, %27 : vector<128x64xf32>
    %29 = arith.truncf %28 : vector<128x64xf32> to vector<128x64xbf16>
    %c0_13 = arith.constant 0 : index
    %c0_14 = arith.constant 0 : index
    %c0_15 = arith.constant 0 : index
    %30 = vector.load %arg9[%c0_13, %c0_14, %c0_15] : memref<1x64x64xbf16, #tpu.memory_space<vmem>>, vector<1x64x64xbf16>
    %31 = vector.shape_cast %30 : vector<1x64x64xbf16> to vector<64x64xbf16>
    %cst_16 = arith.constant dense<0.000000e+00> : vector<128x64xf32>
    %32 = tpu.matmul %29, %31, %cst_16 {dimension_numbers = #tpu.dot_dimension_numbers<[1], [0], [0], [1], [0, 0, 1, 1], [], []>} : vector<128x64xbf16>, vector<64x64xbf16>, vector<128x64xf32> -> vector<128x64xf32>
    %c0_17 = arith.constant 0 : index
    %c0_18 = arith.constant 0 : index
    %c0_19 = arith.constant 0 : index
    %33 = vector.load %arg10[%c0_17, %c0_18, %c0_19] : memref<1x1x64xf32, #tpu.memory_space<vmem>>, vector<1x1x64xf32>
    %34 = vector.shape_cast %33 : vector<1x1x64xf32> to vector<1x64xf32>
    %35 = vector.broadcast %34 : vector<1x64xf32> to vector<128x64xf32>
    %36 = arith.addf %32, %35 : vector<128x64xf32>
    %c0_20 = arith.constant 0 : index
    %c0_21 = arith.constant 0 : index
    %c0_22 = arith.constant 0 : index
    %37 = vector.load %arg11[%c0_20, %c0_21, %c0_22] : memref<1x64x64xbf16, #tpu.memory_space<vmem>>, vector<1x64x64xbf16>
    %38 = vector.shape_cast %37 : vector<1x64x64xbf16> to vector<64x64xbf16>
    %cst_23 = arith.constant dense<0.000000e+00> : vector<128x64xf32>
    %39 = tpu.matmul %29, %38, %cst_23 {dimension_numbers = #tpu.dot_dimension_numbers<[1], [0], [0], [1], [0, 0, 1, 1], [], []>} : vector<128x64xbf16>, vector<64x64xbf16>, vector<128x64xf32> -> vector<128x64xf32>
    %c0_24 = arith.constant 0 : index
    %c0_25 = arith.constant 0 : index
    %c0_26 = arith.constant 0 : index
    %40 = vector.load %arg12[%c0_24, %c0_25, %c0_26] : memref<1x1x64xf32, #tpu.memory_space<vmem>>, vector<1x1x64xf32>
    %41 = vector.shape_cast %40 : vector<1x1x64xf32> to vector<1x64xf32>
    %42 = vector.broadcast %41 : vector<1x64xf32> to vector<128x64xf32>
    %43 = arith.addf %39, %42 : vector<128x64xf32>
    %c0_27 = arith.constant 0 : index
    %c0_28 = arith.constant 0 : index
    %c0_29 = arith.constant 0 : index
    %44 = vector.load %arg13[%c0_27, %c0_28, %c0_29] : memref<1x64x64xbf16, #tpu.memory_space<vmem>>, vector<1x64x64xbf16>
    %45 = vector.shape_cast %44 : vector<1x64x64xbf16> to vector<64x64xbf16>
    %cst_30 = arith.constant dense<0.000000e+00> : vector<128x64xf32>
    %46 = tpu.matmul %29, %45, %cst_30 {dimension_numbers = #tpu.dot_dimension_numbers<[1], [0], [0], [1], [0, 0, 1, 1], [], []>} : vector<128x64xbf16>, vector<64x64xbf16>, vector<128x64xf32> -> vector<128x64xf32>
    %c0_31 = arith.constant 0 : index
    %c0_32 = arith.constant 0 : index
    %c0_33 = arith.constant 0 : index
    %47 = vector.load %arg14[%c0_31, %c0_32, %c0_33] : memref<1x1x64xf32, #tpu.memory_space<vmem>>, vector<1x1x64xf32>
    %48 = vector.shape_cast %47 : vector<1x1x64xf32> to vector<1x64xf32>
    %49 = vector.broadcast %48 : vector<1x64xf32> to vector<128x64xf32>
    %50 = arith.addf %46, %49 : vector<128x64xf32>
    %51 = vector.extract_strided_slice %36 {offsets = [0, 0], sizes = [128, 16], strides = [1, 1]} : vector<128x64xf32> to vector<128x16xf32>
    %52 = vector.shape_cast %51 : vector<128x16xf32> to vector<16x8x16xf32>
    %53 = vector.extract_strided_slice %36 {offsets = [0, 16], sizes = [128, 16], strides = [1, 1]} : vector<128x64xf32> to vector<128x16xf32>
    %54 = vector.shape_cast %53 : vector<128x16xf32> to vector<16x8x16xf32>
    %55 = vector.extract_strided_slice %36 {offsets = [0, 32], sizes = [128, 16], strides = [1, 1]} : vector<128x64xf32> to vector<128x16xf32>
    %56 = vector.shape_cast %55 : vector<128x16xf32> to vector<16x8x16xf32>
    %57 = vector.extract_strided_slice %36 {offsets = [0, 48], sizes = [128, 16], strides = [1, 1]} : vector<128x64xf32> to vector<128x16xf32>
    %58 = vector.shape_cast %57 : vector<128x16xf32> to vector<16x8x16xf32>
    %59 = tpu.concatenate %52, %54, %56, %58 in 0 : vector<16x8x16xf32>, vector<16x8x16xf32>, vector<16x8x16xf32>, vector<16x8x16xf32> -> vector<64x8x16xf32>
    %60 = vector.extract_strided_slice %43 {offsets = [0, 0], sizes = [128, 16], strides = [1, 1]} : vector<128x64xf32> to vector<128x16xf32>
    %61 = vector.shape_cast %60 : vector<128x16xf32> to vector<16x8x16xf32>
    %62 = vector.extract_strided_slice %43 {offsets = [0, 16], sizes = [128, 16], strides = [1, 1]} : vector<128x64xf32> to vector<128x16xf32>
    %63 = vector.shape_cast %62 : vector<128x16xf32> to vector<16x8x16xf32>
    %64 = vector.extract_strided_slice %43 {offsets = [0, 32], sizes = [128, 16], strides = [1, 1]} : vector<128x64xf32> to vector<128x16xf32>
    %65 = vector.shape_cast %64 : vector<128x16xf32> to vector<16x8x16xf32>
    %66 = vector.extract_strided_slice %43 {offsets = [0, 48], sizes = [128, 16], strides = [1, 1]} : vector<128x64xf32> to vector<128x16xf32>
    %67 = vector.shape_cast %66 : vector<128x16xf32> to vector<16x8x16xf32>
    %68 = tpu.concatenate %61, %63, %65, %67 in 0 : vector<16x8x16xf32>, vector<16x8x16xf32>, vector<16x8x16xf32>, vector<16x8x16xf32> -> vector<64x8x16xf32>
    %69 = vector.extract_strided_slice %50 {offsets = [0, 0], sizes = [128, 16], strides = [1, 1]} : vector<128x64xf32> to vector<128x16xf32>
    %70 = vector.shape_cast %69 : vector<128x16xf32> to vector<16x8x16xf32>
    %71 = vector.extract_strided_slice %50 {offsets = [0, 16], sizes = [128, 16], strides = [1, 1]} : vector<128x64xf32> to vector<128x16xf32>
    %72 = vector.shape_cast %71 : vector<128x16xf32> to vector<16x8x16xf32>
    %73 = vector.extract_strided_slice %50 {offsets = [0, 32], sizes = [128, 16], strides = [1, 1]} : vector<128x64xf32> to vector<128x16xf32>
    %74 = vector.shape_cast %73 : vector<128x16xf32> to vector<16x8x16xf32>
    %75 = vector.extract_strided_slice %50 {offsets = [0, 48], sizes = [128, 16], strides = [1, 1]} : vector<128x64xf32> to vector<128x16xf32>
    %76 = vector.shape_cast %75 : vector<128x16xf32> to vector<16x8x16xf32>
    %77 = tpu.concatenate %70, %72, %74, %76 in 0 : vector<16x8x16xf32>, vector<16x8x16xf32>, vector<16x8x16xf32>, vector<16x8x16xf32> -> vector<64x8x16xf32>
    %78 = tpu.iota {dimensions = array<i32: 2>} : vector<1x1x8xi32>
    %c5_i32 = arith.constant 5 : i32
    %79 = vector.broadcast %c5_i32 : i32 to vector<1x1x8xi32>
    %80 = arith.cmpi slt, %78, %79 : vector<1x1x8xi32>
    %cst_34 = arith.constant 0.000000e+00 : f32
    %cst_35 = arith.constant -1.000000e+30 : f32
    %81 = vector.broadcast %cst_34 : f32 to vector<1x1x8xf32>
    %82 = vector.broadcast %cst_35 : f32 to vector<1x1x8xf32>
    %83 = arith.select %80, %81, %82 : vector<1x1x8xi1>, vector<1x1x8xf32>
    %84 = arith.truncf %59 : vector<64x8x16xf32> to vector<64x8x16xbf16>
    %85 = arith.truncf %68 : vector<64x8x16xf32> to vector<64x8x16xbf16>
    "tpu.trace_start"() <{level = 10 : i32, message = "bqd,bkd->bqk"}> : () -> ()
    %cst_36 = arith.constant dense<0.000000e+00> : vector<64x8x8xf32>
    %86 = tpu.matmul %84, %85, %cst_36 {dimension_numbers = #tpu.dot_dimension_numbers<[2], [2], [1], [1], [0, 0, 0, 1, 1, 1], [0], [0]>} : vector<64x8x16xbf16>, vector<64x8x16xbf16>, vector<64x8x8xf32> -> vector<64x8x8xf32>
    "tpu.trace_stop"() : () -> ()
    %cst_37 = arith.constant 2.500000e-01 : f32
    %87 = vector.broadcast %cst_37 : f32 to vector<64x8x8xf32>
    %88 = arith.mulf %86, %87 : vector<64x8x8xf32>
    %89 = vector.broadcast %83 : vector<1x1x8xf32> to vector<64x8x8xf32>
    %90 = arith.addf %88, %89 : vector<64x8x8xf32>
    %cst_38 = arith.constant dense<0xFF800000> : vector<64x8xf32>
    %91 = vector.multi_reduction <maximumf>, %90, %cst_38 [2] : vector<64x8x8xf32> to vector<64x8xf32>
    %92 = vector.shape_cast %91 : vector<64x8xf32> to vector<64x8x1xf32>
    %93 = vector.broadcast %92 : vector<64x8x1xf32> to vector<64x8x8xf32>
    %94 = arith.subf %90, %93 : vector<64x8x8xf32>
    %95 = math.exp %94 : vector<64x8x8xf32>
    %cst_39 = arith.constant dense<0.000000e+00> : vector<64x8xf32>
    %96 = vector.multi_reduction <add>, %95, %cst_39 [2] : vector<64x8x8xf32> to vector<64x8xf32>
    %97 = vector.shape_cast %96 : vector<64x8xf32> to vector<64x8x1xf32>
    %98 = tpu.reciprocal %97 {approx = true} : vector<64x8x1xf32> -> vector<64x8x1xf32>
    %99 = vector.broadcast %98 : vector<64x8x1xf32> to vector<64x8x8xf32>
    %100 = arith.mulf %95, %99 : vector<64x8x8xf32>
    %101 = arith.truncf %100 : vector<64x8x8xf32> to vector<64x8x8xbf16>
    %102 = arith.truncf %77 : vector<64x8x16xf32> to vector<64x8x16xbf16>
    "tpu.trace_start"() <{level = 10 : i32, message = "bqk,bkd->bqd"}> : () -> ()
    %cst_40 = arith.constant dense<0.000000e+00> : vector<64x8x16xf32>
    %103 = tpu.matmul %101, %102, %cst_40 {dimension_numbers = #tpu.dot_dimension_numbers<[2], [1], [1], [2], [0, 0, 0, 1, 1, 2], [0], [0]>} : vector<64x8x8xbf16>, vector<64x8x16xbf16>, vector<64x8x16xf32> -> vector<64x8x16xf32>
    "tpu.trace_stop"() : () -> ()
    %104 = vector.extract_strided_slice %103 {offsets = [0, 0, 0], sizes = [16, 8, 16], strides = [1, 1, 1]} : vector<64x8x16xf32> to vector<16x8x16xf32>
    %105 = vector.shape_cast %104 : vector<16x8x16xf32> to vector<128x16xf32>
    %106 = vector.extract_strided_slice %103 {offsets = [16, 0, 0], sizes = [16, 8, 16], strides = [1, 1, 1]} : vector<64x8x16xf32> to vector<16x8x16xf32>
    %107 = vector.shape_cast %106 : vector<16x8x16xf32> to vector<128x16xf32>
    %108 = vector.extract_strided_slice %103 {offsets = [32, 0, 0], sizes = [16, 8, 16], strides = [1, 1, 1]} : vector<64x8x16xf32> to vector<16x8x16xf32>
    %109 = vector.shape_cast %108 : vector<16x8x16xf32> to vector<128x16xf32>
    %110 = vector.extract_strided_slice %103 {offsets = [48, 0, 0], sizes = [16, 8, 16], strides = [1, 1, 1]} : vector<64x8x16xf32> to vector<16x8x16xf32>
    %111 = vector.shape_cast %110 : vector<16x8x16xf32> to vector<128x16xf32>
    %112 = tpu.concatenate %105, %107, %109, %111 in 1 : vector<128x16xf32>, vector<128x16xf32>, vector<128x16xf32>, vector<128x16xf32> -> vector<128x64xf32>
    %113 = arith.truncf %112 : vector<128x64xf32> to vector<128x64xbf16>
    %c0_41 = arith.constant 0 : index
    %c0_42 = arith.constant 0 : index
    %c0_43 = arith.constant 0 : index
    %114 = vector.load %arg15[%c0_41, %c0_42, %c0_43] : memref<1x64x64xbf16, #tpu.memory_space<vmem>>, vector<1x64x64xbf16>
    %115 = vector.shape_cast %114 : vector<1x64x64xbf16> to vector<64x64xbf16>
    %cst_44 = arith.constant dense<0.000000e+00> : vector<128x64xf32>
    %116 = tpu.matmul %113, %115, %cst_44 {dimension_numbers = #tpu.dot_dimension_numbers<[1], [0], [0], [1], [0, 0, 1, 1], [], []>} : vector<128x64xbf16>, vector<64x64xbf16>, vector<128x64xf32> -> vector<128x64xf32>
    %117 = arith.addf %4, %116 : vector<128x64xf32>
    %c0_45 = arith.constant 0 : index
    %c0_46 = arith.constant 0 : index
    %c0_47 = arith.constant 0 : index
    %118 = vector.load %arg16[%c0_45, %c0_46, %c0_47] : memref<1x1x64xf32, #tpu.memory_space<vmem>>, vector<1x1x64xf32>
    %119 = vector.shape_cast %118 : vector<1x1x64xf32> to vector<1x64xf32>
    %120 = vector.broadcast %119 : vector<1x64xf32> to vector<128x64xf32>
    %121 = arith.addf %117, %120 : vector<128x64xf32>
    %c0_48 = arith.constant 0 : index
    %c0_49 = arith.constant 0 : index
    %c0_50 = arith.constant 0 : index
    %122 = vector.load %arg17[%c0_48, %c0_49, %c0_50] : memref<1x1x64xf32, #tpu.memory_space<vmem>>, vector<1x1x64xf32>
    %123 = vector.shape_cast %122 : vector<1x1x64xf32> to vector<1x64xf32>
    %c0_51 = arith.constant 0 : index
    %c0_52 = arith.constant 0 : index
    %c0_53 = arith.constant 0 : index
    %124 = vector.load %arg18[%c0_51, %c0_52, %c0_53] : memref<1x1x64xf32, #tpu.memory_space<vmem>>, vector<1x1x64xf32>
    %125 = vector.shape_cast %124 : vector<1x1x64xf32> to vector<1x64xf32>
    %cst_54 = arith.constant dense<0.000000e+00> : vector<128xf32>
    %126 = vector.multi_reduction <add>, %121, %cst_54 [1] : vector<128x64xf32> to vector<128xf32>
    %127 = vector.shape_cast %126 : vector<128xf32> to vector<128x1xf32>
    %cst_55 = arith.constant 6.400000e+01 : f32
    %128 = vector.broadcast %cst_55 : f32 to vector<128x1xf32>
    %129 = arith.divf %127, %128 : vector<128x1xf32>
    %130 = vector.broadcast %129 : vector<128x1xf32> to vector<128x64xf32>
    %131 = arith.subf %121, %130 : vector<128x64xf32>
    %132 = arith.mulf %131, %131 : vector<128x64xf32>
    %cst_56 = arith.constant dense<0.000000e+00> : vector<128xf32>
    %133 = vector.multi_reduction <add>, %132, %cst_56 [1] : vector<128x64xf32> to vector<128xf32>
    %134 = vector.shape_cast %133 : vector<128xf32> to vector<128x1xf32>
    %cst_57 = arith.constant 6.400000e+01 : f32
    %135 = vector.broadcast %cst_57 : f32 to vector<128x1xf32>
    %136 = arith.divf %134, %135 : vector<128x1xf32>
    %cst_58 = arith.constant 9.99999997E-7 : f32
    %137 = vector.broadcast %cst_58 : f32 to vector<128x1xf32>
    %138 = arith.addf %136, %137 : vector<128x1xf32>
    %139 = math.rsqrt %138 : vector<128x1xf32>
    %140 = vector.broadcast %139 : vector<128x1xf32> to vector<128x64xf32>
    %141 = arith.mulf %131, %140 : vector<128x64xf32>
    %142 = vector.broadcast %123 : vector<1x64xf32> to vector<128x64xf32>
    %143 = arith.mulf %141, %142 : vector<128x64xf32>
    %144 = vector.broadcast %125 : vector<1x64xf32> to vector<128x64xf32>
    %145 = arith.addf %143, %144 : vector<128x64xf32>
    %146 = arith.truncf %145 : vector<128x64xf32> to vector<128x64xbf16>
    %c0_59 = arith.constant 0 : index
    %c0_60 = arith.constant 0 : index
    %c0_61 = arith.constant 0 : index
    %147 = vector.load %arg19[%c0_59, %c0_60, %c0_61] : memref<1x64x256xbf16, #tpu.memory_space<vmem>>, vector<1x64x256xbf16>
    %148 = vector.shape_cast %147 : vector<1x64x256xbf16> to vector<64x256xbf16>
    %cst_62 = arith.constant dense<0.000000e+00> : vector<128x256xf32>
    %149 = tpu.matmul %146, %148, %cst_62 {dimension_numbers = #tpu.dot_dimension_numbers<[1], [0], [0], [1], [0, 0, 1, 1], [], []>} : vector<128x64xbf16>, vector<64x256xbf16>, vector<128x256xf32> -> vector<128x256xf32>
    %c0_63 = arith.constant 0 : index
    %c0_64 = arith.constant 0 : index
    %c0_65 = arith.constant 0 : index
    %150 = vector.load %arg20[%c0_63, %c0_64, %c0_65] : memref<1x1x256xf32, #tpu.memory_space<vmem>>, vector<1x1x256xf32>
    %151 = vector.shape_cast %150 : vector<1x1x256xf32> to vector<1x256xf32>
    %152 = vector.broadcast %151 : vector<1x256xf32> to vector<128x256xf32>
    %153 = arith.addf %149, %152 : vector<128x256xf32>
    %cst_66 = arith.constant 5.000000e-01 : f32
    %154 = vector.broadcast %cst_66 : f32 to vector<128x256xf32>
    %155 = arith.mulf %154, %153 : vector<128x256xf32>
    %cst_67 = arith.constant 0.707106769 : f32
    %156 = vector.broadcast %cst_67 : f32 to vector<128x256xf32>
    %157 = arith.mulf %153, %156 : vector<128x256xf32>
    %158 = math.absf %157 : vector<128x256xf32>
    %cst_68 = arith.constant 0.327591091 : f32
    %159 = vector.broadcast %cst_68 : f32 to vector<128x256xf32>
    %160 = arith.mulf %159, %158 : vector<128x256xf32>
    %cst_69 = arith.constant 1.000000e+00 : f32
    %161 = vector.broadcast %cst_69 : f32 to vector<128x256xf32>
    %162 = arith.addf %161, %160 : vector<128x256xf32>
    %163 = tpu.reciprocal %162 {approx = true} : vector<128x256xf32> -> vector<128x256xf32>
    %cst_70 = arith.constant 1.06140542 : f32
    %164 = vector.broadcast %cst_70 : f32 to vector<128x256xf32>
    %165 = arith.mulf %164, %163 : vector<128x256xf32>
    %cst_71 = arith.constant -1.45315206 : f32
    %166 = vector.broadcast %cst_71 : f32 to vector<128x256xf32>
    %167 = arith.addf %165, %166 : vector<128x256xf32>
    %168 = arith.mulf %167, %163 : vector<128x256xf32>
    %cst_72 = arith.constant 1.42141378 : f32
    %169 = vector.broadcast %cst_72 : f32 to vector<128x256xf32>
    %170 = arith.addf %168, %169 : vector<128x256xf32>
    %171 = arith.mulf %170, %163 : vector<128x256xf32>
    %cst_73 = arith.constant -0.284496725 : f32
    %172 = vector.broadcast %cst_73 : f32 to vector<128x256xf32>
    %173 = arith.addf %171, %172 : vector<128x256xf32>
    %174 = arith.mulf %173, %163 : vector<128x256xf32>
    %cst_74 = arith.constant 0.254829586 : f32
    %175 = vector.broadcast %cst_74 : f32 to vector<128x256xf32>
    %176 = arith.addf %174, %175 : vector<128x256xf32>
    %177 = arith.mulf %176, %163 : vector<128x256xf32>
    %cst_75 = arith.constant 0.000000e+00 : f32
    %178 = vector.broadcast %cst_75 : f32 to vector<128x256xf32>
    %179 = arith.subf %178, %158 : vector<128x256xf32>
    %180 = arith.mulf %179, %158 : vector<128x256xf32>
    %181 = math.exp %180 : vector<128x256xf32>
    %182 = arith.mulf %177, %181 : vector<128x256xf32>
    %cst_76 = arith.constant 1.000000e+00 : f32
    %183 = vector.broadcast %cst_76 : f32 to vector<128x256xf32>
    %184 = arith.subf %183, %182 : vector<128x256xf32>
    %cst_77 = arith.constant 0.000000e+00 : f32
    %185 = vector.broadcast %cst_77 : f32 to vector<128x256xf32>
    %186 = arith.cmpf oge, %157, %185 : vector<128x256xf32>
    %cst_78 = arith.constant 0.000000e+00 : f32
    %187 = vector.broadcast %cst_78 : f32 to vector<128x256xf32>
    %188 = arith.subf %187, %184 : vector<128x256xf32>
    %189 = arith.select %186, %184, %188 : vector<128x256xi1>, vector<128x256xf32>
    %cst_79 = arith.constant 1.000000e+00 : f32
    %190 = vector.broadcast %cst_79 : f32 to vector<128x256xf32>
    %191 = arith.addf %190, %189 : vector<128x256xf32>
    %192 = arith.mulf %155, %191 : vector<128x256xf32>
    %193 = arith.truncf %192 : vector<128x256xf32> to vector<128x256xbf16>
    %c0_80 = arith.constant 0 : index
    %c0_81 = arith.constant 0 : index
    %c0_82 = arith.constant 0 : index
    %194 = vector.load %arg21[%c0_80, %c0_81, %c0_82] : memref<1x256x64xbf16, #tpu.memory_space<vmem>>, vector<1x256x64xbf16>
    %195 = vector.shape_cast %194 : vector<1x256x64xbf16> to vector<256x64xbf16>
    %cst_83 = arith.constant dense<0.000000e+00> : vector<128x64xf32>
    %196 = tpu.matmul %193, %195, %cst_83 {dimension_numbers = #tpu.dot_dimension_numbers<[1], [0], [0], [1], [0, 0, 1, 1], [], []>} : vector<128x256xbf16>, vector<256x64xbf16>, vector<128x64xf32> -> vector<128x64xf32>
    %c0_84 = arith.constant 0 : index
    %c0_85 = arith.constant 0 : index
    %c0_86 = arith.constant 0 : index
    %197 = vector.load %arg22[%c0_84, %c0_85, %c0_86] : memref<1x1x64xf32, #tpu.memory_space<vmem>>, vector<1x1x64xf32>
    %198 = vector.shape_cast %197 : vector<1x1x64xf32> to vector<1x64xf32>
    %199 = vector.broadcast %198 : vector<1x64xf32> to vector<128x64xf32>
    %200 = arith.addf %196, %199 : vector<128x64xf32>
    %201 = arith.addf %121, %200 : vector<128x64xf32>
    %202 = vector.shape_cast %201 : vector<128x64xf32> to vector<16x8x64xf32>
    %c0_87 = arith.constant 0 : index
    %c0_88 = arith.constant 0 : index
    %c0_89 = arith.constant 0 : index
    %203 = vector.load %arg28[%c0_87, %c0_88, %c0_89] : memref<16x8x64xf32, #tpu.memory_space<vmem>>, vector<16x8x64xf32>
    tpu.vector_store %arg28[%c0_87, %c0_88, %c0_89], %202 {strides = array<i32>} : memref<16x8x64xf32, #tpu.memory_space<vmem>>, vector<16x8x64xf32>,
    %c1_i32 = arith.constant 1 : i32
    %204 = arith.cmpi eq, %arg1, %c1_i32 : i32
    %205 = arith.extui %204 : i1 to i32
    %c0_i32_90 = arith.constant 0 : i32
    %206 = arith.cmpi ne, %205, %c0_i32_90 : i32
    scf.if %206 {
      %207 = vector.extract_strided_slice %202 {offsets = [0, 0, 0], sizes = [16, 1, 64], strides = [1, 1, 1]} : vector<16x8x64xf32> to vector<16x1x64xf32>
      %208 = vector.shape_cast %207 : vector<16x1x64xf32> to vector<16x64xf32>
      %c0_91 = arith.constant 0 : index
      %c0_92 = arith.constant 0 : index
      %209 = vector.load %arg23[%c0_91, %c0_92] : memref<1x64xf32, #tpu.memory_space<vmem>>, vector<1x64xf32>
      %c0_93 = arith.constant 0 : index
      %c0_94 = arith.constant 0 : index
      %210 = vector.load %arg24[%c0_93, %c0_94] : memref<1x64xf32, #tpu.memory_space<vmem>>, vector<1x64xf32>
      %cst_95 = arith.constant dense<0.000000e+00> : vector<16xf32>
      %211 = vector.multi_reduction <add>, %208, %cst_95 [1] : vector<16x64xf32> to vector<16xf32>
      %212 = vector.shape_cast %211 : vector<16xf32> to vector<16x1xf32>
      %cst_96 = arith.constant 6.400000e+01 : f32
      %213 = vector.broadcast %cst_96 : f32 to vector<16x1xf32>
      %214 = arith.divf %212, %213 : vector<16x1xf32>
      %215 = vector.broadcast %214 : vector<16x1xf32> to vector<16x64xf32>
      %216 = arith.subf %208, %215 : vector<16x64xf32>
      %217 = arith.mulf %216, %216 : vector<16x64xf32>
      %cst_97 = arith.constant dense<0.000000e+00> : vector<16xf32>
      %218 = vector.multi_reduction <add>, %217, %cst_97 [1] : vector<16x64xf32> to vector<16xf32>
      %219 = vector.shape_cast %218 : vector<16xf32> to vector<16x1xf32>
      %cst_98 = arith.constant 6.400000e+01 : f32
      %220 = vector.broadcast %cst_98 : f32 to vector<16x1xf32>
      %221 = arith.divf %219, %220 : vector<16x1xf32>
      %cst_99 = arith.constant 9.99999997E-7 : f32
      %222 = vector.broadcast %cst_99 : f32 to vector<16x1xf32>
      %223 = arith.addf %221, %222 : vector<16x1xf32>
      %224 = math.rsqrt %223 : vector<16x1xf32>
      %225 = vector.broadcast %224 : vector<16x1xf32> to vector<16x64xf32>
      %226 = arith.mulf %216, %225 : vector<16x64xf32>
      %227 = vector.broadcast %209 : vector<1x64xf32> to vector<16x64xf32>
      %228 = arith.mulf %226, %227 : vector<16x64xf32>
      %229 = vector.broadcast %210 : vector<1x64xf32> to vector<16x64xf32>
      %230 = arith.addf %228, %229 : vector<16x64xf32>
      %231 = arith.truncf %230 : vector<16x64xf32> to vector<16x64xbf16>
      %c0_100 = arith.constant 0 : index
      %c0_101 = arith.constant 0 : index
      %232 = vector.load %arg25[%c0_100, %c0_101] : memref<64x128xbf16, #tpu.memory_space<vmem>>, vector<64x128xbf16>
      %cst_102 = arith.constant dense<0.000000e+00> : vector<16x128xf32>
      %233 = tpu.matmul %231, %232, %cst_102 {dimension_numbers = #tpu.dot_dimension_numbers<[1], [0], [0], [1], [0, 0, 1, 1], [], []>} : vector<16x64xbf16>, vector<64x128xbf16>, vector<16x128xf32> -> vector<16x128xf32>
      %c0_103 = arith.constant 0 : index
      %c0_104 = arith.constant 0 : index
      %234 = vector.load %arg26[%c0_103, %c0_104] : memref<1x128xf32, #tpu.memory_space<vmem>>, vector<1x128xf32>
      %235 = vector.broadcast %234 : vector<1x128xf32> to vector<16x128xf32>
      %236 = arith.addf %233, %235 : vector<16x128xf32>
      %c0_105 = arith.constant 0 : index
      %c0_106 = arith.constant 0 : index
      %237 = vector.load %arg27[%c0_105, %c0_106] : memref<16x128xf32, #tpu.memory_space<vmem>>, vector<16x128xf32>
      tpu.vector_store %arg27[%c0_105, %c0_106], %236 {strides = array<i32>} : memref<16x128xf32, #tpu.memory_space<vmem>>, vector<16x128xf32>,
    } else {
    }
    return
  }
  func.func @transform_0(%arg0: i32, %arg1: i32) -> (i32, i32, i32) {
    %c0_i32 = arith.constant 0 : i32
    %c0_i32_0 = arith.constant 0 : i32
    %c0_i32_1 = arith.constant 0 : i32
    return %arg0, %c0_i32, %c0_i32_0 : i32, i32, i32
  }
  func.func @transform_1(%arg0: i32, %arg1: i32) -> (i32, i32) {
    %c0_i32 = arith.constant 0 : i32
    %c0_i32_0 = arith.constant 0 : i32
    %c0_i32_1 = arith.constant 0 : i32
    return %c0_i32, %c0_i32_0 : i32, i32
  }
  func.func @transform_2(%arg0: i32, %arg1: i32) -> (i32, i32) {
    %c0_i32 = arith.constant 0 : i32
    %c0_i32_0 = arith.constant 0 : i32
    %c0_i32_1 = arith.constant 0 : i32
    return %c0_i32, %c0_i32_0 : i32, i32
  }
  func.func @transform_3(%arg0: i32, %arg1: i32) -> (i32, i32) {
    %c0_i32 = arith.constant 0 : i32
    %c0_i32_0 = arith.constant 0 : i32
    %c0_i32_1 = arith.constant 0 : i32
    return %c0_i32, %c0_i32_0 : i32, i32
  }
  func.func @transform_4(%arg0: i32, %arg1: i32) -> (i32, i32, i32) {
    %c0_i32 = arith.constant 0 : i32
    %c0_i32_0 = arith.constant 0 : i32
    %c0_i32_1 = arith.constant 0 : i32
    %c0_i32_2 = arith.constant 0 : i32
    return %c0_i32, %c0_i32_0, %c0_i32_1 : i32, i32, i32
  }
  func.func @transform_5(%arg0: i32, %arg1: i32) -> (i32, i32, i32) {
    %c0_i32 = arith.constant 0 : i32
    %c0_i32_0 = arith.constant 0 : i32
    %c0_i32_1 = arith.constant 0 : i32
    return %arg1, %c0_i32, %c0_i32_0 : i32, i32, i32
  }
  func.func @transform_6(%arg0: i32, %arg1: i32) -> (i32, i32, i32) {
    %c0_i32 = arith.constant 0 : i32
    %c0_i32_0 = arith.constant 0 : i32
    %c0_i32_1 = arith.constant 0 : i32
    return %arg1, %c0_i32, %c0_i32_0 : i32, i32, i32
  }
  func.func @transform_7(%arg0: i32, %arg1: i32) -> (i32, i32, i32) {
    %c0_i32 = arith.constant 0 : i32
    %c0_i32_0 = arith.constant 0 : i32
    %c0_i32_1 = arith.constant 0 : i32
    return %arg1, %c0_i32, %c0_i32_0 : i32, i32, i32
  }
  func.func @transform_8(%arg0: i32, %arg1: i32) -> (i32, i32, i32) {
    %c0_i32 = arith.constant 0 : i32
    %c0_i32_0 = arith.constant 0 : i32
    %c0_i32_1 = arith.constant 0 : i32
    return %arg1, %c0_i32, %c0_i32_0 : i32, i32, i32
  }
  func.func @transform_9(%arg0: i32, %arg1: i32) -> (i32, i32, i32) {
    %c0_i32 = arith.constant 0 : i32
    %c0_i32_0 = arith.constant 0 : i32
    %c0_i32_1 = arith.constant 0 : i32
    return %arg1, %c0_i32, %c0_i32_0 : i32, i32, i32
  }
  func.func @transform_10(%arg0: i32, %arg1: i32) -> (i32, i32, i32) {
    %c0_i32 = arith.constant 0 : i32
    %c0_i32_0 = arith.constant 0 : i32
    %c0_i32_1 = arith.constant 0 : i32
    return %arg1, %c0_i32, %c0_i32_0 : i32, i32, i32
  }
  func.func @transform_11(%arg0: i32, %arg1: i32) -> (i32, i32, i32) {
    %c0_i32 = arith.constant 0 : i32
    %c0_i32_0 = arith.constant 0 : i32
    %c0_i32_1 = arith.constant 0 : i32
    return %arg1, %c0_i32, %c0_i32_0 : i32, i32, i32
  }
  func.func @transform_12(%arg0: i32, %arg1: i32) -> (i32, i32, i32) {
    %c0_i32 = arith.constant 0 : i32
    %c0_i32_0 = arith.constant 0 : i32
    %c0_i32_1 = arith.constant 0 : i32
    return %arg1, %c0_i32, %c0_i32_0 : i32, i32, i32
  }
  func.func @transform_13(%arg0: i32, %arg1: i32) -> (i32, i32, i32) {
    %c0_i32 = arith.constant 0 : i32
    %c0_i32_0 = arith.constant 0 : i32
    %c0_i32_1 = arith.constant 0 : i32
    return %arg1, %c0_i32, %c0_i32_0 : i32, i32, i32
  }
  func.func @transform_14(%arg0: i32, %arg1: i32) -> (i32, i32, i32) {
    %c0_i32 = arith.constant 0 : i32
    %c0_i32_0 = arith.constant 0 : i32
    %c0_i32_1 = arith.constant 0 : i32
    return %arg1, %c0_i32, %c0_i32_0 : i32, i32, i32
  }
  func.func @transform_15(%arg0: i32, %arg1: i32) -> (i32, i32, i32) {
    %c0_i32 = arith.constant 0 : i32
    %c0_i32_0 = arith.constant 0 : i32
    %c0_i32_1 = arith.constant 0 : i32
    return %arg1, %c0_i32, %c0_i32_0 : i32, i32, i32
  }
  func.func @transform_16(%arg0: i32, %arg1: i32) -> (i32, i32, i32) {
    %c0_i32 = arith.constant 0 : i32
    %c0_i32_0 = arith.constant 0 : i32
    %c0_i32_1 = arith.constant 0 : i32
    return %arg1, %c0_i32, %c0_i32_0 : i32, i32, i32
  }
  func.func @transform_17(%arg0: i32, %arg1: i32) -> (i32, i32, i32) {
    %c0_i32 = arith.constant 0 : i32
    %c0_i32_0 = arith.constant 0 : i32
    %c0_i32_1 = arith.constant 0 : i32
    return %arg1, %c0_i32, %c0_i32_0 : i32, i32, i32
  }
  func.func @transform_18(%arg0: i32, %arg1: i32) -> (i32, i32, i32) {
    %c0_i32 = arith.constant 0 : i32
    %c0_i32_0 = arith.constant 0 : i32
    %c0_i32_1 = arith.constant 0 : i32
    return %arg1, %c0_i32, %c0_i32_0 : i32, i32, i32
  }
  func.func @transform_19(%arg0: i32, %arg1: i32) -> (i32, i32, i32) {
    %c0_i32 = arith.constant 0 : i32
    %c0_i32_0 = arith.constant 0 : i32
    %c0_i32_1 = arith.constant 0 : i32
    return %arg1, %c0_i32, %c0_i32_0 : i32, i32, i32
  }
  func.func @transform_20(%arg0: i32, %arg1: i32) -> (i32, i32, i32) {
    %c0_i32 = arith.constant 0 : i32
    %c0_i32_0 = arith.constant 0 : i32
    %c0_i32_1 = arith.constant 0 : i32
    return %arg1, %c0_i32, %c0_i32_0 : i32, i32, i32
  }
  func.func @transform_21(%arg0: i32, %arg1: i32) -> (i32, i32) {
    %c0_i32 = arith.constant 0 : i32
    %c0_i32_0 = arith.constant 0 : i32
    %c0_i32_1 = arith.constant 0 : i32
    return %c0_i32, %c0_i32_0 : i32, i32
  }
  func.func @transform_22(%arg0: i32, %arg1: i32) -> (i32, i32) {
    %c0_i32 = arith.constant 0 : i32
    %c0_i32_0 = arith.constant 0 : i32
    %c0_i32_1 = arith.constant 0 : i32
    return %c0_i32, %c0_i32_0 : i32, i32
  }
  func.func @transform_23(%arg0: i32, %arg1: i32) -> (i32, i32) {
    %c0_i32 = arith.constant 0 : i32
    %c0_i32_0 = arith.constant 0 : i32
    %c0_i32_1 = arith.constant 0 : i32
    return %c0_i32, %c0_i32_0 : i32, i32
  }
  func.func @transform_24(%arg0: i32, %arg1: i32) -> (i32, i32) {
    %c0_i32 = arith.constant 0 : i32
    %c0_i32_0 = arith.constant 0 : i32
    %c0_i32_1 = arith.constant 0 : i32
    return %c0_i32, %c0_i32_0 : i32, i32
  }
  func.func @transform_25(%arg0: i32, %arg1: i32) -> (i32, i32) {
    %c0_i32 = arith.constant 0 : i32
    %c0_i32_0 = arith.constant 0 : i32
    return %arg0, %c0_i32 : i32, i32
  }
}

</mosaic_0001>

<bundles_post_ra>
// kernel: vit_forward.1
= control target key start
LH: loop header
LB: loop body
LE: loop exit
PB: predicated region body
PF: predicated region fallthrough
CT: control target
= control target key end

     0   :  { %s21731_s0 = inlined_call_operand.hbm [shape: f32[16,4,192], index: 0, kind: input, shape index: {}]   ;;  %s21732_s1 = inlined_call_operand.hbm [shape: bf16[192,64], index: 1, kind: input, shape index: {}]   ;;  %s21733_s2 = inlined_call_operand.hbm [shape: f32[1,64], index: 2, kind: input, shape index: {}]   ;;  %s21734_s3 = inlined_call_operand.hbm [shape: f32[1,64], index: 3, kind: input, shape index: {}]   ;;  %s21735_s4 = inlined_call_operand.hbm [shape: f32[1,8,64], index: 4, kind: input, shape index: {}]   ;;  %s21736_s5 = inlined_call_operand.hbm [shape: f32[2,1,64], index: 5, kind: input, shape index: {}]   ;;  %s21737_s6 = inlined_call_operand.hbm [shape: f32[2,1,64], index: 6, kind: input, shape index: {}]   ;;  %s21738_s7 = inlined_call_operand.hbm [shape: bf16[2,64,64], index: 7, kind: input, shape index: {}]   ;;  %s21739_s8 = inlined_call_operand.hbm [shape: f32[2,1,64], index: 8, kind: input, shape index: {}]   ;;  %s21740_s9 = inlined_call_operand.hbm [shape: bf16[2,64,64], index: 9, kind: input, shape index: {}]   ;;  %s21741_s10 = inlined_call_operand.hbm [shape: f32[2,1,64], index: 10, kind: input, shape index: {}]   ;;  %s21742_s11 = inlined_call_operand.hbm [shape: bf16[2,64,64], index: 11, kind: input, shape index: {}]   ;;  %s21743_s12 = inlined_call_operand.hbm [shape: f32[2,1,64], index: 12, kind: input, shape index: {}]   ;;  %s21744_s13 = inlined_call_operand.hbm [shape: bf16[2,64,64], index: 13, kind: input, shape index: {}]   ;;  %s21745_s14 = inlined_call_operand.hbm [shape: f32[2,1,64], index: 14, kind: input, shape index: {}]   ;;  %s21746_s15 = inlined_call_operand.hbm [shape: f32[2,1,64], index: 15, kind: input, shape index: {}]   ;;  %s21747_s16 = inlined_call_operand.hbm [shape: f32[2,1,64], index: 16, kind: input, shape index: {}]   ;;  %s21748_s17 = inlined_call_operand.hbm [shape: bf16[2,64,256], index: 17, kind: input, shape index: {}]   ;;  %s21749_s18 = inlined_call_operand.hbm [shape: f32[2,1,256], index: 18, kind: input, shape index: {}]   ;;  %s21750_s19 = inlined_call_operand.hbm [shape: bf16[2,256,64], index: 19, kind: input, shape index: {}]   ;;  %s21751_s20 = inlined_call_operand.hbm [shape: f32[2,1,64], index: 20, kind: input, shape index: {}]   ;;  %s21752_s21 = inlined_call_operand.hbm [shape: f32[1,64], index: 21, kind: input, shape index: {}]   ;;  %s21753_s22 = inlined_call_operand.hbm [shape: f32[1,64], index: 22, kind: input, shape index: {}]   ;;  %s21754_s23 = inlined_call_operand.hbm [shape: bf16[64,128], index: 23, kind: input, shape index: {}]   ;;  %s21755_s24 = inlined_call_operand.hbm [shape: f32[1,128], index: 24, kind: input, shape index: {}]   ;;  %s21756_s25 = inlined_call_operand.hbm [shape: f32[16,128], index: 25, kind: output, shape index: {}]  }
   0x1   :  { %21881 = sst [smem:[#allocation114_spill]] %s21731_s0 }
   0x2   :  { %21882 = sst [smem:[#allocation115_spill]] %s21732_s1 }
   0x3   :  { %21883 = sst [smem:[#allocation116_spill]] %s21733_s2 }
   0x4   :  { %21884 = sst [smem:[#allocation117_spill]] %s21734_s3 }
   0x5   :  { %21885 = sst [smem:[#allocation118_spill]] %s21735_s4 }
   0x6   :  { %21886 = sst [smem:[#allocation119_spill]] %s21736_s5 }
   0x7   :  { %21887 = sst [smem:[#allocation120_spill]] %s21737_s6 }
   0x8   :  { %21888 = sst [smem:[#allocation121_spill]] %s21738_s7 }
   0x9   :  { %21889 = sst [smem:[#allocation122_spill]] %s21739_s8 }
   0xa   :  { %21890 = sst [smem:[#allocation123_spill]] %s21740_s9 }
   0xb   :  { %21891 = sst [smem:[#allocation124_spill]] %s21741_s10 }
   0xc   :  { %21892 = sst [smem:[#allocation125_spill]] %s21742_s11 }
   0xd   :  { %21893 = sst [smem:[#allocation126_spill]] %s21743_s12 }
   0xe   :  { %21894 = sst [smem:[#allocation127_spill]] %s21744_s13 }
   0xf   :  { %21895 = sst [smem:[#allocation128_spill]] %s21745_s14 }
  0x10   :  { %21896 = sst [smem:[#allocation129_spill]] %s21747_s16 }
  0x11   :  { %21897 = sst [smem:[#allocation130_spill]] %s21749_s18 }
  0x12   :  { %21898 = sst [smem:[#allocation131_spill]] %s21751_s20 }
  0x13   :  { %21899 = sst [smem:[#allocation132_spill]] %s21752_s21 }
  0x14   :  { %21900 = sst [smem:[#allocation133_spill]] %s21754_s23 }
  0x15   :  { %21901 = sst [smem:[#allocation134_spill]] %s21756_s25 }
  0x16   :  { %30 = vsyncpa [#allocation4], 0 }
  0x17   :  { %31 = vsyncpa [#allocation7], 0 }
  0x18   :  { %32 = vsyncpa [#allocation10], 0 }
  0x19   :  { %33 = vsyncpa [#allocation13], 0 }
  0x1a   :  { %35 = vsyncpa [#allocation13 + $0x1], 0 }
  0x1b   :  { %36 = vsyncpa [#allocation16], 0 }
  0x1c   :  { %38 = vsyncpa [#allocation16 + $0x1], 0 }
  0x1d   :  { %39 = vsyncpa [#allocation19], 0 }
  0x1e   :  { %41 = vsyncpa [#allocation19 + $0x1], 0 }
  0x1f   :  { %42 = vsyncpa [#allocation22], 0 }
  0x20   :  { %44 = vsyncpa [#allocation22 + $0x1], 0 }
  0x21   :  { %45 = vsyncpa [#allocation25], 0 }
  0x22   :  { %47 = vsyncpa [#allocation25 + $0x1], 0 }
  0x23   :  { %48 = vsyncpa [#allocation28], 0 }
  0x24   :  { %50 = vsyncpa [#allocation28 + $0x1], 0 }
  0x25   :  { %51 = vsyncpa [#allocation31], 0 }
  0x26   :  { %53 = vsyncpa [#allocation31 + $0x1], 0 }
  0x27   :  { %54 = vsyncpa [#allocation34], 0 }
  0x28   :  { %56 = vsyncpa [#allocation34 + $0x1], 0 }
  0x29   :  { %57 = vsyncpa [#allocation37], 0 }
  0x2a   :  { %58 = vsyncpa [#allocation40], 0 }
  0x2b   :  { %59 = vsyncpa [#allocation5], 0  ;;  %s16738_s29 = smov 0   ;;  %s16740_s2 = smov 0  }
  0x2c   :  { %s16742_s6 = smov 0   ;;  %s16744_s30 = smov 0  }
  0x2d   :  { %s16746_s7 = smov 0   ;;  %s16748_s3 = smov 0  }
  0x2e LB: > { %21902 = sst [smem:[#allocation57_spill]] %s16541_s2  ;;  %s16767_s26 = sadd.s32 4294967295, %s16557_s3   ;;  %s16557_s3 = sphi %s16748_s3, %s65_s3   ;;  %s16553_s7 = sphi %s16746_s7, %s22166_s7   ;;  %s16549_s30 = sphi %s16744_s30, %s22165_s30   ;;  %s16545_s6 = sphi %s16742_s6, %s22164_s6   ;;  %s16541_s2 = sphi %s16740_s2, %s22163_s2   ;;  %s16537_s29 = sphi %s16738_s29, %s22160_s29  }
  0x2f   : > { %21903 = sst [smem:[#allocation58_spill]] %s16549_s30  ;;  %s74_s1 = sadd.s32 1, %s16553_s7 }
  0x30   : > { %21904 = sst [smem:[#allocation59_spill]] %s16767_s26  ;;  %p75_p0 = scmp.ge.s32.totalorder %s74_s1, 2 }
  0x31   : > { %s194_s8 = sadd.s32 1, %s16545_s6  ;;  %p201_p1 = scmp.ne.s32.totalorder %s16545_s6, %s16541_s2 }
  0x32   : > { %p202_p2 = scmp.eq.s32.totalorder %s16557_s3, 0  ;;  %s22168_s1 = smov (%p75_p0, %s74_s1), 0 }
  0x33   : > { %21905 = sst [smem:[#allocation60_spill]] %s22168_s1  ;;  %p207_p4 = scmp.ne.s32.totalorder %s16541_s2, %s16537_s29 }
  0x34   : > { %p16776_p3 = por %p202_p2, %p201_p1  ;;  %s191_s4 = ssub.s32 %s16553_s7, %s22168_s1 }
  0x35   : > { %p21777_p5 = scmp.eq.s32.totalorder %s16767_s26, 0  ;;  %p192_p6 = scmp.eq.s32.totalorder %s191_s4, 0 }
  0x36   : > { %s21906_s27 = scalar_select %p16776_p3, 1, 0 }
  0x37   : > { %p12902_p7 = scmp.ge.s32.totalorder %s16557_s3, 1  ;;  %p16787_p8 = por %p21777_p5, %p207_p4 }
  0x38   : > { %p718_p9 = scmp.lt.s32.totalorder %s16557_s3, 3  ;;  %s16559_s0 = smov [#allocation6]  }
  0x39   : > { %s21907_s28 = scalar_select %p16787_p8, 1, 0 }
  0x3a   : > { %s16793_s9 = scalar_select %p192_p6, %s16545_s6, %s194_s8  }
  0x3b   : > { %21908 = sst [smem:[#allocation61_spill]] %s21907_s28  ;;  %p16795_p10 = pnand %p12902_p7, %p718_p9 }
  0x3c   : > { %21909 = sst [smem:[#allocation62_spill]] %s16793_s9  ;;  %s747_s29 = sshll.u32 %s16559_s0, 4  ;;  %s748_s29 = int_to_ptr.vmem [resolvable:$true] %s747_s29 }
  0x3d   : > { %s21910_s5 = scalar_select %p16795_p10, 1, 0 }
  0x3e   : > { %p14568_p11 = pneg %p16795_p10  ;;  %s16560_s1 = smov [#allocation9]  }
  0x3f   : > { %21911 = sst [smem:[#allocation63_spill]] %s21910_s5  ;;  %s772_s25 = sshll.u32 %s16560_s1, 4  ;;  %s16807_s25 = int_to_ptr.vmem [resolvable:$true] %s772_s25 }
  0x40   : > { %p16803_p12 = pnand %p14568_p11, %p21777_p5  ;;  %s21913_s30 = sld [smem:[#allocation115_spill]] }
  0x42   : > { %p16817_p0 = pneg %p16803_p12 }
  0x46   : > { %s21914_s28 = smov %s21913_s30  ;;  %s15729_s2 = scalar_lea.hbm %s21913_s30, 1536 }
  0x47   : > { %p15730_p13 = scmp.ne.s32.totalorder %s21914_s28, %s15729_s2  ;;  %p15736_p4 = scmp.lt.u32.totalorder %s15729_s2, %s21914_s28 }
  0x49   : > { %p15732_p1 = pnand %p16817_p0, %p15730_p13 }
  0x4b   : > { %p15733_p2 = pneg %p15732_p1 }
  0x4d   : > { %p15738_p6 = pnand %p15736_p4, %p15733_p2 }
  0x4f   : > { %15741 = shalt.err (!%p15738_p6)
}
  0x50   : > { %s15742_s30 = scalar_lea.vmem %s748_s29, 1536  ;;  %p15750_p5 = scmp.lt.s32.totalorder %s748_s29, %s748_s29 }
  0x51   : > { %p15743_p7 = scmp.ne.s32.totalorder %s748_s29, %s15742_s30  ;;  %p15751_p8 = scmp.lt.s32.totalorder %s15742_s30, %s15742_s30 }
  0x53   : > { %p15745_p9 = pnand %p15743_p7, %p16817_p0  ;;  %p15752_p10 = por %p15751_p8, %p15750_p5 }
  0x55   : > { %p15746_p11 = pneg %p15745_p9 }
  0x57   : > { %p15753_p3 = pnand %p15752_p10, %p15746_p11 }
  0x59   : > { %15756 = shalt.err (!%p15753_p3)
}
  0x5a   : > { %s21785_s20 = smov 64   ;;  %s21786_s9 = smov 4  }
  0x5b   : > { %14574 = dma.hbm_to_vmem [thread:$0]  (!%p16803_p12), %s21914_s28, 1536, %s748_s29, [#allocation7], %s21785_s20, %s21785_s20, %s21786_s9  }
  0x5c   : > { %s21916_s1 = sld [smem:[#allocation117_spill]] }
  0x62   : > { %s15757_s18 = scalar_lea.hbm %s21916_s1, 16 }
  0x63   : > { %p15758_p3 = scmp.ne.s32.totalorder %s21916_s1, %s15757_s18  ;;  %p15764_p10 = scmp.lt.u32.totalorder %s15757_s18, %s21916_s1 }
  0x65   : > { %p15760_p5 = pnand %p15758_p3, %p16817_p0 }
  0x67   : > { %p15761_p8 = pneg %p15760_p5 }
  0x69   : > { %p15766_p13 = pnand %p15764_p10, %p15761_p8 }
  0x6b   : > { %15769 = shalt.err (!%p15766_p13)
}
  0x6c   : > { %s15770_s29 = scalar_lea.vmem %s16807_s25, 16  ;;  %s15777_s16 = scalar_lea.vmem %s16807_s25, 32 }
  0x6d   : > { %p15771_p1 = scmp.ne.s32.totalorder %s16807_s25, %s15770_s29  ;;  %p15778_p6 = scmp.lt.s32.totalorder %s16807_s25, %s16807_s25 }
  0x6e   : > { %p15779_p7 = scmp.lt.s32.totalorder %s15777_s16, %s15770_s29 }
  0x6f   : > { %p15773_p2 = pnand %p15771_p1, %p16817_p0 }
  0x70   : > { %p15780_p9 = por %p15779_p7, %p15778_p6 }
  0x71   : > { %p15774_p4 = pneg %p15773_p2 }
  0x73   : > { %p15781_p11 = pnand %p15780_p9, %p15774_p4 }
  0x75   : > { %15784 = shalt.err (!%p15781_p11)
}
  0x76   : > { %14580 = dma.hbm_to_vmem [thread:$0]  (!%p16803_p12), %s21916_s1, 16, %s16807_s25, [#allocation10]  }
  0x77   : > { %s16563_s18 = smov [#allocation36]   ;;  %s16564_s26 = smov [#allocation39]  }
  0x78   : > { %s794_s2 = sshll.u32 %s16563_s18, 4  ;;  %s815_s5 = sshll.u32 %s16564_s26, 4  ;;  %s795_s2 = int_to_ptr.vmem [resolvable:$true] %s794_s2  ;;  %s816_s5 = int_to_ptr.vmem [resolvable:$true] %s815_s5 }
  0x79   : > { %s21917_s21 = sld [smem:[#allocation132_spill]] }
  0x7f   : > { %s15785_s29 = scalar_lea.hbm %s21917_s21, 16 }
  0x80   : > { %p15786_p3 = scmp.ne.s32.totalorder %s21917_s21, %s15785_s29  ;;  %p15792_p10 = scmp.lt.u32.totalorder %s15785_s29, %s21917_s21 }
  0x82   : > { %p15788_p5 = pnand %p15786_p3, %p16817_p0 }
  0x84   : > { %p15789_p8 = pneg %p15788_p5 }
  0x86   : > { %p15794_p13 = pnand %p15792_p10, %p15789_p8 }
  0x88   : > { %15797 = shalt.err (!%p15794_p13)
}
  0x89   : > { %s15798_s25 = scalar_lea.vmem %s795_s2, 16  ;;  %s15805_s14 = scalar_lea.vmem %s795_s2, 32 }
  0x8a   : > { %p15799_p1 = scmp.ne.s32.totalorder %s795_s2, %s15798_s25  ;;  %p15806_p6 = scmp.lt.s32.totalorder %s795_s2, %s795_s2 }
  0x8b   : > { %p15807_p7 = scmp.lt.s32.totalorder %s15805_s14, %s15798_s25 }
  0x8c   : > { %p15801_p2 = pnand %p15799_p1, %p16817_p0 }
  0x8d   : > { %p15808_p9 = por %p15807_p7, %p15806_p6 }
  0x8e   : > { %p15802_p4 = pneg %p15801_p2 }
  0x90   : > { %p15809_p11 = pnand %p15808_p9, %p15802_p4 }
  0x92   : > { %15812 = shalt.err (!%p15809_p11)
}
  0x93   : > { %14586 = dma.hbm_to_vmem [thread:$0]  (!%p16803_p12), %s21917_s21, 16, %s795_s2, [#allocation37]  }
  0x94   : > { %s21918_s23 = sld [smem:[#allocation133_spill]] }
  0x9a   : > { %s15813_s8 = scalar_lea.hbm %s21918_s23, 512 }
  0x9b   : > { %p15814_p3 = scmp.ne.s32.totalorder %s21918_s23, %s15813_s8  ;;  %p15820_p10 = scmp.lt.u32.totalorder %s15813_s8, %s21918_s23 }
  0x9d   : > { %p15816_p5 = pnand %p15814_p3, %p16817_p0 }
  0x9f   : > { %p15817_p8 = pneg %p15816_p5 }
  0xa1   : > { %p15822_p13 = pnand %p15820_p10, %p15817_p8 }
  0xa3   : > { %15825 = shalt.err (!%p15822_p13)
}
  0xa4   : > { %s15826_s25 = scalar_lea.vmem %s816_s5, 512  ;;  %p15834_p6 = scmp.lt.s32.totalorder %s816_s5, %s816_s5 }
  0xa5   : > { %p15827_p1 = scmp.ne.s32.totalorder %s816_s5, %s15826_s25  ;;  %p15835_p7 = scmp.lt.s32.totalorder %s15826_s25, %s15826_s25 }
  0xa7   : > { %p15829_p2 = pnand %p15827_p1, %p16817_p0  ;;  %p15836_p9 = por %p15835_p7, %p15834_p6 }
  0xa9   : > { %p15830_p4 = pneg %p15829_p2 }
  0xab   : > { %p15837_p11 = pnand %p15836_p9, %p15830_p4 }
  0xad   : > { %15840 = shalt.err (!%p15837_p11)
}
  0xae   : > { %s21919_s2 = smov 4   ;;  %s21920_s14 = smov 64  }
  0xaf   : > { %14592 = dma.hbm_to_vmem [thread:$0]  (!%p16803_p12), %s21918_s23, 512, %s816_s5, [#allocation40], %s21920_s14, %s21920_s14, %s21919_s2  }
  0xb0   : > { %s16565_s9 = smov [#allocation3]   ;;  %s21921_s29 = sld [smem:[#allocation114_spill]] }
  0xb1   : > { %s734_s26 = sshll.u32 %s16565_s9, 4  ;;  %s735_s26 = int_to_ptr.vmem [resolvable:$true] %s734_s26 }
  0xb6   : > { %s21922_s16 = smov %s21921_s29  ;;  %s15841_s12 = scalar_lea.hbm %s21921_s29, 2048 }
  0xb7   : > { %p15842_p3 = scmp.ne.s32.totalorder %s21922_s16, %s15841_s12  ;;  %p15848_p10 = scmp.lt.u32.totalorder %s15841_s12, %s21922_s16 }
  0xb9   : > { %p15844_p5 = pnand %p15842_p3, %p16817_p0 }
  0xbb   : > { %p15845_p8 = pneg %p15844_p5 }
  0xbd   : > { %p15850_p13 = pnand %p15848_p10, %p15845_p8 }
  0xbf   : > { %15853 = shalt.err (!%p15850_p13)
}
  0xc0   : > { %s15854_s5 = scalar_lea.vmem %s735_s26, 2048  ;;  %p15862_p6 = scmp.lt.s32.totalorder %s735_s26, %s735_s26 }
  0xc1   : > { %p15855_p1 = scmp.ne.s32.totalorder %s735_s26, %s15854_s5  ;;  %p15863_p7 = scmp.lt.s32.totalorder %s15854_s5, %s15854_s5 }
  0xc3   : > { %p15857_p2 = pnand %p15855_p1, %p16817_p0  ;;  %p15864_p9 = por %p15863_p7, %p15862_p6 }
  0xc5   : > { %p15858_p4 = pneg %p15857_p2 }
  0xc7   : > { %p15865_p11 = pnand %p15864_p9, %p15858_p4 }
  0xc9   : > { %15868 = shalt.err (!%p15865_p11)
}
  0xca   : > { %s16566_s1 = smov 128   ;;  %s16567_s2 = smov 8  }
  0xcb   : > { %14571 = dma.hbm_to_vmem [thread:$0]  (!%p16803_p12), %s21922_s16, 2048, %s735_s26, [#allocation4], %s16566_s1, %s16566_s1, %s16567_s2  }
  0xcc   : > { %s16568_s14 = smov [#allocation8]   ;;  %s16569_s18 = smov [#allocation11]  }
  0xcd   : > { %s761_s20 = sshll.u32 %s16568_s14, 4  ;;  %s783_s9 = sshll.u32 %s16569_s18, 4  ;;  %s762_s20 = int_to_ptr.vmem [resolvable:$true] %s761_s20  ;;  %s16917_s9 = int_to_ptr.vmem [resolvable:$true] %s783_s9 }
  0xce   : > { %s21923_s29 = sld [smem:[#allocation116_spill]] }
  0xd4   : > { %s21924_s12 = smov %s21923_s29  ;;  %s15869_s25 = scalar_lea.hbm %s21923_s29, 16 }
  0xd5   : > { %p15870_p3 = scmp.ne.s32.totalorder %s21924_s12, %s15869_s25  ;;  %p15876_p10 = scmp.lt.u32.totalorder %s15869_s25, %s21924_s12 }
  0xd7   : > { %p15872_p5 = pnand %p15870_p3, %p16817_p0 }
  0xd9   : > { %p15873_p8 = pneg %p15872_p5 }
  0xdb   : > { %p15878_p13 = pnand %p15876_p10, %p15873_p8 }
  0xdd   : > { %15881 = shalt.err (!%p15878_p13)
}
  0xde   : > { %s15882_s1 = scalar_lea.vmem %s762_s20, 16  ;;  %s15889_s2 = scalar_lea.vmem %s762_s20, 32 }
  0xdf   : > { %p15883_p1 = scmp.ne.s32.totalorder %s762_s20, %s15882_s1  ;;  %p15890_p6 = scmp.lt.s32.totalorder %s762_s20, %s762_s20 }
  0xe0   : > { %p15891_p7 = scmp.lt.s32.totalorder %s15889_s2, %s15882_s1 }
  0xe1   : > { %p15885_p2 = pnand %p15883_p1, %p16817_p0 }
  0xe2   : > { %p15892_p9 = por %p15891_p7, %p15890_p6 }
  0xe3   : > { %p15886_p4 = pneg %p15885_p2 }
  0xe5   : > { %p15893_p11 = pnand %p15892_p9, %p15886_p4 }
  0xe7   : > { %15896 = shalt.err (!%p15893_p11)
}
  0xe8   : > { %14577 = dma.hbm_to_vmem [thread:$0]  (!%p16803_p12), %s21924_s12, 16, %s762_s20, [#allocation7]  }
  0xe9   : > { %s21925_s8 = sld [smem:[#allocation118_spill]] }
  0xef   : > { %s15897_s30 = scalar_lea.hbm %s21925_s8, 128 }
  0xf0   : > { %p15898_p3 = scmp.ne.s32.totalorder %s21925_s8, %s15897_s30  ;;  %p15904_p10 = scmp.lt.u32.totalorder %s15897_s30, %s21925_s8 }
  0xf2   : > { %p15900_p5 = pnand %p15898_p3, %p16817_p0 }
  0xf4   : > { %p15901_p8 = pneg %p15900_p5 }
  0xf6   : > { %p15906_p13 = pnand %p15904_p10, %p15901_p8 }
  0xf8   : > { %15909 = shalt.err (!%p15906_p13)
}
  0xf9   : > { %s15910_s20 = scalar_lea.vmem %s16917_s9, 128  ;;  %p15918_p6 = scmp.lt.s32.totalorder %s16917_s9, %s16917_s9 }
  0xfa   : > { %p15911_p1 = scmp.ne.s32.totalorder %s16917_s9, %s15910_s20  ;;  %p15919_p7 = scmp.lt.s32.totalorder %s15910_s20, %s15910_s20 }
  0xfc   : > { %p15913_p2 = pnand %p15911_p1, %p16817_p0  ;;  %p15920_p9 = por %p15919_p7, %p15918_p6 }
  0xfe   : > { %p15914_p4 = pneg %p15913_p2 }
 0x100   : > { %p15921_p11 = pnand %p15920_p9, %p15914_p4 }
 0x102   : > { %15924 = shalt.err (!%p15921_p11)
}
 0x103   : > { %14583 = dma.hbm_to_vmem [thread:$0]  (!%p16803_p12), %s21925_s8, 128, %s16917_s9, [#allocation10]  }
 0x104   : > { %s16570_s2 = smov [#allocation38]   ;;  %s16571_s28 = smov [#allocation41]  }
 0x105   : > { %s805_s23 = sshll.u32 %s16570_s2, 4  ;;  %s829_s14 = sshll.u32 %s16571_s28, 4  ;;  %s806_s23 = int_to_ptr.vmem [resolvable:$true] %s805_s23  ;;  %s16960_s14 = int_to_ptr.vmem [resolvable:$true] %s829_s14 }
 0x106   : > { %s15925_s29 = scalar_lea.hbm %s21753_s22, 16 }
 0x107   : > { %p15926_p3 = scmp.ne.s32.totalorder %s21753_s22, %s15925_s29  ;;  %p15932_p10 = scmp.lt.u32.totalorder %s15925_s29, %s21753_s22 }
 0x109   : > { %p15928_p5 = pnand %p15926_p3, %p16817_p0 }
 0x10b   : > { %p15929_p8 = pneg %p15928_p5 }
 0x10d   : > { %p15934_p13 = pnand %p15932_p10, %p15929_p8 }
 0x10f   : > { %15937 = shalt.err (!%p15934_p13)
}
 0x110   : > { %s15938_s20 = scalar_lea.vmem %s806_s23, 16  ;;  %s15945_s26 = scalar_lea.vmem %s806_s23, 32 }
 0x111   : > { %p15939_p1 = scmp.ne.s32.totalorder %s806_s23, %s15938_s20  ;;  %p15946_p6 = scmp.lt.s32.totalorder %s806_s23, %s806_s23 }
 0x112   : > { %p15947_p7 = scmp.lt.s32.totalorder %s15945_s26, %s15938_s20 }
 0x113   : > { %p15941_p2 = pnand %p15939_p1, %p16817_p0 }
 0x114   : > { %p15948_p9 = por %p15947_p7, %p15946_p6 }
 0x115   : > { %p15942_p4 = pneg %p15941_p2 }
 0x117   : > { %p15949_p11 = pnand %p15948_p9, %p15942_p4 }
 0x119   : > { %15952 = shalt.err (!%p15949_p11)
}
 0x11a   : > { %14589 = dma.hbm_to_vmem [thread:$0]  (!%p16803_p12), %s21753_s22, 16, %s806_s23, [#allocation37]  }
 0x11b   : > { %s15953_s30 = scalar_lea.hbm %s21755_s24, 16 }
 0x11c   : > { %p15954_p3 = scmp.ne.s32.totalorder %s21755_s24, %s15953_s30  ;;  %p15960_p10 = scmp.lt.u32.totalorder %s15953_s30, %s21755_s24 }
 0x11e   : > { %p15956_p5 = pnand %p15954_p3, %p16817_p0 }
 0x120   : > { %p15957_p8 = pneg %p15956_p5 }
 0x122   : > { %p15962_p13 = pnand %p15960_p10, %p15957_p8 }
 0x124   : > { %15965 = shalt.err (!%p15962_p13)
}
 0x125   : > { %s15966_s23 = scalar_lea.vmem %s16960_s14, 16  ;;  %s15973_s9 = scalar_lea.vmem %s16960_s14, 32 }
 0x126   : > { %p15967_p1 = scmp.ne.s32.totalorder %s16960_s14, %s15966_s23  ;;  %p15974_p6 = scmp.lt.s32.totalorder %s16960_s14, %s16960_s14 }
 0x127   : > { %p15975_p7 = scmp.lt.s32.totalorder %s15973_s9, %s15966_s23 }
 0x128   : > { %p15969_p2 = pnand %p15967_p1, %p16817_p0 }
 0x129   : > { %p15976_p9 = por %p15975_p7, %p15974_p6 }
 0x12a   : > { %p15970_p4 = pneg %p15969_p2 }
 0x12c   : > { %p15977_p11 = pnand %p15976_p9, %p15970_p4 }
 0x12e   : > { %15980 = shalt.err (!%p15977_p11)
}
 0x12f   : > { %14595 = dma.hbm_to_vmem [thread:$0]  (!%p16803_p12), %s21755_s24, 16, %s16960_s14, [#allocation40]  }
 0x130   : > { %p12912_p3 = scmp.ge.s32.totalorder %s16557_s3, 2 }
 0x131   : > { %s17006_s0 = sand.u32 (!%p12912_p3), 1, %s16557_s3   ;;  %s17009_s1 = sand.u32 (!%p12912_p3), 1, %s16545_s6  }
 0x132   : > { %836 = sbr.rel (%p12912_p3) target bundleno = 749 (0x2ed), region = 52  ;;  %s17012_s2 = sshll.u32 (!%p12912_p3), %s16553_s7, 4 }
 0x133   : > { %s843_s4 = scalar_lea.vmem (!%p12912_p3), [#allocation12], %s17009_s1  ;;  %s21926_s30 = sld [smem:[#allocation119_spill]] (!%p12912_p3) }
 0x134   : > { %s850_s28 = sshll.u32 (!%p12912_p3), %s843_s4, 4  ;;  %s21789_s5 = scalar_lea.sflag (!%p12912_p3), [#allocation13], %s17006_s0  ;;  %s851_s28 = int_to_ptr.vmem [resolvable:$true] %s850_s28 }
 0x135   : > { %p21928_p0 = scmp.ne.s32.totalorder (!%p12912_p3), %s21906_s27, 0 }
 0x139   : > { %s21927_s25 = smov %s21926_s30  ;;  %s17019_s29 = scalar_lea.hbm %s21926_s30, %s17012_s2 }
 0x13a   : > { %s15981_s21 = scalar_lea.hbm %s17019_s29, 16  ;;  %s15985_s20 = scalar_lea.hbm %s21927_s25, 32 }
 0x13b   : > { %p15982_p12 = scmp.ne.s32.totalorder %s17019_s29, %s15981_s21  ;;  %p15986_p10 = scmp.lt.u32.totalorder %s17019_s29, %s21927_s25 }
 0x13c   : > { %p15987_p13 = scmp.lt.u32.totalorder %s15985_s20, %s15981_s21  ;;  %p15989_p2 = scmp.lt.u32.totalorder %s15981_s21, %s17019_s29 }
 0x13d   : > { %p15983_p5 = pnand %p15982_p12, %p21928_p0 }
 0x13e   : > { %p15988_p1 = por %p15987_p13, %p15986_p10 }
 0x13f   : > { %p15984_p8 = pneg %p15983_p5 }
 0x140   : > { %p15990_p4 = por %p15989_p2, %p15988_p1 }
 0x142   : > { %p15991_p6 = pnand %p15990_p4, %p15984_p8 }
 0x144   : > { %15994 = shalt.err (!%p15991_p6)
}
 0x145   : > { %s15995_s18 = scalar_lea.vmem %s851_s28, 16  ;;  %s16572_s14 = smov [#allocation12]  }
 0x146   : > { %p15996_p7 = scmp.ne.s32.totalorder %s851_s28, %s15995_s18  ;;  %s15999_s30 = sshll.u32 %s16572_s14, 4  ;;  %s16000_s30 = int_to_ptr.vmem [resolvable:$false] %s15999_s30 }
 0x147   : > { %s16001_s23 = scalar_lea.vmem %s16000_s30, 32  ;;  %p16002_p3 = scmp.lt.s32.totalorder %s851_s28, %s16000_s30 }
 0x148   : > { %p15997_p9 = pnand %p15996_p7, %p21928_p0  ;;  %p16003_p12 = scmp.lt.s32.totalorder %s16001_s23, %s15995_s18 }
 0x14a   : > { %p15998_p11 = pneg %p15997_p9  ;;  %p16004_p5 = por %p16003_p12, %p16002_p3 }
 0x14c   : > { %p16005_p10 = pnand %p16004_p5, %p15998_p11 }
 0x14e   : > { %16008 = shalt.err (!%p16005_p10)
}
 0x14f   : > { %14514 = dma.hbm_to_vmem [thread:$0]  (%p21928_p0), %s17019_s29, 16, %s851_s28, %s21789_s5  }
 0x150   : > { %s17042_s21 = sshll.u32 %s17009_s1, 5  ;;  %s17045_s9 = sshll.u32 %s16553_s7, 9 }
 0x151   : > { %s21929_s4 = sld [smem:[#allocation121_spill]]  ;;  %s878_s14 = scalar_lea.vmem [#allocation15], %s17042_s21 }
 0x152   : > { %s885_s30 = sshll.u32 %s878_s14, 4  ;;  %s21794_s28 = scalar_lea.sflag [#allocation16], %s17006_s0  ;;  %s17054_s30 = int_to_ptr.vmem [resolvable:$true] %s885_s30 }
 0x157   : > { %s17051_s18 = scalar_lea.hbm %s21929_s4, %s17045_s9  ;;  %s16013_s20 = scalar_lea.hbm %s21929_s4, 1024 }
 0x158   : > { %s16009_s29 = scalar_lea.hbm %s17051_s18, 512  ;;  %p16014_p2 = scmp.lt.u32.totalorder %s17051_s18, %s21929_s4 }
 0x159   : > { %p16010_p8 = scmp.ne.s32.totalorder %s17051_s18, %s16009_s29  ;;  %p16015_p4 = scmp.lt.u32.totalorder %s16013_s20, %s16009_s29 }
 0x15a   : > { %p16017_p7 = scmp.lt.u32.totalorder %s16009_s29, %s17051_s18 }
 0x15b   : > { %p16011_p13 = pnand %p16010_p8, %p21928_p0  ;;  %p16016_p6 = por %p16015_p4, %p16014_p2 }
 0x15d   : > { %p16012_p1 = pneg %p16011_p13  ;;  %p16018_p9 = por %p16017_p7, %p16016_p6 }
 0x15f   : > { %p16019_p11 = pnand %p16018_p9, %p16012_p1 }
 0x161   : > { %16022 = shalt.err (!%p16019_p11)
}
 0x162   : > { %s16023_s14 = scalar_lea.vmem %s17054_s30, 512  ;;  %s16573_s5 = smov [#allocation15]  }
 0x163   : > { %p16024_p3 = scmp.ne.s32.totalorder %s17054_s30, %s16023_s14  ;;  %s16027_s23 = sshll.u32 %s16573_s5, 4  ;;  %s16028_s23 = int_to_ptr.vmem [resolvable:$false] %s16027_s23 }
 0x164   : > { %s16029_s8 = scalar_lea.vmem %s16028_s23, 1024  ;;  %p16030_p10 = scmp.lt.s32.totalorder %s17054_s30, %s16028_s23 }
 0x165   : > { %p16025_p12 = pnand %p16024_p3, %p21928_p0  ;;  %p16031_p8 = scmp.lt.s32.totalorder %s16029_s8, %s16023_s14 }
 0x167   : > { %p16026_p5 = pneg %p16025_p12  ;;  %p16032_p13 = por %p16031_p8, %p16030_p10 }
 0x169   : > { %p16033_p2 = pnand %p16032_p13, %p16026_p5 }
 0x16b   : > { %16036 = shalt.err (!%p16033_p2)
}
 0x16c   : > { %s21799_s29 = smov 64   ;;  %s21800_s20 = smov 4  }
 0x16d   : > { %14516 = dma.hbm_to_vmem [thread:$0]  (%p21928_p0), %s17051_s18, 512, %s17054_s30, %s21794_s28, %s21799_s29, %s21799_s29, %s21800_s20  }
 0x16e   : > { %s21930_s5 = sld [smem:[#allocation123_spill]]  ;;  %s916_s8 = scalar_lea.vmem [#allocation18], %s17042_s21 }
 0x16f   : > { %s923_s4 = sshll.u32 %s916_s8, 4  ;;  %s21795_s12 = scalar_lea.sflag [#allocation19], %s17006_s0  ;;  %s17090_s4 = int_to_ptr.vmem [resolvable:$true] %s923_s4 }
 0x174   : > { %s17087_s23 = scalar_lea.hbm %s21930_s5, %s17045_s9  ;;  %s16041_s26 = scalar_lea.hbm %s21930_s5, 1024 }
 0x175   : > { %s16037_s16 = scalar_lea.hbm %s17087_s23, 512  ;;  %p16042_p7 = scmp.lt.u32.totalorder %s17087_s23, %s21930_s5 }
 0x176   : > { %p16038_p1 = scmp.ne.s32.totalorder %s17087_s23, %s16037_s16  ;;  %p16043_p9 = scmp.lt.u32.totalorder %s16041_s26, %s16037_s16 }
 0x177   : > { %p16045_p3 = scmp.lt.u32.totalorder %s16037_s16, %s17087_s23 }
 0x178   : > { %p16039_p4 = pnand %p16038_p1, %p21928_p0  ;;  %p16044_p11 = por %p16043_p9, %p16042_p7 }
 0x17a   : > { %p16040_p6 = pneg %p16039_p4  ;;  %p16046_p12 = por %p16045_p3, %p16044_p11 }
 0x17c   : > { %p16047_p5 = pnand %p16046_p12, %p16040_p6 }
 0x17e   : > { %16050 = shalt.err (!%p16047_p5)
}
 0x17f   : > { %s16051_s8 = scalar_lea.vmem %s17090_s4, 512  ;;  %s16576_s18 = smov [#allocation18]  }
 0x180   : > { %p16052_p10 = scmp.ne.s32.totalorder %s17090_s4, %s16051_s8  ;;  %s16055_s30 = sshll.u32 %s16576_s18, 4  ;;  %s16056_s30 = int_to_ptr.vmem [resolvable:$false] %s16055_s30 }
 0x181   : > { %s16057_s28 = scalar_lea.vmem %s16056_s30, 1024  ;;  %p16058_p2 = scmp.lt.s32.totalorder %s17090_s4, %s16056_s30 }
 0x182   : > { %p16053_p8 = pnand %p16052_p10, %p21928_p0  ;;  %p16059_p1 = scmp.lt.s32.totalorder %s16057_s28, %s16051_s8 }
 0x184   : > { %p16054_p13 = pneg %p16053_p8  ;;  %p16060_p4 = por %p16059_p1, %p16058_p2 }
 0x186   : > { %p16061_p7 = pnand %p16060_p4, %p16054_p13 }
 0x188   : > { %16064 = shalt.err (!%p16061_p7)
}
 0x189   : > { %14518 = dma.hbm_to_vmem [thread:$0]  (%p21928_p0), %s17087_s23, 512, %s17090_s4, %s21795_s12, %s21799_s29, %s21799_s29, %s21800_s20  }
 0x18a   : > { %s21931_s11 = sld [smem:[#allocation125_spill]]  ;;  %s954_s8 = scalar_lea.vmem [#allocation21], %s17042_s21 }
 0x18b   : > { %s961_s18 = sshll.u32 %s954_s8, 4  ;;  %s21797_s30 = scalar_lea.sflag [#allocation22], %s17006_s0  ;;  %s17126_s18 = int_to_ptr.vmem [resolvable:$true] %s961_s18 }
 0x190   : > { %s17123_s14 = scalar_lea.hbm %s21931_s11, %s17045_s9  ;;  %s16069_s16 = scalar_lea.hbm %s21931_s11, 1024 }
 0x191   : > { %s16065_s28 = scalar_lea.hbm %s17123_s14, 512  ;;  %p16070_p3 = scmp.lt.u32.totalorder %s17123_s14, %s21931_s11 }
 0x192   : > { %p16066_p6 = scmp.ne.s32.totalorder %s17123_s14, %s16065_s28  ;;  %p16071_p12 = scmp.lt.u32.totalorder %s16069_s16, %s16065_s28 }
 0x193   : > { %p16073_p10 = scmp.lt.u32.totalorder %s16065_s28, %s17123_s14 }
 0x194   : > { %p16067_p9 = pnand %p16066_p6, %p21928_p0  ;;  %p16072_p5 = por %p16071_p12, %p16070_p3 }
 0x196   : > { %p16068_p11 = pneg %p16067_p9  ;;  %p16074_p8 = por %p16073_p10, %p16072_p5 }
 0x198   : > { %p16075_p13 = pnand %p16074_p8, %p16068_p11 }
 0x19a   : > { %16078 = shalt.err (!%p16075_p13)
}
 0x19b   : > { %s16079_s8 = scalar_lea.vmem %s17126_s18, 512  ;;  %s16577_s4 = smov [#allocation21]  }
 0x19c   : > { %p16080_p2 = scmp.ne.s32.totalorder %s17126_s18, %s16079_s8  ;;  %s16083_s23 = sshll.u32 %s16577_s4, 4  ;;  %s16084_s23 = int_to_ptr.vmem [resolvable:$false] %s16083_s23 }
 0x19d   : > { %s16085_s12 = scalar_lea.vmem %s16084_s23, 1024  ;;  %p16086_p7 = scmp.lt.s32.totalorder %s17126_s18, %s16084_s23 }
 0x19e   : > { %p16081_p1 = pnand %p16080_p2, %p21928_p0  ;;  %p16087_p6 = scmp.lt.s32.totalorder %s16085_s12, %s16079_s8 }
 0x1a0   : > { %p16082_p4 = pneg %p16081_p1  ;;  %p16088_p9 = por %p16087_p6, %p16086_p7 }
 0x1a2   : > { %p16089_p3 = pnand %p16088_p9, %p16082_p4 }
 0x1a4   : > { %16092 = shalt.err (!%p16089_p3)
}
 0x1a5   : > { %14520 = dma.hbm_to_vmem [thread:$0]  (%p21928_p0), %s17123_s14, 512, %s17126_s18, %s21797_s30, %s21799_s29, %s21799_s29, %s21800_s20  }
 0x1a6   : > { %s21932_s13 = sld [smem:[#allocation127_spill]]  ;;  %s992_s8 = scalar_lea.vmem [#allocation24], %s17042_s21 }
 0x1a7   : > { %s999_s4 = sshll.u32 %s992_s8, 4  ;;  %s21796_s23 = scalar_lea.sflag [#allocation25], %s17006_s0  ;;  %s17162_s4 = int_to_ptr.vmem [resolvable:$true] %s999_s4 }
 0x1ac   : > { %s17159_s26 = scalar_lea.hbm %s21932_s13, %s17045_s9  ;;  %s16097_s28 = scalar_lea.hbm %s21932_s13, 1024 }
 0x1ad   : > { %s16093_s12 = scalar_lea.hbm %s17159_s26, 512  ;;  %p16098_p10 = scmp.lt.u32.totalorder %s17159_s26, %s21932_s13 }
 0x1ae   : > { %p16094_p11 = scmp.ne.s32.totalorder %s17159_s26, %s16093_s12  ;;  %p16099_p8 = scmp.lt.u32.totalorder %s16097_s28, %s16093_s12 }
 0x1af   : > { %p16101_p2 = scmp.lt.u32.totalorder %s16093_s12, %s17159_s26 }
 0x1b0   : > { %p16095_p12 = pnand %p16094_p11, %p21928_p0  ;;  %p16100_p13 = por %p16099_p8, %p16098_p10 }
 0x1b2   : > { %p16096_p5 = pneg %p16095_p12  ;;  %p16102_p1 = por %p16101_p2, %p16100_p13 }
 0x1b4   : > { %p16103_p4 = pnand %p16102_p1, %p16096_p5 }
 0x1b6   : > { %16106 = shalt.err (!%p16103_p4)
}
 0x1b7   : > { %s16107_s21 = scalar_lea.vmem %s17162_s4, 512  ;;  %s16578_s8 = smov [#allocation24]  }
 0x1b8   : > { %p16108_p7 = scmp.ne.s32.totalorder %s17162_s4, %s16107_s21  ;;  %s16111_s14 = sshll.u32 %s16578_s8, 4  ;;  %s16112_s14 = int_to_ptr.vmem [resolvable:$false] %s16111_s14 }
 0x1b9   : > { %s16113_s18 = scalar_lea.vmem %s16112_s14, 1024  ;;  %p16114_p3 = scmp.lt.s32.totalorder %s17162_s4, %s16112_s14 }
 0x1ba   : > { %p16109_p6 = pnand %p16108_p7, %p21928_p0  ;;  %p16115_p11 = scmp.lt.s32.totalorder %s16113_s18, %s16107_s21 }
 0x1bc   : > { %p16110_p9 = pneg %p16109_p6  ;;  %p16116_p12 = por %p16115_p11, %p16114_p3 }
 0x1be   : > { %p16117_p10 = pnand %p16116_p12, %p16110_p9 }
 0x1c0   : > { %16120 = shalt.err (!%p16117_p10)
}
 0x1c1   : > { %14522 = dma.hbm_to_vmem [thread:$0]  (%p21928_p0), %s17159_s26, 512, %s17162_s4, %s21796_s23, %s21799_s29, %s21799_s29, %s21800_s20  }
 0x1c2   : > { %s17195_s9 = scalar_lea.hbm %s21746_s15, %s17012_s2  ;;  %s1029_s16 = scalar_lea.vmem [#allocation27], %s17009_s1 }
 0x1c3   : > { %s1036_s21 = sshll.u32 %s1029_s16, 4  ;;  %s21798_s8 = scalar_lea.sflag [#allocation28], %s17006_s0  ;;  %s1037_s21 = int_to_ptr.vmem [resolvable:$true] %s1036_s21 }
 0x1c4   : > { %s16121_s14 = scalar_lea.hbm %s17195_s9, 16  ;;  %s16125_s4 = scalar_lea.hbm %s21746_s15, 32 }
 0x1c5   : > { %p16122_p5 = scmp.ne.s32.totalorder %s17195_s9, %s16121_s14  ;;  %p16126_p2 = scmp.lt.u32.totalorder %s17195_s9, %s21746_s15 }
 0x1c6   : > { %p16127_p1 = scmp.lt.u32.totalorder %s16125_s4, %s16121_s14  ;;  %p16129_p7 = scmp.lt.u32.totalorder %s16121_s14, %s17195_s9 }
 0x1c7   : > { %p16123_p8 = pnand %p16122_p5, %p21928_p0 }
 0x1c8   : > { %p16128_p4 = por %p16127_p1, %p16126_p2 }
 0x1c9   : > { %p16124_p13 = pneg %p16123_p8 }
 0x1ca   : > { %p16130_p6 = por %p16129_p7, %p16128_p4 }
 0x1cc   : > { %p16131_p9 = pnand %p16130_p6, %p16124_p13 }
 0x1ce   : > { %16134 = shalt.err (!%p16131_p9)
}
 0x1cf   : > { %s16135_s16 = scalar_lea.vmem %s1037_s21, 16  ;;  %s16579_s23 = smov [#allocation27]  }
 0x1d0   : > { %p16136_p3 = scmp.ne.s32.totalorder %s1037_s21, %s16135_s16  ;;  %s16139_s30 = sshll.u32 %s16579_s23, 4  ;;  %s16140_s30 = int_to_ptr.vmem [resolvable:$false] %s16139_s30 }
 0x1d1   : > { %s16141_s18 = scalar_lea.vmem %s16140_s30, 32  ;;  %p16142_p10 = scmp.lt.s32.totalorder %s1037_s21, %s16140_s30 }
 0x1d2   : > { %p16137_p11 = pnand %p16136_p3, %p21928_p0  ;;  %p16143_p5 = scmp.lt.s32.totalorder %s16141_s18, %s16135_s16 }
 0x1d4   : > { %p16138_p12 = pneg %p16137_p11  ;;  %p16144_p8 = por %p16143_p5, %p16142_p10 }
 0x1d6   : > { %p16145_p1 = pnand %p16144_p8, %p16138_p12 }
 0x1d8   : > { %16148 = shalt.err (!%p16145_p1)
}
 0x1d9   : > { %14524 = dma.hbm_to_vmem [thread:$0]  (%p21928_p0), %s17195_s9, 16, %s1037_s21, %s21798_s8  }
 0x1da   : > { %s12933_s14 = sshll.u32 %s17009_s1, 6  ;;  %s13212_s26 = sshll.u32 %s16553_s7, 10 }
 0x1db   : > { %s17223_s30 = scalar_lea.hbm %s21748_s17, %s13212_s26  ;;  %s1064_s12 = scalar_lea.vmem [#allocation30], %s12933_s14 }
 0x1dc   : > { %s1071_s28 = sshll.u32 %s1064_s12, 4  ;;  %s21801_s16 = scalar_lea.sflag [#allocation31], %s17006_s0  ;;  %s17225_s28 = int_to_ptr.vmem [resolvable:$true] %s1071_s28 }
 0x1dd   : > { %s16149_s18 = scalar_lea.hbm %s17223_s30, 1024  ;;  %s16153_s23 = scalar_lea.hbm %s21748_s17, 2048 }
 0x1de   : > { %p16150_p13 = scmp.ne.s32.totalorder %s17223_s30, %s16149_s18  ;;  %p16154_p7 = scmp.lt.u32.totalorder %s17223_s30, %s21748_s17 }
 0x1df   : > { %p16155_p6 = scmp.lt.u32.totalorder %s16153_s23, %s16149_s18  ;;  %p16157_p3 = scmp.lt.u32.totalorder %s16149_s18, %s17223_s30 }
 0x1e0   : > { %p16151_p2 = pnand %p16150_p13, %p21928_p0 }
 0x1e1   : > { %p16156_p9 = por %p16155_p6, %p16154_p7 }
 0x1e2   : > { %p16152_p4 = pneg %p16151_p2 }
 0x1e3   : > { %p16158_p11 = por %p16157_p3, %p16156_p9 }
 0x1e5   : > { %p16159_p12 = pnand %p16158_p11, %p16152_p4 }
 0x1e7   : > { %16162 = shalt.err (!%p16159_p12)
}
 0x1e8   : > { %s16163_s14 = scalar_lea.vmem %s17225_s28, 1024  ;;  %s16580_s12 = smov [#allocation30]  }
 0x1e9   : > { %p16164_p10 = scmp.ne.s32.totalorder %s17225_s28, %s16163_s14  ;;  %s16167_s9 = sshll.u32 %s16580_s12, 4  ;;  %s16168_s9 = int_to_ptr.vmem [resolvable:$false] %s16167_s9 }
 0x1ea   : > { %s16169_s21 = scalar_lea.vmem %s16168_s9, 2048  ;;  %p16170_p1 = scmp.lt.s32.totalorder %s17225_s28, %s16168_s9 }
 0x1eb   : > { %p16165_p5 = pnand %p16164_p10, %p21928_p0  ;;  %p16171_p13 = scmp.lt.s32.totalorder %s16169_s21, %s16163_s14 }
 0x1ed   : > { %p16166_p8 = pneg %p16165_p5  ;;  %p16172_p2 = por %p16171_p13, %p16170_p1 }
 0x1ef   : > { %p16173_p7 = pnand %p16172_p2, %p16166_p8 }
 0x1f1   : > { %16176 = shalt.err (!%p16173_p7)
}
 0x1f2   : > { %s16581_s18 = smov 128   ;;  %s16582_s23 = smov 8  }
 0x1f3   : > { %14526 = dma.hbm_to_vmem [thread:$0]  (%p21928_p0), %s17223_s30, 1024, %s17225_s28, %s21801_s16, %s16581_s18, %s16581_s18, %s16582_s23  }
 0x1f4   : > { %s12939_s26 = sshll.u32 %s17009_s1, 7  ;;  %s13214_s4 = sshll.u32 %s16553_s7, 11 }
 0x1f5   : > { %s17256_s9 = scalar_lea.hbm %s21750_s19, %s13214_s4  ;;  %s1104_s21 = scalar_lea.vmem [#allocation33], %s12939_s26 }
 0x1f6   : > { %s1111_s8 = sshll.u32 %s1104_s21, 4  ;;  %s21802_s29 = scalar_lea.sflag [#allocation34], %s17006_s0  ;;  %s17258_s8 = int_to_ptr.vmem [resolvable:$true] %s1111_s8 }
 0x1f7   : > { %s16177_s20 = scalar_lea.hbm %s17256_s9, 2048  ;;  %s16181_s18 = scalar_lea.hbm %s21750_s19, 4096 }
 0x1f8   : > { %p16178_p4 = scmp.ne.s32.totalorder %s17256_s9, %s16177_s20  ;;  %p16182_p3 = scmp.lt.u32.totalorder %s17256_s9, %s21750_s19 }
 0x1f9   : > { %p16183_p11 = scmp.lt.u32.totalorder %s16181_s18, %s16177_s20  ;;  %p16185_p10 = scmp.lt.u32.totalorder %s16177_s20, %s17256_s9 }
 0x1fa   : > { %p16179_p6 = pnand %p16178_p4, %p21928_p0 }
 0x1fb   : > { %p16184_p12 = por %p16183_p11, %p16182_p3 }
 0x1fc   : > { %p16180_p9 = pneg %p16179_p6 }
 0x1fd   : > { %p16186_p5 = por %p16185_p10, %p16184_p12 }
 0x1ff   : > { %p16187_p8 = pnand %p16186_p5, %p16180_p9 }
 0x201   : > { %16190 = shalt.err (!%p16187_p8)
}
 0x202   : > { %s16191_s26 = scalar_lea.vmem %s17258_s8, 2048  ;;  %s16583_s12 = smov [#allocation33]  }
 0x203   : > { %p16192_p1 = scmp.ne.s32.totalorder %s17258_s8, %s16191_s26  ;;  %s16195_s14 = sshll.u32 %s16583_s12, 4  ;;  %s16196_s14 = int_to_ptr.vmem [resolvable:$false] %s16195_s14 }
 0x204   : > { %s16197_s21 = scalar_lea.vmem %s16196_s14, 4096  ;;  %p16198_p7 = scmp.lt.s32.totalorder %s17258_s8, %s16196_s14 }
 0x205   : > { %p16193_p13 = pnand %p16192_p1, %p21928_p0  ;;  %p16199_p4 = scmp.lt.s32.totalorder %s16197_s21, %s16191_s26 }
 0x207   : > { %p16194_p2 = pneg %p16193_p13  ;;  %p16200_p6 = por %p16199_p4, %p16198_p7 }
 0x209   : > { %p16201_p3 = pnand %p16200_p6, %p16194_p2 }
 0x20b   : > { %16204 = shalt.err (!%p16201_p3)
}
 0x20c   : > { %s21933_s20 = smov 4   ;;  %s21934_s30 = smov 64  }
 0x20d   : > { %14528 = dma.hbm_to_vmem [thread:$0]  (%p21928_p0), %s17256_s9, 2048, %s17258_s8, %s21802_s29, %s21934_s30, %s21934_s30, %s21933_s20  }
 0x20e   : > { %s21935_s23 = sld [smem:[#allocation120_spill]]  ;;  %s860_s26 = scalar_lea.vmem [#allocation14], %s17009_s1 }
 0x20f   : > { %s867_s12 = sshll.u32 %s860_s26, 4  ;;  %s868_s12 = int_to_ptr.vmem [resolvable:$true] %s867_s12 }
 0x214   : > { %s17291_s4 = scalar_lea.hbm %s21935_s23, %s17012_s2  ;;  %s16209_s8 = scalar_lea.hbm %s21935_s23, 32 }
 0x215   : > { %s16205_s14 = scalar_lea.hbm %s17291_s4, 16  ;;  %p16210_p10 = scmp.lt.u32.totalorder %s17291_s4, %s21935_s23 }
 0x216   : > { %p16206_p9 = scmp.ne.s32.totalorder %s17291_s4, %s16205_s14  ;;  %p16211_p5 = scmp.lt.u32.totalorder %s16209_s8, %s16205_s14 }
 0x217   : > { %p16213_p1 = scmp.lt.u32.totalorder %s16205_s14, %s17291_s4 }
 0x218   : > { %p16207_p11 = pnand %p16206_p9, %p21928_p0  ;;  %p16212_p8 = por %p16211_p5, %p16210_p10 }
 0x21a   : > { %p16208_p12 = pneg %p16207_p11  ;;  %p16214_p13 = por %p16213_p1, %p16212_p8 }
 0x21c   : > { %p16215_p2 = pnand %p16214_p13, %p16208_p12 }
 0x21e   : > { %16218 = shalt.err (!%p16215_p2)
}
 0x21f   : > { %s16219_s30 = scalar_lea.vmem %s868_s12, 16  ;;  %s16584_s28 = smov [#allocation14]  }
 0x220   : > { %p16220_p7 = scmp.ne.s32.totalorder %s868_s12, %s16219_s30  ;;  %s16223_s18 = sshll.u32 %s16584_s28, 4  ;;  %s16224_s18 = int_to_ptr.vmem [resolvable:$false] %s16223_s18 }
 0x221   : > { %s16225_s16 = scalar_lea.vmem %s16224_s18, 32  ;;  %p16226_p3 = scmp.lt.s32.totalorder %s868_s12, %s16224_s18 }
 0x222   : > { %p16221_p4 = pnand %p16220_p7, %p21928_p0  ;;  %p16227_p9 = scmp.lt.s32.totalorder %s16225_s16, %s16219_s30 }
 0x224   : > { %p16222_p6 = pneg %p16221_p4  ;;  %p16228_p11 = por %p16227_p9, %p16226_p3 }
 0x226   : > { %p16229_p5 = pnand %p16228_p11, %p16222_p6 }
 0x228   : > { %16232 = shalt.err (!%p16229_p5)
}
 0x229   : > { %s21936_s26 = scalar_lea.sflag [#allocation13], %s17006_s0  ;;  %s21937_s8 = sld [smem:[#allocation122_spill]] }
 0x22a   : > { %14515 = dma.hbm_to_vmem [thread:$0]  (%p21928_p0), %s17291_s4, 16, %s868_s12, %s21936_s26  }
 0x22b   : > { %s898_s20 = scalar_lea.vmem [#allocation17], %s17009_s1 }
 0x22c   : > { %s905_s30 = sshll.u32 %s898_s20, 4  ;;  %s906_s30 = int_to_ptr.vmem [resolvable:$true] %s905_s30 }
 0x22f   : > { %s17317_s9 = scalar_lea.hbm %s21937_s8, %s17012_s2  ;;  %s16237_s4 = scalar_lea.hbm %s21937_s8, 32 }
 0x230   : > { %s16233_s28 = scalar_lea.hbm %s17317_s9, 16  ;;  %p16238_p1 = scmp.lt.u32.totalorder %s17317_s9, %s21937_s8 }
 0x231   : > { %p16234_p12 = scmp.ne.s32.totalorder %s17317_s9, %s16233_s28  ;;  %p16239_p13 = scmp.lt.u32.totalorder %s16237_s4, %s16233_s28 }
 0x232   : > { %p16241_p7 = scmp.lt.u32.totalorder %s16233_s28, %s17317_s9 }
 0x233   : > { %p16235_p10 = pnand %p16234_p12, %p21928_p0  ;;  %p16240_p2 = por %p16239_p13, %p16238_p1 }
 0x235   : > { %p16236_p8 = pneg %p16235_p10  ;;  %p16242_p4 = por %p16241_p7, %p16240_p2 }
 0x237   : > { %p16243_p6 = pnand %p16242_p4, %p16236_p8 }
 0x239   : > { %16246 = shalt.err (!%p16243_p6)
}
 0x23a   : > { %s16247_s14 = scalar_lea.vmem %s906_s30, 16  ;;  %s16585_s21 = smov [#allocation17]  }
 0x23b   : > { %p16248_p3 = scmp.ne.s32.totalorder %s906_s30, %s16247_s14  ;;  %s16251_s20 = sshll.u32 %s16585_s21, 4  ;;  %s16252_s20 = int_to_ptr.vmem [resolvable:$false] %s16251_s20 }
 0x23c   : > { %s16253_s18 = scalar_lea.vmem %s16252_s20, 32  ;;  %p16254_p5 = scmp.lt.s32.totalorder %s906_s30, %s16252_s20 }
 0x23d   : > { %p16249_p9 = pnand %p16248_p3, %p21928_p0  ;;  %p16255_p12 = scmp.lt.s32.totalorder %s16253_s18, %s16247_s14 }
 0x23f   : > { %p16250_p11 = pneg %p16249_p9  ;;  %p16256_p10 = por %p16255_p12, %p16254_p5 }
 0x241   : > { %p16257_p1 = pnand %p16256_p10, %p16250_p11 }
 0x243   : > { %16260 = shalt.err (!%p16257_p1)
}
 0x244   : > { %s21938_s28 = scalar_lea.sflag [#allocation16], %s17006_s0  ;;  %s21939_s10 = sld [smem:[#allocation124_spill]] }
 0x245   : > { %14517 = dma.hbm_to_vmem [thread:$0]  (%p21928_p0), %s17317_s9, 16, %s906_s30, %s21938_s28  }
 0x246   : > { %s936_s26 = scalar_lea.vmem [#allocation20], %s17009_s1 }
 0x247   : > { %s943_s14 = sshll.u32 %s936_s26, 4  ;;  %s944_s14 = int_to_ptr.vmem [resolvable:$true] %s943_s14 }
 0x24a   : > { %s17343_s12 = scalar_lea.hbm %s21939_s10, %s17012_s2  ;;  %s16265_s9 = scalar_lea.hbm %s21939_s10, 32 }
 0x24b   : > { %s16261_s21 = scalar_lea.hbm %s17343_s12, 16  ;;  %p16266_p7 = scmp.lt.u32.totalorder %s17343_s12, %s21939_s10 }
 0x24c   : > { %p16262_p8 = scmp.ne.s32.totalorder %s17343_s12, %s16261_s21  ;;  %p16267_p4 = scmp.lt.u32.totalorder %s16265_s9, %s16261_s21 }
 0x24d   : > { %p16269_p3 = scmp.lt.u32.totalorder %s16261_s21, %s17343_s12 }
 0x24e   : > { %p16263_p13 = pnand %p16262_p8, %p21928_p0  ;;  %p16268_p6 = por %p16267_p4, %p16266_p7 }
 0x250   : > { %p16264_p2 = pneg %p16263_p13  ;;  %p16270_p9 = por %p16269_p3, %p16268_p6 }
 0x252   : > { %p16271_p11 = pnand %p16270_p9, %p16264_p2 }
 0x254   : > { %16274 = shalt.err (!%p16271_p11)
}
 0x255   : > { %s16275_s16 = scalar_lea.vmem %s944_s14, 16  ;;  %s16586_s4 = smov [#allocation20]  }
 0x256   : > { %p16276_p5 = scmp.ne.s32.totalorder %s944_s14, %s16275_s16  ;;  %s16279_s26 = sshll.u32 %s16586_s4, 4  ;;  %s16280_s26 = int_to_ptr.vmem [resolvable:$false] %s16279_s26 }
 0x257   : > { %s16281_s20 = scalar_lea.vmem %s16280_s26, 32  ;;  %p16282_p1 = scmp.lt.s32.totalorder %s944_s14, %s16280_s26 }
 0x258   : > { %p16277_p12 = pnand %p16276_p5, %p21928_p0  ;;  %p16283_p8 = scmp.lt.s32.totalorder %s16281_s20, %s16275_s16 }
 0x25a   : > { %p16278_p10 = pneg %p16277_p12  ;;  %p16284_p13 = por %p16283_p8, %p16282_p1 }
 0x25c   : > { %p16285_p4 = pnand %p16284_p13, %p16278_p10 }
 0x25e   : > { %16288 = shalt.err (!%p16285_p4)
}
 0x25f   : > { %s21940_s21 = scalar_lea.sflag [#allocation19], %s17006_s0  ;;  %s21941_s30 = sld [smem:[#allocation126_spill]] }
 0x260   : > { %14519 = dma.hbm_to_vmem [thread:$0]  (%p21928_p0), %s17343_s12, 16, %s944_s14, %s21940_s21  }
 0x261   : > { %s974_s16 = scalar_lea.vmem [#allocation23], %s17009_s1 }
 0x262   : > { %s981_s26 = sshll.u32 %s974_s16, 4  ;;  %s982_s26 = int_to_ptr.vmem [resolvable:$true] %s981_s26 }
 0x265   : > { %s21942_s28 = smov %s21941_s30  ;;  %s17369_s4 = scalar_lea.hbm %s21941_s30, %s17012_s2 }
 0x266   : > { %s16289_s20 = scalar_lea.hbm %s17369_s4, 16  ;;  %s16293_s12 = scalar_lea.hbm %s21942_s28, 32 }
 0x267   : > { %p16290_p2 = scmp.ne.s32.totalorder %s17369_s4, %s16289_s20  ;;  %p16294_p3 = scmp.lt.u32.totalorder %s17369_s4, %s21942_s28 }
 0x268   : > { %p16295_p9 = scmp.lt.u32.totalorder %s16293_s12, %s16289_s20  ;;  %p16297_p5 = scmp.lt.u32.totalorder %s16289_s20, %s17369_s4 }
 0x269   : > { %p16291_p7 = pnand %p16290_p2, %p21928_p0 }
 0x26a   : > { %p16296_p11 = por %p16295_p9, %p16294_p3 }
 0x26b   : > { %p16292_p6 = pneg %p16291_p7 }
 0x26c   : > { %p16298_p12 = por %p16297_p5, %p16296_p11 }
 0x26e   : > { %p16299_p10 = pnand %p16298_p12, %p16292_p6 }
 0x270   : > { %16302 = shalt.err (!%p16299_p10)
}
 0x271   : > { %s16303_s18 = scalar_lea.vmem %s982_s26, 16  ;;  %s16587_s9 = smov [#allocation23]  }
 0x272   : > { %p16304_p1 = scmp.ne.s32.totalorder %s982_s26, %s16303_s18  ;;  %s16307_s30 = sshll.u32 %s16587_s9, 4  ;;  %s16308_s30 = int_to_ptr.vmem [resolvable:$false] %s16307_s30 }
 0x273   : > { %s16309_s29 = scalar_lea.vmem %s16308_s30, 32  ;;  %p16310_p4 = scmp.lt.s32.totalorder %s982_s26, %s16308_s30 }
 0x274   : > { %p16305_p8 = pnand %p16304_p1, %p21928_p0  ;;  %p16311_p2 = scmp.lt.s32.totalorder %s16309_s29, %s16303_s18 }
 0x276   : > { %p16306_p13 = pneg %p16305_p8  ;;  %p16312_p7 = por %p16311_p2, %p16310_p4 }
 0x278   : > { %p16313_p3 = pnand %p16312_p7, %p16306_p13 }
 0x27a   : > { %16316 = shalt.err (!%p16313_p3)
}
 0x27b   : > { %s21943_s5 = scalar_lea.sflag [#allocation22], %s17006_s0  ;;  %s21944_s12 = sld [smem:[#allocation128_spill]] }
 0x27c   : > { %14521 = dma.hbm_to_vmem [thread:$0]  (%p21928_p0), %s17369_s4, 16, %s982_s26, %s21943_s5  }
 0x27d   : > { %s1012_s21 = scalar_lea.vmem [#allocation26], %s17009_s1 }
 0x27e   : > { %s1019_s18 = sshll.u32 %s1012_s21, 4  ;;  %s1020_s18 = int_to_ptr.vmem [resolvable:$true] %s1019_s18 }
 0x281   : > { %s17395_s14 = scalar_lea.hbm %s21944_s12, %s17012_s2  ;;  %s16321_s4 = scalar_lea.hbm %s21944_s12, 32 }
 0x282   : > { %s16317_s9 = scalar_lea.hbm %s17395_s14, 16  ;;  %p16322_p5 = scmp.lt.u32.totalorder %s17395_s14, %s21944_s12 }
 0x283   : > { %p16318_p6 = scmp.ne.s32.totalorder %s17395_s14, %s16317_s9  ;;  %p16323_p12 = scmp.lt.u32.totalorder %s16321_s4, %s16317_s9 }
 0x284   : > { %p16325_p1 = scmp.lt.u32.totalorder %s16317_s9, %s17395_s14 }
 0x285   : > { %p16319_p9 = pnand %p16318_p6, %p21928_p0  ;;  %p16324_p10 = por %p16323_p12, %p16322_p5 }
 0x287   : > { %p16320_p11 = pneg %p16319_p9  ;;  %p16326_p8 = por %p16325_p1, %p16324_p10 }
 0x289   : > { %p16327_p13 = pnand %p16326_p8, %p16320_p11 }
 0x28b   : > { %16330 = shalt.err (!%p16327_p13)
}
 0x28c   : > { %s16331_s16 = scalar_lea.vmem %s1020_s18, 16  ;;  %s16588_s20 = smov [#allocation26]  }
 0x28d   : > { %p16332_p4 = scmp.ne.s32.totalorder %s1020_s18, %s16331_s16  ;;  %s16335_s21 = sshll.u32 %s16588_s20, 4  ;;  %s16336_s21 = int_to_ptr.vmem [resolvable:$false] %s16335_s21 }
 0x28e   : > { %s16337_s30 = scalar_lea.vmem %s16336_s21, 32  ;;  %p16338_p3 = scmp.lt.s32.totalorder %s1020_s18, %s16336_s21 }
 0x28f   : > { %p16333_p2 = pnand %p16332_p4, %p21928_p0  ;;  %p16339_p6 = scmp.lt.s32.totalorder %s16337_s30, %s16331_s16 }
 0x291   : > { %p16334_p7 = pneg %p16333_p2  ;;  %p16340_p9 = por %p16339_p6, %p16338_p3 }
 0x293   : > { %p16341_p5 = pnand %p16340_p9, %p16334_p7 }
 0x295   : > { %16344 = shalt.err (!%p16341_p5)
}
 0x296   : > { %s21945_s9 = scalar_lea.sflag [#allocation25], %s17006_s0  ;;  %s21946_s26 = sld [smem:[#allocation129_spill]] }
 0x297   : > { %14523 = dma.hbm_to_vmem [thread:$0]  (%p21928_p0), %s17395_s14, 16, %s1020_s18, %s21945_s9  }
 0x298   : > { %s1046_s16 = scalar_lea.vmem [#allocation29], %s17009_s1 }
 0x299   : > { %s1053_s20 = sshll.u32 %s1046_s16, 4  ;;  %s1054_s20 = int_to_ptr.vmem [resolvable:$true] %s1053_s20 }
 0x29c   : > { %s17421_s5 = scalar_lea.hbm %s21946_s26, %s17012_s2  ;;  %s16349_s18 = scalar_lea.hbm %s21946_s26, 32 }
 0x29d   : > { %s16345_s30 = scalar_lea.hbm %s17421_s5, 16  ;;  %p16350_p1 = scmp.lt.u32.totalorder %s17421_s5, %s21946_s26 }
 0x29e   : > { %p16346_p11 = scmp.ne.s32.totalorder %s17421_s5, %s16345_s30  ;;  %p16351_p8 = scmp.lt.u32.totalorder %s16349_s18, %s16345_s30 }
 0x29f   : > { %p16353_p4 = scmp.lt.u32.totalorder %s16345_s30, %s17421_s5 }
 0x2a0   : > { %p16347_p12 = pnand %p16346_p11, %p21928_p0  ;;  %p16352_p13 = por %p16351_p8, %p16350_p1 }
 0x2a2   : > { %p16348_p10 = pneg %p16347_p12  ;;  %p16354_p2 = por %p16353_p4, %p16352_p13 }
 0x2a4   : > { %p16355_p7 = pnand %p16354_p2, %p16348_p10 }
 0x2a6   : > { %16358 = shalt.err (!%p16355_p7)
}
 0x2a7   : > { %s16359_s4 = scalar_lea.vmem %s1054_s20, 16  ;;  %s16589_s16 = smov [#allocation29]  }
 0x2a8   : > { %p16360_p3 = scmp.ne.s32.totalorder %s1054_s20, %s16359_s4  ;;  %s16363_s21 = sshll.u32 %s16589_s16, 4  ;;  %s16364_s21 = int_to_ptr.vmem [resolvable:$false] %s16363_s21 }
 0x2a9   : > { %s16365_s8 = scalar_lea.vmem %s16364_s21, 32  ;;  %p16366_p5 = scmp.lt.s32.totalorder %s1054_s20, %s16364_s21 }
 0x2aa   : > { %p16361_p6 = pnand %p16360_p3, %p21928_p0  ;;  %p16367_p11 = scmp.lt.s32.totalorder %s16365_s8, %s16359_s4 }
 0x2ac   : > { %p16362_p9 = pneg %p16361_p6  ;;  %p16368_p12 = por %p16367_p11, %p16366_p5 }
 0x2ae   : > { %p16369_p1 = pnand %p16368_p12, %p16362_p9 }
 0x2b0   : > { %16372 = shalt.err (!%p16369_p1)
}
 0x2b1   : > { %s21947_s30 = scalar_lea.sflag [#allocation28], %s17006_s0  ;;  %s13213_s14 = sshll.u32 %s16553_s7, 5 }
 0x2b2   : > { %14525 = dma.hbm_to_vmem [thread:$0]  (%p21928_p0), %s17421_s5, 16, %s1054_s20, %s21947_s30  }
 0x2b3   : > { %s21948_s29 = sld [smem:[#allocation130_spill]]  ;;  %s21950_s21 = sshll.u32 %s17009_s1, 1 }
 0x2b4   : > { %s1085_s4 = scalar_lea.vmem [#allocation32], %s21950_s21 }
 0x2b5   : > { %s1093_s8 = sshll.u32 %s1085_s4, 4  ;;  %s1094_s8 = int_to_ptr.vmem [resolvable:$true] %s1093_s8 }
 0x2b9   : > { %s21949_s16 = smov %s21948_s29  ;;  %s17448_s10 = scalar_lea.hbm %s21948_s29, %s13213_s14 }
 0x2ba   : > { %s16373_s11 = scalar_lea.hbm %s17448_s10, 32  ;;  %s16377_s30 = scalar_lea.hbm %s21949_s16, 64 }
 0x2bb   : > { %p16374_p10 = scmp.ne.s32.totalorder %s17448_s10, %s16373_s11  ;;  %p16378_p4 = scmp.lt.u32.totalorder %s17448_s10, %s21949_s16 }
 0x2bc   : > { %p16379_p2 = scmp.lt.u32.totalorder %s16377_s30, %s16373_s11  ;;  %p16381_p3 = scmp.lt.u32.totalorder %s16373_s11, %s17448_s10 }
 0x2bd   : > { %p16375_p8 = pnand %p16374_p10, %p21928_p0 }
 0x2be   : > { %p16380_p7 = por %p16379_p2, %p16378_p4 }
 0x2bf   : > { %p16376_p13 = pneg %p16375_p8 }
 0x2c0   : > { %p16382_p6 = por %p16381_p3, %p16380_p7 }
 0x2c2   : > { %p16383_p9 = pnand %p16382_p6, %p16376_p13 }
 0x2c4   : > { %16386 = shalt.err (!%p16383_p9)
}
 0x2c5   : > { %s16387_s9 = scalar_lea.vmem %s1094_s8, 32  ;;  %s16590_s29 = smov [#allocation32]  }
 0x2c6   : > { %p16388_p5 = scmp.ne.s32.totalorder %s1094_s8, %s16387_s9  ;;  %s16391_s21 = sshll.u32 %s16590_s29, 4  ;;  %s16392_s21 = int_to_ptr.vmem [resolvable:$false] %s16391_s21 }
 0x2c7   : > { %s16393_s4 = scalar_lea.vmem %s16392_s21, 64  ;;  %p16394_p1 = scmp.lt.s32.totalorder %s1094_s8, %s16392_s21 }
 0x2c8   : > { %p16389_p11 = pnand %p16388_p5, %p21928_p0  ;;  %p16395_p10 = scmp.lt.s32.totalorder %s16393_s4, %s16387_s9 }
 0x2ca   : > { %p16390_p12 = pneg %p16389_p11  ;;  %p16396_p8 = por %p16395_p10, %p16394_p1 }
 0x2cc   : > { %p16397_p2 = pnand %p16396_p8, %p16390_p12 }
 0x2ce   : > { %16400 = shalt.err (!%p16397_p2)
}
 0x2cf   : > { %s21951_s11 = scalar_lea.sflag [#allocation31], %s17006_s0  ;;  %s21952_s30 = sld [smem:[#allocation131_spill]] }
 0x2d0   : > { %14527 = dma.hbm_to_vmem [thread:$0]  (%p21928_p0), %s17448_s10, 32, %s1094_s8, %s21951_s11  }
 0x2d1   : > { %s1124_s9 = scalar_lea.vmem [#allocation35], %s17009_s1 }
 0x2d2   : > { %s1131_s29 = sshll.u32 %s1124_s9, 4  ;;  %s1132_s29 = int_to_ptr.vmem [resolvable:$true] %s1131_s29 }
 0x2d5   : > { %s21953_s18 = smov %s21952_s30  ;;  %s17475_s14 = scalar_lea.hbm %s21952_s30, %s17012_s2 }
 0x2d6   : > { %s16401_s21 = scalar_lea.hbm %s17475_s14, 16  ;;  %s16405_s10 = scalar_lea.hbm %s21953_s18, 32 }
 0x2d7   : > { %p16402_p13 = scmp.ne.s32.totalorder %s17475_s14, %s16401_s21  ;;  %p16406_p3 = scmp.lt.u32.totalorder %s17475_s14, %s21953_s18 }
 0x2d8   : > { %p16407_p6 = scmp.lt.u32.totalorder %s16405_s10, %s16401_s21  ;;  %p16409_p5 = scmp.lt.u32.totalorder %s16401_s21, %s17475_s14 }
 0x2d9   : > { %p16403_p4 = pnand %p16402_p13, %p21928_p0 }
 0x2da   : > { %p16408_p9 = por %p16407_p6, %p16406_p3 }
 0x2db   : > { %p16404_p7 = pneg %p16403_p4 }
 0x2dc   : > { %p16410_p11 = por %p16409_p5, %p16408_p9 }
 0x2de   : > { %p16411_p12 = pnand %p16410_p11, %p16404_p7 }
 0x2e0   : > { %16414 = shalt.err (!%p16411_p12)
}
 0x2e1   : > { %s16415_s1 = scalar_lea.vmem %s1132_s29, 16  ;;  %s16591_s2 = smov [#allocation35]  }
 0x2e2   : > { %p16416_p1 = scmp.ne.s32.totalorder %s1132_s29, %s16415_s1  ;;  %s16419_s5 = sshll.u32 %s16591_s2, 4  ;;  %s16420_s5 = int_to_ptr.vmem [resolvable:$false] %s16419_s5 }
 0x2e3   : > { %s16421_s12 = scalar_lea.vmem %s16420_s5, 32  ;;  %p16422_p2 = scmp.lt.s32.totalorder %s1132_s29, %s16420_s5 }
 0x2e4   : > { %p16417_p10 = pnand %p16416_p1, %p21928_p0  ;;  %p16423_p13 = scmp.lt.s32.totalorder %s16421_s12, %s16415_s1 }
 0x2e6   : > { %p16418_p8 = pneg %p16417_p10  ;;  %p16424_p4 = por %p16423_p13, %p16422_p2 }
 0x2e8   : > { %p16425_p3 = pnand %p16424_p4, %p16418_p8 }
 0x2ea   : > { %16428 = shalt.err (!%p16425_p3)
}
 0x2eb   : > { %s21954_s20 = scalar_lea.sflag [#allocation34], %s17006_s0 }
 0x2ec   : > { %14529 = dma.hbm_to_vmem [thread:$0]  (%p21928_p0), %s17475_s14, 16, %s1132_s29, %s21954_s20  }
 0x2ed PF: > { %s21955_s30 = sld [smem:[#allocation63_spill]] }
 0x2f3   : > { %p21956_p7 = scmp.ne.s32.totalorder %s21955_s30, 0 }
 0x2f5   : > { %1140 = sbr.rel (%p21956_p7) target bundleno = 4668 (0x123c), region = 120 }
 0x2fc   : > { %s21957_s9 = sld [smem:[#allocation59_spill]] }
 0x302   : > { %p21958_p6 = scmp.eq.s32.totalorder %s21957_s9, 0 }
 0x304   : > { %16480 = dma.done.wait (%p21958_p6), [#allocation4], 2048   ;;  %p21959_p9 = pmov %p21958_p6 }
 0x305   : > { %p21960_p5 = pmov %p21958_p6 }
 0x306   : > { %16482 = vsyncadd (%p21959_p9), [#allocation4], 4294965248 }
 0x307   : > { %16484 = dma.done.wait (%p21960_p5), [#allocation7], 1552   ;;  %p21961_p11 = pmov %p21960_p5 }
 0x308   : > { %p21962_p12 = pmov %p21960_p5 }
 0x309   : > { %16486 = vsyncadd (%p21961_p11), [#allocation7], 4294965744 }
 0x30a   : > { %16488 = dma.done.wait (%p21962_p12), [#allocation10], 144   ;;  %p21963_p0 = pmov %p21960_p5 }
 0x30b   : > { %s21964_s27 = sld [smem:[#allocation57_spill]]  ;;  %s21965_s0 = sld [smem:[#allocation61_spill]] }
 0x30c   : > { %16490 = vsyncadd (%p21963_p0), [#allocation10], 4294967152  ;;  %s17512_s14 = sand.u32 1, %s21957_s9  }
 0x30d   : > { %s1163_s21 = scalar_lea.sflag [#allocation13], %s17512_s14 }
 0x311   : > { %s17515_s29 = sand.u32 1, %s21964_s27   ;;  %p21966_p1 = scmp.ne.s32.totalorder %s21965_s0, 0 }
 0x313   : > { %16492 = dma.done.wait (%p21966_p1), %s1163_s21, 32  }
 0x314   : > { %16494 = vsyncadd (%p21966_p1), %s1163_s21, 4294967264  ;;  %s12949_s10 = sshll.u32 %s17515_s29, 5  ;;  %s1179_s11 = scalar_lea.sflag [#allocation16], %s17512_s14 }
 0x315   : > { %s17526_s1 = scalar_lea.vmem [#allocation15], %s12949_s10 }
 0x316   : > { %16496 = dma.done.wait (%p21966_p1), %s1179_s11, 528  }
 0x317   : > { %16498 = vsyncadd (%p21966_p1), %s1179_s11, 4294966768  ;;  %s1196_s5 = scalar_lea.sflag [#allocation19], %s17512_s14  ;;  %s17534_s12 = scalar_lea.vmem [#allocation18], %s12949_s10 }
 0x318   : > { %16500 = dma.done.wait (%p21966_p1), %s1196_s5, 528  }
 0x319   : > { %16502 = vsyncadd (%p21966_p1), %s1196_s5, 4294966768  ;;  %s1213_s30 = scalar_lea.sflag [#allocation22], %s17512_s14  ;;  %s17542_s27 = scalar_lea.vmem [#allocation21], %s12949_s10 }
 0x31a   : > { %16504 = dma.done.wait (%p21966_p1), %s1213_s30, 528  }
 0x31b   : > { %16506 = vsyncadd (%p21966_p1), %s1213_s30, 4294966768  ;;  %s1230_s11 = scalar_lea.sflag [#allocation25], %s17512_s14  ;;  %s17550_s2 = scalar_lea.vmem [#allocation24], %s12949_s10 }
 0x31c   : > { %16508 = dma.done.wait (%p21966_p1), %s1230_s11, 528  }
 0x31d   : > { %16510 = vsyncadd (%p21966_p1), %s1230_s11, 4294966768  ;;  %s1247_s20 = scalar_lea.sflag [#allocation28], %s17512_s14 }
 0x31e   : > { %16512 = dma.done.wait (%p21966_p1), %s1247_s20, 32  }
 0x31f   : > { %16514 = vsyncadd (%p21966_p1), %s1247_s20, 4294967264  ;;  %s12953_s10 = sshll.u32 %s17515_s29, 6  ;;  %s1257_s30 = scalar_lea.vmem [#allocation29], %s17515_s29 }
 0x320   : > { %s1263_s21 = scalar_lea.sflag [#allocation31], %s17512_s14  ;;  %s17566_s11 = scalar_lea.vmem [#allocation30], %s12953_s10 }
 0x321   : > { %16516 = dma.done.wait (%p21966_p1), %s1263_s21, 1056  }
 0x322   : > { %16518 = vsyncadd (%p21966_p1), %s1263_s21, 4294966240  ;;  %s12954_s8 = sshll.u32 %s17515_s29, 1  ;;  %s12955_s20 = sshll.u32 %s17515_s29, 7 }
 0x323   : > { %s17574_s5 = scalar_lea.vmem [#allocation32], %s12954_s8  ;;  %s1281_s4 = scalar_lea.sflag [#allocation34], %s17512_s14 }
 0x324   : > { %s17577_s13 = scalar_lea.vmem [#allocation33], %s12955_s20 }
 0x325   : > { %16520 = dma.done.wait (%p21966_p1), %s1281_s4, 2064  }
 0x326   : > { %16522 = vsyncadd (%p21966_p1), %s1281_s4, 4294965232  ;;  %s1292_s10 = scalar_lea.vmem [#allocation35], %s17515_s29  ;;  %p21967_p10 = pmov %p21963_p0 }
 0x327   : > { %p21968_p8 = pmov %p21963_p0 }
 0x328   : > { %16524 = dma.done.wait (%p21967_p10), [#allocation37], 32  }
 0x329   : > { %16526 = vsyncadd (%p21968_p8), [#allocation37], 4294967264  ;;  %p21969_p2 = pmov %p21963_p0 }
 0x32a   : > { %p21970_p13 = pmov %p21963_p0 }
 0x32b   : > { %16528 = dma.done.wait (%p21969_p2), [#allocation40], 528  }
 0x32c   : > { %16530 = vsyncadd (%p21970_p13), [#allocation40], 4294966768  ;;  %s21971_s14 = sld [smem:[#allocation58_spill]] }
 0x332   : > { %p12960_p4 = scmp.ne.s32.totalorder %s21971_s14, 0 }
 0x333   : > { %v14697_v0 = vld [vmem:[#allocation6] sm:$0xff] (!%p12960_p4)   ;;  %v16592_v1 = vmov (!%p12960_p4), 0   ;;  %v14698_v2 = vld [vmem:[#allocation6 + $0x8] sm:$0xff] (!%p12960_p4)   ;;  %v14699_v3 = vld [vmem:[#allocation6 + $0x10] sm:$0xff] (!%p12960_p4)   ;;  %vm1618_vm0 = vcmask (!%p12960_p4), 523264   ;;  %vm1746_vm1 = vcmask (!%p12960_p4), 1040384  }
 0x334   : > { %1442 = sbr.rel (%p12960_p4) target bundleno = 1108 (0x454), region = 224  ;;  %1631 = vmatprep.subr.bf16.mxu0 (!%p12960_p4), %v16592_v1  ;;  %14464 = vmatprep.subr.bf16.mxu1 (!%p12960_p4), %v16592_v1  ;;  %v14700_v4 = vld [vmem:[#allocation6 + $0x18] sm:$0xff] (!%p12960_p4)   ;;  %v14711_v5 = vld [vmem:[#allocation3 + $0x4] ss:$8 sps:$4 sm:$0xff] (!%p12960_p4)   ;;  %v14703_v13 = vld [vmem:[#allocation6 + $0x30] sm:$0xff] (!%p12960_p4)   ;;  %vm1763_vm2 = vcmask (!%p12960_p4), 1044480  }
 0x335   : > { %1632 = vmatpush1.bf16.msra.mxu0 (!%p12960_p4), %v14697_v0  ;;  %14476 = vmatpush1.bf16.msra.mxu1 (!%p12960_p4), %v14697_v0  ;;  %v14701_v6 = vld [vmem:[#allocation6 + $0x20] sm:$0xff] (!%p12960_p4)   ;;  %v14714_v7 = vld [vmem:[#allocation3 + $0x14] ss:$8 sps:$4 sm:$0xff] (!%p12960_p4)   ;;  %v14702_v11 = vld [vmem:[#allocation6 + $0x28] sm:$0xff] (!%p12960_p4)  }
 0x336   : > { %1633 = vmatprep.subr.bf16.mxu0 (!%p12960_p4), %v16592_v1  ;;  %14465 = vmatprep.subr.bf16.mxu1 (!%p12960_p4), %v16592_v1  ;;  %v1508_v8 = vpack.c.bf16 (!%p12960_p4), %v14714_v7, %v14711_v5  ;;  %v14717_v9 = vld [vmem:[#allocation3 + $0x44] ss:$8 sps:$4 sm:$0xff] (!%p12960_p4)   ;;  %v14720_v10 = vld [vmem:[#allocation3 + $0x54] ss:$8 sps:$4 sm:$0xff] (!%p12960_p4)   ;;  %v14709_v19 = vld [vmem:[#allocation3] ss:$8 sps:$4 sm:$0xff] (!%p12960_p4)  }
 0x337   : > { %v1512_v12 = vpack.c.bf16 (!%p12960_p4), %v14720_v10, %v14717_v9  ;;  %v14704_v14 = vld [vmem:[#allocation6 + $0x38] sm:$0xff] (!%p12960_p4)   ;;  %v14705_v15 = vld [vmem:[#allocation6 + $0x40] sm:$0xff] (!%p12960_p4)   ;;  %v14706_v16 = vld [vmem:[#allocation6 + $0x48] sm:$0xff] (!%p12960_p4)  }
 0x338   : > { %12974 = vmatprep.mubr.msk.bf16.mxu0 (!%p12960_p4), %vm1618_vm0, %v1508_v8  ;;  %v14707_v17 = vld [vmem:[#allocation6 + $0x50] sm:$0xff] (!%p12960_p4)   ;;  %v14708_v18 = vld [vmem:[#allocation6 + $0x58] sm:$0xff] (!%p12960_p4)   ;;  %v14715_v21 = vld [vmem:[#allocation3 + $0x40] ss:$8 sps:$4 sm:$0xff] (!%p12960_p4)  }
 0x339   : > { %1634 = vmatpush1.bf16.msra.mxu0 (!%p12960_p4), %v14698_v2  ;;  %14477 = vmatpush1.bf16.msra.mxu1 (!%p12960_p4), %v14698_v2  ;;  %v14712_v20 = vld [vmem:[#allocation3 + $0x10] ss:$8 sps:$4 sm:$0xff] (!%p12960_p4)   ;;  %v14721_v23 = vld [vmem:[#allocation3 + $0x24] ss:$8 sps:$4 sm:$0xff] (!%p12960_p4)   ;;  %v14723_v24 = vld [vmem:[#allocation3 + $0x34] ss:$8 sps:$4 sm:$0xff] (!%p12960_p4)  }
 0x33a   : > { %1635 = vmatprep.subr.bf16.mxu0 (!%p12960_p4), %v16592_v1  ;;  %14466 = vmatprep.subr.bf16.mxu1 (!%p12960_p4), %v16592_v1  ;;  %v14718_v22 = vld [vmem:[#allocation3 + $0x50] ss:$8 sps:$4 sm:$0xff] (!%p12960_p4)   ;;  %v14725_v25 = vld [vmem:[#allocation3 + $0x64] ss:$8 sps:$4 sm:$0xff] (!%p12960_p4)   ;;  %v14727_v26 = vld [vmem:[#allocation3 + $0x74] ss:$8 sps:$4 sm:$0xff] (!%p12960_p4)   ;;  %v1507_v27 = vpack.c.bf16 (!%p12960_p4), %v14712_v20, %v14709_v19  ;;  %v1510_v29 = vpack.c.bf16 (!%p12960_p4), %v14723_v24, %v14721_v23 }
 0x33b   : > { %12976 = vmatprep.mubr.msk.bf16.mxu1 %vm1618_vm0, %v1512_v12  ;;  %v1511_v28 = vpack.c.bf16 %v14718_v22, %v14715_v21  ;;  %v1514_v30 = vpack.c.bf16 %v14727_v26, %v14725_v25  ;;  %v14729_v31 = vld [vmem:[#allocation3 + $0x20] ss:$8 sps:$4 sm:$0xff]   ;;  %v14730_v32 = vld [vmem:[#allocation3 + $0x30] ss:$8 sps:$4 sm:$0xff]  }
 0x33c   : > { %v14731_v33 = vld [vmem:[#allocation3 + $0x60] ss:$8 sps:$4 sm:$0xff]   ;;  %v14732_v34 = vld [vmem:[#allocation3 + $0x70] ss:$8 sps:$4 sm:$0xff]   ;;  %v1509_v35 = vpack.c.bf16 %v14730_v32, %v14729_v31 }
 0x33d   : > { %1636 = vmatpush1.bf16.msra.mxu0 %v14699_v3  ;;  %14478 = vmatpush1.bf16.msra.mxu1 %v14699_v3  ;;  %v1513_v36 = vpack.c.bf16 %v14732_v34, %v14731_v33  ;;  %v17621_v37 = vld [vmem:[#allocation8] ss:$0 sm:$0xff]  ;;  %v17625_v44 = vld [vmem:[#allocation9] sm:$0x1]  ;;  %v17627_v53 = vld [vmem:[#allocation11] sm:$0xff] }
 0x33e   : > { %1637 = vmatprep.subr.bf16.mxu0 %v16592_v1  ;;  %14467 = vmatprep.subr.bf16.mxu1 %v16592_v1 }
 0x341   : > { %1638 = vmatpush1.bf16.msra.mxu0 %v14700_v4  ;;  %14479 = vmatpush1.bf16.msra.mxu1 %v14700_v4 }
 0x342   : > { %1639 = vmatprep.subr.bf16.mxu0 %v16592_v1  ;;  %14468 = vmatprep.subr.bf16.mxu1 %v16592_v1 }
 0x345   : > { %1640 = vmatpush1.bf16.msra.mxu0 %v14701_v6  ;;  %14480 = vmatpush1.bf16.msra.mxu1 %v14701_v6 }
 0x346   : > { %1641 = vmatprep.subr.bf16.mxu0 %v16592_v1  ;;  %14469 = vmatprep.subr.bf16.mxu1 %v16592_v1 }
 0x349   : > { %1642 = vmatpush1.bf16.msra.mxu0 %v14702_v11  ;;  %14481 = vmatpush1.bf16.msra.mxu1 %v14702_v11 }
 0x34a   : > { %1643 = vmatprep.subr.bf16.mxu0 %v16592_v1  ;;  %14470 = vmatprep.subr.bf16.mxu1 %v16592_v1 }
 0x34d   : > { %1644 = vmatpush1.bf16.msra.mxu0 %v14703_v13  ;;  %14482 = vmatpush1.bf16.msra.mxu1 %v14703_v13 }
 0x34e   : > { %1645 = vmatprep.subr.bf16.mxu0 %v16592_v1  ;;  %14471 = vmatprep.subr.bf16.mxu1 %v16592_v1 }
 0x351   : > { %1646 = vmatpush1.bf16.msra.mxu0 %v14704_v14  ;;  %14483 = vmatpush1.bf16.msra.mxu1 %v14704_v14 }
 0x352   : > { %1647 = vmatprep.subr.bf16.mxu0 %v16592_v1  ;;  %14472 = vmatprep.subr.bf16.mxu1 %v16592_v1 }
 0x355   : > { %1648 = vmatpush1.bf16.msra.mxu0 %v14705_v15  ;;  %14484 = vmatpush1.bf16.msra.mxu1 %v14705_v15 }
 0x356   : > { %1649 = vmatprep.subr.bf16.mxu0 %v16592_v1  ;;  %14473 = vmatprep.subr.bf16.mxu1 %v16592_v1 }
 0x359   : > { %1650 = vmatpush1.bf16.msra.mxu0 %v14706_v16  ;;  %14485 = vmatpush1.bf16.msra.mxu1 %v14706_v16 }
 0x35a   : > { %1651 = vmatprep.subr.bf16.mxu0 %v16592_v1  ;;  %14474 = vmatprep.subr.bf16.mxu1 %v16592_v1 }
 0x35d   : > { %1652 = vmatpush1.bf16.msra.mxu0 %v14707_v17  ;;  %14486 = vmatpush1.bf16.msra.mxu1 %v14707_v17 }
 0x35e   : > { %1653 = vmatprep.subr.bf16.mxu0 %v16592_v1  ;;  %14475 = vmatprep.subr.bf16.mxu1 %v16592_v1 }
 0x361   : > { %1654 = vmatpush1.bf16.msra.mxu0 %v14708_v18  ;;  %14487 = vmatpush1.bf16.msra.mxu1 %v14708_v18 }
 0x364   : > { %1664 = vmatmul.mubr.bf16.vlgmr.msra.gmra.mrb[0].mxu0 %v1507_v27  ;;  %1680 = vmatmul.mubr.bf16.vlgmr.msra.gmra.mrb[0].mxu1 %v1511_v28 }
 0x365   : > { %12975 = vmatprep.mubr.msk.bf16.mxu0 %vm1618_vm0, %v1510_v29  ;;  %12977 = vmatprep.mubr.msk.bf16.mxu1 %vm1618_vm0, %v1514_v30 }
 0x36c   : > { %1672 = vmatmul.mubr.bf16.gmra.mrb[4].mxu0 %v1509_v35  ;;  %1688 = vmatmul.mubr.bf16.gmra.mrb[4].mxu1 %v1513_v36 }
 0x437   : > { %v1665_v38 = vpop.f32.mrb[0].mxu0  ;;  %v1681_v39 = vpop.f32.mrb[0].mxu1 }
 0x438   : > { %v1666_v40 = vadd.f32 %v17621_v37, %v1665_v38  ;;  %v1682_v41 = vadd.f32 %v17621_v37, %v1681_v39  ;;  %v1667_v42 = vpop.f32.mrb[1].mxu0  ;;  %v1683_v43 = vpop.f32.mrb[1].mxu1 }
 0x439   : > { %v1668_v45 = vpop.f32.mrb[2].mxu0  ;;  %v1684_v46 = vpop.f32.mrb[2].mxu1 }
 0x43a   : > { %v1706_v47 = vcombine.high %v1666_v40, %v1666_v40  ;;  %v1714_v48 = vrot.slane %v1666_v40, 7  ;;  %v1710_v49 = vcombine.high %v1682_v41, %v1682_v41  ;;  %v1722_v50 = vrot.slane %v1682_v41, 7  ;;  %v1670_v51 = vpop.f32.mrb[3].mxu0  ;;  %v1686_v52 = vpop.f32.mrb[3].mxu1 }
 0x43b   : > { %v1669_v54 = vadd.f32 %v17621_v37, %v1668_v45  ;;  %v1685_v55 = vadd.f32 %v17621_v37, %v1684_v46 }
 0x43c   : > { %v1715_v56 = vrot.slane %v1706_v47, 7  ;;  %v1747_v57 = vsel %vm1746_vm1, %v17625_v44, %v1714_v48  ;;  %v1723_v58 = vrot.slane %v1710_v49, 7  ;;  %v1755_v59 = vsel %vm1746_vm1, %v17625_v44, %v1722_v50 }
 0x43d   : > { %v1764_v60 = vsel %vm1763_vm2, %v1747_v57, 0.0  ;;  %v1772_v61 = vsel %vm1763_vm2, %v1755_v59, 0.0  ;;  %v1707_v62 = vcombine.high %v1669_v54, %v1669_v54  ;;  %v1716_v63 = vrot.slane %v1669_v54, 7 }
 0x43e   : > { %v1748_v0 = vsel %vm1746_vm1, %v17625_v44, %v1715_v56  ;;  %v1781_v1 = vadd.f32 %v17627_v53, %v1764_v60  ;;  %v1756_v2 = vsel %vm1746_vm1, %v17625_v44, %v1723_v58  ;;  %v1789_v3 = vadd.f32 %v17627_v53, %v1772_v61 }
 0x43f   : > { %v1765_v4 = vsel %vm1763_vm2, %v1748_v0, 0.0  ;;  %v1773_v5 = vsel %vm1763_vm2, %v1756_v2, 0.0  ;;  %v1717_v6 = vrot.slane %v1707_v62, 7  ;;  %v1749_v7 = vsel %vm1746_vm1, %v17625_v44, %v1716_v63  ;;  %v1673_v8 = vpop.f32.mrb[4].mxu0  ;;  %v1689_v9 = vpop.f32.mrb[4].mxu1 }
 0x440   : > { %v1782_v10 = vadd.f32 %v17627_v53, %v1765_v4  ;;  %1797 = vst.msk [vmem:[#allocation2] sm:$0xff] %vm1618_vm0, %v1781_v1  ;;  %v1790_v11 = vadd.f32 %v17627_v53, %v1773_v5  ;;  %1805 = vst.msk [vmem:[#allocation2 + $0x40] sm:$0xff] %vm1618_vm0, %v1789_v3  ;;  %v1766_v12 = vsel %vm1763_vm2, %v1749_v7, 0.0  ;;  %v1711_v13 = vcombine.high %v1685_v55, %v1685_v55  ;;  %v1675_v14 = vpop.f32.mrb[5].mxu0  ;;  %v1691_v15 = vpop.f32.mrb[5].mxu1 }
 0x441   : > { %v1750_v16 = vsel %vm1746_vm1, %v17625_v44, %v1717_v6  ;;  %v1783_v17 = vadd.f32 %v17627_v53, %v1766_v12  ;;  %v1724_v18 = vrot.slane %v1685_v55, 7  ;;  %v1674_v19 = vadd.f32 %v17621_v37, %v1673_v8  ;;  %v1676_v20 = vpop.f32.mrb[6].mxu0  ;;  %v1692_v21 = vpop.f32.mrb[6].mxu1 }
 0x442   : > { %1798 = vst.msk [vmem:[#allocation2 + $0x8] sm:$0xff] %vm1618_vm0, %v1782_v10  ;;  %1806 = vst.msk [vmem:[#allocation2 + $0x48] sm:$0xff] %vm1618_vm0, %v1790_v11  ;;  %v1767_v22 = vsel %vm1763_vm2, %v1750_v16, 0.0  ;;  %v1725_v23 = vrot.slane %v1711_v13, 7  ;;  %v1690_v24 = vadd.f32 %v17621_v37, %v1689_v9  ;;  %v1677_v25 = vadd.f32 %v17621_v37, %v1676_v20  ;;  %v1678_v26 = vpop.f32.mrb[7].mxu0  ;;  %v1694_v27 = vpop.f32.mrb[7].mxu1 }
 0x443   : > { %v1784_v28 = vadd.f32 %v17627_v53, %v1767_v22  ;;  %1799 = vst.msk [vmem:[#allocation2 + $0x10] sm:$0xff] %vm1618_vm0, %v1783_v17  ;;  %v1757_v29 = vsel %vm1746_vm1, %v17625_v44, %v1724_v18  ;;  %v1708_v30 = vcombine.high %v1674_v19, %v1674_v19  ;;  %v1718_v31 = vrot.slane %v1674_v19, 7 }
 0x444   : > { %v1758_v32 = vsel %vm1746_vm1, %v17625_v44, %v1725_v23  ;;  %v1774_v33 = vsel %vm1763_vm2, %v1757_v29, 0.0  ;;  %v1712_v34 = vcombine.high %v1690_v24, %v1690_v24  ;;  %v1726_v35 = vrot.slane %v1690_v24, 7 }
 0x445   : > { %1800 = vst.msk [vmem:[#allocation2 + $0x18] sm:$0xff] %vm1618_vm0, %v1784_v28  ;;  %v1775_v36 = vsel %vm1763_vm2, %v1758_v32, 0.0  ;;  %v1791_v38 = vadd.f32 %v17627_v53, %v1774_v33  ;;  %v1719_v39 = vrot.slane %v1708_v30, 7  ;;  %v1751_v40 = vsel %vm1746_vm1, %v17625_v44, %v1718_v31 }
 0x446   : > { %v1792_v41 = vadd.f32 %v17627_v53, %v1775_v36  ;;  %v1768_v42 = vsel %vm1763_vm2, %v1751_v40, 0.0  ;;  %v1727_v43 = vrot.slane %v1712_v34, 7  ;;  %v1759_v45 = vsel %vm1746_vm1, %v17625_v44, %v1726_v35 }
 0x447   : > { %1807 = vst.msk [vmem:[#allocation2 + $0x50] sm:$0xff] %vm1618_vm0, %v1791_v38  ;;  %v1752_v46 = vsel %vm1746_vm1, %v17625_v44, %v1719_v39  ;;  %v1785_v47 = vadd.f32 %v17627_v53, %v1768_v42  ;;  %v1776_v48 = vsel %vm1763_vm2, %v1759_v45, 0.0  ;;  %v1709_v49 = vcombine.high %v1677_v25, %v1677_v25 }
 0x448   : > { %1808 = vst.msk [vmem:[#allocation2 + $0x58] sm:$0xff] %vm1618_vm0, %v1792_v41  ;;  %v1769_v50 = vsel %vm1763_vm2, %v1752_v46, 0.0  ;;  %v1760_v51 = vsel %vm1746_vm1, %v17625_v44, %v1727_v43  ;;  %v1793_v52 = vadd.f32 %v17627_v53, %v1776_v48  ;;  %v1720_v54 = vrot.slane %v1677_v25, 7 }
 0x449   : > { %v1786_v55 = vadd.f32 %v17627_v53, %v1769_v50  ;;  %1801 = vst.msk [vmem:[#allocation2 + $0x20] sm:$0xff] %vm1618_vm0, %v1785_v47  ;;  %v1777_v56 = vsel %vm1763_vm2, %v1760_v51, 0.0  ;;  %v1721_v57 = vrot.slane %v1709_v49, 7  ;;  %v1693_v58 = vadd.f32 %v17621_v37, %v1692_v21 }
 0x44a   : > { %v1794_v59 = vadd.f32 %v17627_v53, %v1777_v56  ;;  %1809 = vst.msk [vmem:[#allocation2 + $0x60] sm:$0xff] %vm1618_vm0, %v1793_v52  ;;  %v1753_v60 = vsel %vm1746_vm1, %v17625_v44, %v1720_v54 }
 0x44b   : > { %1802 = vst.msk [vmem:[#allocation2 + $0x28] sm:$0xff] %vm1618_vm0, %v1786_v55  ;;  %v1754_v61 = vsel %vm1746_vm1, %v17625_v44, %v1721_v57  ;;  %v1770_v62 = vsel %vm1763_vm2, %v1753_v60, 0.0  ;;  %v1713_v63 = vcombine.high %v1693_v58, %v1693_v58  ;;  %v1728_v0 = vrot.slane %v1693_v58, 7 }
 0x44c   : > { %1810 = vst.msk [vmem:[#allocation2 + $0x68] sm:$0xff] %vm1618_vm0, %v1794_v59  ;;  %v1771_v37 = vsel %vm1763_vm2, %v1754_v61, 0.0  ;;  %v1787_v1 = vadd.f32 %v17627_v53, %v1770_v62 }
 0x44d   : > { %v1788_v2 = vadd.f32 %v17627_v53, %v1771_v37  ;;  %v1729_v3 = vrot.slane %v1713_v63, 7  ;;  %v1761_v4 = vsel %vm1746_vm1, %v17625_v44, %v1728_v0 }
 0x44e   : > { %1803 = vst.msk [vmem:[#allocation2 + $0x30] sm:$0xff] %vm1618_vm0, %v1787_v1  ;;  %v1778_v5 = vsel %vm1763_vm2, %v1761_v4, 0.0 }
 0x44f   : > { %1804 = vst.msk [vmem:[#allocation2 + $0x38] sm:$0xff] %vm1618_vm0, %v1788_v2  ;;  %v1762_v6 = vsel %vm1746_vm1, %v17625_v44, %v1729_v3  ;;  %v1795_v7 = vadd.f32 %v17627_v53, %v1778_v5 }
 0x450   : > { %v1779_v8 = vsel %vm1763_vm2, %v1762_v6, 0.0 }
 0x451   : > { %v1796_v9 = vadd.f32 %v17627_v53, %v1779_v8  ;;  %1811 = vst.msk [vmem:[#allocation2 + $0x70] sm:$0xff] %vm1618_vm0, %v1795_v7 }
 0x453   : > { %1812 = vst.msk [vmem:[#allocation2 + $0x78] sm:$0xff] %vm1618_vm0, %v1796_v9 }
 0x454 PF: > { %v1821_v10 = vld [vmem:[#allocation2 + $0x40] sm:$0xff]  ;;  %vm1831_vm3 = vcmask 523264   ;;  %v1823_v11 = vld [vmem:[#allocation2 + $0x50] sm:$0xff]  ;;  %v1822_v12 = vld [vmem:[#allocation2 + $0x48] sm:$0xff]  ;;  %s21972_s9 = scalar_lea.vmem [#allocation12], %s17515_s29  ;;  %s21973_s0 = scalar_lea.vmem [#allocation14], %s17515_s29 }
 0x455   : > { %v1856_v13 = vsel %vm1831_vm3, %v1821_v10, 0.0  ;;  %v1862_v14 = vsel %vm1831_vm3, %v1823_v11, 0.0  ;;  %v1824_v44 = vld [vmem:[#allocation2 + $0x58] sm:$0xff]  ;;  %v17717_v15 = vld [vmem:[#allocation2 + $0x60] sm:$0xff]  ;;  %v17719_v16 = vld [vmem:[#allocation2 + $0x68] sm:$0xff]  ;;  %v1859_v19 = vsel %vm1831_vm3, %v1822_v12, 0.0 }
 0x456   : > { %1857 = vadd.xlane.f32.xlu0 %v1856_v13  ;;  %1863 = vadd.xlane.f32.xlu1 %v1862_v14  ;;  %v17725_v18 = vld [vmem:[#allocation2] sm:$0xff]  ;;  %v1865_v20 = vsel %vm1831_vm3, %v1824_v44, 0.0  ;;  %v17729_v21 = vld [vmem:[#allocation2 + $0x8] sm:$0xff]  ;;  %v1868_v22 = vsel %vm1831_vm3, %v17717_v15, 0.0  ;;  %v1871_v23 = vsel %vm1831_vm3, %v17719_v16, 0.0  ;;  %v17743_v28 = vld [vmem:[#allocation2 + $0x10] sm:$0xff] }
 0x457   : > { %v1832_v26 = vsel %vm1831_vm3, %v17725_v18, 0.0  ;;  %v1835_v27 = vsel %vm1831_vm3, %v17729_v21, 0.0  ;;  %v17745_v29 = vld [vmem:[#allocation2 + $0x18] sm:$0xff]  ;;  %v17747_v30 = vld [vmem:[#allocation2 + $0x20] sm:$0xff]  ;;  %v17749_v31 = vld [vmem:[#allocation2 + $0x28] sm:$0xff]  ;;  %v1838_v34 = vsel %vm1831_vm3, %v17743_v28, 0.0 }
 0x458   : > { %v17721_v53 = vld [vmem:[#allocation2 + $0x70] sm:$0xff]  ;;  %v17753_v33 = vld [vmem:[#allocation2 + $0x38] sm:$0xff]  ;;  %v1841_v35 = vsel %vm1831_vm3, %v17745_v29, 0.0  ;;  %v1844_v36 = vsel %vm1831_vm3, %v17747_v30, 0.0  ;;  %v1847_v38 = vsel %vm1831_vm3, %v17749_v31, 0.0  ;;  %vm16594_vm4 = vmmov 0  }
 0x459   : > { %v1874_v24 = vsel %vm1831_vm3, %v17721_v53, 0.0  ;;  %v17751_v32 = vld [vmem:[#allocation2 + $0x30] sm:$0xff]  ;;  %v1853_v40 = vsel %vm1831_vm3, %v17753_v33, 0.0  ;;  %s21974_s4 = scalar_lea.vmem [#allocation17], %s17515_s29  ;;  %s21975_s8 = scalar_lea.vmem [#allocation20], %s17515_s29  ;;  %vm3137_vm5 = vcmask 130048  }
 0x45a   : > { %v17723_v17 = vld [vmem:[#allocation2 + $0x78] sm:$0xff]  ;;  %1860 = vadd.xlane.f32.xlu0 %v1859_v19  ;;  %1866 = vadd.xlane.f32.xlu1 %v1865_v20  ;;  %v1850_v39 = vsel %vm1831_vm3, %v17751_v32, 0.0  ;;  %s16597_s21 = smov 80   ;;  %vm6210_vm7 = vcmask 64512   ;;  %vm7046_vm8 = vcmask 1043456   ;;  %s16599_s20 = smov 16  }
 0x45b   : > { %v1877_v25 = vsel %vm1831_vm3, %v17723_v17, 0.0  ;;  %s16600_s14 = smov 32   ;;  %vm10196_vm9 = vcmask 261120   ;;  %vm10213_vm10 = vcmask 392192  }
 0x45e   : > { %1869 = vadd.xlane.f32.xlu0 %v1868_v22  ;;  %1872 = vadd.xlane.f32.xlu1 %v1871_v23 }
 0x462   : > { %1875 = vadd.xlane.f32.xlu0 %v1874_v24  ;;  %1878 = vadd.xlane.f32.xlu1 %v1877_v25 }
 0x466   : > { %1833 = vadd.xlane.f32.xlu0 %v1832_v26  ;;  %1836 = vadd.xlane.f32.xlu1 %v1835_v27 }
 0x46a   : > { %1839 = vadd.xlane.f32.xlu0 %v1838_v34  ;;  %1842 = vadd.xlane.f32.xlu1 %v1841_v35 }
 0x46e   : > { %1845 = vadd.xlane.f32.xlu0 %v1844_v36  ;;  %1848 = vadd.xlane.f32.xlu1 %v1847_v38 }
 0x472   : > { %1851 = vadd.xlane.f32.xlu0 %v1850_v39  ;;  %1854 = vadd.xlane.f32.xlu1 %v1853_v40 }
 0x4e3   : > { %v1858_v41 = vpop.xlane.xlu0 %1857  ;;  %v1864_v42 = vpop.xlane.xlu1 %1863 }
 0x4e4   : > { %v1889_v43 = vmul.f32 0.015625, %v1858_v41  ;;  %v1891_v45 = vmul.f32 0.015625, %v1864_v42 }
 0x4e6   : > { %v17767_v46 = vsub.f32 %v1821_v10, %v1889_v43  ;;  %v17769_v47 = vsub.f32 %v1823_v11, %v1891_v45 }
 0x4e7   : > { %v1861_v48 = vpop.xlane.xlu0 %1860  ;;  %v1867_v49 = vpop.xlane.xlu1 %1866 }
 0x4e8   : > { %v1890_v50 = vmul.f32 0.015625, %v1861_v48  ;;  %v1892_v51 = vmul.f32 0.015625, %v1867_v49  ;;  %v1921_v52 = vmul.f32 %v17767_v46, %v17767_v46  ;;  %v1923_v54 = vmul.f32 %v17769_v47, %v17769_v47 }
 0x4ea   : > { %v17775_v55 = vsub.f32 %v1822_v12, %v1890_v50  ;;  %v17777_v56 = vsub.f32 %v1824_v44, %v1892_v51  ;;  %v1953_v57 = vsel %vm1831_vm3, %v1921_v52, 0.0  ;;  %v1959_v60 = vsel %vm1831_vm3, %v1923_v54, 0.0 }
 0x4eb   : > { %v1870_v58 = vpop.xlane.xlu0 %1869  ;;  %1954 = vadd.xlane.f32.xlu0 %v1953_v57  ;;  %v1873_v59 = vpop.xlane.xlu1 %1872 }
 0x4ec   : > { %v1893_v61 = vmul.f32 0.015625, %v1870_v58  ;;  %v1894_v62 = vmul.f32 0.015625, %v1873_v59  ;;  %v1922_v63 = vmul.f32 %v17775_v55, %v17775_v55  ;;  %v1924_v0 = vmul.f32 %v17777_v56, %v17777_v56 }
 0x4ee   : > { %v17786_v37 = vsub.f32 %v17717_v15, %v1893_v61  ;;  %v17789_v1 = vsub.f32 %v17719_v16, %v1894_v62  ;;  %v1956_v2 = vsel %vm1831_vm3, %v1922_v63, 0.0  ;;  %v1962_v5 = vsel %vm1831_vm3, %v1924_v0, 0.0  ;;  %v15214_v0 = vld [vmem:[%s17526_s1 + $0x8] sm:$0xff]  }
 0x4ef   : > { %v1876_v3 = vpop.xlane.xlu0 %1875  ;;  %1957 = vadd.xlane.f32.xlu1 %v1956_v2  ;;  %1960 = vadd.xlane.f32.xlu0 %v1959_v60  ;;  %v1879_v4 = vpop.xlane.xlu1 %1878  ;;  %v15215_v2 = vld [vmem:[%s17526_s1 + $0x10] sm:$0xff]  }
 0x4f0   : > { %v1895_v6 = vmul.f32 0.015625, %v1876_v3  ;;  %v1896_v7 = vmul.f32 0.015625, %v1879_v4  ;;  %v1925_v8 = vmul.f32 %v17786_v37, %v17786_v37  ;;  %v1926_v9 = vmul.f32 %v17789_v1, %v17789_v1  ;;  %v15216_v3 = vld [vmem:[%s17526_s1 + $0x18] sm:$0xff]   ;;  %v17864_v4 = vld [vmem:[%s17534_s12] sm:$0xff]  }
 0x4f2   : > { %v17798_v10 = vsub.f32 %v17721_v53, %v1895_v6  ;;  %v17801_v11 = vsub.f32 %v17723_v17, %v1896_v7  ;;  %v1965_v12 = vsel %vm1831_vm3, %v1925_v8, 0.0  ;;  %v1968_v14 = vsel %vm1831_vm3, %v1926_v9, 0.0 }
 0x4f3   : > { %1963 = vadd.xlane.f32.xlu1 %v1962_v5  ;;  %1966 = vadd.xlane.f32.xlu0 %v1965_v12  ;;  %v1834_v13 = vpop.xlane.xlu0 %1833  ;;  %v1837_v44 = vpop.xlane.xlu1 %1836  ;;  %v17868_v5 = vld [vmem:[%s17542_s27] sm:$0xff]  }
 0x4f4   : > { %v1881_v15 = vmul.f32 0.015625, %v1834_v13  ;;  %v1882_v16 = vmul.f32 0.015625, %v1837_v44  ;;  %v1927_v19 = vmul.f32 %v17798_v10, %v17798_v10  ;;  %v1928_v53 = vmul.f32 %v17801_v11, %v17801_v11 }
 0x4f6   : > { %v17810_v20 = vsub.f32 %v17725_v18, %v1881_v15  ;;  %v17813_v17 = vsub.f32 %v17729_v21, %v1882_v16  ;;  %v1971_v22 = vsel %vm1831_vm3, %v1927_v19, 0.0  ;;  %v1974_v24 = vsel %vm1831_vm3, %v1928_v53, 0.0 }
 0x4f7   : > { %1969 = vadd.xlane.f32.xlu1 %v1968_v14  ;;  %1972 = vadd.xlane.f32.xlu0 %v1971_v22  ;;  %v1840_v23 = vpop.xlane.xlu0 %1839  ;;  %v1843_v25 = vpop.xlane.xlu1 %1842 }
 0x4f8   : > { %v1883_v26 = vmul.f32 0.015625, %v1840_v23  ;;  %v1884_v27 = vmul.f32 0.015625, %v1843_v25  ;;  %v1913_v34 = vmul.f32 %v17810_v20, %v17810_v20  ;;  %v1914_v18 = vmul.f32 %v17813_v17, %v17813_v17 }
 0x4fa   : > { %v17822_v35 = vsub.f32 %v17743_v28, %v1883_v26  ;;  %v17825_v21 = vsub.f32 %v17745_v29, %v1884_v27  ;;  %v1929_v36 = vsel %vm1831_vm3, %v1913_v34, 0.0  ;;  %v1932_v39 = vsel %vm1831_vm3, %v1914_v18, 0.0 }
 0x4fb   : > { %1975 = vadd.xlane.f32.xlu1 %v1974_v24  ;;  %1930 = vadd.xlane.f32.xlu0 %v1929_v36  ;;  %v1846_v38 = vpop.xlane.xlu0 %1845  ;;  %v1849_v40 = vpop.xlane.xlu1 %1848 }
 0x4fc   : > { %v1885_v41 = vmul.f32 0.015625, %v1846_v38  ;;  %v1886_v42 = vmul.f32 0.015625, %v1849_v40  ;;  %v1915_v43 = vmul.f32 %v17822_v35, %v17822_v35  ;;  %v1916_v28 = vmul.f32 %v17825_v21, %v17825_v21 }
 0x4fe   : > { %v17834_v45 = vsub.f32 %v17747_v30, %v1885_v41  ;;  %v17837_v29 = vsub.f32 %v17749_v31, %v1886_v42  ;;  %v1935_v48 = vsel %vm1831_vm3, %v1915_v43, 0.0  ;;  %v1938_v50 = vsel %vm1831_vm3, %v1916_v28, 0.0  ;;  %v17874_v28 = vld [vmem:[%s21972_s9] ss:$0 sm:$0xff]  ;;  %s16601_s9 = smov 48  }
 0x4ff   : > { %1933 = vadd.xlane.f32.xlu1 %v1932_v39  ;;  %1936 = vadd.xlane.f32.xlu0 %v1935_v48  ;;  %v1852_v49 = vpop.xlane.xlu0 %1851  ;;  %v1855_v51 = vpop.xlane.xlu1 %1854 }
 0x500   : > { %v1887_v52 = vmul.f32 0.015625, %v1852_v49  ;;  %v1888_v54 = vmul.f32 0.015625, %v1855_v51  ;;  %v1917_v57 = vmul.f32 %v17834_v45, %v17834_v45  ;;  %v1918_v30 = vmul.f32 %v17837_v29, %v17837_v29 }
 0x502   : > { %v17846_v31 = vsub.f32 %v17751_v32, %v1887_v52  ;;  %v17849_v58 = vsub.f32 %v17753_v33, %v1888_v54  ;;  %v1941_v59 = vsel %vm1831_vm3, %v1917_v57, 0.0  ;;  %v1944_v60 = vsel %vm1831_vm3, %v1918_v30, 0.0  ;;  %v15213_v33 = vld [vmem:[%s17526_s1] sm:$0xff]   ;;  %s16595_s1 = smov 112  }
 0x503   : > { %1939 = vadd.xlane.f32.xlu1 %v1938_v50  ;;  %1942 = vadd.xlane.f32.xlu0 %v1941_v59 }
 0x504   : > { %v1919_v61 = vmul.f32 %v17846_v31, %v17846_v31  ;;  %v1920_v62 = vmul.f32 %v17849_v58, %v17849_v58  ;;  %14488 = vmatprep.subr.bf16.mxu1 %v15213_v33  ;;  %13588 = vmatprep.subr.bf16.mxu0 %v15213_v33 }
 0x505   : > { %14492 = vmatpush3.bf16.msra.mxu1 %v15213_v33  ;;  %13589 = vmatpush3.bf16.msra.mxu0 %v15213_v33 }
 0x506   : > { %v1947_v32 = vsel %vm1831_vm3, %v1919_v61, 0.0  ;;  %v1950_v63 = vsel %vm1831_vm3, %v1920_v62, 0.0  ;;  %14489 = vmatprep.subr.bf16.mxu1 %v15214_v0  ;;  %13590 = vmatprep.subr.bf16.mxu0 %v15214_v0 }
 0x507   : > { %1945 = vadd.xlane.f32.xlu1 %v1944_v60  ;;  %1948 = vadd.xlane.f32.xlu0 %v1947_v32  ;;  %v17880_v60 = vld [vmem:[%s21973_s0] ss:$0 sm:$0xff] }
 0x509   : > { %14493 = vmatpush3.bf16.msra.mxu1 %v15214_v0  ;;  %13591 = vmatpush3.bf16.msra.mxu0 %v15214_v0 }
 0x50a   : > { %14490 = vmatprep.subr.bf16.mxu1 %v15215_v2  ;;  %13592 = vmatprep.subr.bf16.mxu0 %v15215_v2 }
 0x50b   : > { %1951 = vadd.xlane.f32.xlu1 %v1950_v63 }
 0x50d   : > { %14494 = vmatpush3.bf16.msra.mxu1 %v15215_v2  ;;  %13593 = vmatpush3.bf16.msra.mxu0 %v15215_v2 }
 0x50e   : > { %14491 = vmatprep.subr.bf16.mxu1 %v15216_v3  ;;  %13594 = vmatprep.subr.bf16.mxu0 %v15216_v3 }
 0x511   : > { %14495 = vmatpush3.bf16.msra.mxu1 %v15216_v3  ;;  %13595 = vmatpush3.bf16.msra.mxu0 %v15216_v3 }
 0x512   : > { %13612 = vmatprep.subr.bf16.mxu1 %v17864_v4  ;;  %13636 = vmatprep.subr.bf16.mxu0 %v17868_v5 }
 0x578   : > { %v1955_v6 = vpop.xlane.xlu0 %1954 }
 0x579   : > { %v1985_v7 = vmul.f32 0.015625, %v1955_v6 }
 0x57b   : > { %v2001_v8 = vadd.f32 1e-06, %v1985_v7 }
 0x57c   : > { %v1958_v9 = vpop.xlane.xlu1 %1957  ;;  %v1961_v12 = vpop.xlane.xlu0 %1960 }
 0x57d   : > { %15257 = vrsqrt.f32 %v2001_v8  ;;  %v1986_v13 = vmul.f32 0.015625, %v1958_v9  ;;  %v1987_v14 = vmul.f32 0.015625, %v1961_v12 }
 0x57f   : > { %v2002_v44 = vadd.f32 1e-06, %v1986_v13  ;;  %v2003_v15 = vadd.f32 1e-06, %v1987_v14 }
 0x580   : > { %v1964_v16 = vpop.xlane.xlu1 %1963  ;;  %v1967_v19 = vpop.xlane.xlu0 %1966 }
 0x581   : > { %15259 = vrsqrt.f32 %v2002_v44  ;;  %v1988_v53 = vmul.f32 0.015625, %v1964_v16  ;;  %v1989_v22 = vmul.f32 0.015625, %v1967_v19 }
 0x582   : > { %15261 = vrsqrt.f32 %v2003_v15 }
 0x583   : > { %v2004_v23 = vadd.f32 1e-06, %v1988_v53  ;;  %v2005_v24 = vadd.f32 1e-06, %v1989_v22 }
 0x584   : > { %v1970_v25 = vpop.xlane.xlu1 %1969  ;;  %v1973_v26 = vpop.xlane.xlu0 %1972 }
 0x585   : > { %15263 = vrsqrt.f32 %v2004_v23  ;;  %v1990_v27 = vmul.f32 0.015625, %v1970_v25  ;;  %v1991_v34 = vmul.f32 0.015625, %v1973_v26 }
 0x586   : > { %15265 = vrsqrt.f32 %v2005_v24 }
 0x587   : > { %v15258_v18 = vpop.eup %15257  ;;  %v2006_v36 = vadd.f32 1e-06, %v1990_v27  ;;  %v2007_v38 = vadd.f32 1e-06, %v1991_v34 }
 0x588   : > { %v1976_v39 = vpop.xlane.xlu1 %1975  ;;  %v1931_v40 = vpop.xlane.xlu0 %1930  ;;  %v2033_v41 = vmul.f32 %v15258_v18, %v17767_v46 }
 0x589   : > { %15267 = vrsqrt.f32 %v2006_v36  ;;  %v1992_v42 = vmul.f32 0.015625, %v1976_v39  ;;  %v1977_v43 = vmul.f32 0.015625, %v1931_v40  ;;  %v15218_v36 = vld [vmem:[%s17534_s12 + $0x8] sm:$0xff]  }
 0x58a   : > { %15269 = vrsqrt.f32 %v2007_v38  ;;  %v2055_v30 = vmul.f32 %v17874_v28, %v2033_v41 }
 0x58b   : > { %v15260_v48 = vpop.eup %15259  ;;  %v2008_v49 = vadd.f32 1e-06, %v1992_v42  ;;  %v1993_v50 = vadd.f32 1e-06, %v1977_v43 }
 0x58c   : > { %v15262_v51 = vpop.eup %15261  ;;  %v1934_v52 = vpop.xlane.xlu1 %1933  ;;  %v2034_v57 = vmul.f32 %v15260_v48, %v17775_v55  ;;  %v2077_v55 = vadd.f32 %v17880_v60, %v2055_v30 }
 0x58d   : > { %v1937_v54 = vpop.xlane.xlu0 %1936  ;;  %15271 = vrsqrt.f32 %v2008_v49  ;;  %v1978_v46 = vmul.f32 0.015625, %v1934_v52  ;;  %v2035_v61 = vmul.f32 %v15262_v51, %v17769_v47 }
 0x58e   : > { %v1979_v59 = vmul.f32 0.015625, %v1937_v54  ;;  %15273 = vrsqrt.f32 %v1993_v50  ;;  %v2056_v62 = vmul.f32 %v17874_v28, %v2034_v57  ;;  %v15219_v54 = vld [vmem:[%s17534_s12 + $0x10] sm:$0xff]  }
 0x58f   : > { %v15264_v32 = vpop.eup %15263  ;;  %v1994_v33 = vadd.f32 1e-06, %v1978_v46  ;;  %v2057_v8 = vmul.f32 %v17874_v28, %v2035_v61 }
 0x590   : > { %v1995_v63 = vadd.f32 1e-06, %v1979_v59  ;;  %v15266_v0 = vpop.eup %15265  ;;  %v1940_v2 = vpop.xlane.xlu1 %1939  ;;  %v2078_v6 = vadd.f32 %v17880_v60, %v2056_v62  ;;  %v2036_v7 = vmul.f32 %v15264_v32, %v17777_v56 }
 0x591   : > { %v1943_v3 = vpop.xlane.xlu0 %1942  ;;  %15275 = vrsqrt.f32 %v1994_v33  ;;  %v1980_v9 = vmul.f32 0.015625, %v1940_v2  ;;  %v2037_v14 = vmul.f32 %v15266_v0, %v17786_v37  ;;  %v2079_v22 = vadd.f32 %v17880_v60, %v2057_v8  ;;  %v15220_v33 = vld [vmem:[%s17534_s12 + $0x18] sm:$0xff]   ;;  %s21976_s12 = scalar_lea.vmem [#allocation23], %s17515_s29 }
 0x592   : > { %v1981_v47 = vmul.f32 0.015625, %v1943_v3  ;;  %15277 = vrsqrt.f32 %v1995_v63  ;;  %v17888_v12 = vpack.c.bf16 %v2078_v6, %v2077_v55  ;;  %v2058_v13 = vmul.f32 %v17874_v28, %v2036_v7 }
 0x593   : > { %v15268_v44 = vpop.eup %15267  ;;  %v1996_v15 = vadd.f32 1e-06, %v1980_v9  ;;  %v2059_v25 = vmul.f32 %v17874_v28, %v2037_v14 }
 0x594   : > { %v1997_v16 = vadd.f32 1e-06, %v1981_v47  ;;  %v15270_v19 = vpop.eup %15269  ;;  %v1946_v53 = vpop.xlane.xlu1 %1945  ;;  %13604 = vmatprep.mubr.msk.bf16.mxu1 %vm1831_vm3, %v17888_v12  ;;  %v2080_v23 = vadd.f32 %v17880_v60, %v2058_v13  ;;  %v2038_v24 = vmul.f32 %v15268_v44, %v17789_v1 }
 0x595   : > { %v1949_v56 = vpop.xlane.xlu0 %1948  ;;  %15279 = vrsqrt.f32 %v1996_v15  ;;  %v1982_v37 = vmul.f32 0.015625, %v1946_v53  ;;  %v2039_v27 = vmul.f32 %v15270_v19, %v17798_v10  ;;  %v2081_v1 = vadd.f32 %v17880_v60, %v2059_v25 }
 0x596   : > { %v1983_v26 = vmul.f32 0.015625, %v1949_v56  ;;  %15281 = vrsqrt.f32 %v1997_v16  ;;  %v17899_v34 = vpack.c.bf16 %v2080_v23, %v2079_v22  ;;  %v2060_v18 = vmul.f32 %v17874_v28, %v2038_v24  ;;  %v15222_v16 = vld [vmem:[%s17542_s27 + $0x8] sm:$0xff]   ;;  %v15223_v24 = vld [vmem:[%s17542_s27 + $0x10] sm:$0xff]  }
 0x597   : > { %v15272_v38 = vpop.eup %15271  ;;  %v1998_v39 = vadd.f32 1e-06, %v1982_v37  ;;  %v2061_v48 = vmul.f32 %v17874_v28, %v2039_v27 }
 0x598   : > { %v1999_v40 = vadd.f32 1e-06, %v1983_v26  ;;  %v15274_v41 = vpop.eup %15273  ;;  %v1952_v42 = vpop.xlane.xlu1 %1951  ;;  %13605 = vmatmul.mubr.msk.bf16.vlgmr.msra.gmra.mrb[0].mxu1 %vm1831_vm3, %v17899_v34  ;;  %v2082_v43 = vadd.f32 %v17880_v60, %v2060_v18  ;;  %v2040_v10 = vmul.f32 %v15272_v38, %v17801_v11 }
 0x599   : > { %15283 = vrsqrt.f32 %v1998_v39  ;;  %v1984_v49 = vmul.f32 0.015625, %v1952_v42  ;;  %13613 = vmatpush3.bf16.msra.mxu1 %v17864_v4  ;;  %v2025_v50 = vmul.f32 %v15274_v41, %v17810_v20  ;;  %v2083_v11 = vadd.f32 %v17880_v60, %v2061_v48 }
 0x59a   : > { %15285 = vrsqrt.f32 %v1999_v40  ;;  %v17911_v51 = vpack.c.bf16 %v2082_v43, %v2081_v1  ;;  %13614 = vmatprep.subr.bf16.mxu1 %v15218_v36  ;;  %v2062_v52 = vmul.f32 %v17874_v28, %v2040_v10 }
 0x59b   : > { %v15276_v57 = vpop.eup %15275  ;;  %v2000_v30 = vadd.f32 1e-06, %v1984_v49  ;;  %v2047_v59 = vmul.f32 %v17874_v28, %v2025_v50 }
 0x59c   : > { %v15278_v46 = vpop.eup %15277  ;;  %13608 = vmatprep.mubr.msk.bf16.mxu1 %vm1831_vm3, %v17911_v51  ;;  %v2084_v4 = vadd.f32 %v17880_v60, %v2062_v52  ;;  %v2026_v20 = vmul.f32 %v15276_v57, %v17813_v17  ;;  %v18031_v57 = vld [vmem:[%s21975_s8] ss:$0 sm:$0xff] }
 0x59d   : > { %15287 = vrsqrt.f32 %v2000_v30  ;;  %13615 = vmatpush3.bf16.msra.mxu1 %v15218_v36  ;;  %v2027_v61 = vmul.f32 %v15278_v46, %v17822_v35  ;;  %v2069_v2 = vadd.f32 %v17880_v60, %v2047_v59 }
 0x59e   : > { %v17922_v62 = vpack.c.bf16 %v2084_v4, %v2083_v11  ;;  %13616 = vmatprep.subr.bf16.mxu1 %v15219_v54  ;;  %v2048_v32 = vmul.f32 %v17874_v28, %v2026_v20 }
 0x59f   : > { %v15280_v63 = vpop.eup %15279  ;;  %v2049_v55 = vmul.f32 %v17874_v28, %v2027_v61 }
 0x5a0   : > { %v15282_v0 = vpop.eup %15281  ;;  %13609 = vmatmul.mubr.msk.bf16.gmra.mrb[4].mxu1 %vm1831_vm3, %v17922_v62  ;;  %v2070_v17 = vadd.f32 %v17880_v60, %v2048_v32  ;;  %v2028_v3 = vmul.f32 %v15280_v63, %v17825_v21 }
 0x5a1   : > { %13617 = vmatpush3.bf16.msra.mxu1 %v15219_v54  ;;  %v2029_v35 = vmul.f32 %v15282_v0, %v17834_v45  ;;  %v2071_v21 = vadd.f32 %v17880_v60, %v2049_v55 }
 0x5a2   : > { %v2085_v6 = vpack.c.bf16 %v2070_v17, %v2069_v2  ;;  %13618 = vmatprep.subr.bf16.mxu1 %v15220_v33  ;;  %v2050_v7 = vmul.f32 %v17874_v28, %v2028_v3 }
 0x5a3   : > { %v15284_v8 = vpop.eup %15283  ;;  %v2051_v9 = vmul.f32 %v17874_v28, %v2029_v35 }
 0x5a4   : > { %v15286_v47 = vpop.eup %15285  ;;  %13596 = vmatprep.mubr.msk.bf16.mxu0 %vm1831_vm3, %v2085_v6  ;;  %13620 = vmatprep.mubr.msk.bf16.mxu1 %vm1831_vm3, %v2085_v6  ;;  %v2072_v13 = vadd.f32 %v17880_v60, %v2050_v7  ;;  %v2030_v14 = vmul.f32 %v15284_v8, %v17837_v29 }
 0x5a5   : > { %13619 = vmatpush3.bf16.msra.mxu1 %v15220_v33  ;;  %v2031_v45 = vmul.f32 %v15286_v47, %v17846_v31  ;;  %v2073_v53 = vadd.f32 %v17880_v60, %v2051_v9 }
 0x5a6   : > { %v2086_v44 = vpack.c.bf16 %v2072_v13, %v2071_v21  ;;  %v2052_v15 = vmul.f32 %v17874_v28, %v2030_v14 }
 0x5a7   : > { %v15288_v19 = vpop.eup %15287  ;;  %v2053_v22 = vmul.f32 %v17874_v28, %v2031_v45 }
 0x5a8   : > { %13597 = vmatmul.mubr.msk.bf16.vlgmr.msra.gmra.mrb[0].mxu0 %vm1831_vm3, %v2086_v44  ;;  %13621 = vmatmul.mubr.msk.bf16.vlgmr.msra.gmra.mrb[8].mxu1 %vm1831_vm3, %v2086_v44  ;;  %v2074_v56 = vadd.f32 %v17880_v60, %v2052_v15  ;;  %v2032_v29 = vmul.f32 %v15288_v19, %v17849_v58  ;;  %v15224_v58 = vld [vmem:[%s17542_s27 + $0x18] sm:$0xff]   ;;  %s16596_s27 = smov 96  }
 0x5a9   : > { %13637 = vmatpush3.bf16.msra.mxu0 %v17868_v5  ;;  %v2075_v25 = vadd.f32 %v17880_v60, %v2053_v22  ;;  %v21807_v5 = vmov 0.0  }
 0x5aa   : > { %v2087_v31 = vpack.c.bf16 %v2074_v56, %v2073_v53  ;;  %13638 = vmatprep.subr.bf16.mxu0 %v15222_v16  ;;  %v2054_v23 = vmul.f32 %v17874_v28, %v2032_v29  ;;  %13660 = vmatprep.subr.bf16.mxu1 %v21807_v5  ;;  %v17987_v28 = vld [vmem:[%s21974_s4] ss:$0 sm:$0xff] }
 0x5ac   : > { %13600 = vmatprep.mubr.msk.bf16.mxu0 %vm1831_vm3, %v2087_v31  ;;  %13624 = vmatprep.mubr.msk.bf16.mxu1 %vm1831_vm3, %v2087_v31  ;;  %v2076_v37 = vadd.f32 %v17880_v60, %v2054_v23 }
 0x5ad   : > { %13639 = vmatpush3.bf16.msra.mxu0 %v15222_v16 }
 0x5ae   : > { %v2088_v26 = vpack.c.bf16 %v2076_v37, %v2075_v25  ;;  %13640 = vmatprep.subr.bf16.mxu0 %v15223_v24 }
 0x5b0   : > { %13601 = vmatmul.mubr.msk.bf16.gmra.mrb[4].mxu0 %vm1831_vm3, %v2088_v26  ;;  %13625 = vmatmul.mubr.msk.bf16.gmra.mrb[12].mxu1 %vm1831_vm3, %v2088_v26 }
 0x5b1   : > { %13628 = vmatprep.mubr.msk.bf16.mxu1 %vm1831_vm3, %v17888_v12  ;;  %13641 = vmatpush3.bf16.msra.mxu0 %v15223_v24 }
 0x5b2   : > { %13644 = vmatprep.mubr.msk.bf16.mxu0 %vm1831_vm3, %v2085_v6  ;;  %13642 = vmatprep.subr.bf16.mxu0 %v15224_v58 }
 0x5b5   : > { %13643 = vmatpush3.bf16.msra.mxu0 %v15224_v58 }
 0x5b6   : > { %13684 = vmatprep.subr.bf16.mxu0 %v21807_v5 }
 0x5b8   : > { %13629 = vmatmul.mubr.msk.bf16.gmra.mrb[16].mxu1 %vm1831_vm3, %v17899_v34  ;;  %13645 = vmatmul.mubr.msk.bf16.vlgmr.msra.gmra.mrb[8].mxu0 %vm1831_vm3, %v2086_v44 }
 0x5b9   : > { %13632 = vmatprep.mubr.msk.bf16.mxu1 %vm1831_vm3, %v17911_v51  ;;  %13648 = vmatprep.mubr.msk.bf16.mxu0 %vm1831_vm3, %v2087_v31 }
 0x5c0   : > { %13633 = vmatmul.mubr.msk.bf16.gmra.mrb[20].mxu1 %vm1831_vm3, %v17922_v62  ;;  %13649 = vmatmul.mubr.msk.bf16.gmra.mrb[12].mxu0 %vm1831_vm3, %v2088_v26 }
 0x5c1   : > { %13652 = vmatprep.mubr.msk.bf16.mxu0 %vm1831_vm3, %v17888_v12  ;;  %13662 = vmatprep.mubr.msk.bf16.mxu1 %vm16594_vm4, %v21807_v5 }
 0x5c8   : > { %13653 = vmatmul.mubr.msk.bf16.gmra.mrb[16].mxu0 %vm1831_vm3, %v17899_v34 }
 0x5c9   : > { %13656 = vmatprep.mubr.msk.bf16.mxu0 %vm1831_vm3, %v17911_v51 }
 0x5d0   : > { %13657 = vmatmul.mubr.msk.bf16.gmra.mrb[20].mxu0 %vm1831_vm3, %v17922_v62 }
 0x5d1   : > { %13686 = vmatprep.mubr.msk.bf16.mxu0 %vm16594_vm4, %v21807_v5 }
 0x66b   : > { %v13606_v60 = vpop.f32.mrb[0].mxu1 }
 0x66c   : > { %v2222_v12 = vpop.f32.mrb[1].mxu1  ;;  %v17990_v34 = vadd.f32 %v13606_v60, %v17987_v28 }
 0x66d   : > { %v13607_v27 = vpop.f32.mrb[2].mxu1  ;;  %v17996_v38 = vadd.f32 %v17987_v28, %v2222_v12 }
 0x66e   : > { %v17993_v18 = vadd.f32 %v13607_v27, %v17987_v28  ;;  %v2225_v36 = vpop.f32.mrb[3].mxu1 }
 0x66f   : > { %v17999_v39 = vadd.f32 %v17987_v28, %v2225_v36 }
 0x670   : > { %v18003_v40 = vpack.i.bf16 %v17993_v18, %v17990_v34 }
 0x671   : > { %v18007_v41 = vpack.i.bf16 %v17999_v39, %v17996_v38 }
 0x673   : > { %v13610_v42 = vpop.f32.mrb[4].mxu1 }
 0x674   : > { %v2238_v1 = vpop.f32.mrb[5].mxu1  ;;  %v18010_v10 = vadd.f32 %v13610_v42, %v17987_v28 }
 0x675   : > { %v13611_v43 = vpop.f32.mrb[6].mxu1  ;;  %v18016_v50 = vadd.f32 %v17987_v28, %v2238_v1 }
 0x676   : > { %v18013_v48 = vadd.f32 %v13611_v43, %v17987_v28  ;;  %v2241_v49 = vpop.f32.mrb[7].mxu1 }
 0x677   : > { %v18019_v51 = vadd.f32 %v17987_v28, %v2241_v49 }
 0x678   : > { %v18023_v52 = vpack.i.bf16 %v18013_v48, %v18010_v10 }
 0x679   : > { %v18027_v54 = vpack.i.bf16 %v18019_v51, %v18016_v50 }
 0x67b   : > { %v13598_v30 = vpop.f32.mrb[0].mxu0  ;;  %v13622_v46 = vpop.f32.mrb[8].mxu1 }
 0x67c   : > { %v2190_v11 = vpop.f32.mrb[1].mxu0  ;;  %v2326_v4 = vpop.f32.mrb[9].mxu1  ;;  %v18035_v62 = vadd.f32 %v13598_v30, %v17987_v28  ;;  %v18038_v32 = vadd.f32 %v13622_v46, %v18031_v57 }
 0x67d   : > { %v2327_v20 = vadd.f32 %v18031_v57, %v2326_v4  ;;  %v13599_v59 = vpop.f32.mrb[2].mxu0  ;;  %v13623_v61 = vpop.f32.mrb[10].mxu1  ;;  %v2191_v17 = vadd.f32 %v17987_v28, %v2190_v11 }
 0x67e   : > { %v18041_v33 = vadd.f32 %v13599_v59, %v17987_v28  ;;  %v18044_v63 = vadd.f32 %v13623_v61, %v18031_v57  ;;  %v2193_v0 = vpop.f32.mrb[3].mxu0  ;;  %v2329_v2 = vpop.f32.mrb[11].mxu1  ;;  %v3075_v11 = vpack.c.bf16 %v18038_v32, %v18038_v32 }
 0x67f   : > { %v18048_v3 = vadd.f32 %v17987_v28, %v2193_v0  ;;  %v2330_v55 = vadd.f32 %v18031_v57, %v2329_v2  ;;  %v3073_v35 = vpack.c.bf16 %v2327_v20, %v2327_v20  ;;  %v3009_v14 = vpack.c.bf16 %v2191_v17, %v2191_v17 }
 0x680   : > { %v18053_v6 = vpack.i.bf16 %v18044_v63, %v18038_v32  ;;  %v18057_v7 = vpack.i.bf16 %v18041_v33, %v18035_v62 }
 0x681   : > { %v3142_v8 = vsel %vm3137_vm5, %v3073_v35, 0  ;;  %v18060_v9 = vpack.i.bf16 %v2330_v55, %v2327_v20  ;;  %v18063_v47 = vpack.i.bf16 %v18048_v3, %v2191_v17  ;;  %v3074_v53 = vpack.c.bf16 %v2330_v55, %v2330_v55  ;;  %v18119_v20 = vld [vmem:[%s21976_s12] ss:$0 sm:$0xff] }
 0x682   : > { %13661 = vmatpush3.bf16.xpose.msra.mxu1 %v3142_v8  ;;  %v3010_v49 = vpack.c.bf16 %v18048_v3, %v18048_v3 }
 0x683   : > { %14734 = vrot.lane.b32.xlu0 %v18060_v9, %s16595_s1  ;;  %14739 = vrot.lane.b32.xlu1 %v18063_v47, %s16595_s1  ;;  %v13602_v21 = vpop.f32.mrb[4].mxu0  ;;  %v13626_v13 = vpop.f32.mrb[12].mxu1  ;;  %v3188_v27 = vsel %vm3137_vm5, %v3074_v53, 0 }
 0x684   : > { %v2206_v45 = vpop.f32.mrb[5].mxu0  ;;  %v2342_v44 = vpop.f32.mrb[13].mxu1  ;;  %13666 = vmatprep.subr.bf16.mxu1 %v21807_v5  ;;  %v18072_v56 = vadd.f32 %v13602_v21, %v17987_v28  ;;  %v2351_v29 = vadd.f32 %v13626_v13, %v18031_v57 }
 0x685   : > { %v2343_v15 = vadd.f32 %v18031_v57, %v2342_v44  ;;  %v13603_v16 = vpop.f32.mrb[6].mxu0  ;;  %v13627_v19 = vpop.f32.mrb[14].mxu1  ;;  %v2207_v25 = vadd.f32 %v17987_v28, %v2206_v45 }
 0x686   : > { %v18076_v22 = vadd.f32 %v13603_v16, %v17987_v28  ;;  %v18079_v31 = vadd.f32 %v13627_v19, %v18031_v57  ;;  %v2209_v23 = vpop.f32.mrb[7].mxu0  ;;  %v2345_v24 = vpop.f32.mrb[15].mxu1  ;;  %v3079_v0 = vpack.c.bf16 %v2351_v29, %v2351_v29 }
 0x687   : > { %v18083_v37 = vadd.f32 %v17987_v28, %v2209_v23  ;;  %v18086_v26 = vadd.f32 %v18031_v57, %v2345_v24  ;;  %14744 = vrot.lane.b32.xlu1 %v18053_v6, %s16595_s1  ;;  %v3077_v58 = vpack.c.bf16 %v2343_v15, %v2343_v15  ;;  %v3013_v4 = vpack.c.bf16 %v2207_v25, %v2207_v25 }
 0x688   : > { %v18091_v60 = vpack.i.bf16 %v18079_v31, %v2351_v29  ;;  %v18095_v12 = vpack.i.bf16 %v18076_v22, %v18072_v56  ;;  %v3011_v24 = vpack.c.bf16 %v18035_v62, %v18035_v62 }
 0x689   : > { %13663 = vmatmul.mubr.msk.bf16.vlgmr.msra.gmra.mrb[24].mxu1 %vm3137_vm5, %v3009_v14  ;;  %v3326_v28 = vsel %vm3137_vm5, %v3077_v58, 0  ;;  %v18101_v36 = vpack.i.bf16 %v18086_v26, %v2343_v15  ;;  %v18104_v42 = vpack.i.bf16 %v18083_v37, %v2207_v25  ;;  %v3234_v14 = vsel %vm3137_vm5, %v3075_v11, 0 }
 0x68a   : > { %13667 = vmatpush3.bf16.xpose.msra.mxu1 %v3188_v27  ;;  %13685 = vmatpush3.bf16.xpose.msra.mxu0 %v3326_v28  ;;  %v3418_v15 = vsel %vm3137_vm5, %v3079_v0, 0  ;;  %v3076_v27 = vpack.c.bf16 %v18044_v63, %v18044_v63  ;;  %v3015_v28 = vpack.c.bf16 %v18072_v56, %v18072_v56 }
 0x68b   : > { %14749 = vrot.lane.b32.xlu1 %v18057_v7, %s16595_s1  ;;  %v13630_v1 = vpop.f32.mrb[16].mxu1  ;;  %14754 = vrot.lane.b32.xlu0 %v18101_v36, %s16595_s1  ;;  %v13646_v43 = vpop.f32.mrb[8].mxu0 }
 0x68c   : > { %v2358_v30 = vpop.f32.mrb[17].mxu1  ;;  %v2462_v46 = vpop.f32.mrb[9].mxu0  ;;  %13668 = vmatprep.mubr.msk.bf16.mxu1 %vm16594_vm4, %v21807_v5  ;;  %13672 = vmatprep.subr.bf16.mxu1 %v21807_v5  ;;  %v18123_v2 = vadd.f32 %v13630_v1, %v18031_v57  ;;  %v18143_v13 = vadd.f32 %v13646_v43, %v18119_v20 }
 0x68d   : > { %v13631_v59 = vpop.f32.mrb[18].mxu1  ;;  %v13647_v61 = vpop.f32.mrb[10].mxu0  ;;  %13696 = vmatprep.subr.bf16.mxu0 %v21807_v5  ;;  %v2359_v17 = vadd.f32 %v18031_v57, %v2358_v30  ;;  %v18151_v44 = vadd.f32 %v18119_v20, %v2462_v46 }
 0x68e   : > { %v18127_v3 = vadd.f32 %v13631_v59, %v18031_v57  ;;  %v2361_v55 = vpop.f32.mrb[19].mxu1  ;;  %v2465_v35 = vpop.f32.mrb[11].mxu0  ;;  %v18130_v32 = vadd.f32 %v13647_v61, %v18119_v20 }
 0x68f   : > { %v18133_v8 = vadd.f32 %v18031_v57, %v2361_v55  ;;  %v18136_v21 = vadd.f32 %v18119_v20, %v2465_v35  ;;  %14764 = vrot.lane.b32.xlu0 %v18091_v60, %s16595_s1  ;;  %14759 = vrot.lane.b32.xlu1 %v18104_v42, %s16595_s1  ;;  %v3081_v62 = vpack.c.bf16 %v2359_v17, %v2359_v17 }
 0x690   : > { %v18148_v45 = vpack.i.bf16 %v18127_v3, %v18123_v2  ;;  %v18169_v23 = vpack.i.bf16 %v18130_v32, %v18143_v13 }
 0x691   : > { %13669 = vmatmul.mubr.msk.bf16.vlgmr.msra.gmra.mrb[28].mxu1 %vm3137_vm5, %v3010_v49  ;;  %13687 = vmatmul.mubr.msk.bf16.vlgmr.msra.gmra.mrb[24].mxu0 %vm3137_vm5, %v3013_v4  ;;  %v18157_v16 = vpack.i.bf16 %v18133_v8, %v2359_v17  ;;  %v18165_v29 = vpack.i.bf16 %v18136_v21, %v18151_v44  ;;  %v3510_v55 = vsel %vm3137_vm5, %v3081_v62, 0  ;;  %v3012_v62 = vpack.c.bf16 %v18041_v33, %v18041_v33 }
 0x692   : > { %13673 = vmatpush3.bf16.xpose.msra.mxu1 %v3234_v14  ;;  %13697 = vmatpush3.bf16.xpose.msra.mxu0 %v3418_v15 }
 0x693   : > { %v13634_v19 = vpop.f32.mrb[20].mxu1  ;;  %14774 = vrot.lane.b32.xlu0 %v18157_v16, %s16595_s1  ;;  %v13650_v53 = vpop.f32.mrb[12].mxu0  ;;  %14769 = vrot.lane.b32.xlu1 %v18095_v12, %s16595_s1 }
 0x694   : > { %v2374_v25 = vpop.f32.mrb[21].mxu1  ;;  %v2478_v58 = vpop.f32.mrb[13].mxu0  ;;  %13674 = vmatprep.mubr.msk.bf16.mxu1 %vm16594_vm4, %v21807_v5  ;;  %13698 = vmatprep.mubr.msk.bf16.mxu0 %vm16594_vm4, %v21807_v5  ;;  %v18184_v49 = vadd.f32 %v13634_v19, %v18031_v57  ;;  %v18206_v61 = vadd.f32 %v13650_v53, %v18119_v20 }
 0x695   : > { %v13635_v1 = vpop.f32.mrb[22].mxu1  ;;  %v13651_v43 = vpop.f32.mrb[14].mxu0  ;;  %13678 = vmatprep.subr.bf16.mxu1 %v21807_v5  ;;  %13708 = vmatprep.subr.bf16.mxu0 %v21807_v5  ;;  %v18193_v56 = vadd.f32 %v18031_v57, %v2374_v25  ;;  %v18209_v0 = vadd.f32 %v18119_v20, %v2478_v58  ;;  %v3078_v25 = vpack.c.bf16 %v18086_v26, %v18086_v26 }
 0x696   : > { %v18187_v30 = vadd.f32 %v13635_v1, %v18031_v57  ;;  %v18190_v46 = vadd.f32 %v13651_v43, %v18119_v20  ;;  %v2377_v63 = vpop.f32.mrb[23].mxu1  ;;  %v2481_v11 = vpop.f32.mrb[15].mxu0  ;;  %v3083_v58 = vpack.c.bf16 %v18123_v2, %v18123_v2 }
 0x697   : > { %v18196_v4 = vadd.f32 %v18031_v57, %v2377_v63  ;;  %v18199_v59 = vadd.f32 %v18119_v20, %v2481_v11  ;;  %14784 = vrot.lane.b32.xlu0 %v18148_v45, %s16595_s1  ;;  %14779 = vrot.lane.b32.xlu1 %v18007_v41, %s16595_s1  ;;  %v3280_v57 = vsel %vm3137_vm5, %v3076_v27, 0  ;;  %v3017_v27 = vpack.c.bf16 %v17996_v38, %v17996_v38 }
 0x698   : > { %v18213_v17 = vpack.i.bf16 %v18187_v30, %v18184_v49  ;;  %v18229_v15 = vpack.i.bf16 %v18190_v46, %v18206_v61  ;;  %v3372_v33 = vsel %vm3137_vm5, %v3078_v25, 0  ;;  %v3602_v2 = vsel %vm3137_vm5, %v3083_v58, 0 }
 0x699   : > { %13675 = vmatmul.mubr.msk.bf16.vlgmr.msra.gmra.mrb[32].mxu1 %vm3137_vm5, %v3011_v24  ;;  %13699 = vmatmul.mubr.msk.bf16.vlgmr.msra.gmra.mrb[28].mxu0 %vm3137_vm5, %v3015_v28  ;;  %v18221_v35 = vpack.i.bf16 %v18196_v4, %v18193_v56  ;;  %v18225_v14 = vpack.i.bf16 %v18199_v59, %v18209_v0  ;;  %v3085_v25 = vpack.c.bf16 %v18193_v56, %v18193_v56 }
 0x69a   : > { %13679 = vmatpush3.bf16.xpose.msra.mxu1 %v3280_v57  ;;  %13709 = vmatpush3.bf16.xpose.msra.mxu0 %v3510_v55  ;;  %21978 = vst [vmem:[#allocation65_spill] sm:$0xff] %v18229_v15  ;;  %v3019_v55 = vpack.c.bf16 %v17990_v34, %v17990_v34 }
 0x69b   : > { %21977 = vst [vmem:[#allocation64_spill] sm:$0xff] %v18225_v14  ;;  %14794 = vrot.lane.b32.xlu0 %v18221_v35, %s16595_s1  ;;  %v13654_v19 = vpop.f32.mrb[16].mxu0  ;;  %14789 = vrot.lane.b32.xlu1 %v18003_v40, %s16595_s1  ;;  %v3694_v56 = vsel %vm3137_vm5, %v3085_v25, 0 }
 0x69c   : > { %v2494_v53 = vpop.f32.mrb[17].mxu0  ;;  %13680 = vmatprep.mubr.msk.bf16.mxu1 %vm16594_vm4, %v21807_v5  ;;  %13710 = vmatprep.mubr.msk.bf16.mxu0 %vm16594_vm4, %v21807_v5  ;;  %v18248_v28 = vadd.f32 %v13654_v19, %v18119_v20 }
 0x69d   : > { %v13655_v24 = vpop.f32.mrb[18].mxu0  ;;  %13690 = vmatprep.subr.bf16.mxu1 %v21807_v5  ;;  %13720 = vmatprep.subr.bf16.mxu0 %v21807_v5  ;;  %v18256_v63 = vadd.f32 %v18119_v20, %v2494_v53 }
 0x69e   : > { %v18251_v1 = vadd.f32 %v13655_v24, %v18119_v20  ;;  %v2497_v43 = vpop.f32.mrb[19].mxu0  ;;  %v3080_v24 = vpack.c.bf16 %v18079_v31, %v18079_v31 }
 0x69f   : > { %v18259_v26 = vadd.f32 %v18119_v20, %v2497_v43  ;;  %14804 = vrot.lane.b32.xlu0 %v18213_v17, %s16595_s1  ;;  %14799 = vrot.lane.b32.xlu1 %v18027_v54, %s16595_s1  ;;  %v3014_v43 = vpack.c.bf16 %v18083_v37, %v18083_v37 }
 0x6a0   : > { %v18267_v38 = vpack.i.bf16 %v18251_v1, %v18248_v28  ;;  %v3464_v37 = vsel %vm3137_vm5, %v3080_v24, 0 }
 0x6a1   : > { %13681 = vmatmul.mubr.msk.bf16.vlgmr.msra.gmra.mrb[36].mxu1 %vm3137_vm5, %v3012_v62  ;;  %13711 = vmatmul.mubr.msk.bf16.vlgmr.msra.gmra.mrb[32].mxu0 %vm3137_vm5, %v3017_v27  ;;  %v18275_v11 = vpack.i.bf16 %v18259_v26, %v18256_v63 }
 0x6a2   : > { %21979 = vst [vmem:[#allocation66_spill] sm:$0xff] %v18267_v38  ;;  %13691 = vmatpush3.bf16.xpose.msra.mxu1 %v3372_v33  ;;  %13721 = vmatpush3.bf16.xpose.msra.mxu0 %v3602_v2  ;;  %v3082_v2 = vpack.c.bf16 %v18133_v8, %v18133_v8 }
 0x6a3   : > { %21980 = vst [vmem:[#allocation67_spill] sm:$0xff] %v18275_v11  ;;  %14814 = vrot.lane.b32.xlu0 %v18060_v9, %s16596_s27  ;;  %v13658_v57 = vpop.f32.mrb[20].mxu0  ;;  %14809 = vrot.lane.b32.xlu1 %v18023_v52, %s16595_s1 }
 0x6a4   : > { %v2510_v19 = vpop.f32.mrb[21].mxu0  ;;  %13692 = vmatprep.mubr.msk.bf16.mxu1 %vm16594_vm4, %v21807_v5  ;;  %13722 = vmatprep.mubr.msk.bf16.mxu0 %vm16594_vm4, %v21807_v5  ;;  %v18294_v34 = vadd.f32 %v13658_v57, %v18119_v20  ;;  %v3087_v57 = vpack.c.bf16 %v18184_v49, %v18184_v49  ;;  %v3556_v8 = vsel %vm3137_vm5, %v3082_v2, 0 }
 0x6a5   : > { %v13659_v53 = vpop.f32.mrb[22].mxu0  ;;  %13702 = vmatprep.subr.bf16.mxu1 %v21807_v5  ;;  %13732 = vmatprep.subr.bf16.mxu0 %v21807_v5  ;;  %v18302_v62 = vadd.f32 %v18119_v20, %v2510_v19  ;;  %v3016_v19 = vpack.c.bf16 %v18076_v22, %v18076_v22  ;;  %v3018_v22 = vpack.c.bf16 %v17999_v39, %v17999_v39 }
 0x6a6   : > { %21981 = vst [vmem:[#allocation68_spill] sm:$0xff] %v18294_v34  ;;  %v18297_v58 = vadd.f32 %v13659_v53, %v18119_v20  ;;  %v2513_v27 = vpop.f32.mrb[23].mxu0  ;;  %v3786_v49 = vsel %vm3137_vm5, %v3087_v57, 0  ;;  %v3023_v53 = vpack.c.bf16 %v18010_v10, %v18010_v10  ;;  %v3086_v39 = vpack.c.bf16 %v18196_v4, %v18196_v4 }
 0x6a7   : > { %v18305_v33 = vadd.f32 %v18119_v20, %v2513_v27  ;;  %14824 = vrot.lane.b32.xlu0 %v18053_v6, %s16596_s27  ;;  %14819 = vrot.lane.b32.xlu1 %v18063_v47, %s16596_s27  ;;  %v3020_v10 = vpack.c.bf16 %v17993_v18, %v17993_v18  ;;  %v3088_v18 = vpack.c.bf16 %v18187_v30, %v18187_v30 }
 0x6a8   : > { %21982 = vst [vmem:[#allocation69_spill] sm:$0xff] %v18297_v58  ;;  %v18313_v31 = vpack.i.bf16 %v18297_v58, %v18294_v34  ;;  %v3740_v24 = vsel %vm3137_vm5, %v3086_v39, 0  ;;  %v3022_v4 = vpack.c.bf16 %v18019_v51, %v18019_v51  ;;  %v3024_v51 = vpack.c.bf16 %v18013_v48, %v18013_v48 }
 0x6a9   : > { %13693 = vmatmul.mubr.msk.bf16.vlgmr.msra.gmra.mrb[40].mxu1 %vm3137_vm5, %v3014_v43  ;;  %13723 = vmatmul.mubr.msk.bf16.vlgmr.msra.gmra.mrb[36].mxu0 %vm3137_vm5, %v3019_v55  ;;  %v18321_v20 = vpack.i.bf16 %v18305_v33, %v18302_v62  ;;  %v3021_v55 = vpack.c.bf16 %v18016_v50, %v18016_v50  ;;  %v3084_v50 = vpack.c.bf16 %v18127_v3, %v18127_v3 }
 0x6aa   : > { %21983 = vst [vmem:[#allocation70_spill] sm:$0xff] %v18313_v31  ;;  %13703 = vmatpush3.bf16.xpose.msra.mxu1 %v3464_v37  ;;  %13733 = vmatpush3.bf16.xpose.msra.mxu0 %v3694_v56 }
 0x6ab   : > { %21984 = vst [vmem:[#allocation71_spill] sm:$0xff] %v18321_v20  ;;  %14834 = vrot.lane.b32.xlu0 %v18101_v36, %s16596_s27  ;;  %14829 = vrot.lane.b32.xlu1 %v18057_v7, %s16596_s27  ;;  %v3648_v3 = vsel %vm3137_vm5, %v3084_v50, 0 }
 0x6ac   : > { %13704 = vmatprep.mubr.msk.bf16.mxu1 %vm16594_vm4, %v21807_v5  ;;  %13734 = vmatprep.mubr.msk.bf16.mxu0 %vm16594_vm4, %v21807_v5 }
 0x6ad   : > { %13714 = vmatprep.subr.bf16.mxu1 %v21807_v5  ;;  %13744 = vmatprep.subr.bf16.mxu0 %v21807_v5 }
 0x6af   : > { %14844 = vrot.lane.b32.xlu0 %v18091_v60, %s16596_s27  ;;  %14839 = vrot.lane.b32.xlu1 %v18104_v42, %s16596_s27 }
 0x6b1   : > { %13705 = vmatmul.mubr.msk.bf16.vlgmr.msra.gmra.mrb[44].mxu1 %vm3137_vm5, %v3016_v19  ;;  %13735 = vmatmul.mubr.msk.bf16.vlgmr.msra.gmra.mrb[40].mxu0 %vm3137_vm5, %v3021_v55 }
 0x6b2   : > { %13715 = vmatpush3.bf16.xpose.msra.mxu1 %v3556_v8  ;;  %13745 = vmatpush3.bf16.xpose.msra.mxu0 %v3786_v49 }
 0x6b3   : > { %14854 = vrot.lane.b32.xlu0 %v18157_v16, %s16596_s27  ;;  %14849 = vrot.lane.b32.xlu1 %v18095_v12, %s16596_s27 }
 0x6b4   : > { %13716 = vmatprep.mubr.msk.bf16.mxu1 %vm16594_vm4, %v21807_v5  ;;  %13746 = vmatprep.mubr.msk.bf16.mxu0 %vm16594_vm4, %v21807_v5 }
 0x6b5   : > { %13726 = vmatprep.subr.bf16.mxu1 %v21807_v5  ;;  %13756 = vmatprep.subr.bf16.mxu0 %v21807_v5 }
 0x6b7   : > { %14864 = vrot.lane.b32.xlu0 %v18148_v45, %s16596_s27  ;;  %14859 = vrot.lane.b32.xlu1 %v18007_v41, %s16596_s27 }
 0x6b9   : > { %13717 = vmatmul.mubr.msk.bf16.vlgmr.msra.gmra.mrb[48].mxu1 %vm3137_vm5, %v3018_v22  ;;  %13747 = vmatmul.mubr.msk.bf16.vlgmr.msra.gmra.mrb[44].mxu0 %vm3137_vm5, %v3023_v53 }
 0x6ba   : > { %13727 = vmatpush3.bf16.xpose.msra.mxu1 %v3648_v3  ;;  %13728 = vmatprep.mubr.msk.bf16.mxu1 %vm16594_vm4, %v21807_v5 }
 0x6bb   : > { %14879 = vrot.lane.b32.xlu0 %v18221_v35, %s16596_s27  ;;  %14869 = vrot.lane.b32.xlu1 %v18003_v40, %s16596_s27 }
 0x6bc   : > { %13738 = vmatprep.subr.bf16.mxu1 %v21807_v5  ;;  %13758 = vmatprep.mubr.msk.bf16.mxu0 %vm16594_vm4, %v21807_v5 }
 0x6bf   : > { %14884 = vrot.lane.b32.xlu0 %v18213_v17, %s16596_s27  ;;  %14874 = vrot.lane.b32.xlu1 %v18027_v54, %s16596_s27 }
 0x6c1   : > { %13729 = vmatmul.mubr.msk.bf16.vlgmr.msra.gmra.mrb[52].mxu1 %vm3137_vm5, %v3020_v10 }
 0x6c2   : > { %13739 = vmatpush3.bf16.xpose.msra.mxu1 %v3740_v24  ;;  %13740 = vmatprep.mubr.msk.bf16.mxu1 %vm16594_vm4, %v21807_v5 }
 0x6c3   : > { %14894 = vrot.lane.b32.xlu0 %v18060_v9, %s16597_s21  ;;  %14889 = vrot.lane.b32.xlu1 %v18023_v52, %s16596_s27  ;;  %v3832_v9 = vsel %vm3137_vm5, %v3088_v18, 0 }
 0x6c4   : > { %13750 = vmatprep.subr.bf16.mxu1 %v21807_v5 }
 0x6c7   : > { %14904 = vrot.lane.b32.xlu0 %v18053_v6, %s16597_s21  ;;  %14899 = vrot.lane.b32.xlu1 %v18063_v47, %s16597_s21 }
 0x6c9   : > { %13741 = vmatmul.mubr.msk.bf16.vlgmr.msra.gmra.mrb[56].mxu1 %vm3137_vm5, %v3022_v4 }
 0x6ca   : > { %13751 = vmatpush3.bf16.xpose.msra.mxu1 %v3832_v9  ;;  %13752 = vmatprep.mubr.msk.bf16.mxu1 %vm16594_vm4, %v21807_v5 }
 0x6cb   : > { %14914 = vrot.lane.b32.xlu0 %v18101_v36, %s16597_s21  ;;  %14909 = vrot.lane.b32.xlu1 %v18057_v7, %s16597_s21 }
 0x6cc   : > { %13762 = vmatprep.subr.bf16.mxu1 %v21807_v5 }
 0x6cf   : > { %14924 = vrot.lane.b32.xlu0 %v18091_v60, %s16597_s21  ;;  %14919 = vrot.lane.b32.xlu1 %v18104_v42, %s16597_s21 }
 0x6d1   : > { %13753 = vmatmul.mubr.msk.bf16.vlgmr.msra.gmra.mrb[60].mxu1 %vm3137_vm5, %v3024_v51 }
 0x6d2   : > { %13764 = vmatprep.mubr.msk.bf16.mxu1 %vm16594_vm4, %v21807_v5 }
 0x6d3   : > { %14934 = vrot.lane.b32.xlu0 %v18157_v16, %s16597_s21  ;;  %14929 = vrot.lane.b32.xlu1 %v18095_v12, %s16597_s21 }
 0x6d7   : > { %14944 = vrot.lane.b32.xlu0 %v18148_v45, %s16597_s21  ;;  %14939 = vrot.lane.b32.xlu1 %v18007_v41, %s16597_s21 }
 0x6db   : > { %14959 = vrot.lane.b32.xlu0 %v18213_v17, %s16597_s21  ;;  %14949 = vrot.lane.b32.xlu1 %v18003_v40, %s16597_s21 }
 0x6df   : > { %14969 = vrot.lane.b32.xlu0 %v18165_v29, %s16595_s1  ;;  %14954 = vrot.lane.b32.xlu1 %v18027_v54, %s16597_s21 }
 0x6e3   : > { %14979 = vrot.lane.b32.xlu0 %v18225_v14, %s16595_s1  ;;  %14964 = vrot.lane.b32.xlu1 %v18023_v52, %s16597_s21 }
 0x6e7   : > { %14984 = vrot.lane.b32.xlu0 %v18229_v15, %s16595_s1  ;;  %14974 = vrot.lane.b32.xlu1 %v18169_v23, %s16595_s1 }
 0x6eb   : > { %14994 = vrot.lane.b32.xlu0 %v18267_v38, %s16595_s1  ;;  %14989 = vrot.lane.b32.xlu1 %v18275_v11, %s16595_s1 }
 0x6ef   : > { %14999 = vrot.lane.b32.xlu0 %v18313_v31, %s16595_s1  ;;  %15004 = vrot.lane.b32.xlu1 %v18165_v29, %s16596_s27 }
 0x6f3   : > { %15009 = vrot.lane.b32.xlu0 %v18169_v23, %s16596_s27  ;;  %15014 = vrot.lane.b32.xlu1 %v18225_v14, %s16596_s27 }
 0x6f5   : > { %v14740_v40 = vpop.permute.xlu1 %14739  ;;  %v14735_v41 = vpop.permute.xlu0 %14734 }
 0x6f6   : > { %v14737_v48 = vunpack.i.h.bf16 %v14735_v41  ;;  %v14736_v52 = vunpack.i.l.bf16 %v14735_v41  ;;  %v14742_v36 = vunpack.i.h.bf16 %v14740_v40  ;;  %v14741_v42 = vunpack.i.l.bf16 %v14740_v40 }
 0x6f7   : > { %15019 = vrot.lane.b32.xlu0 %v18229_v15, %s16596_s27  ;;  %15024 = vrot.lane.b32.xlu1 %v18275_v11, %s16596_s27 }
 0x6f8   : > { %v3090_v54 = vpack.c.bf16 %v14737_v48, %v14737_v48  ;;  %v3089_v6 = vpack.c.bf16 %v14736_v52, %v14736_v52  ;;  %v3026_v17 = vpack.c.bf16 %v14742_v36, %v14742_v36 }
 0x6f9   : > { %v14745_v7 = vpop.permute.xlu1 %14744 }
 0x6fa   : > { %v3878_v47 = vsel %vm3137_vm5, %v3089_v6, 0  ;;  %v3924_v60 = vsel %vm3137_vm5, %v3090_v54, 0  ;;  %v14746_v12 = vunpack.i.l.bf16 %v14745_v7  ;;  %v14747_v45 = vunpack.i.h.bf16 %v14745_v7 }
 0x6fb   : > { %15029 = vrot.lane.b32.xlu0 %v18221_v35, %s16597_s21  ;;  %15044 = vrot.lane.b32.xlu1 %v18165_v29, %s16597_s21  ;;  %v3025_v29 = vpack.c.bf16 %v14741_v42, %v14741_v42 }
 0x6fc   : > { %13757 = vmatpush3.bf16.xpose.msra.mxu0 %v3878_v47  ;;  %13763 = vmatpush3.bf16.xpose.msra.mxu1 %v3924_v60  ;;  %v3091_v30 = vpack.c.bf16 %v14746_v12, %v14746_v12  ;;  %v3092_v35 = vpack.c.bf16 %v14747_v45, %v14747_v45 }
 0x6fd   : > { %v14755_v16 = vpop.permute.xlu0 %14754  ;;  %13768 = vmatprep.subr.bf16.mxu0 %v21807_v5  ;;  %13774 = vmatprep.subr.bf16.mxu1 %v21807_v5  ;;  %v14750_v27 = vpop.permute.xlu1 %14749 }
 0x6fe   : > { %v14756_v43 = vunpack.i.l.bf16 %v14755_v16  ;;  %v3970_v37 = vsel %vm3137_vm5, %v3091_v30, 0  ;;  %v14757_v56 = vunpack.i.h.bf16 %v14755_v16  ;;  %v4016_v2 = vsel %vm3137_vm5, %v3092_v35, 0 }
 0x6ff   : > { %15034 = vrot.lane.b32.xlu0 %v18267_v38, %s16596_s27  ;;  %15054 = vrot.lane.b32.xlu1 %v18321_v20, %s16595_s1  ;;  %v14751_v55 = vunpack.i.l.bf16 %v14750_v27  ;;  %v14752_v19 = vunpack.i.h.bf16 %v14750_v27 }
 0x700   : > { %v3093_v8 = vpack.c.bf16 %v14756_v43, %v14756_v43  ;;  %v3094_v49 = vpack.c.bf16 %v14757_v56, %v14757_v56 }
 0x701   : > { %v14765_v25 = vpop.permute.xlu0 %14764  ;;  %v3027_v22 = vpack.c.bf16 %v14751_v55, %v14751_v55  ;;  %v3028_v53 = vpack.c.bf16 %v14752_v19, %v14752_v19  ;;  %v14760_v3 = vpop.permute.xlu1 %14759 }
 0x702   : > { %v14766_v39 = vunpack.i.l.bf16 %v14765_v25  ;;  %v4062_v10 = vsel %vm3137_vm5, %v3093_v8, 0  ;;  %v14767_v24 = vunpack.i.h.bf16 %v14765_v25  ;;  %v4108_v18 = vsel %vm3137_vm5, %v3094_v49, 0 }
 0x703   : > { %13759 = vmatmul.mubr.msk.bf16.vlgmr.msra.gmra.mrb[48].mxu0 %vm3137_vm5, %v3025_v29  ;;  %13765 = vmatmul.mubr.msk.bf16.vlgmr.msra.gmra.mrb[64].mxu1 %vm3137_vm5, %v3026_v17  ;;  %v14761_v4 = vunpack.i.l.bf16 %v14760_v3  ;;  %v14762_v9 = vunpack.i.h.bf16 %v14760_v3 }
 0x704   : > { %15039 = vrot.lane.b32.xlu0 %v18313_v31, %s16596_s27  ;;  %15059 = vrot.lane.b32.xlu1 %v18321_v20, %s16596_s27  ;;  %v3095_v51 = vpack.c.bf16 %v14766_v39, %v14766_v39  ;;  %v3096_v40 = vpack.c.bf16 %v14767_v24, %v14767_v24 }
 0x705   : > { %13769 = vmatpush3.bf16.xpose.msra.mxu0 %v3970_v37  ;;  %v14775_v57 = vpop.permute.xlu0 %14774  ;;  %13775 = vmatpush3.bf16.xpose.msra.mxu1 %v4016_v2  ;;  %v3029_v48 = vpack.c.bf16 %v14761_v4, %v14761_v4  ;;  %v3030_v52 = vpack.c.bf16 %v14762_v9, %v14762_v9  ;;  %v14770_v54 = vpop.permute.xlu1 %14769 }
 0x706   : > { %13770 = vmatprep.mubr.msk.bf16.mxu0 %vm16594_vm4, %v21807_v5  ;;  %13776 = vmatprep.mubr.msk.bf16.mxu1 %vm16594_vm4, %v21807_v5  ;;  %v14776_v6 = vunpack.i.l.bf16 %v14775_v57  ;;  %v4154_v7 = vsel %vm3137_vm5, %v3095_v51, 0  ;;  %v14777_v47 = vunpack.i.h.bf16 %v14775_v57  ;;  %v4200_v60 = vsel %vm3137_vm5, %v3096_v40, 0 }
 0x707   : > { %13780 = vmatprep.subr.bf16.mxu0 %v21807_v5  ;;  %13786 = vmatprep.subr.bf16.mxu1 %v21807_v5  ;;  %v14771_v36 = vunpack.i.l.bf16 %v14770_v54  ;;  %v14772_v42 = vunpack.i.h.bf16 %v14770_v54 }
 0x708   : > { %15049 = vrot.lane.b32.xlu0 %v18169_v23, %s16597_s21  ;;  %v3097_v45 = vpack.c.bf16 %v14776_v6, %v14776_v6  ;;  %v3098_v16 = vpack.c.bf16 %v14777_v47, %v14777_v47 }
 0x709   : > { %v18491_v50 = vpop.permute.xlu0 %14784  ;;  %v3031_v17 = vpack.c.bf16 %v14771_v36, %v14771_v36  ;;  %v3032_v29 = vpack.c.bf16 %v14772_v42, %v14772_v42  ;;  %v14780_v35 = vpop.permute.xlu1 %14779 }
 0x70a   : > { %v14786_v25 = vunpack.i.l.bf16 %v18491_v50  ;;  %v4246_v27 = vsel %vm3137_vm5, %v3097_v45, 0  ;;  %v14787_v43 = vunpack.i.h.bf16 %v18491_v50  ;;  %v4292_v37 = vsel %vm3137_vm5, %v3098_v16, 0 }
 0x70b   : > { %v14781_v56 = vunpack.i.l.bf16 %v14780_v35  ;;  %v14782_v57 = vunpack.i.h.bf16 %v14780_v35 }
 0x70c   : > { %13771 = vmatmul.mubr.msk.bf16.vlgmr.msra.gmra.mrb[52].mxu0 %vm3137_vm5, %v3027_v22  ;;  %13777 = vmatmul.mubr.msk.bf16.vlgmr.msra.gmra.mrb[68].mxu1 %vm3137_vm5, %v3028_v53  ;;  %v3099_v55 = vpack.c.bf16 %v14786_v25, %v14786_v25  ;;  %v3100_v19 = vpack.c.bf16 %v14787_v43, %v14787_v43 }
 0x70d   : > { %13781 = vmatpush3.bf16.xpose.msra.mxu0 %v4062_v10  ;;  %v18498_v23 = vpop.permute.xlu0 %14794  ;;  %13787 = vmatpush3.bf16.xpose.msra.mxu1 %v4108_v18  ;;  %v3033_v8 = vpack.c.bf16 %v14781_v56, %v14781_v56  ;;  %v3034_v49 = vpack.c.bf16 %v14782_v57, %v14782_v57  ;;  %v14790_v50 = vpop.permute.xlu1 %14789 }
 0x70e   : > { %13782 = vmatprep.mubr.msk.bf16.mxu0 %vm16594_vm4, %v21807_v5  ;;  %13788 = vmatprep.mubr.msk.bf16.mxu1 %vm16594_vm4, %v21807_v5  ;;  %v14796_v22 = vunpack.i.l.bf16 %v18498_v23  ;;  %v4338_v3 = vsel %vm3137_vm5, %v3099_v55, 0  ;;  %v14797_v39 = vunpack.i.h.bf16 %v18498_v23  ;;  %v4384_v10 = vsel %vm3137_vm5, %v3100_v19, 0 }
 0x70f   : > { %13792 = vmatprep.subr.bf16.mxu0 %v21807_v5  ;;  %13798 = vmatprep.subr.bf16.mxu1 %v21807_v5  ;;  %v14791_v24 = vunpack.i.l.bf16 %v14790_v50  ;;  %v14792_v18 = vunpack.i.h.bf16 %v14790_v50 }
 0x710   : > { %v3101_v4 = vpack.c.bf16 %v14796_v22, %v14796_v22  ;;  %v3102_v23 = vpack.c.bf16 %v14797_v39, %v14797_v39 }
 0x711   : > { %v18506_v41 = vpop.permute.xlu0 %14804  ;;  %v3035_v9 = vpack.c.bf16 %v14791_v24, %v14791_v24  ;;  %v3036_v40 = vpack.c.bf16 %v14792_v18, %v14792_v18 }
 0x712   : > { %v4430_v54 = vsel %vm3137_vm5, %v3101_v4, 0  ;;  %v14807_v6 = vunpack.i.h.bf16 %v18506_v41 }
 0x714   : > { %13783 = vmatmul.mubr.msk.bf16.vlgmr.msra.gmra.mrb[56].mxu0 %vm3137_vm5, %v3029_v48  ;;  %13789 = vmatmul.mubr.msk.bf16.vlgmr.msra.gmra.mrb[72].mxu1 %vm3137_vm5, %v3030_v52  ;;  %v14800_v48 = vpop.permute.xlu1 %14799  ;;  %v14806_v52 = vunpack.i.l.bf16 %v18506_v41  ;;  %v3104_v41 = vpack.c.bf16 %v14807_v6, %v14807_v6 }
 0x715   : > { %13793 = vmatpush3.bf16.xpose.msra.mxu0 %v4154_v7  ;;  %v18512_v12 = vpop.permute.xlu0 %14814  ;;  %13799 = vmatpush3.bf16.xpose.msra.mxu1 %v4200_v60  ;;  %v4476_v7 = vsel %vm3137_vm5, %v3102_v23, 0  ;;  %v14801_v47 = vunpack.i.l.bf16 %v14800_v48  ;;  %v14802_v60 = vunpack.i.h.bf16 %v14800_v48 }
 0x716   : > { %13794 = vmatprep.mubr.msk.bf16.mxu0 %vm16594_vm4, %v21807_v5  ;;  %13800 = vmatprep.mubr.msk.bf16.mxu1 %vm16594_vm4, %v21807_v5  ;;  %v3103_v36 = vpack.c.bf16 %v14806_v52, %v14806_v52  ;;  %v14817_v25 = vunpack.i.h.bf16 %v18512_v12 }
 0x717   : > { %13804 = vmatprep.subr.bf16.mxu0 %v21807_v5  ;;  %13810 = vmatprep.subr.bf16.mxu1 %v21807_v5  ;;  %v3037_v45 = vpack.c.bf16 %v14801_v47, %v14801_v47  ;;  %v3038_v16 = vpack.c.bf16 %v14802_v60, %v14802_v60 }
 0x718   : > { %v4522_v35 = vsel %vm3137_vm5, %v3103_v36, 0 }
 0x719   : > { %v18520_v30 = vpop.permute.xlu0 %14824 }
 0x71c   : > { %13795 = vmatmul.mubr.msk.bf16.vlgmr.msra.gmra.mrb[60].mxu0 %vm3137_vm5, %v3031_v17  ;;  %13801 = vmatmul.mubr.msk.bf16.vlgmr.msra.gmra.mrb[76].mxu1 %vm3137_vm5, %v3032_v29  ;;  %v14810_v17 = vpop.permute.xlu1 %14809  ;;  %v14816_v29 = vunpack.i.l.bf16 %v18512_v12  ;;  %v3106_v12 = vpack.c.bf16 %v14817_v25, %v14817_v25 }
 0x71d   : > { %13805 = vmatpush3.bf16.xpose.msra.mxu0 %v4246_v27  ;;  %13811 = vmatpush3.bf16.xpose.msra.mxu1 %v4292_v37  ;;  %v18528_v2 = vpop.permute.xlu0 %14834  ;;  %v4568_v27 = vsel %vm3137_vm5, %v3104_v41, 0  ;;  %v14811_v43 = vunpack.i.l.bf16 %v14810_v17  ;;  %v14812_v56 = vunpack.i.h.bf16 %v14810_v17 }
 0x71e   : > { %13806 = vmatprep.mubr.msk.bf16.mxu0 %vm16594_vm4, %v21807_v5  ;;  %13812 = vmatprep.mubr.msk.bf16.mxu1 %vm16594_vm4, %v21807_v5  ;;  %v3105_v57 = vpack.c.bf16 %v14816_v29, %v14816_v29  ;;  %v4660_v39 = vsel %vm3137_vm5, %v3106_v12, 0  ;;  %v14836_v48 = vunpack.i.l.bf16 %v18528_v2  ;;  %v21806_v12 = vlaneseq }
 0x71f   : > { %13816 = vmatprep.subr.bf16.mxu0 %v21807_v5  ;;  %13822 = vmatprep.subr.bf16.mxu1 %v21807_v5  ;;  %v3039_v55 = vpack.c.bf16 %v14811_v43, %v14811_v43  ;;  %v3040_v19 = vpack.c.bf16 %v14812_v56, %v14812_v56 }
 0x720   : > { %v4614_v22 = vsel %vm3137_vm5, %v3105_v57, 0  ;;  %v3109_v60 = vpack.c.bf16 %v14836_v48, %v14836_v48 }
 0x721   : > { %v18537_v53 = vpop.permute.xlu0 %14844 }
 0x722   : > { %v14846_v17 = vunpack.i.l.bf16 %v18537_v53  ;;  %v4798_v29 = vsel %vm3137_vm5, %v3109_v60, 0 }
 0x724   : > { %13807 = vmatmul.mubr.msk.bf16.vlgmr.msra.gmra.mrb[64].mxu0 %vm3137_vm5, %v3033_v8  ;;  %13813 = vmatmul.mubr.msk.bf16.vlgmr.msra.gmra.mrb[80].mxu1 %vm3137_vm5, %v3034_v49  ;;  %v14820_v8 = vpop.permute.xlu1 %14819  ;;  %v14826_v49 = vunpack.i.l.bf16 %v18520_v30  ;;  %v3111_v57 = vpack.c.bf16 %v14846_v17, %v14846_v17 }
 0x725   : > { %13817 = vmatpush3.bf16.xpose.msra.mxu0 %v4338_v3  ;;  %13823 = vmatpush3.bf16.xpose.msra.mxu1 %v4384_v10  ;;  %v18550_v51 = vpop.permute.xlu0 %14854  ;;  %v14827_v3 = vunpack.i.h.bf16 %v18520_v30  ;;  %v14821_v10 = vunpack.i.l.bf16 %v14820_v8  ;;  %v14822_v24 = vunpack.i.h.bf16 %v14820_v8 }
 0x726   : > { %13818 = vmatprep.mubr.msk.bf16.mxu0 %vm16594_vm4, %v21807_v5  ;;  %13824 = vmatprep.mubr.msk.bf16.mxu1 %vm16594_vm4, %v21807_v5  ;;  %v3107_v18 = vpack.c.bf16 %v14826_v49, %v14826_v49  ;;  %v14856_v49 = vunpack.i.l.bf16 %v18550_v51 }
 0x727   : > { %13828 = vmatprep.subr.bf16.mxu0 %v21807_v5  ;;  %13834 = vmatprep.subr.bf16.mxu1 %v21807_v5  ;;  %v3108_v30 = vpack.c.bf16 %v14827_v3, %v14827_v3  ;;  %v3041_v4 = vpack.c.bf16 %v14821_v10, %v14821_v10  ;;  %v4890_v3 = vsel %vm3137_vm5, %v3111_v57, 0 }
 0x728   : > { %v4706_v52 = vsel %vm3137_vm5, %v3107_v18, 0 }
 0x729   : > { %v18563_v42 = vpop.permute.xlu0 %14864  ;;  %v4752_v6 = vsel %vm3137_vm5, %v3108_v30, 0 }
 0x72c   : > { %13819 = vmatmul.mubr.msk.bf16.vlgmr.msra.gmra.mrb[68].mxu0 %vm3137_vm5, %v3035_v9  ;;  %13825 = vmatmul.mubr.msk.bf16.vlgmr.msra.gmra.mrb[84].mxu1 %vm3137_vm5, %v3036_v40  ;;  %v3042_v9 = vpack.c.bf16 %v14822_v24, %v14822_v24  ;;  %v14830_v40 = vpop.permute.xlu1 %14829  ;;  %v3006_v24 = vand.u32 127, %v21806_v12 }
 0x72d   : > { %13829 = vmatpush3.bf16.xpose.msra.mxu0 %v4430_v54  ;;  %13835 = vmatpush3.bf16.xpose.msra.mxu1 %v4476_v7  ;;  %v18572_v37 = vpop.permute.xlu0 %14879  ;;  %v14837_v54 = vunpack.i.h.bf16 %v18528_v2  ;;  %v14831_v7 = vunpack.i.l.bf16 %v14830_v40  ;;  %v14832_v47 = vunpack.i.h.bf16 %v14830_v40 }
 0x72e   : > { %13830 = vmatprep.mubr.msk.bf16.mxu0 %vm16594_vm4, %v21807_v5  ;;  %13836 = vmatprep.mubr.msk.bf16.mxu1 %vm16594_vm4, %v21807_v5  ;;  %vm3007_vm6 = vcmp.lt.s32.totalorder %v3006_v24, 5  ;;  %v14882_v24 = vunpack.i.h.bf16 %v18572_v37 }
 0x72f   : > { %13840 = vmatprep.subr.bf16.mxu0 %v21807_v5  ;;  %13846 = vmatprep.subr.bf16.mxu1 %v21807_v5  ;;  %v3110_v2 = vpack.c.bf16 %v14837_v54, %v14837_v54  ;;  %v3043_v41 = vpack.c.bf16 %v14831_v7, %v14831_v7  ;;  %v14866_v54 = vunpack.i.l.bf16 %v18563_v42 }
 0x731   : > { %v18581_v50 = vpop.permute.xlu0 %14884  ;;  %v4844_v25 = vsel %vm3137_vm5, %v3110_v2, 0  ;;  %v14867_v2 = vunpack.i.h.bf16 %v18563_v42 }
 0x733   : > { %v3116_v57 = vpack.c.bf16 %v14867_v2, %v14867_v2 }
 0x734   : > { %13831 = vmatmul.mubr.msk.bf16.vlgmr.msra.gmra.mrb[72].mxu0 %vm3137_vm5, %v3037_v45  ;;  %13837 = vmatmul.mubr.msk.bf16.vlgmr.msra.gmra.mrb[88].mxu1 %vm3137_vm5, %v3038_v16  ;;  %v3044_v45 = vpack.c.bf16 %v14832_v47, %v14832_v47  ;;  %v14840_v16 = vpop.permute.xlu1 %14839  ;;  %v16598_v47 = vmov -1e+30  }
 0x735   : > { %13841 = vmatpush3.bf16.xpose.msra.mxu0 %v4522_v35  ;;  %13847 = vmatpush3.bf16.xpose.msra.mxu1 %v4568_v27  ;;  %v18594_v23 = vpop.permute.xlu0 %14894  ;;  %v14847_v35 = vunpack.i.h.bf16 %v18537_v53  ;;  %v14841_v27 = vunpack.i.l.bf16 %v14840_v16  ;;  %v14842_v56 = vunpack.i.h.bf16 %v14840_v16  ;;  %v18644_v60 = vsel %vm3007_vm6, 0.0, %v16598_v47 }
 0x736   : > { %13842 = vmatprep.mubr.msk.bf16.mxu0 %vm16594_vm4, %v21807_v5  ;;  %13848 = vmatprep.mubr.msk.bf16.mxu1 %vm16594_vm4, %v21807_v5 }
 0x737   : > { %13852 = vmatprep.subr.bf16.mxu0 %v21807_v5  ;;  %13858 = vmatprep.subr.bf16.mxu1 %v21807_v5  ;;  %v3112_v53 = vpack.c.bf16 %v14847_v35, %v14847_v35 }
 0x738   : > { %v14850_v8 = vpop.permute.xlu1 %14849 }
 0x739   : > { %v18607_v36 = vpop.permute.xlu0 %14904  ;;  %v4936_v10 = vsel %vm3137_vm5, %v3112_v53, 0  ;;  %v14851_v18 = vunpack.i.l.bf16 %v14850_v8  ;;  %v14852_v30 = vunpack.i.h.bf16 %v14850_v8 }
 0x73b   : > { %v3048_v48 = vpack.c.bf16 %v14852_v30, %v14852_v30 }
 0x73c   : > { %13843 = vmatmul.mubr.msk.bf16.vlgmr.msra.gmra.mrb[76].mxu0 %vm3137_vm5, %v3039_v55  ;;  %13849 = vmatmul.mubr.msk.bf16.vlgmr.msra.gmra.mrb[92].mxu1 %vm3137_vm5, %v3040_v19  ;;  %v3045_v55 = vpack.c.bf16 %v14841_v27, %v14841_v27  ;;  %v3046_v19 = vpack.c.bf16 %v14842_v56, %v14842_v56  ;;  %v3115_v27 = vpack.c.bf16 %v14866_v54, %v14866_v54 }
 0x73d   : > { %13853 = vmatpush3.bf16.xpose.msra.mxu0 %v4614_v22  ;;  %13859 = vmatpush3.bf16.xpose.msra.mxu1 %v4660_v39  ;;  %v18616_v43 = vpop.permute.xlu0 %14914  ;;  %v14857_v39 = vunpack.i.h.bf16 %v18550_v51 }
 0x73e   : > { %13854 = vmatprep.mubr.msk.bf16.mxu0 %vm16594_vm4, %v21807_v5  ;;  %13860 = vmatprep.mubr.msk.bf16.mxu1 %vm16594_vm4, %v21807_v5 }
 0x73f   : > { %13864 = vmatprep.subr.bf16.mxu0 %v21807_v5  ;;  %13870 = vmatprep.subr.bf16.mxu1 %v21807_v5  ;;  %v3114_v51 = vpack.c.bf16 %v14857_v39, %v14857_v39 }
 0x741   : > { %v18625_v22 = vpop.permute.xlu0 %14924 }
 0x744   : > { %13855 = vmatmul.mubr.msk.bf16.vlgmr.msra.gmra.mrb[80].mxu0 %vm3137_vm5, %v3041_v4  ;;  %13861 = vmatmul.mubr.msk.bf16.vlgmr.msra.gmra.mrb[96].mxu1 %vm3137_vm5, %v3042_v9  ;;  %v3113_v4 = vpack.c.bf16 %v14856_v49, %v14856_v49  ;;  %v3047_v9 = vpack.c.bf16 %v14851_v18, %v14851_v18  ;;  %v14881_v49 = vunpack.i.l.bf16 %v18572_v37  ;;  %v5120_v18 = vsel %vm3137_vm5, %v3116_v57, 0 }
 0x745   : > { %13865 = vmatpush3.bf16.xpose.msra.mxu0 %v4706_v52  ;;  %13871 = vmatpush3.bf16.xpose.msra.mxu1 %v4752_v6  ;;  %v18639_v40 = vpop.permute.xlu0 %14934  ;;  %v14860_v52 = vpop.permute.xlu1 %14859  ;;  %v14886_v57 = vunpack.i.l.bf16 %v18581_v50 }
 0x746   : > { %13866 = vmatprep.mubr.msk.bf16.mxu0 %vm16594_vm4, %v21807_v5  ;;  %13872 = vmatprep.mubr.msk.bf16.mxu1 %vm16594_vm4, %v21807_v5  ;;  %v4982_v6 = vsel %vm3137_vm5, %v3113_v4, 0  ;;  %v14861_v17 = vunpack.i.l.bf16 %v14860_v52  ;;  %v14862_v35 = vunpack.i.h.bf16 %v14860_v52  ;;  %v3117_v2 = vpack.c.bf16 %v14881_v49, %v14881_v49 }
 0x747   : > { %13876 = vmatprep.subr.bf16.mxu0 %v21807_v5  ;;  %13882 = vmatprep.subr.bf16.mxu1 %v21807_v5 }
 0x749   : > { %v18657_v56 = vpop.permute.xlu0 %14944  ;;  %v14870_v8 = vpop.permute.xlu1 %14869 }
 0x74a   : > { %v14872_v54 = vunpack.i.h.bf16 %v14870_v8 }
 0x74c   : > { %13867 = vmatmul.mubr.msk.bf16.vlgmr.msra.gmra.mrb[84].mxu0 %vm3137_vm5, %v3043_v41  ;;  %13873 = vmatmul.mubr.msk.bf16.vlgmr.msra.gmra.mrb[100].mxu1 %vm3137_vm5, %v3044_v45  ;;  %v5028_v41 = vsel %vm3137_vm5, %v3114_v51, 0 }
 0x74d   : > { %13877 = vmatpush3.bf16.xpose.msra.mxu0 %v4798_v29  ;;  %13883 = vmatpush3.bf16.xpose.msra.mxu1 %v4844_v25 }
 0x74e   : > { %13878 = vmatprep.mubr.msk.bf16.mxu0 %vm16594_vm4, %v21807_v5  ;;  %13884 = vmatprep.mubr.msk.bf16.mxu1 %vm16594_vm4, %v21807_v5 }
 0x74f   : > { %13888 = vmatprep.subr.bf16.mxu0 %v21807_v5  ;;  %13894 = vmatprep.subr.bf16.mxu1 %v21807_v5 }
 0x754   : > { %13879 = vmatmul.mubr.msk.bf16.vlgmr.msra.gmra.mrb[88].mxu0 %vm3137_vm5, %v3045_v55  ;;  %13885 = vmatmul.mubr.msk.bf16.vlgmr.msra.gmra.mrb[104].mxu1 %vm3137_vm5, %v3046_v19  ;;  %v3049_v55 = vpack.c.bf16 %v14861_v17, %v14861_v17  ;;  %v3050_v19 = vpack.c.bf16 %v14862_v35, %v14862_v35 }
 0x755   : > { %13889 = vmatpush3.bf16.xpose.msra.mxu0 %v4890_v3  ;;  %13895 = vmatpush3.bf16.xpose.msra.mxu1 %v4936_v10  ;;  %v5074_v3 = vsel %vm3137_vm5, %v3115_v27, 0  ;;  %v14875_v27 = vpop.permute.xlu1 %14874 }
 0x756   : > { %13890 = vmatprep.mubr.msk.bf16.mxu0 %vm16594_vm4, %v21807_v5  ;;  %13896 = vmatprep.mubr.msk.bf16.mxu1 %vm16594_vm4, %v21807_v5 }
 0x757   : > { %13900 = vmatprep.subr.bf16.mxu0 %v21807_v5  ;;  %13906 = vmatprep.subr.bf16.mxu1 %v21807_v5 }
 0x75c   : > { %13891 = vmatmul.mubr.msk.bf16.vlgmr.msra.gmra.mrb[92].mxu0 %vm3137_vm5, %v3047_v9  ;;  %v3178_v7 = vpop.f32.mrb[24].mxu1  ;;  %13897 = vmatmul.mubr.msk.bf16.vlgmr.msra.gmra.mrb[108].mxu1 %vm3137_vm5, %v3048_v48  ;;  %v14871_v9 = vunpack.i.l.bf16 %v14870_v8  ;;  %v18668_v48 = vpop.permute.xlu0 %14959  ;;  %v14887_v8 = vunpack.i.h.bf16 %v18581_v50 }
 0x75d   : > { %13901 = vmatpush3.bf16.xpose.msra.mxu0 %v4982_v6  ;;  %v6082_v45 = vmul.f32 0.25, %v3178_v7  ;;  %v13664_v16 = vpop.f32.mrb[25].mxu1  ;;  %13907 = vmatpush3.bf16.xpose.msra.mxu1 %v5028_v41 }
 0x75e   : > { %v3181_v29 = vpop.f32.mrb[26].mxu1  ;;  %13902 = vmatprep.mubr.msk.bf16.mxu0 %vm16594_vm4, %v21807_v5  ;;  %13908 = vmatprep.mubr.msk.bf16.mxu1 %vm16594_vm4, %v21807_v5  ;;  %v3118_v16 = vpack.c.bf16 %v14882_v24, %v14882_v24  ;;  %v3051_v35 = vpack.c.bf16 %v14871_v9, %v14871_v9 }
 0x75f   : > { %v13665_v25 = vpop.f32.mrb[27].mxu1  ;;  %v18654_v42 = vadd.f32 %v6082_v45, %v18644_v60  ;;  %13912 = vmatprep.subr.bf16.mxu0 %v21807_v5  ;;  %13918 = vmatprep.subr.bf16.mxu1 %v21807_v5 }
 0x760   : > { %v3052_v25 = vpack.c.bf16 %v14872_v54, %v14872_v54  ;;  %v18690_v49 = vpop.permute.xlu0 %14969 }
 0x761   : > { %v6211_v53 = vsel %vm6210_vm7, %v18654_v42, -inf  ;;  %21985 = vst [vmem:[#allocation72_spill] sm:$0xff] %v18690_v49 }
 0x762   : > { %6212 = vmax.xlane.f32.xlu0 %v6211_v53  ;;  %v5166_v53 = vsel %vm3137_vm5, %v3117_v2, 0 }
 0x764   : > { %13903 = vmatmul.mubr.msk.bf16.vlgmr.msra.gmra.mrb[96].mxu0 %vm3137_vm5, %v3049_v55  ;;  %v3224_v39 = vpop.f32.mrb[28].mxu1  ;;  %v3362_v10 = vpop.f32.mrb[24].mxu0  ;;  %13909 = vmatmul.mubr.msk.bf16.vlgmr.msra.gmra.mrb[112].mxu1 %vm3137_vm5, %v3050_v19 }
 0x765   : > { %13913 = vmatpush3.bf16.xpose.msra.mxu0 %v5074_v3  ;;  %v6083_v30 = vmul.f32 0.25, %v3224_v39  ;;  %v6086_v4 = vmul.f32 0.25, %v3362_v10  ;;  %v13670_v51 = vpop.f32.mrb[29].mxu1  ;;  %13919 = vmatpush3.bf16.xpose.msra.mxu1 %v5120_v18  ;;  %v13688_v52 = vpop.f32.mrb[25].mxu0  ;;  %v5212_v3 = vsel %vm3137_vm5, %v3118_v16, 0  ;;  %v14876_v18 = vunpack.i.l.bf16 %v14875_v27 }
 0x766   : > { %13914 = vmatprep.mubr.msk.bf16.mxu0 %vm16594_vm4, %v21807_v5  ;;  %v3227_v6 = vpop.f32.mrb[30].mxu1  ;;  %v3365_v7 = vpop.f32.mrb[26].mxu0  ;;  %13920 = vmatprep.mubr.msk.bf16.mxu1 %vm16594_vm4, %v21807_v5  ;;  %v3119_v52 = vpack.c.bf16 %v14886_v57, %v14886_v57 }
 0x767   : > { %v18675_v37 = vadd.f32 %v6083_v30, %v18644_v60  ;;  %v18678_v47 = vadd.f32 %v6086_v4, %v18644_v60  ;;  %13924 = vmatprep.subr.bf16.mxu0 %v21807_v5  ;;  %v13671_v41 = vpop.f32.mrb[31].mxu1  ;;  %v13689_v45 = vpop.f32.mrb[27].mxu0  ;;  %13930 = vmatprep.subr.bf16.mxu1 %v21807_v5  ;;  %v14877_v4 = vunpack.i.h.bf16 %v14875_v27  ;;  %v3120_v7 = vpack.c.bf16 %v14887_v8, %v14887_v8 }
 0x768   : > { %v3053_v45 = vpack.c.bf16 %v14876_v18, %v14876_v18  ;;  %v5258_v27 = vsel %vm3137_vm5, %v3119_v52, 0 }
 0x769   : > { %v6214_v17 = vsel %vm6210_vm7, %v18675_v37, -inf  ;;  %v6223_v29 = vsel %vm6210_vm7, %v18678_v47, -inf  ;;  %v3054_v16 = vpack.c.bf16 %v14877_v4, %v14877_v4 }
 0x76a   : > { %6215 = vmax.xlane.f32.xlu1 %v6214_v17  ;;  %6224 = vmax.xlane.f32.xlu0 %v6223_v29  ;;  %v14890_v17 = vpop.permute.xlu1 %14889  ;;  %v18708_v29 = vpop.permute.xlu0 %14979 }
 0x76b   : > { %21986 = vst [vmem:[#allocation73_spill] sm:$0xff] %v18708_v29  ;;  %v14892_v18 = vunpack.i.h.bf16 %v14890_v17 }
 0x76c   : > { %13915 = vmatmul.mubr.msk.bf16.vlgmr.msra.gmra.mrb[100].mxu0 %vm3137_vm5, %v3051_v35  ;;  %v3270_v55 = vpop.f32.mrb[32].mxu1  ;;  %v3454_v19 = vpop.f32.mrb[28].mxu0  ;;  %13921 = vmatmul.mubr.msk.bf16.vlgmr.msra.gmra.mrb[116].mxu1 %vm3137_vm5, %v3052_v25  ;;  %v14897_v35 = vunpack.i.h.bf16 %v18594_v23  ;;  %v14896_v25 = vunpack.i.l.bf16 %v18594_v23 }
 0x76d   : > { %13925 = vmatpush3.bf16.xpose.msra.mxu0 %v5166_v53  ;;  %v6084_v39 = vmul.f32 0.25, %v3270_v55  ;;  %v6088_v10 = vmul.f32 0.25, %v3454_v19  ;;  %v13676_v24 = vpop.f32.mrb[33].mxu1  ;;  %13931 = vmatpush3.bf16.xpose.msra.mxu1 %v5212_v3  ;;  %v13700_v30 = vpop.f32.mrb[29].mxu0  ;;  %v5304_v55 = vsel %vm3137_vm5, %v3120_v7, 0 }
 0x76e   : > { %13926 = vmatprep.mubr.msk.bf16.mxu0 %vm16594_vm4, %v21807_v5  ;;  %v3273_v51 = vpop.f32.mrb[34].mxu1  ;;  %v3457_v9 = vpop.f32.mrb[30].mxu0  ;;  %13932 = vmatprep.mubr.msk.bf16.mxu1 %vm16594_vm4, %v21807_v5  ;;  %v14891_v24 = vunpack.i.l.bf16 %v14890_v17 }
 0x76f   : > { %v18699_v50 = vadd.f32 %v6084_v39, %v18644_v60  ;;  %13936 = vmatprep.subr.bf16.mxu0 %v21807_v5  ;;  %v13677_v54 = vpop.f32.mrb[35].mxu1  ;;  %v13701_v6 = vpop.f32.mrb[31].mxu0  ;;  %13942 = vmatprep.subr.bf16.mxu1 %v21807_v5  ;;  %v18706_v41 = vadd.f32 %v6088_v10, %v18644_v60  ;;  %v3121_v51 = vpack.c.bf16 %v14896_v25, %v14896_v25  ;;  %v14907_v25 = vunpack.i.h.bf16 %v18607_v36 }
 0x770   : > { %v3122_v54 = vpack.c.bf16 %v14897_v35, %v14897_v35  ;;  %v18732_v17 = vpop.permute.xlu0 %14984 }
 0x771   : > { %v6217_v2 = vsel %vm6210_vm7, %v18699_v50, -inf  ;;  %v6229_v10 = vsel %vm6210_vm7, %v18706_v41, -inf  ;;  %21987 = vst [vmem:[#allocation74_spill] sm:$0xff] %v18732_v17  ;;  %v5350_v35 = vsel %vm3137_vm5, %v3121_v51, 0 }
 0x772   : > { %6218 = vmax.xlane.f32.xlu0 %v6217_v2  ;;  %v3055_v2 = vpack.c.bf16 %v14891_v24, %v14891_v24 }
 0x774   : > { %13927 = vmatmul.mubr.msk.bf16.vlgmr.msra.gmra.mrb[104].mxu0 %vm3137_vm5, %v3053_v45  ;;  %v3316_v57 = vpop.f32.mrb[36].mxu1  ;;  %v3546_v53 = vpop.f32.mrb[32].mxu0  ;;  %13933 = vmatmul.mubr.msk.bf16.vlgmr.msra.gmra.mrb[120].mxu1 %vm3137_vm5, %v3054_v16  ;;  %v3056_v45 = vpack.c.bf16 %v14892_v18, %v14892_v18 }
 0x775   : > { %13937 = vmatpush3.bf16.xpose.msra.mxu0 %v5258_v27  ;;  %v6085_v19 = vmul.f32 0.25, %v3316_v57  ;;  %v6090_v8 = vmul.f32 0.25, %v3546_v53  ;;  %v13682_v3 = vpop.f32.mrb[37].mxu1  ;;  %v13712_v39 = vpop.f32.mrb[33].mxu0  ;;  %13943 = vmatpush3.bf16.xpose.msra.mxu1 %v5304_v55  ;;  %v14906_v27 = vunpack.i.l.bf16 %v18607_v36  ;;  %v5396_v55 = vsel %vm3137_vm5, %v3122_v54, 0 }
 0x776   : > { %v3319_v23 = vpop.f32.mrb[38].mxu1  ;;  %6230 = vmax.xlane.f32.xlu0 %v6229_v10  ;;  %v3549_v30 = vpop.f32.mrb[34].mxu0  ;;  %13938 = vmatprep.mubr.msk.bf16.mxu0 %vm16594_vm4, %v21807_v5 }
 0x777   : > { %13944 = vmatprep.mubr.msk.bf16.mxu1 %vm16594_vm4, %v21807_v5  ;;  %v18723_v4 = vadd.f32 %v6085_v19, %v18644_v60  ;;  %v13683_v9 = vpop.f32.mrb[39].mxu1  ;;  %v13713_v52 = vpop.f32.mrb[35].mxu0  ;;  %13948 = vmatprep.subr.bf16.mxu0 %v21807_v5  ;;  %v18730_v7 = vadd.f32 %v6090_v8, %v18644_v60  ;;  %v3123_v54 = vpack.c.bf16 %v14906_v27, %v14906_v27  ;;  %v14916_v27 = vunpack.i.l.bf16 %v18616_v43 }
 0x778   : > { %13954 = vmatprep.subr.bf16.mxu1 %v21807_v5  ;;  %v14900_v16 = vpop.permute.xlu1 %14899 }
 0x779   : > { %v6220_v6 = vsel %vm6210_vm7, %v18723_v4, -inf  ;;  %v6235_v10 = vsel %vm6210_vm7, %v18730_v7, -inf  ;;  %v14901_v24 = vunpack.i.l.bf16 %v14900_v16  ;;  %v14902_v18 = vunpack.i.h.bf16 %v14900_v16 }
 0x77a   : > { %6221 = vmax.xlane.f32.xlu0 %v6220_v6  ;;  %v3124_v6 = vpack.c.bf16 %v14907_v25, %v14907_v25 }
 0x77b   : > { %v3057_v16 = vpack.c.bf16 %v14901_v24, %v14901_v24 }
 0x77c   : > { %13939 = vmatmul.mubr.msk.bf16.vlgmr.msra.gmra.mrb[108].mxu0 %vm3137_vm5, %v3055_v2  ;;  %v3408_v57 = vpop.f32.mrb[40].mxu1  ;;  %v3638_v53 = vpop.f32.mrb[36].mxu0  ;;  %13945 = vmatmul.mubr.msk.bf16.vlgmr.msra.gmra.mrb[124].mxu1 %vm3137_vm5, %v3056_v45 }
 0x77d   : > { %13949 = vmatpush3.bf16.xpose.msra.mxu0 %v5350_v35  ;;  %v6087_v19 = vmul.f32 0.25, %v3408_v57  ;;  %v6092_v8 = vmul.f32 0.25, %v3638_v53  ;;  %v13694_v3 = vpop.f32.mrb[41].mxu1  ;;  %v13724_v39 = vpop.f32.mrb[37].mxu0  ;;  %13955 = vmatpush3.bf16.xpose.msra.mxu1 %v5396_v55  ;;  %v3058_v35 = vpack.c.bf16 %v14902_v18, %v14902_v18  ;;  %v5442_v55 = vsel %vm3137_vm5, %v3123_v54, 0 }
 0x77e   : > { %v3411_v36 = vpop.f32.mrb[42].mxu1  ;;  %6236 = vmax.xlane.f32.xlu0 %v6235_v10  ;;  %v3641_v23 = vpop.f32.mrb[38].mxu0  ;;  %13950 = vmatprep.mubr.msk.bf16.mxu0 %vm16594_vm4, %v21807_v5  ;;  %v5488_v3 = vsel %vm3137_vm5, %v3124_v6, 0 }
 0x77f   : > { %v13695_v30 = vpop.f32.mrb[43].mxu1  ;;  %v13725_v51 = vpop.f32.mrb[39].mxu0  ;;  %13956 = vmatprep.mubr.msk.bf16.mxu1 %vm16594_vm4, %v21807_v5  ;;  %v18747_v9 = vadd.f32 %v6087_v19, %v18644_v60  ;;  %v18750_v52 = vadd.f32 %v6092_v8, %v18644_v60  ;;  %13960 = vmatprep.subr.bf16.mxu0 %v21807_v5  ;;  %v14917_v8 = vunpack.i.h.bf16 %v18616_v43 }
 0x780   : > { %13966 = vmatprep.subr.bf16.mxu1 %v21807_v5  ;;  %v14910_v57 = vpop.permute.xlu1 %14909  ;;  %v18758_v53 = vpop.permute.xlu0 %14994 }
 0x781   : > { %v6226_v2 = vsel %vm6210_vm7, %v18747_v9, -inf  ;;  %v6241_v45 = vsel %vm6210_vm7, %v18750_v52, -inf  ;;  %21988 = vst [vmem:[#allocation75_spill] sm:$0xff] %v18758_v53  ;;  %v14911_v23 = vunpack.i.l.bf16 %v14910_v57  ;;  %v14912_v51 = vunpack.i.h.bf16 %v14910_v57 }
 0x782   : > { %6227 = vmax.xlane.f32.xlu1 %v6226_v2  ;;  %6242 = vmax.xlane.f32.xlu0 %v6241_v45  ;;  %v3125_v45 = vpack.c.bf16 %v14916_v27, %v14916_v27 }
 0x784   : > { %13951 = vmatmul.mubr.msk.bf16.vlgmr.msra.gmra.mrb[112].mxu0 %vm3137_vm5, %v3057_v16  ;;  %v3500_v25 = vpop.f32.mrb[44].mxu1  ;;  %v3730_v19 = vpop.f32.mrb[40].mxu0  ;;  %13957 = vmatmul.mubr.msk.bf16.vlgmr.msra.gmra.mrb[128].mxu1 %vm3137_vm5, %v3058_v35  ;;  %v3126_v16 = vpack.c.bf16 %v14917_v8, %v14917_v8  ;;  %v5534_v27 = vsel %vm3137_vm5, %v3125_v45, 0 }
 0x785   : > { %13961 = vmatpush3.bf16.xpose.msra.mxu0 %v5442_v55  ;;  %v6089_v39 = vmul.f32 0.25, %v3500_v25  ;;  %v6094_v10 = vmul.f32 0.25, %v3730_v19  ;;  %v13706_v24 = vpop.f32.mrb[45].mxu1  ;;  %v13736_v36 = vpop.f32.mrb[41].mxu0  ;;  %13967 = vmatpush3.bf16.xpose.msra.mxu1 %v5488_v3  ;;  %v3059_v55 = vpack.c.bf16 %v14911_v23, %v14911_v23  ;;  %v3060_v25 = vpack.c.bf16 %v14912_v51, %v14912_v51 }
 0x786   : > { %v3503_v18 = vpop.f32.mrb[46].mxu1  ;;  %v3733_v30 = vpop.f32.mrb[42].mxu0  ;;  %13962 = vmatprep.mubr.msk.bf16.mxu0 %vm16594_vm4, %v21807_v5  ;;  %13968 = vmatprep.mubr.msk.bf16.mxu1 %vm16594_vm4, %v21807_v5  ;;  %v14927_v24 = vunpack.i.h.bf16 %v18625_v22  ;;  %v5580_v36 = vsel %vm3137_vm5, %v3126_v16, 0 }
 0x787   : > { %v13707_v54 = vpop.f32.mrb[47].mxu1  ;;  %v13737_v2 = vpop.f32.mrb[43].mxu0  ;;  %v18771_v43 = vadd.f32 %v6089_v39, %v18644_v60  ;;  %v18774_v6 = vadd.f32 %v6094_v10, %v18644_v60  ;;  %13972 = vmatprep.subr.bf16.mxu0 %v21807_v5  ;;  %13978 = vmatprep.subr.bf16.mxu1 %v21807_v5  ;;  %v14926_v39 = vunpack.i.l.bf16 %v18625_v22 }
 0x788   : > { %v14920_v19 = vpop.permute.xlu1 %14919  ;;  %v18782_v3 = vpop.permute.xlu0 %14999 }
 0x789   : > { %v6232_v35 = vsel %vm6210_vm7, %v18771_v43, -inf  ;;  %v6247_v57 = vsel %vm6210_vm7, %v18774_v6, -inf  ;;  %21989 = vst [vmem:[#allocation76_spill] sm:$0xff] %v18782_v3  ;;  %v14921_v54 = vunpack.i.l.bf16 %v14920_v19  ;;  %v14922_v45 = vunpack.i.h.bf16 %v14920_v19 }
 0x78a   : > { %6233 = vmax.xlane.f32.xlu1 %v6232_v35  ;;  %6248 = vmax.xlane.f32.xlu0 %v6247_v57 }
 0x78c   : > { %13963 = vmatmul.mubr.msk.bf16.vlgmr.msra.gmra.mrb[116].mxu0 %vm3137_vm5, %v3059_v55  ;;  %v3592_v8 = vpop.f32.mrb[48].mxu1  ;;  %v3822_v10 = vpop.f32.mrb[44].mxu0  ;;  %13969 = vmatmul.mubr.msk.bf16.vlgmr.msra.gmra.mrb[132].mxu1 %vm3137_vm5, %v3060_v25  ;;  %v3127_v25 = vpack.c.bf16 %v14926_v39, %v14926_v39 }
 0x78d   : > { %13973 = vmatpush3.bf16.xpose.msra.mxu0 %v5534_v27  ;;  %v6091_v23 = vmul.f32 0.25, %v3592_v8  ;;  %v6096_v18 = vmul.f32 0.25, %v3822_v10  ;;  %v13718_v30 = vpop.f32.mrb[49].mxu1  ;;  %v13748_v51 = vpop.f32.mrb[45].mxu0  ;;  %13979 = vmatpush3.bf16.xpose.msra.mxu1 %v5580_v36  ;;  %v3128_v27 = vpack.c.bf16 %v14927_v24, %v14927_v24  ;;  %v3061_v10 = vpack.c.bf16 %v14921_v54, %v14921_v54 }
 0x78e   : > { %v3595_v2 = vpop.f32.mrb[50].mxu1  ;;  %v3825_v35 = vpop.f32.mrb[46].mxu0  ;;  %13974 = vmatprep.mubr.msk.bf16.mxu0 %vm16594_vm4, %v21807_v5  ;;  %13980 = vmatprep.mubr.msk.bf16.mxu1 %vm16594_vm4, %v21807_v5  ;;  %v3062_v36 = vpack.c.bf16 %v14922_v45, %v14922_v45  ;;  %v5626_v39 = vsel %vm3137_vm5, %v3127_v25, 0  ;;  %v14937_v24 = vunpack.i.h.bf16 %v18639_v40 }
 0x78f   : > { %v13719_v57 = vpop.f32.mrb[51].mxu1  ;;  %v13749_v55 = vpop.f32.mrb[47].mxu0  ;;  %v18795_v22 = vadd.f32 %v6091_v23, %v18644_v60  ;;  %v18798_v16 = vadd.f32 %v6096_v18, %v18644_v60  ;;  %13984 = vmatprep.subr.bf16.mxu0 %v21807_v5  ;;  %13990 = vmatprep.subr.bf16.mxu1 %v21807_v5  ;;  %v14936_v18 = vunpack.i.l.bf16 %v18639_v40  ;;  %v5672_v54 = vsel %vm3137_vm5, %v3128_v27, 0 }
 0x790   : > { %v14930_v23 = vpop.permute.xlu1 %14929  ;;  %v18810_v51 = vpop.permute.xlu0 %15009  ;;  %v3130_v27 = vpack.c.bf16 %v14937_v24, %v14937_v24 }
 0x791   : > { %v6238_v19 = vsel %vm6210_vm7, %v18795_v22, -inf  ;;  %v6253_v8 = vsel %vm6210_vm7, %v18798_v16, -inf  ;;  %21990 = vst [vmem:[#allocation77_spill] sm:$0xff] %v18810_v51  ;;  %v14931_v45 = vunpack.i.l.bf16 %v14930_v23  ;;  %v14932_v55 = vunpack.i.h.bf16 %v14930_v23 }
 0x792   : > { %6239 = vmax.xlane.f32.xlu1 %v6238_v19  ;;  %6254 = vmax.xlane.f32.xlu0 %v6253_v8  ;;  %v3129_v19 = vpack.c.bf16 %v14936_v18, %v14936_v18  ;;  %v14947_v18 = vunpack.i.h.bf16 %v18657_v56  ;;  %v5764_v24 = vsel %vm3137_vm5, %v3130_v27, 0 }
 0x794   : > { %13975 = vmatmul.mubr.msk.bf16.vlgmr.msra.gmra.mrb[120].mxu0 %vm3137_vm5, %v3061_v10  ;;  %v3684_v30 = vpop.f32.mrb[52].mxu1  ;;  %13981 = vmatmul.mubr.msk.bf16.vlgmr.msra.gmra.mrb[136].mxu1 %vm3137_vm5, %v3062_v36  ;;  %v3063_v10 = vpack.c.bf16 %v14931_v45, %v14931_v45  ;;  %v3064_v36 = vpack.c.bf16 %v14932_v55, %v14932_v55  ;;  %v14940_v23 = vpop.permute.xlu1 %14939  ;;  %v3132_v27 = vpack.c.bf16 %v14947_v18, %v14947_v18 }
 0x795   : > { %13985 = vmatpush3.bf16.xpose.msra.mxu0 %v5626_v39  ;;  %v6093_v2 = vmul.f32 0.25, %v3684_v30  ;;  %v13730_v35 = vpop.f32.mrb[53].mxu1  ;;  %13991 = vmatpush3.bf16.xpose.msra.mxu1 %v5672_v54  ;;  %v18825_v39 = vpop.permute.xlu0 %15019  ;;  %v14946_v30 = vunpack.i.l.bf16 %v18657_v56  ;;  %v5718_v54 = vsel %vm3137_vm5, %v3129_v19, 0 }
 0x796   : > { %v3687_v57 = vpop.f32.mrb[54].mxu1  ;;  %13986 = vmatprep.mubr.msk.bf16.mxu0 %vm16594_vm4, %v21807_v5  ;;  %13992 = vmatprep.mubr.msk.bf16.mxu1 %vm16594_vm4, %v21807_v5  ;;  %21991 = vst [vmem:[#allocation78_spill] sm:$0xff] %v18825_v39 }
 0x797   : > { %v13731_v25 = vpop.f32.mrb[55].mxu1  ;;  %v18819_v40 = vadd.f32 %v6093_v2, %v18644_v60  ;;  %13996 = vmatprep.subr.bf16.mxu0 %v21807_v5  ;;  %14002 = vmatprep.subr.bf16.mxu1 %v21807_v5  ;;  %v14941_v57 = vunpack.i.l.bf16 %v14940_v23  ;;  %v3131_v19 = vpack.c.bf16 %v14946_v30, %v14946_v30  ;;  %v5856_v30 = vsel %vm3137_vm5, %v3132_v27, 0 }
 0x798   : > { %v14942_v25 = vunpack.i.h.bf16 %v14940_v23 }
 0x799   : > { %v6244_v8 = vsel %vm6210_vm7, %v18819_v40, -inf }
 0x79a   : > { %6245 = vmax.xlane.f32.xlu1 %v6244_v8  ;;  %v3066_v23 = vpack.c.bf16 %v14942_v25, %v14942_v25 }
 0x79c   : > { %13987 = vmatmul.mubr.msk.bf16.vlgmr.msra.gmra.mrb[124].mxu0 %vm3137_vm5, %v3063_v10  ;;  %v3776_v2 = vpop.f32.mrb[56].mxu1  ;;  %13993 = vmatmul.mubr.msk.bf16.vlgmr.msra.gmra.mrb[140].mxu1 %vm3137_vm5, %v3064_v36  ;;  %v15030_v10 = vpop.permute.xlu0 %15029 }
 0x79d   : > { %13997 = vmatpush3.bf16.xpose.msra.mxu0 %v5718_v54  ;;  %v6095_v35 = vmul.f32 0.25, %v3776_v2  ;;  %v13742_v45 = vpop.f32.mrb[57].mxu1  ;;  %14003 = vmatpush3.bf16.xpose.msra.mxu1 %v5764_v24  ;;  %v3065_v54 = vpack.c.bf16 %v14941_v57, %v14941_v57  ;;  %v14950_v2 = vpop.permute.xlu1 %14949  ;;  %v15031_v24 = vunpack.i.l.bf16 %v15030_v10 }
 0x79e   : > { %v3779_v55 = vpop.f32.mrb[58].mxu1  ;;  %13998 = vmatprep.mubr.msk.bf16.mxu0 %vm16594_vm4, %v21807_v5  ;;  %14004 = vmatprep.mubr.msk.bf16.mxu1 %vm16594_vm4, %v21807_v5  ;;  %v14951_v12 = vunpack.i.l.bf16 %v14950_v2  ;;  %v14952_v25 = vunpack.i.h.bf16 %v14950_v2 }
 0x79f   : > { %v13743_v8 = vpop.f32.mrb[59].mxu1  ;;  %v18838_v56 = vadd.f32 %v6095_v35, %v18644_v60  ;;  %14008 = vmatprep.subr.bf16.mxu0 %v21807_v5  ;;  %14014 = vmatprep.subr.bf16.mxu1 %v21807_v5  ;;  %v5810_v35 = vsel %vm3137_vm5, %v3131_v19, 0  ;;  %v15032_v55 = vunpack.i.h.bf16 %v15030_v10  ;;  %v3133_v10 = vpack.c.bf16 %v15031_v24, %v15031_v24 }
 0x7a1   : > { %v6250_v36 = vsel %vm6210_vm7, %v18838_v56, -inf  ;;  %v3134_v27 = vpack.c.bf16 %v15032_v55, %v15032_v55  ;;  %v14955_v2 = vpop.permute.xlu1 %14954 }
 0x7a2   : > { %6251 = vmax.xlane.f32.xlu1 %v6250_v36  ;;  %v14956_v55 = vunpack.i.l.bf16 %v14955_v2 }
 0x7a3   : > { %v5948_v24 = vsel %vm3137_vm5, %v3134_v27, 0 }
 0x7a4   : > { %13999 = vmatmul.mubr.msk.bf16.vlgmr.msra.gmra.mrb[128].mxu0 %vm3137_vm5, %v3065_v54  ;;  %v3868_v45 = vpop.f32.mrb[60].mxu1  ;;  %14005 = vmatmul.mubr.msk.bf16.vlgmr.msra.gmra.mrb[144].mxu1 %vm3137_vm5, %v3066_v23  ;;  %v3067_v23 = vpack.c.bf16 %v14951_v12, %v14951_v12  ;;  %v14957_v12 = vunpack.i.h.bf16 %v14955_v2  ;;  %v6980_v2 = vpack.c.bf16 %v18136_v21, %v18136_v21 }
 0x7a5   : > { %14009 = vmatpush3.bf16.xpose.msra.mxu0 %v5810_v35  ;;  %v6097_v18 = vmul.f32 0.25, %v3868_v45  ;;  %v13754_v8 = vpop.f32.mrb[61].mxu1  ;;  %14015 = vmatpush3.bf16.xpose.msra.mxu1 %v5856_v30  ;;  %v3068_v35 = vpack.c.bf16 %v14952_v25, %v14952_v25  ;;  %v14961_v45 = vunpack.i.l.bf16 %v18668_v48  ;;  %v5902_v30 = vsel %vm3137_vm5, %v3133_v10, 0 }
 0x7a6   : > { %v3871_v57 = vpop.f32.mrb[62].mxu1  ;;  %14010 = vmatprep.mubr.msk.bf16.mxu0 %vm16594_vm4, %v21807_v5  ;;  %14016 = vmatprep.mubr.msk.bf16.mxu1 %vm16594_vm4, %v21807_v5  ;;  %v3070_v25 = vpack.c.bf16 %v14957_v12, %v14957_v12 }
 0x7a7   : > { %v13755_v36 = vpop.f32.mrb[63].mxu1  ;;  %v18853_v19 = vadd.f32 %v6097_v18, %v18644_v60  ;;  %14020 = vmatprep.subr.bf16.mxu0 %v21807_v5  ;;  %14026 = vmatprep.subr.bf16.mxu1 %v21807_v5  ;;  %v14962_v18 = vunpack.i.h.bf16 %v18668_v48  ;;  %v3135_v8 = vpack.c.bf16 %v14961_v45, %v14961_v45  ;;  %v3069_v57 = vpack.c.bf16 %v14956_v55, %v14956_v55 }
 0x7a8   : > { %v14965_v36 = vpop.permute.xlu1 %14964 }
 0x7a9   : > { %v6256_v54 = vsel %vm6210_vm7, %v18853_v19, -inf  ;;  %v3136_v48 = vpack.c.bf16 %v14962_v18, %v14962_v18  ;;  %v5994_v10 = vsel %vm3137_vm5, %v3135_v8, 0 }
 0x7aa   : > { %6257 = vmax.xlane.f32.xlu1 %v6256_v54  ;;  %v14966_v54 = vunpack.i.l.bf16 %v14965_v36 }
 0x7ab   : > { %v6040_v27 = vsel %vm3137_vm5, %v3136_v48, 0 }
 0x7ac   : > { %14011 = vmatmul.mubr.msk.bf16.vlgmr.msra.gmra.mrb[132].mxu0 %vm3137_vm5, %v3067_v23  ;;  %14017 = vmatmul.mubr.msk.bf16.vlgmr.msra.gmra.mrb[148].mxu1 %vm3137_vm5, %v3068_v35  ;;  %v14967_v23 = vunpack.i.h.bf16 %v14965_v36  ;;  %v6979_v35 = vpack.c.bf16 %v18151_v44, %v18151_v44  ;;  %v3071_v45 = vpack.c.bf16 %v14966_v54, %v14966_v54  ;;  %v18895_v21 = vpop.permute.xlu1 %14974 }
 0x7ad   : > { %14021 = vmatpush3.bf16.xpose.msra.mxu0 %v5902_v30  ;;  %14027 = vmatpush3.bf16.xpose.msra.mxu1 %v5948_v24  ;;  %v7094_v24 = vsel %vm7046_vm8, %v6980_v2, 0  ;;  %21992 = vst [vmem:[#allocation79_spill] sm:$0xff] %v18895_v21 }
 0x7ae   : > { %14022 = vmatprep.mubr.msk.bf16.mxu0 %vm16594_vm4, %v21807_v5  ;;  %14028 = vmatprep.mubr.msk.bf16.mxu1 %vm16594_vm4, %v21807_v5  ;;  %v3072_v30 = vpack.c.bf16 %v14967_v23, %v14967_v23  ;;  %v7048_v18 = vsel %vm7046_vm8, %v6979_v35, 0 }
 0x7af   : > { %14032 = vmatprep.subr.bf16.mxu0 %v21807_v5  ;;  %14038 = vmatprep.subr.bf16.mxu1 %v21807_v5 }
 0x7b0   : > { %v18897_v44 = vpop.permute.xlu1 %14989 }
 0x7b1   : > { %21993 = vst [vmem:[#allocation80_spill] sm:$0xff] %v18897_v44 }
 0x7b4   : > { %14023 = vmatmul.mubr.msk.bf16.vlgmr.msra.gmra.mrb[136].mxu0 %vm3137_vm5, %v3069_v57  ;;  %14029 = vmatmul.mubr.msk.bf16.vlgmr.msra.gmra.mrb[152].mxu1 %vm3137_vm5, %v3070_v25  ;;  %v18899_v55 = vpop.permute.xlu1 %15004 }
 0x7b5   : > { %14033 = vmatpush3.bf16.xpose.msra.mxu0 %v5994_v10  ;;  %14039 = vmatpush3.bf16.xpose.msra.mxu1 %v6040_v27  ;;  %21994 = vst [vmem:[#allocation81_spill] sm:$0xff] %v18899_v55 }
 0x7b6   : > { %14034 = vmatprep.mubr.msk.bf16.mxu0 %vm16594_vm4, %v21807_v5  ;;  %14040 = vmatprep.mubr.msk.bf16.mxu1 %vm16594_vm4, %v21807_v5 }
 0x7b7   : > { %14044 = vmatprep.subr.bf16.mxu0 %v21807_v5  ;;  %14050 = vmatprep.subr.bf16.mxu1 %v21807_v5 }
 0x7b8   : > { %v18901_v12 = vpop.permute.xlu1 %15014 }
 0x7b9   : > { %21995 = vst [vmem:[#allocation82_spill] sm:$0xff] %v18901_v12 }
 0x7bc   : > { %14035 = vmatmul.mubr.msk.bf16.vlgmr.msra.gmra.mrb[140].mxu0 %vm3137_vm5, %v3071_v45  ;;  %14041 = vmatmul.mubr.msk.bf16.vlgmr.msra.gmra.mrb[156].mxu1 %vm3137_vm5, %v3072_v30 }
 0x7bd   : > { %14045 = vmatpush3.bf16.msra.mxu0 %v7048_v18  ;;  %14051 = vmatpush3.bf16.msra.mxu1 %v7094_v24  ;;  %v18913_v24 = vpop.permute.xlu1 %15024 }
 0x7be   : > { %14046 = vmatprep.mubr.msk.bf16.mxu0 %vm16594_vm4, %v21807_v5  ;;  %14056 = vmatprep.subr.bf16.mxu0 %v21807_v5  ;;  %21996 = vst [vmem:[#allocation83_spill] sm:$0xff] %v18913_v24 }
 0x7bf   : > { %14052 = vmatprep.mubr.msk.bf16.mxu1 %vm16594_vm4, %v21807_v5  ;;  %14062 = vmatprep.subr.bf16.mxu1 %v21807_v5 }
 0x7d6   : > { %v3914_v8 = vpop.f32.mrb[48].mxu0  ;;  %v3960_v48 = vpop.f32.mrb[64].mxu1 }
 0x7d7   : > { %v6098_v57 = vmul.f32 0.25, %v3914_v8  ;;  %v6099_v25 = vmul.f32 0.25, %v3960_v48  ;;  %v13760_v36 = vpop.f32.mrb[49].mxu0  ;;  %v13766_v10 = vpop.f32.mrb[65].mxu1 }
 0x7d8   : > { %v3917_v27 = vpop.f32.mrb[50].mxu0  ;;  %v3963_v54 = vpop.f32.mrb[66].mxu1 }
 0x7d9   : > { %v18904_v23 = vadd.f32 %v6099_v25, %v18644_v60  ;;  %v13761_v35 = vpop.f32.mrb[51].mxu0  ;;  %v13767_v2 = vpop.f32.mrb[67].mxu1  ;;  %v18907_v45 = vadd.f32 %v6098_v57, %v18644_v60 }
 0x7da   : > { %v18915_v8 = vpop.permute.xlu0 %15034 }
 0x7db   : > { %v6262_v30 = vsel %vm6210_vm7, %v18904_v23, -inf  ;;  %v6259_v18 = vsel %vm6210_vm7, %v18907_v45, -inf  ;;  %21997 = vst [vmem:[#allocation84_spill] sm:$0xff] %v18915_v8 }
 0x7dc   : > { %6263 = vmax.xlane.f32.xlu1 %v6262_v30  ;;  %6260 = vmax.xlane.f32.xlu0 %v6259_v18 }
 0x7de   : > { %v18925_v8 = vpop.permute.xlu0 %15039 }
 0x7df   : > { %v4006_v48 = vpop.f32.mrb[52].mxu0  ;;  %v4052_v36 = vpop.f32.mrb[68].mxu1  ;;  %21998 = vst [vmem:[#allocation85_spill] sm:$0xff] %v18925_v8 }
 0x7e0   : > { %v6100_v25 = vmul.f32 0.25, %v4006_v48  ;;  %v13772_v10 = vpop.f32.mrb[53].mxu0  ;;  %v6101_v27 = vmul.f32 0.25, %v4052_v36  ;;  %v13778_v54 = vpop.f32.mrb[69].mxu1 }
 0x7e1   : > { %v4009_v57 = vpop.f32.mrb[54].mxu0  ;;  %v4055_v35 = vpop.f32.mrb[70].mxu1 }
 0x7e2   : > { %v13773_v2 = vpop.f32.mrb[55].mxu0  ;;  %v18918_v5 = vadd.f32 %v6100_v25, %v18644_v60  ;;  %v18921_v31 = vadd.f32 %v6101_v27, %v18644_v60  ;;  %v13779_v30 = vpop.f32.mrb[71].mxu1 }
 0x7e3   : > { %v18929_v36 = vpop.permute.xlu1 %15044  ;;  %v18934_v8 = vpop.permute.xlu0 %15049 }
 0x7e4   : > { %v6265_v18 = vsel %vm6210_vm7, %v18918_v5, -inf  ;;  %v6268_v48 = vsel %vm6210_vm7, %v18921_v31, -inf  ;;  %21999 = vst [vmem:[#allocation86_spill] sm:$0xff] %v18929_v36  ;;  %22000 = vst [vmem:[#allocation87_spill] sm:$0xff] %v18934_v8 }
 0x7e5   : > { %6266 = vmax.xlane.f32.xlu0 %v6265_v18  ;;  %6269 = vmax.xlane.f32.xlu1 %v6268_v48 }
 0x7e7   : > { %v4098_v10 = vpop.f32.mrb[56].mxu0  ;;  %v4144_v25 = vpop.f32.mrb[72].mxu1 }
 0x7e8   : > { %v6102_v54 = vmul.f32 0.25, %v4098_v10  ;;  %v13784_v57 = vpop.f32.mrb[57].mxu0  ;;  %v6103_v35 = vmul.f32 0.25, %v4144_v25  ;;  %v13790_v27 = vpop.f32.mrb[73].mxu1 }
 0x7e9   : > { %v4101_v2 = vpop.f32.mrb[58].mxu0  ;;  %v4147_v30 = vpop.f32.mrb[74].mxu1 }
 0x7ea   : > { %v13785_v24 = vpop.f32.mrb[59].mxu0  ;;  %v18932_v39 = vadd.f32 %v6102_v54, %v18644_v60  ;;  %v18937_v12 = vadd.f32 %v6103_v35, %v18644_v60  ;;  %v13791_v18 = vpop.f32.mrb[75].mxu1 }
 0x7eb   : > { %v18941_v10 = vpop.permute.xlu1 %15054 }
 0x7ec   : > { %v6271_v48 = vsel %vm6210_vm7, %v18932_v39, -inf  ;;  %22001 = vst [vmem:[#allocation88_spill] sm:$0xff] %v18941_v10  ;;  %v6274_v25 = vsel %vm6210_vm7, %v18937_v12, -inf }
 0x7ed   : > { %6272 = vmax.xlane.f32.xlu0 %v6271_v48  ;;  %6275 = vmax.xlane.f32.xlu1 %v6274_v25 }
 0x7ef   : > { %v4190_v24 = vpop.f32.mrb[60].mxu0  ;;  %v6213_v57 = vpop.xlane.xlu0 %6212 }
 0x7f0   : > { %v6104_v54 = vmul.f32 0.25, %v4190_v24  ;;  %v4236_v27 = vpop.f32.mrb[76].mxu1  ;;  %v13796_v2 = vpop.f32.mrb[61].mxu0  ;;  %v6403_v48 = vsub.f32 %v18654_v42, %v6213_v57 }
 0x7f1   : > { %v6105_v30 = vmul.f32 0.25, %v4236_v27  ;;  %v13802_v8 = vpop.f32.mrb[77].mxu1  ;;  %v4193_v35 = vpop.f32.mrb[62].mxu0 }
 0x7f2   : > { %v4239_v36 = vpop.f32.mrb[78].mxu1  ;;  %v13797_v18 = vpop.f32.mrb[63].mxu0  ;;  %v18946_v51 = vadd.f32 %v6104_v54, %v18644_v60 }
 0x7f3   : > { %v18948_v55 = vpop.permute.xlu1 %15059  ;;  %v18951_v20 = vadd.f32 %v6105_v30, %v18644_v60  ;;  %v13803_v25 = vpop.f32.mrb[79].mxu1  ;;  %v6467_v36 = vmul.f32 1.442695, %v6403_v48 }
 0x7f4   : > { %22002 = vst [vmem:[#allocation89_spill] sm:$0xff] %v18948_v55  ;;  %v6277_v24 = vsel %vm6210_vm7, %v18946_v51, -inf }
 0x7f5   : > { %v6280_v8 = vsel %vm6210_vm7, %v18951_v20, -inf  ;;  %6278 = vmax.xlane.f32.xlu0 %v6277_v24  ;;  %15289 = vpow2.f32 %v6467_v36 }
 0x7f6   : > { %6281 = vmax.xlane.f32.xlu1 %v6280_v8 }
 0x7f7   : > { %v4282_v27 = vpop.f32.mrb[64].mxu0  ;;  %v6216_v54 = vpop.xlane.xlu1 %6215 }
 0x7f8   : > { %v6106_v2 = vmul.f32 0.25, %v4282_v27  ;;  %v4328_v35 = vpop.f32.mrb[80].mxu1  ;;  %v13808_v18 = vpop.f32.mrb[65].mxu0  ;;  %v6404_v27 = vsub.f32 %v18675_v37, %v6216_v54 }
 0x7f9   : > { %v6107_v55 = vmul.f32 0.25, %v4328_v35  ;;  %v13814_v30 = vpop.f32.mrb[81].mxu1  ;;  %v6225_v11 = vpop.xlane.xlu0 %6224 }
 0x7fa   : > { %v18959_v42 = vadd.f32 %v6106_v2, %v18644_v60  ;;  %v4285_v57 = vpop.f32.mrb[66].mxu0  ;;  %v4331_v25 = vpop.f32.mrb[82].mxu1  ;;  %v6407_v24 = vsub.f32 %v18678_v47, %v6225_v11 }
 0x7fb   : > { %v18962_v38 = vadd.f32 %v6107_v55, %v18644_v60  ;;  %v13809_v48 = vpop.f32.mrb[67].mxu0  ;;  %v13815_v8 = vpop.f32.mrb[83].mxu1  ;;  %v6469_v57 = vmul.f32 1.442695, %v6404_v27 }
 0x7fc   : > { %v6283_v35 = vsel %vm6210_vm7, %v18959_v42, -inf  ;;  %v6475_v2 = vmul.f32 1.442695, %v6407_v24 }
 0x7fd   : > { %v6286_v18 = vsel %vm6210_vm7, %v18962_v38, -inf  ;;  %6284 = vmax.xlane.f32.xlu0 %v6283_v35 }
 0x7fe   : > { %6287 = vmax.xlane.f32.xlu1 %v6286_v18  ;;  %15291 = vpow2.f32 %v6475_v2 }
 0x7ff   : > { %v4374_v30 = vpop.f32.mrb[68].mxu0  ;;  %v6219_v36 = vpop.xlane.xlu0 %6218  ;;  %15293 = vpow2.f32 %v6469_v57 }
 0x800   : > { %v6108_v55 = vmul.f32 0.25, %v4374_v30  ;;  %v4420_v25 = vpop.f32.mrb[84].mxu1  ;;  %v13820_v3 = vpop.f32.mrb[69].mxu0  ;;  %v6405_v24 = vsub.f32 %v18699_v50, %v6219_v36 }
 0x801   : > { %v6109_v11 = vmul.f32 0.25, %v4420_v25  ;;  %v13826_v47 = vpop.f32.mrb[85].mxu1  ;;  %v4377_v48 = vpop.f32.mrb[70].mxu0 }
 0x802   : > { %v18971_v37 = vadd.f32 %v6108_v55, %v18644_v60  ;;  %v4423_v54 = vpop.f32.mrb[86].mxu1  ;;  %v13821_v8 = vpop.f32.mrb[71].mxu0  ;;  %v6471_v55 = vmul.f32 1.442695, %v6405_v24 }
 0x803   : > { %v18974_v10 = vadd.f32 %v6109_v11, %v18644_v60  ;;  %v13827_v35 = vpop.f32.mrb[87].mxu1  ;;  %v6231_v18 = vpop.xlane.xlu0 %6230 }
 0x804   : > { %v6289_v3 = vsel %vm6210_vm7, %v18971_v37, -inf  ;;  %v18979_v27 = vpop.eup %15289  ;;  %v6409_v2 = vsub.f32 %v18706_v41, %v6231_v18  ;;  %15295 = vpow2.f32 %v6471_v55 }
 0x805   : > { %v6292_v30 = vsel %vm6210_vm7, %v18974_v10, -inf  ;;  %6290 = vmax.xlane.f32.xlu0 %v6289_v3  ;;  %v6595_v57 = vsel %vm6210_vm7, %v18979_v27, 0.0 }
 0x806   : > { %6293 = vmax.xlane.f32.xlu1 %v6292_v30  ;;  %v6479_v24 = vmul.f32 1.442695, %v6409_v2 }
 0x807   : > { %v4466_v25 = vpop.f32.mrb[72].mxu0  ;;  %v6222_v11 = vpop.xlane.xlu0 %6221 }
 0x808   : > { %v6110_v47 = vmul.f32 0.25, %v4466_v25  ;;  %v4512_v50 = vpop.f32.mrb[88].mxu1  ;;  %v13832_v36 = vpop.f32.mrb[73].mxu0  ;;  %v6406_v25 = vsub.f32 %v18723_v4, %v6222_v11  ;;  %15297 = vpow2.f32 %v6479_v24 }
 0x809   : > { %v6111_v48 = vmul.f32 0.25, %v4512_v50  ;;  %v13838_v54 = vpop.f32.mrb[89].mxu1  ;;  %6596 = vadd.xlane.f32.xlu0 %v6595_v57  ;;  %v4469_v8 = vpop.f32.mrb[74].mxu0 }
 0x80a   : > { %v18987_v35 = vadd.f32 %v6110_v47, %v18644_v60  ;;  %v4515_v3 = vpop.f32.mrb[90].mxu1  ;;  %v13833_v30 = vpop.f32.mrb[75].mxu0 }
 0x80b   : > { %v18990_v41 = vadd.f32 %v6111_v48, %v18644_v60  ;;  %v13839_v18 = vpop.f32.mrb[91].mxu1  ;;  %v6237_v36 = vpop.xlane.xlu0 %6236  ;;  %v6473_v48 = vmul.f32 1.442695, %v6406_v25 }
 0x80c   : > { %v6295_v50 = vsel %vm6210_vm7, %v18987_v35, -inf  ;;  %v18995_v54 = vpop.eup %15291  ;;  %v6411_v55 = vsub.f32 %v18730_v7, %v6237_v36 }
 0x80d   : > { %v6298_v47 = vsel %vm6210_vm7, %v18990_v41, -inf  ;;  %6296 = vmax.xlane.f32.xlu0 %v6295_v50  ;;  %v18999_v57 = vpop.eup %15293  ;;  %v6607_v3 = vsel %vm6210_vm7, %v18995_v54, 0.0  ;;  %15299 = vpow2.f32 %v6473_v48 }
 0x80e   : > { %6299 = vmax.xlane.f32.xlu1 %v6298_v47  ;;  %v6598_v50 = vsel %vm6210_vm7, %v18999_v57, 0.0  ;;  %v6483_v25 = vmul.f32 1.442695, %v6411_v55 }
 0x80f   : > { %v4558_v2 = vpop.f32.mrb[76].mxu0  ;;  %v4604_v4 = vpop.f32.mrb[92].mxu1 }
 0x810   : > { %v6112_v8 = vmul.f32 0.25, %v4558_v2  ;;  %v13844_v11 = vpop.f32.mrb[77].mxu0  ;;  %v6113_v30 = vmul.f32 0.25, %v4604_v4  ;;  %v13850_v18 = vpop.f32.mrb[93].mxu1  ;;  %15301 = vpow2.f32 %v6483_v25 }
 0x811   : > { %v6228_v53 = vpop.xlane.xlu1 %6227  ;;  %6608 = vadd.xlane.f32.xlu0 %v6607_v3  ;;  %v4607_v7 = vpop.f32.mrb[94].mxu1 }
 0x812   : > { %v19007_v47 = vadd.f32 %v6112_v8, %v18644_v60  ;;  %6599 = vadd.xlane.f32.xlu1 %v6598_v50  ;;  %v4561_v24 = vpop.f32.mrb[78].mxu0  ;;  %v19010_v36 = vadd.f32 %v6113_v30, %v18644_v60  ;;  %v13851_v11 = vpop.f32.mrb[95].mxu1  ;;  %v6408_v4 = vsub.f32 %v18747_v9, %v6228_v53 }
 0x813   : > { %v13845_v2 = vpop.f32.mrb[79].mxu0  ;;  %v6243_v18 = vpop.xlane.xlu0 %6242 }
 0x814   : > { %v6301_v44 = vsel %vm6210_vm7, %v19007_v47, -inf  ;;  %v19015_v3 = vpop.eup %15295  ;;  %v6304_v8 = vsel %vm6210_vm7, %v19010_v36, -inf  ;;  %v6413_v55 = vsub.f32 %v18750_v52, %v6243_v18  ;;  %v6477_v50 = vmul.f32 1.442695, %v6408_v4 }
 0x815   : > { %6302 = vmax.xlane.f32.xlu0 %v6301_v44  ;;  %v6601_v9 = vsel %vm6210_vm7, %v19015_v3, 0.0  ;;  %v19022_v53 = vpop.eup %15297 }
 0x816   : > { %6305 = vmax.xlane.f32.xlu1 %v6304_v8  ;;  %v6487_v8 = vmul.f32 1.442695, %v6413_v55  ;;  %15303 = vpow2.f32 %v6477_v50 }
 0x817   : > { %v4650_v30 = vpop.f32.mrb[80].mxu0  ;;  %v4696_v48 = vpop.f32.mrb[96].mxu1 }
 0x818   : > { %v6114_v7 = vmul.f32 0.25, %v4650_v30  ;;  %v13856_v24 = vpop.f32.mrb[81].mxu0  ;;  %v6115_v2 = vmul.f32 0.25, %v4696_v48  ;;  %v13862_v11 = vpop.f32.mrb[97].mxu1  ;;  %v6613_v48 = vsel %vm6210_vm7, %v19022_v53, 0.0  ;;  %15305 = vpow2.f32 %v6487_v8 }
 0x819   : > { %v6234_v17 = vpop.xlane.xlu1 %6233  ;;  %6602 = vadd.xlane.f32.xlu0 %v6601_v9  ;;  %v4699_v29 = vpop.f32.mrb[98].mxu1 }
 0x81a   : > { %v4653_v44 = vpop.f32.mrb[82].mxu0  ;;  %v19025_v25 = vadd.f32 %v6115_v2, %v18644_v60  ;;  %v13863_v4 = vpop.f32.mrb[99].mxu1  ;;  %v19028_v18 = vadd.f32 %v6114_v7, %v18644_v60  ;;  %v6410_v30 = vsub.f32 %v18771_v43, %v6234_v17 }
 0x81b   : > { %v13857_v52 = vpop.f32.mrb[83].mxu0  ;;  %v6249_v24 = vpop.xlane.xlu0 %6248 }
 0x81c   : > { %v6310_v29 = vsel %vm6210_vm7, %v19025_v25, -inf  ;;  %v19035_v55 = vpop.eup %15299  ;;  %v6415_v9 = vsub.f32 %v18774_v6, %v6249_v24  ;;  %v6481_v2 = vmul.f32 1.442695, %v6410_v30  ;;  %v6307_v17 = vsel %vm6210_vm7, %v19028_v18, -inf }
 0x81d   : > { %6614 = vadd.xlane.f32.xlu0 %v6613_v48  ;;  %6311 = vmax.xlane.f32.xlu1 %v6310_v29  ;;  %v19040_v43 = vpop.eup %15301  ;;  %v6604_v48 = vsel %vm6210_vm7, %v19035_v55, 0.0 }
 0x81e   : > { %v6491_v24 = vmul.f32 1.442695, %v6415_v9  ;;  %15307 = vpow2.f32 %v6481_v2  ;;  %v6619_v58 = vsel %vm6210_vm7, %v19040_v43, 0.0 }
 0x81f   : > { %v4742_v50 = vpop.f32.mrb[84].mxu0  ;;  %v4788_v11 = vpop.f32.mrb[100].mxu1 }
 0x820   : > { %v6116_v7 = vmul.f32 0.25, %v4742_v50  ;;  %v13868_v44 = vpop.f32.mrb[85].mxu0  ;;  %v6117_v52 = vmul.f32 0.25, %v4788_v11  ;;  %v13874_v4 = vpop.f32.mrb[101].mxu1  ;;  %15309 = vpow2.f32 %v6491_v24 }
 0x821   : > { %v6240_v21 = vpop.xlane.xlu1 %6239  ;;  %6308 = vmax.xlane.f32.xlu0 %v6307_v17  ;;  %6605 = vadd.xlane.f32.xlu1 %v6604_v48  ;;  %v4791_v8 = vpop.f32.mrb[102].mxu1 }
 0x822   : > { %v4745_v6 = vpop.f32.mrb[86].mxu0  ;;  %v19045_v30 = vadd.f32 %v6117_v52, %v18644_v60  ;;  %v13875_v50 = vpop.f32.mrb[103].mxu1  ;;  %v19048_v44 = vadd.f32 %v6116_v7, %v18644_v60  ;;  %v6412_v11 = vsub.f32 %v18795_v22, %v6240_v21 }
 0x823   : > { %v13869_v29 = vpop.f32.mrb[87].mxu0  ;;  %v6255_v4 = vpop.xlane.xlu0 %6254 }
 0x824   : > { %v6316_v17 = vsel %vm6210_vm7, %v19045_v30, -inf  ;;  %v19055_v9 = vpop.eup %15303  ;;  %v6417_v52 = vsub.f32 %v18798_v16, %v6255_v4  ;;  %v6485_v7 = vmul.f32 1.442695, %v6412_v11  ;;  %v6313_v21 = vsel %vm6210_vm7, %v19048_v44, -inf }
 0x825   : > { %6620 = vadd.xlane.f32.xlu0 %v6619_v58  ;;  %6317 = vmax.xlane.f32.xlu1 %v6316_v17  ;;  %v19060_v29 = vpop.eup %15305  ;;  %v6610_v58 = vsel %vm6210_vm7, %v19055_v9, 0.0 }
 0x826   : > { %v6495_v17 = vmul.f32 1.442695, %v6417_v52  ;;  %15311 = vpow2.f32 %v6485_v7 }
 0x827   : > { %v4834_v2 = vpop.f32.mrb[88].mxu0  ;;  %v6246_v48 = vpop.xlane.xlu1 %6245 }
 0x828   : > { %v6118_v8 = vmul.f32 0.25, %v4834_v2  ;;  %v4880_v6 = vpop.f32.mrb[104].mxu1  ;;  %v13880_v22 = vpop.f32.mrb[89].mxu0  ;;  %15313 = vpow2.f32 %v6495_v17 }
 0x829   : > { %v6119_v50 = vmul.f32 0.25, %v4880_v6  ;;  %v13886_v14 = vpop.f32.mrb[105].mxu1  ;;  %6314 = vmax.xlane.f32.xlu0 %v6313_v21  ;;  %v4837_v24 = vpop.f32.mrb[90].mxu0  ;;  %6611 = vadd.xlane.f32.xlu1 %v6610_v58  ;;  %v6414_v6 = vsub.f32 %v18819_v40, %v6246_v48 }
 0x82a   : > { %v4883_v16 = vpop.f32.mrb[106].mxu1  ;;  %v13881_v4 = vpop.f32.mrb[91].mxu0  ;;  %v19068_v22 = vadd.f32 %v6118_v8, %v18644_v60  ;;  %v6625_v14 = vsel %vm6210_vm7, %v19060_v29, 0.0 }
 0x82b   : > { %v19065_v11 = vadd.f32 %v6119_v50, %v18644_v60  ;;  %v13887_v2 = vpop.f32.mrb[107].mxu1  ;;  %v19075_v58 = vpop.eup %15307  ;;  %v6489_v24 = vmul.f32 1.442695, %v6414_v6 }
 0x82c   : > { %v6319_v40 = vsel %vm6210_vm7, %v19068_v22, -inf  ;;  %v19079_v48 = vpop.eup %15309 }
 0x82d   : > { %v6322_v21 = vsel %vm6210_vm7, %v19065_v11, -inf  ;;  %6626 = vadd.xlane.f32.xlu0 %v6625_v14  ;;  %v6616_v14 = vsel %vm6210_vm7, %v19075_v58, 0.0  ;;  %15315 = vpow2.f32 %v6489_v24 }
 0x82e   : > { %6323 = vmax.xlane.f32.xlu1 %v6322_v21 }
 0x82f   : > { %v4926_v52 = vpop.f32.mrb[92].mxu0  ;;  %v6252_v50 = vpop.xlane.xlu1 %6251 }
 0x830   : > { %v6120_v7 = vmul.f32 0.25, %v4926_v52  ;;  %v4972_v16 = vpop.f32.mrb[108].mxu1  ;;  %v13892_v8 = vpop.f32.mrb[93].mxu0  ;;  %v6416_v49 = vsub.f32 %v18838_v56, %v6252_v50 }
 0x831   : > { %v6121_v4 = vmul.f32 0.25, %v4972_v16  ;;  %v13898_v2 = vpop.f32.mrb[109].mxu1  ;;  %6320 = vmax.xlane.f32.xlu0 %v6319_v40  ;;  %v4929_v15 = vpop.f32.mrb[94].mxu0  ;;  %v6631_v16 = vsel %vm6210_vm7, %v19079_v48, 0.0 }
 0x832   : > { %6617 = vadd.xlane.f32.xlu1 %v6616_v14  ;;  %v4975_v17 = vpop.f32.mrb[110].mxu1  ;;  %v13893_v21 = vpop.f32.mrb[95].mxu0  ;;  %v19087_v8 = vadd.f32 %v6120_v7, %v18644_v60 }
 0x833   : > { %v19084_v6 = vadd.f32 %v6121_v4, %v18644_v60  ;;  %v13899_v52 = vpop.f32.mrb[111].mxu1  ;;  %v19094_v15 = vpop.eup %15311  ;;  %v6493_v4 = vmul.f32 1.442695, %v6416_v49 }
 0x834   : > { %22004 = vst [vmem:[#allocation91_spill] sm:$0xff] %v19087_v8  ;;  %v6325_v7 = vsel %vm6210_vm7, %v19087_v8, -inf  ;;  %v19098_v21 = vpop.eup %15313  ;;  %v6622_v52 = vsel %vm6210_vm7, %v19094_v15, 0.0 }
 0x835   : > { %22003 = vst [vmem:[#allocation90_spill] sm:$0xff] %v19084_v6  ;;  %v6328_v40 = vsel %vm6210_vm7, %v19084_v6, -inf  ;;  %6632 = vadd.xlane.f32.xlu0 %v6631_v16  ;;  %22005 = vst [vmem:[#allocation92_spill] sm:$0xff] %v19098_v21  ;;  %15317 = vpow2.f32 %v6493_v4 }
 0x836   : > { %6329 = vmax.xlane.f32.xlu1 %v6328_v40 }
 0x837   : > { %v5018_v2 = vpop.f32.mrb[96].mxu0  ;;  %v5064_v17 = vpop.f32.mrb[112].mxu1 }
 0x838   : > { %v6122_v14 = vmul.f32 0.25, %v5018_v2  ;;  %v13904_v24 = vpop.f32.mrb[97].mxu0  ;;  %v6123_v56 = vmul.f32 0.25, %v5064_v17  ;;  %v13910_v50 = vpop.f32.mrb[113].mxu1  ;;  %v6637_v17 = vsel %vm6210_vm7, %v19098_v21, 0.0 }
 0x839   : > { %6326 = vmax.xlane.f32.xlu0 %v6325_v7  ;;  %v5021_v16 = vpop.f32.mrb[98].mxu0  ;;  %v5067_v6 = vpop.f32.mrb[114].mxu1 }
 0x83a   : > { %6623 = vadd.xlane.f32.xlu1 %v6622_v52  ;;  %v13905_v40 = vpop.f32.mrb[99].mxu0  ;;  %v19103_v49 = vadd.f32 %v6123_v56, %v18644_v60  ;;  %v13911_v2 = vpop.f32.mrb[115].mxu1  ;;  %v19106_v24 = vadd.f32 %v6122_v14, %v18644_v60 }
 0x83b   : > { %v6258_v50 = vpop.xlane.xlu1 %6257  ;;  %v19112_v7 = vpop.eup %15315 }
 0x83c   : > { %22006 = vst [vmem:[#allocation93_spill] sm:$0xff] %v19103_v49  ;;  %22007 = vst [vmem:[#allocation94_spill] sm:$0xff] %v19106_v24  ;;  %v6334_v8 = vsel %vm6210_vm7, %v19103_v49, -inf  ;;  %v6418_v56 = vsub.f32 %v18853_v19, %v6258_v50  ;;  %v6331_v14 = vsel %vm6210_vm7, %v19106_v24, -inf  ;;  %v6628_v21 = vsel %vm6210_vm7, %v19112_v7, 0.0 }
 0x83d   : > { %6638 = vadd.xlane.f32.xlu0 %v6637_v17 }
 0x83e   : > { %6335 = vmax.xlane.f32.xlu1 %v6334_v8 }
 0x83f   : > { %v5110_v6 = vpop.f32.mrb[100].mxu0  ;;  %v5156_v16 = vpop.f32.mrb[116].mxu1 }
 0x840   : > { %v6124_v52 = vmul.f32 0.25, %v5110_v6  ;;  %v13916_v4 = vpop.f32.mrb[101].mxu0  ;;  %v6125_v40 = vmul.f32 0.25, %v5156_v16  ;;  %v13922_v2 = vpop.f32.mrb[117].mxu1  ;;  %v6497_v6 = vmul.f32 1.442695, %v6418_v56 }
 0x841   : > { %6332 = vmax.xlane.f32.xlu0 %v6331_v14  ;;  %v5113_v49 = vpop.f32.mrb[102].mxu0  ;;  %v5159_v8 = vpop.f32.mrb[118].mxu1 }
 0x842   : > { %v19120_v17 = vadd.f32 %v6124_v52, %v18644_v60  ;;  %6629 = vadd.xlane.f32.xlu1 %v6628_v21  ;;  %v13917_v34 = vpop.f32.mrb[103].mxu0  ;;  %v19123_v19 = vadd.f32 %v6125_v40, %v18644_v60  ;;  %v13923_v50 = vpop.f32.mrb[119].mxu1  ;;  %15319 = vpow2.f32 %v6497_v6 }
 0x843   : > { %v19129_v14 = vpop.eup %15317 }
 0x844   : > { %22008 = vst [vmem:[#allocation95_spill] sm:$0xff] %v19120_v17  ;;  %22009 = vst [vmem:[#allocation96_spill] sm:$0xff] %v19123_v19  ;;  %v6337_v16 = vsel %vm6210_vm7, %v19120_v17, -inf  ;;  %v6340_v4 = vsel %vm6210_vm7, %v19123_v19, -inf  ;;  %v6634_v56 = vsel %vm6210_vm7, %v19129_v14, 0.0 }
 0x845   : > { %6338 = vmax.xlane.f32.xlu0 %v6337_v16  ;;  %22010 = vst [vmem:[#allocation97_spill] sm:$0xff] %v19129_v14 }
 0x846   : > { %6341 = vmax.xlane.f32.xlu1 %v6340_v4 }
 0x847   : > { %v5202_v49 = vpop.f32.mrb[104].mxu0  ;;  %v5248_v52 = vpop.f32.mrb[120].mxu1 }
 0x848   : > { %v6126_v21 = vmul.f32 0.25, %v5202_v49  ;;  %v13928_v34 = vpop.f32.mrb[105].mxu0  ;;  %v6127_v2 = vmul.f32 0.25, %v5248_v52  ;;  %v13934_v40 = vpop.f32.mrb[121].mxu1 }
 0x849   : > { %v5205_v8 = vpop.f32.mrb[106].mxu0  ;;  %v5251_v17 = vpop.f32.mrb[122].mxu1 }
 0x84a   : > { %v19134_v50 = vadd.f32 %v6126_v21, %v18644_v60  ;;  %6635 = vadd.xlane.f32.xlu1 %v6634_v56  ;;  %v13929_v16 = vpop.f32.mrb[107].mxu0  ;;  %v13935_v19 = vpop.f32.mrb[123].mxu1  ;;  %v19139_v6 = vadd.f32 %v6127_v2, %v18644_v60 }
 0x84c   : > { %22011 = vst [vmem:[#allocation98_spill] sm:$0xff] %v19134_v50  ;;  %v6343_v4 = vsel %vm6210_vm7, %v19134_v50, -inf  ;;  %22012 = vst [vmem:[#allocation99_spill] sm:$0xff] %v19139_v6  ;;  %v6346_v21 = vsel %vm6210_vm7, %v19139_v6, -inf  ;;  %v19143_v17 = vpop.eup %15319 }
 0x84e   : > { %6344 = vmax.xlane.f32.xlu1 %v6343_v4 }
 0x84f   : > { %v5294_v49 = vpop.f32.mrb[108].mxu0  ;;  %v5340_v34 = vpop.f32.mrb[124].mxu1 }
 0x850   : > { %v6128_v52 = vmul.f32 0.25, %v5294_v49  ;;  %v13940_v40 = vpop.f32.mrb[109].mxu0  ;;  %v6129_v24 = vmul.f32 0.25, %v5340_v34  ;;  %v13946_v8 = vpop.f32.mrb[125].mxu1  ;;  %v6640_v34 = vsel %vm6210_vm7, %v19143_v17, 0.0 }
 0x851   : > { %v5297_v56 = vpop.f32.mrb[110].mxu0  ;;  %v5343_v16 = vpop.f32.mrb[126].mxu1 }
 0x852   : > { %v19146_v19 = vadd.f32 %v6128_v52, %v18644_v60  ;;  %6347 = vmax.xlane.f32.xlu1 %v6346_v21  ;;  %v13941_v2 = vpop.f32.mrb[111].mxu0  ;;  %v13947_v50 = vpop.f32.mrb[127].mxu1  ;;  %v19151_v49 = vadd.f32 %v6129_v24, %v18644_v60 }
 0x854   : > { %22013 = vst [vmem:[#allocation100_spill] sm:$0xff] %v19146_v19  ;;  %v6349_v4 = vsel %vm6210_vm7, %v19146_v19, -inf  ;;  %22014 = vst [vmem:[#allocation101_spill] sm:$0xff] %v19151_v49  ;;  %v6352_v50 = vsel %vm6210_vm7, %v19151_v49, -inf }
 0x855   : > { %6350 = vmax.xlane.f32.xlu0 %v6349_v4 }
 0x856   : > { %6641 = vadd.xlane.f32.xlu1 %v6640_v34 }
 0x857   : > { %v5386_v40 = vpop.f32.mrb[112].mxu0  ;;  %v5432_v56 = vpop.f32.mrb[128].mxu1 }
 0x858   : > { %v6130_v8 = vmul.f32 0.25, %v5386_v40  ;;  %v13952_v52 = vpop.f32.mrb[113].mxu0  ;;  %v6131_v6 = vmul.f32 0.25, %v5432_v56  ;;  %v13958_v16 = vpop.f32.mrb[129].mxu1 }
 0x859   : > { %v5389_v21 = vpop.f32.mrb[114].mxu0  ;;  %v5435_v24 = vpop.f32.mrb[130].mxu1 }
 0x85a   : > { %v19158_v2 = vadd.f32 %v6130_v8, %v18644_v60  ;;  %6353 = vmax.xlane.f32.xlu1 %v6352_v50  ;;  %v13953_v19 = vpop.f32.mrb[115].mxu0  ;;  %v13959_v14 = vpop.f32.mrb[131].mxu1  ;;  %v19163_v34 = vadd.f32 %v6131_v6, %v18644_v60 }
 0x85c   : > { %22015 = vst [vmem:[#allocation102_spill] sm:$0xff] %v19158_v2  ;;  %v6355_v4 = vsel %vm6210_vm7, %v19158_v2, -inf  ;;  %22016 = vst [vmem:[#allocation103_spill] sm:$0xff] %v19163_v34  ;;  %v6358_v8 = vsel %vm6210_vm7, %v19163_v34, -inf }
 0x85e   : > { %6356 = vmax.xlane.f32.xlu1 %v6355_v4 }
 0x85f   : > { %v5478_v40 = vpop.f32.mrb[116].mxu0  ;;  %v5524_v52 = vpop.f32.mrb[132].mxu1 }
 0x860   : > { %v6132_v56 = vmul.f32 0.25, %v5478_v40  ;;  %v13964_v16 = vpop.f32.mrb[117].mxu0  ;;  %v6133_v49 = vmul.f32 0.25, %v5524_v52  ;;  %v13970_v21 = vpop.f32.mrb[133].mxu1 }
 0x861   : > { %v5481_v24 = vpop.f32.mrb[118].mxu0  ;;  %v5527_v14 = vpop.f32.mrb[134].mxu1 }
 0x862   : > { %v19168_v19 = vadd.f32 %v6132_v56, %v18644_v60  ;;  %6359 = vmax.xlane.f32.xlu1 %v6358_v8  ;;  %v13965_v50 = vpop.f32.mrb[119].mxu0  ;;  %v19171_v6 = vadd.f32 %v6133_v49, %v18644_v60  ;;  %v13971_v4 = vpop.f32.mrb[135].mxu1 }
 0x864   : > { %22017 = vst [vmem:[#allocation104_spill] sm:$0xff] %v19168_v19  ;;  %22018 = vst [vmem:[#allocation105_spill] sm:$0xff] %v19171_v6  ;;  %v6361_v40 = vsel %vm6210_vm7, %v19168_v19, -inf  ;;  %v6364_v52 = vsel %vm6210_vm7, %v19171_v6, -inf }
 0x865   : > { %6365 = vmax.xlane.f32.xlu0 %v6364_v52 }
 0x866   : > { %6362 = vmax.xlane.f32.xlu1 %v6361_v40 }
 0x867   : > { %v5570_v16 = vpop.f32.mrb[120].mxu0  ;;  %v5616_v24 = vpop.f32.mrb[136].mxu1 }
 0x868   : > { %v6134_v21 = vmul.f32 0.25, %v5570_v16  ;;  %v13976_v56 = vpop.f32.mrb[121].mxu0  ;;  %v6135_v34 = vmul.f32 0.25, %v5616_v24  ;;  %v13982_v14 = vpop.f32.mrb[137].mxu1 }
 0x869   : > { %v5573_v8 = vpop.f32.mrb[122].mxu0  ;;  %v5619_v49 = vpop.f32.mrb[138].mxu1 }
 0x86a   : > { %v19178_v50 = vadd.f32 %v6134_v21, %v18644_v60  ;;  %v6264_v4 = vpop.xlane.xlu1 %6263  ;;  %v19181_v2 = vadd.f32 %v6135_v34, %v18644_v60  ;;  %v13983_v6 = vpop.f32.mrb[139].mxu1 }
 0x86b   : > { %v6420_v19 = vsub.f32 %v18904_v23, %v6264_v4  ;;  %v6261_v52 = vpop.xlane.xlu0 %6260  ;;  %v13977_v16 = vpop.f32.mrb[123].mxu0 }
 0x86c   : > { %22019 = vst [vmem:[#allocation106_spill] sm:$0xff] %v19178_v50  ;;  %v6419_v40 = vsub.f32 %v18907_v45, %v6261_v52  ;;  %v6367_v24 = vsel %vm6210_vm7, %v19178_v50, -inf  ;;  %v6370_v21 = vsel %vm6210_vm7, %v19181_v2, -inf }
 0x86d   : > { %v6501_v56 = vmul.f32 1.442695, %v6420_v19  ;;  %6368 = vmax.xlane.f32.xlu1 %v6367_v24  ;;  %6371 = vmax.xlane.f32.xlu0 %v6370_v21 }
 0x86e   : > { %v6499_v14 = vmul.f32 1.442695, %v6419_v40 }
 0x86f   : > { %15321 = vpow2.f32 %v6501_v56  ;;  %v5662_v34 = vpop.f32.mrb[124].mxu0  ;;  %v5708_v23 = vpop.f32.mrb[140].mxu1 }
 0x870   : > { %15323 = vpow2.f32 %v6499_v14  ;;  %v6136_v8 = vmul.f32 0.25, %v5662_v34  ;;  %v13988_v6 = vpop.f32.mrb[125].mxu0  ;;  %v6137_v49 = vmul.f32 0.25, %v5708_v23  ;;  %v13994_v4 = vpop.f32.mrb[141].mxu1 }
 0x871   : > { %v5665_v45 = vpop.f32.mrb[126].mxu0  ;;  %v5711_v16 = vpop.f32.mrb[142].mxu1 }
 0x872   : > { %v19190_v52 = vadd.f32 %v6136_v8, %v18644_v60  ;;  %v6267_v19 = vpop.xlane.xlu0 %6266  ;;  %v19193_v50 = vadd.f32 %v6137_v49, %v18644_v60  ;;  %v6270_v24 = vpop.xlane.xlu1 %6269 }
 0x873   : > { %v13995_v40 = vpop.f32.mrb[143].mxu1  ;;  %v6421_v56 = vsub.f32 %v18918_v5, %v6267_v19  ;;  %v6422_v21 = vsub.f32 %v18921_v31, %v6270_v24  ;;  %v13989_v14 = vpop.f32.mrb[127].mxu0 }
 0x874   : > { %v6373_v34 = vsel %vm6210_vm7, %v19190_v52, -inf  ;;  %v6376_v8 = vsel %vm6210_vm7, %v19193_v50, -inf }
 0x875   : > { %v6503_v23 = vmul.f32 1.442695, %v6421_v56  ;;  %6374 = vmax.xlane.f32.xlu1 %v6373_v34  ;;  %v6505_v6 = vmul.f32 1.442695, %v6422_v21  ;;  %6377 = vmax.xlane.f32.xlu0 %v6376_v8 }
 0x877   : > { %15325 = vpow2.f32 %v6503_v23  ;;  %v5754_v49 = vpop.f32.mrb[128].mxu0  ;;  %v5800_v45 = vpop.f32.mrb[144].mxu1 }
 0x878   : > { %15327 = vpow2.f32 %v6505_v6  ;;  %v6138_v4 = vmul.f32 0.25, %v5754_v49  ;;  %v14000_v16 = vpop.f32.mrb[129].mxu0  ;;  %v6139_v31 = vmul.f32 0.25, %v5800_v45  ;;  %v14006_v19 = vpop.f32.mrb[145].mxu1 }
 0x879   : > { %v19201_v5 = vpop.eup %15321  ;;  %v5757_v24 = vpop.f32.mrb[130].mxu0 }
 0x87a   : > { %v19203_v40 = vpop.eup %15323  ;;  %v19206_v56 = vadd.f32 %v6138_v4, %v18644_v60  ;;  %v5803_v14 = vpop.f32.mrb[146].mxu1  ;;  %v6646_v21 = vsel %vm6210_vm7, %v19201_v5, 0.0  ;;  %v19211_v23 = vadd.f32 %v6139_v31, %v18644_v60 }
 0x87b   : > { %22020 = vst [vmem:[#allocation107_spill] sm:$0xff] %v19203_v40  ;;  %v6273_v34 = vpop.xlane.xlu0 %6272  ;;  %v6276_v8 = vpop.xlane.xlu1 %6275  ;;  %v6643_v45 = vsel %vm6210_vm7, %v19203_v40, 0.0  ;;  %6647 = vadd.xlane.f32.xlu1 %v6646_v21 }
 0x87c   : > { %22021 = vst [vmem:[#allocation108_spill] sm:$0xff] %v19211_v23  ;;  %v14007_v6 = vpop.f32.mrb[147].mxu1  ;;  %v6423_v49 = vsub.f32 %v18932_v39, %v6273_v34  ;;  %v6424_v16 = vsub.f32 %v18937_v12, %v6276_v8  ;;  %v14001_v4 = vpop.f32.mrb[131].mxu0  ;;  %6644 = vadd.xlane.f32.xlu0 %v6643_v45  ;;  %v6379_v14 = vsel %vm6210_vm7, %v19206_v56, -inf  ;;  %v6382_v31 = vsel %vm6210_vm7, %v19211_v23, -inf }
 0x87e   : > { %v6507_v19 = vmul.f32 1.442695, %v6423_v49  ;;  %v6509_v24 = vmul.f32 1.442695, %v6424_v16 }
 0x87f   : > { %6380 = vmax.xlane.f32.xlu1 %v6379_v14  ;;  %v5846_v6 = vpop.f32.mrb[132].mxu0  ;;  %v5892_v39 = vpop.f32.mrb[148].mxu1 }
 0x880   : > { %15329 = vpow2.f32 %v6507_v19  ;;  %6383 = vmax.xlane.f32.xlu0 %v6382_v31  ;;  %v6140_v34 = vmul.f32 0.25, %v5846_v6  ;;  %v14012_v21 = vpop.f32.mrb[133].mxu0  ;;  %v6141_v12 = vmul.f32 0.25, %v5892_v39  ;;  %v14018_v8 = vpop.f32.mrb[149].mxu1 }
 0x881   : > { %15331 = vpow2.f32 %v6509_v24  ;;  %v19221_v40 = vpop.eup %15325  ;;  %v5849_v49 = vpop.f32.mrb[134].mxu0 }
 0x882   : > { %22022 = vst [vmem:[#allocation109_spill] sm:$0xff] %v19221_v40  ;;  %v19223_v45 = vpop.eup %15327  ;;  %v5895_v16 = vpop.f32.mrb[150].mxu1  ;;  %v6649_v19 = vsel %vm6210_vm7, %v19221_v40, 0.0  ;;  %v19228_v14 = vadd.f32 %v6141_v12, %v18644_v60  ;;  %v19231_v24 = vadd.f32 %v6140_v34, %v18644_v60 }
 0x883   : > { %22023 = vst [vmem:[#allocation110_spill] sm:$0xff] %v19223_v45  ;;  %v6279_v4 = vpop.xlane.xlu0 %6278  ;;  %v6282_v31 = vpop.xlane.xlu1 %6281  ;;  %v6652_v39 = vsel %vm6210_vm7, %v19223_v45, 0.0 }
 0x884   : > { %v14019_v6 = vpop.f32.mrb[151].mxu1  ;;  %v6425_v21 = vsub.f32 %v18946_v51, %v6279_v4  ;;  %v6426_v8 = vsub.f32 %v18951_v20, %v6282_v31  ;;  %v14013_v49 = vpop.f32.mrb[135].mxu0  ;;  %6650 = vadd.xlane.f32.xlu0 %v6649_v19  ;;  %6653 = vadd.xlane.f32.xlu1 %v6652_v39  ;;  %v6388_v12 = vsel %vm6210_vm7, %v19228_v14, -inf  ;;  %v6385_v34 = vsel %vm6210_vm7, %v19231_v24, -inf }
 0x886   : > { %v6511_v16 = vmul.f32 1.442695, %v6425_v21  ;;  %v6513_v40 = vmul.f32 1.442695, %v6426_v8 }
 0x887   : > { %v5938_v6 = vpop.f32.mrb[136].mxu0  ;;  %v5984_v23 = vpop.f32.mrb[152].mxu1 }
 0x888   : > { %15333 = vpow2.f32 %v6511_v16  ;;  %6389 = vmax.xlane.f32.xlu0 %v6388_v12  ;;  %6386 = vmax.xlane.f32.xlu1 %v6385_v34  ;;  %v6142_v51 = vmul.f32 0.25, %v5938_v6  ;;  %v14024_v4 = vpop.f32.mrb[137].mxu0  ;;  %v6143_v20 = vmul.f32 0.25, %v5984_v23  ;;  %v14030_v19 = vpop.f32.mrb[153].mxu1 }
 0x889   : > { %v5941_v31 = vpop.f32.mrb[138].mxu0  ;;  %15335 = vpow2.f32 %v6513_v40  ;;  %v5987_v39 = vpop.f32.mrb[154].mxu1 }
 0x88a   : > { %v19241_v45 = vpop.eup %15329  ;;  %v6285_v8 = vpop.xlane.xlu0 %6284  ;;  %v19248_v16 = vadd.f32 %v6143_v20, %v18644_v60  ;;  %v19251_v12 = vadd.f32 %v6142_v51, %v18644_v60 }
 0x88b   : > { %22024 = vst [vmem:[#allocation111_spill] sm:$0xff] %v19241_v45  ;;  %v19243_v21 = vpop.eup %15331  ;;  %v6655_v49 = vsel %vm6210_vm7, %v19241_v45, 0.0  ;;  %v6288_v34 = vpop.xlane.xlu1 %6287  ;;  %v6427_v23 = vsub.f32 %v18959_v42, %v6285_v8 }
 0x88c   : > { %22025 = vst [vmem:[#allocation112_spill] sm:$0xff] %v19243_v21  ;;  %22026 = vst [vmem:[#allocation113_spill] sm:$0xff] %v19248_v16  ;;  %v14031_v6 = vpop.f32.mrb[155].mxu1  ;;  %v6658_v4 = vsel %vm6210_vm7, %v19243_v21, 0.0  ;;  %v6428_v40 = vsub.f32 %v18962_v38, %v6288_v34  ;;  %v14025_v19 = vpop.f32.mrb[139].mxu0  ;;  %6656 = vadd.xlane.f32.xlu0 %v6655_v49  ;;  %v6394_v20 = vsel %vm6210_vm7, %v19248_v16, -inf }
 0x88d   : > { %6659 = vadd.xlane.f32.xlu1 %v6658_v4  ;;  %v6515_v31 = vmul.f32 1.442695, %v6427_v23  ;;  %v6391_v51 = vsel %vm6210_vm7, %v19251_v12, -inf }
 0x88e   : > { %v6517_v39 = vmul.f32 1.442695, %v6428_v40 }
 0x88f   : > { %15337 = vpow2.f32 %v6515_v31  ;;  %v6030_v6 = vpop.f32.mrb[140].mxu0  ;;  %v6076_v45 = vpop.f32.mrb[156].mxu1 }
 0x890   : > { %6395 = vmax.xlane.f32.xlu0 %v6394_v20  ;;  %v14036_v42 = vpop.f32.mrb[141].mxu0  ;;  %15339 = vpow2.f32 %v6517_v39  ;;  %v6145_v38 = vmul.f32 0.25, %v6076_v45  ;;  %v14042_v49 = vpop.f32.mrb[157].mxu1  ;;  %v6144_v31 = vmul.f32 0.25, %v6030_v6 }
 0x891   : > { %6392 = vmax.xlane.f32.xlu1 %v6391_v51  ;;  %v6033_v34 = vpop.f32.mrb[142].mxu0  ;;  %v6079_v23 = vpop.f32.mrb[158].mxu1 }
 0x892   : > { %v19261_v8 = vpop.eup %15333  ;;  %v6291_v4 = vpop.xlane.xlu0 %6290  ;;  %v19266_v19 = vadd.f32 %v6145_v38, %v18644_v60  ;;  %v19275_v38 = vadd.f32 %v6144_v31, %v18644_v60 }
 0x893   : > { %v6661_v40 = vsel %vm6210_vm7, %v19261_v8, 0.0  ;;  %v6294_v21 = vpop.xlane.xlu1 %6293  ;;  %v14043_v16 = vpop.f32.mrb[159].mxu1  ;;  %v6429_v20 = vsub.f32 %v18971_v37, %v6291_v4 }
 0x894   : > { %v19269_v51 = vpop.eup %15335  ;;  %v6430_v39 = vsub.f32 %v18974_v10, %v6294_v21  ;;  %v14037_v45 = vpop.f32.mrb[143].mxu0  ;;  %v6400_v49 = vsel %vm6210_vm7, %v19266_v19, -inf  ;;  %v6397_v60 = vsel %vm6210_vm7, %v19275_v38, -inf }
 0x895   : > { %6662 = vadd.xlane.f32.xlu1 %v6661_v40  ;;  %v6519_v42 = vmul.f32 1.442695, %v6429_v20  ;;  %6401 = vmax.xlane.f32.xlu0 %v6400_v49  ;;  %v6664_v37 = vsel %vm6210_vm7, %v19269_v51, 0.0 }
 0x896   : > { %v6521_v34 = vmul.f32 1.442695, %v6430_v39  ;;  %v6597_v23 = vpop.xlane.xlu0 %6596 }
 0x897   : > { %15341 = vpow2.f32 %v6519_v42 }
 0x898   : > { %15343 = vpow2.f32 %v6521_v34 }
 0x899   : > { %6665 = vadd.xlane.f32.xlu1 %v6664_v37  ;;  %v19279_v16 = vpop.eup %15337  ;;  %15345 = vrcp.f32 %v6597_v23 }
 0x89a   : > { %v6297_v10 = vpop.xlane.xlu0 %6296  ;;  %v6667_v21 = vsel %vm6210_vm7, %v19279_v16, 0.0  ;;  %v19283_v6 = vpop.eup %15339 }
 0x89b   : > { %v6300_v4 = vpop.xlane.xlu1 %6299  ;;  %v6431_v40 = vsub.f32 %v18987_v35, %v6297_v10  ;;  %6668 = vadd.xlane.f32.xlu0 %v6667_v21  ;;  %v6670_v42 = vsel %vm6210_vm7, %v19283_v6, 0.0 }
 0x89c   : > { %v6432_v31 = vsub.f32 %v18990_v41, %v6300_v4 }
 0x89d   : > { %6398 = vmax.xlane.f32.xlu1 %v6397_v60  ;;  %v6523_v20 = vmul.f32 1.442695, %v6431_v40  ;;  %v6981_v60 = vpack.c.bf16 %v18143_v13, %v18143_v13 }
 0x89e   : > { %v6525_v39 = vmul.f32 1.442695, %v6432_v31  ;;  %v6609_v45 = vpop.xlane.xlu0 %6608 }
 0x89f   : > { %15347 = vpow2.f32 %v6523_v20  ;;  %v6600_v49 = vpop.xlane.xlu1 %6599  ;;  %6671 = vadd.xlane.f32.xlu0 %v6670_v42 }
 0x8a0   : > { %15349 = vpow2.f32 %v6525_v39 }
 0x8a1   : > { %v19291_v34 = vpop.eup %15341  ;;  %15351 = vrcp.f32 %v6600_v49 }
 0x8a2   : > { %v19293_v35 = vpop.eup %15343  ;;  %v6303_v23 = vpop.xlane.xlu0 %6302  ;;  %v6673_v41 = vsel %vm6210_vm7, %v19291_v34, 0.0 }
 0x8a3   : > { %v15346_v37 = vpop.eup %15345  ;;  %v6306_v10 = vpop.xlane.xlu1 %6305  ;;  %v6433_v21 = vsub.f32 %v19007_v47, %v6303_v23  ;;  %6674 = vadd.xlane.f32.xlu1 %v6673_v41  ;;  %v6676_v49 = vsel %vm6210_vm7, %v19293_v35, 0.0  ;;  %v7140_v47 = vsel %vm7046_vm8, %v6981_v60, 0 }
 0x8a4   : > { %v6434_v4 = vsub.f32 %v19010_v36, %v6306_v10  ;;  %v6851_v40 = vmul.f32 %v15346_v37, %v18979_v27  ;;  %v22027_v27 = vmov 0.0  }
 0x8a5   : > { %v6527_v31 = vmul.f32 1.442695, %v6433_v21 }
 0x8a6   : > { %v6529_v20 = vmul.f32 1.442695, %v6434_v4  ;;  %v6915_v39 = vpack.c.bf16 %v6851_v40, %v6851_v40  ;;  %v6603_v42 = vpop.xlane.xlu0 %6602  ;;  %v6982_v4 = vpack.c.bf16 %v18130_v32, %v18130_v32 }
 0x8a7   : > { %15353 = vpow2.f32 %v6527_v31  ;;  %6677 = vadd.xlane.f32.xlu1 %v6676_v49 }
 0x8a8   : > { %15355 = vpow2.f32 %v6529_v20  ;;  %14047 = vmatmul.mubr.msk.bf16.vlgmr.msra.gmra.mrb[144].mxu0 %vm6210_vm7, %v6915_v39  ;;  %v7186_v49 = vsel %vm7046_vm8, %v6982_v4, 0 }
 0x8a9   : > { %v19306_v36 = vpop.eup %15347  ;;  %14057 = vmatpush3.bf16.msra.mxu0 %v7140_v47  ;;  %15357 = vrcp.f32 %v6603_v42  ;;  %14058 = vmatprep.mubr.msk.bf16.mxu0 %vm16594_vm4, %v22027_v27 }
 0x8aa   : > { %v19310_v13 = vpop.eup %15349  ;;  %v6615_v23 = vpop.xlane.xlu0 %6614  ;;  %v6679_v41 = vsel %vm6210_vm7, %v19306_v36, 0.0  ;;  %14068 = vmatprep.subr.bf16.mxu0 %v22027_v27  ;;  %15359 = vrcp.f32 %v6609_v45 }
 0x8ab   : > { %v15352_v37 = vpop.eup %15351  ;;  %v6312_v10 = vpop.xlane.xlu1 %6311  ;;  %6680 = vadd.xlane.f32.xlu1 %v6679_v41  ;;  %v6682_v20 = vsel %vm6210_vm7, %v19310_v13, 0.0 }
 0x8ac   : > { %v6852_v21 = vmul.f32 %v15352_v37, %v18999_v57  ;;  %v6436_v40 = vsub.f32 %v19025_v25, %v6312_v10 }
 0x8ae   : > { %v6916_v60 = vpack.c.bf16 %v6852_v21, %v6852_v21  ;;  %v6309_v31 = vpop.xlane.xlu0 %6308  ;;  %v6533_v47 = vmul.f32 1.442695, %v6436_v40  ;;  %v6983_v21 = vpack.c.bf16 %v18209_v0, %v18209_v0 }
 0x8af   : > { %v6606_v39 = vpop.xlane.xlu1 %6605  ;;  %v6435_v42 = vsub.f32 %v19028_v18, %v6309_v31  ;;  %6683 = vadd.xlane.f32.xlu1 %v6682_v20 }
 0x8b0   : > { %14053 = vmatmul.mubr.msk.bf16.vlgmr.msra.gmra.mrb[160].mxu1 %vm6210_vm7, %v6916_v60  ;;  %15361 = vrcp.f32 %v6606_v39 }
 0x8b1   : > { %v19324_v57 = vpop.eup %15353  ;;  %14063 = vmatpush3.bf16.msra.mxu1 %v7186_v49  ;;  %v6531_v32 = vmul.f32 1.442695, %v6435_v42  ;;  %14064 = vmatprep.mubr.msk.bf16.mxu1 %vm16594_vm4, %v22027_v27 }
 0x8b2   : > { %v19328_v25 = vpop.eup %15355  ;;  %v6621_v45 = vpop.xlane.xlu0 %6620  ;;  %v6685_v18 = vsel %vm6210_vm7, %v19324_v57, 0.0  ;;  %14074 = vmatprep.subr.bf16.mxu1 %v22027_v27 }
 0x8b3   : > { %v15358_v41 = vpop.eup %15357  ;;  %15363 = vpow2.f32 %v6531_v32  ;;  %v6318_v37 = vpop.xlane.xlu1 %6317  ;;  %6686 = vadd.xlane.f32.xlu0 %v6685_v18  ;;  %v6688_v31 = vsel %vm6210_vm7, %v19328_v25, 0.0  ;;  %v6984_v18 = vpack.c.bf16 %v18199_v59, %v18199_v59 }
 0x8b4   : > { %15365 = vrcp.f32 %v6615_v23  ;;  %v6853_v10 = vmul.f32 %v15358_v41, %v19015_v3  ;;  %v6438_v4 = vsub.f32 %v19045_v30, %v6318_v37  ;;  %v15360_v20 = vpop.eup %15359  ;;  %v7232_v3 = vsel %vm7046_vm8, %v6983_v21, 0 }
 0x8b5   : > { %15367 = vpow2.f32 %v6533_v47  ;;  %v6855_v49 = vmul.f32 %v15360_v20, %v18995_v54  ;;  %v6985_v41 = vpack.c.bf16 %v18206_v61, %v18206_v61  ;;  %v7278_v61 = vsel %vm7046_vm8, %v6984_v18, 0 }
 0x8b6   : > { %v6917_v40 = vpack.c.bf16 %v6853_v10, %v6853_v10  ;;  %v6315_v60 = vpop.xlane.xlu0 %6314  ;;  %v6537_v23 = vmul.f32 1.442695, %v6438_v4 }
 0x8b7   : > { %v6612_v39 = vpop.xlane.xlu1 %6611  ;;  %v6437_v42 = vsub.f32 %v19048_v44, %v6315_v60  ;;  %6689 = vadd.xlane.f32.xlu0 %v6688_v31  ;;  %v6919_v54 = vpack.c.bf16 %v6855_v49, %v6855_v49  ;;  %v6987_v49 = vpack.c.bf16 %v18256_v63, %v18256_v63 }
 0x8b8   : > { %14059 = vmatmul.mubr.msk.bf16.vlgmr.msra.gmra.mrb[148].mxu0 %vm6210_vm7, %v6917_v40  ;;  %15369 = vrcp.f32 %v6612_v39 }
 0x8b9   : > { %14069 = vmatpush3.bf16.msra.mxu0 %v7232_v3  ;;  %v6535_v0 = vmul.f32 1.442695, %v6437_v42  ;;  %14070 = vmatprep.mubr.msk.bf16.mxu0 %vm16594_vm4, %v22027_v27  ;;  %v7416_v63 = vsel %vm7046_vm8, %v6987_v49, 0 }
 0x8ba   : > { %v6627_v30 = vpop.xlane.xlu0 %6626  ;;  %14080 = vmatprep.subr.bf16.mxu0 %v22027_v27  ;;  %v15362_v47 = vpop.eup %15361 }
 0x8bb   : > { %15371 = vpow2.f32 %v6535_v0  ;;  %v6324_v44 = vpop.xlane.xlu1 %6323  ;;  %v6854_v32 = vmul.f32 %v15362_v47, %v19035_v55  ;;  %v6986_v0 = vpack.c.bf16 %v18190_v46, %v18190_v46 }
 0x8bc   : > { %15373 = vrcp.f32 %v6621_v45  ;;  %v6440_v10 = vsub.f32 %v19065_v11, %v6324_v44  ;;  %v7324_v11 = vsel %vm7046_vm8, %v6985_v41, 0 }
 0x8bd   : > { %v19351_v37 = vpop.eup %15363  ;;  %15375 = vpow2.f32 %v6537_v23  ;;  %v6918_v4 = vpack.c.bf16 %v6854_v32, %v6854_v32  ;;  %v7370_v46 = vsel %vm7046_vm8, %v6986_v0, 0 }
 0x8be   : > { %v15366_v21 = vpop.eup %15365  ;;  %v6321_v40 = vpop.xlane.xlu0 %6320  ;;  %v6691_v45 = vsel %vm6210_vm7, %v19351_v37, 0.0  ;;  %v6541_v31 = vmul.f32 1.442695, %v6440_v10 }
 0x8bf   : > { %v19356_v60 = vpop.eup %15367  ;;  %v6618_v55 = vpop.xlane.xlu1 %6617  ;;  %v6439_v59 = vsub.f32 %v19068_v22, %v6321_v40  ;;  %6692 = vadd.xlane.f32.xlu1 %v6691_v45  ;;  %14065 = vmatmul.mubr.msk.bf16.vlgmr.msra.gmra.mrb[164].mxu1 %vm6210_vm7, %v6918_v4  ;;  %v6857_v22 = vmul.f32 %v15366_v21, %v19022_v53 }
 0x8c0   : > { %14071 = vmatmul.mubr.msk.bf16.vlgmr.msra.gmra.mrb[152].mxu0 %vm6210_vm7, %v6919_v54  ;;  %14075 = vmatpush3.bf16.msra.mxu1 %v7278_v61  ;;  %15377 = vrcp.f32 %v6618_v55  ;;  %v6694_v39 = vsel %vm6210_vm7, %v19356_v60, 0.0  ;;  %v6988_v55 = vpack.c.bf16 %v18259_v26, %v18259_v26 }
 0x8c1   : > { %14081 = vmatpush3.bf16.msra.mxu0 %v7324_v11  ;;  %v6539_v20 = vmul.f32 1.442695, %v6439_v59  ;;  %14076 = vmatprep.mubr.msk.bf16.mxu1 %vm16594_vm4, %v22027_v27  ;;  %v6921_v18 = vpack.c.bf16 %v6857_v22, %v6857_v22  ;;  %v6989_v59 = vpack.c.bf16 %v18248_v28, %v18248_v28 }
 0x8c2   : > { %14082 = vmatprep.mubr.msk.bf16.mxu0 %vm16594_vm4, %v22027_v27  ;;  %v15370_v42 = vpop.eup %15369  ;;  %14086 = vmatprep.subr.bf16.mxu1 %v22027_v27  ;;  %v6633_v44 = vpop.xlane.xlu0 %6632  ;;  %v7462_v26 = vsel %vm7046_vm8, %v6988_v55, 0 }
 0x8c3   : > { %15379 = vpow2.f32 %v6539_v20  ;;  %v19370_v3 = vpop.xlane.xlu1 %6329  ;;  %6695 = vadd.xlane.f32.xlu1 %v6694_v39  ;;  %14092 = vmatprep.subr.bf16.mxu0 %v22027_v27  ;;  %v6856_v23 = vmul.f32 %v15370_v42, %v19055_v9  ;;  %v7508_v28 = vsel %vm7046_vm8, %v6989_v59, 0 }
 0x8c4   : > { %15381 = vrcp.f32 %v6627_v30 }
 0x8c5   : > { %v19379_v47 = vpop.eup %15371  ;;  %15383 = vpow2.f32 %v6541_v31  ;;  %v6920_v32 = vpack.c.bf16 %v6856_v23, %v6856_v23 }
 0x8c6   : > { %v15374_v53 = vpop.eup %15373  ;;  %v6697_v30 = vsel %vm6210_vm7, %v19379_v47, 0.0  ;;  %v19399_v40 = vpop.xlane.xlu0 %6326 }
 0x8c7   : > { %v19383_v41 = vpop.eup %15375  ;;  %v6624_v10 = vpop.xlane.xlu1 %6623  ;;  %6698 = vadd.xlane.f32.xlu0 %v6697_v30  ;;  %14077 = vmatmul.mubr.msk.bf16.vlgmr.msra.gmra.mrb[168].mxu1 %vm6210_vm7, %v6920_v32  ;;  %v6859_v21 = vmul.f32 %v15374_v53, %v19040_v43  ;;  %v6991_v32 = vpack.c.bf16 %v18302_v62, %v18302_v62 }
 0x8c8   : > { %14083 = vmatmul.mubr.msk.bf16.vlgmr.msra.gmra.mrb[156].mxu0 %vm6210_vm7, %v6921_v18  ;;  %14087 = vmatpush3.bf16.msra.mxu1 %v7370_v46  ;;  %15385 = vrcp.f32 %v6624_v10  ;;  %v6700_v9 = vsel %vm6210_vm7, %v19383_v41, 0.0 }
 0x8c9   : > { %14093 = vmatpush3.bf16.msra.mxu0 %v7416_v63  ;;  %14088 = vmatprep.mubr.msk.bf16.mxu1 %vm16594_vm4, %v22027_v27  ;;  %15387 = vrcp.f32 %v6633_v44  ;;  %v6923_v31 = vpack.c.bf16 %v6859_v21, %v6859_v21  ;;  %v6990_v44 = vpack.c.bf16 %v18251_v1, %v18251_v1  ;;  %v7600_v63 = vsel %vm7046_vm8, %v6991_v32, 0 }
 0x8ca   : > { %14094 = vmatprep.mubr.msk.bf16.mxu0 %vm16594_vm4, %v22027_v27  ;;  %v15378_v4 = vpop.eup %15377  ;;  %14098 = vmatprep.subr.bf16.mxu1 %v22027_v27  ;;  %v6992_v21 = vpack.c.bf16 %v18305_v33, %v18305_v33  ;;  %v22030_v33 = vld [vmem:[#allocation65_spill] sm:$0xff] }
 0x8cb   : > { %v19396_v54 = vpop.xlane.xlu1 %6335  ;;  %6701 = vadd.xlane.f32.xlu0 %v6700_v9  ;;  %14104 = vmatprep.subr.bf16.mxu0 %v22027_v27  ;;  %v6858_v45 = vmul.f32 %v15378_v4, %v19075_v58  ;;  %v6639_v58 = vpop.xlane.xlu0 %6638  ;;  %v7554_v46 = vsel %vm7046_vm8, %v6990_v44, 0  ;;  %v22028_v4 = vld [vmem:[#allocation68_spill] sm:$0xff]  ;;  %v22034_v44 = vld [vmem:[#allocation69_spill] sm:$0xff] }
 0x8cc   : > { %v6994_v32 = vpack.c.bf16 %v22034_v44, %v22034_v44 }
 0x8cd   : > { %v19407_v61 = vpop.eup %15379  ;;  %v6922_v11 = vpack.c.bf16 %v6858_v45, %v6858_v45  ;;  %v6993_v45 = vpack.c.bf16 %v22028_v4, %v22028_v4 }
 0x8ce   : > { %v15382_v43 = vpop.eup %15381  ;;  %v6703_v20 = vsel %vm6210_vm7, %v19407_v61, 0.0 }
 0x8cf   : > { %v19411_v39 = vpop.eup %15383  ;;  %v6630_v22 = vpop.xlane.xlu1 %6629  ;;  %6704 = vadd.xlane.f32.xlu1 %v6703_v20  ;;  %14089 = vmatmul.mubr.msk.bf16.vlgmr.msra.gmra.mrb[172].mxu1 %vm6210_vm7, %v6922_v11  ;;  %v6861_v23 = vmul.f32 %v15382_v43, %v19060_v29  ;;  %v7646_v20 = vsel %vm7046_vm8, %v6992_v21, 0  ;;  %v22036_v21 = vld [vmem:[#allocation90_spill] sm:$0xff] }
 0x8d0   : > { %14095 = vmatmul.mubr.msk.bf16.vlgmr.msra.gmra.mrb[160].mxu0 %vm6210_vm7, %v6923_v31  ;;  %14099 = vmatpush3.bf16.msra.mxu1 %v7462_v26  ;;  %15389 = vrcp.f32 %v6630_v22  ;;  %v6706_v42 = vsel %vm6210_vm7, %v19411_v39, 0.0  ;;  %v22031_v22 = vld [vmem:[#allocation92_spill] sm:$0xff]  ;;  %v6442_v4 = vsub.f32 %v22036_v21, %v19370_v3  ;;  %v22039_v3 = vld [vmem:[#allocation93_spill] sm:$0xff] }
 0x8d1   : > { %14105 = vmatpush3.bf16.msra.mxu0 %v7508_v28  ;;  %14100 = vmatprep.mubr.msk.bf16.mxu1 %vm16594_vm4, %v22027_v27  ;;  %15391 = vrcp.f32 %v6639_v58  ;;  %v6925_v30 = vpack.c.bf16 %v6861_v23, %v6861_v23  ;;  %v22032_v23 = vld [vmem:[#allocation64_spill] sm:$0xff] }
 0x8d2   : > { %14106 = vmatprep.mubr.msk.bf16.mxu0 %vm16594_vm4, %v22027_v27  ;;  %v15386_v0 = vpop.eup %15385  ;;  %14110 = vmatprep.subr.bf16.mxu1 %v22027_v27 }
 0x8d3   : > { %v19424_v49 = vpop.xlane.xlu1 %6341  ;;  %6707 = vadd.xlane.f32.xlu1 %v6706_v42  ;;  %14116 = vmatprep.subr.bf16.mxu0 %v22027_v27  ;;  %v6860_v53 = vmul.f32 %v15386_v0, %v19094_v15  ;;  %v15388_v29 = vpop.eup %15387  ;;  %v22033_v0 = vld [vmem:[#allocation97_spill] sm:$0xff] }
 0x8d4   : > { %v6863_v1 = vmul.f32 %v15388_v29, %v19079_v48  ;;  %v22029_v48 = vld [vmem:[#allocation72_spill] sm:$0xff]  ;;  %v7738_v29 = vsel %vm7046_vm8, %v6994_v32, 0  ;;  %v22041_v32 = vld [vmem:[#allocation95_spill] sm:$0xff] }
 0x8d5   : > { %v6924_v18 = vpack.c.bf16 %v6860_v53, %v6860_v53  ;;  %v14971_v31 = vunpack.i.l.bf16 %v22029_v48 }
 0x8d6   : > { %v6927_v59 = vpack.c.bf16 %v6863_v1, %v6863_v1 }
 0x8d7   : > { %v6636_v10 = vpop.xlane.xlu1 %6635  ;;  %14101 = vmatmul.mubr.msk.bf16.vlgmr.msra.gmra.mrb[176].mxu1 %vm6210_vm7, %v6924_v18  ;;  %v6995_v42 = vpack.c.bf16 %v14971_v31, %v14971_v31 }
 0x8d8   : > { %14107 = vmatmul.mubr.msk.bf16.vlgmr.msra.gmra.mrb[164].mxu0 %vm6210_vm7, %v6925_v30  ;;  %14111 = vmatpush3.bf16.msra.mxu1 %v7554_v46  ;;  %15393 = vrcp.f32 %v6636_v10 }
 0x8d9   : > { %14117 = vmatpush3.bf16.msra.mxu0 %v7600_v63  ;;  %14112 = vmatprep.mubr.msk.bf16.mxu1 %vm16594_vm4, %v22027_v27  ;;  %v7784_v10 = vsel %vm7046_vm8, %v6995_v42, 0  ;;  %v22035_v63 = vld [vmem:[#allocation91_spill] sm:$0xff] }
 0x8da   : > { %14118 = vmatprep.mubr.msk.bf16.mxu0 %vm16594_vm4, %v22027_v27  ;;  %v15390_v62 = vpop.eup %15389  ;;  %14122 = vmatprep.subr.bf16.mxu1 %v22027_v27  ;;  %v6441_v1 = vsub.f32 %v22035_v63, %v19399_v40 }
 0x8db   : > { %v19442_v15 = vpop.xlane.xlu1 %6344  ;;  %14128 = vmatprep.subr.bf16.mxu0 %v22027_v27  ;;  %v6862_v9 = vmul.f32 %v15390_v62, %v19112_v7  ;;  %v15392_v43 = vpop.eup %15391  ;;  %v7692_v7 = vsel %vm7046_vm8, %v6993_v45, 0  ;;  %v14972_v62 = vunpack.i.h.bf16 %v22029_v48 }
 0x8dc   : > { %v6865_v26 = vmul.f32 %v15392_v43, %v22031_v22  ;;  %v6543_v45 = vmul.f32 1.442695, %v6441_v1  ;;  %v22038_v22 = vld [vmem:[#allocation96_spill] sm:$0xff] }
 0x8dd   : > { %v6926_v55 = vpack.c.bf16 %v6862_v9, %v6862_v9 }
 0x8de   : > { %v6929_v30 = vpack.c.bf16 %v6865_v26, %v6865_v26  ;;  %v6446_v26 = vsub.f32 %v22038_v22, %v19424_v49  ;;  %v22040_v49 = vld [vmem:[#allocation98_spill] sm:$0xff]  ;;  %v22046_v22 = vld [vmem:[#allocation105_spill] sm:$0xff] }
 0x8df   : > { %v19451_v11 = vpop.xlane.xlu1 %6347  ;;  %14113 = vmatmul.mubr.msk.bf16.vlgmr.msra.gmra.mrb[180].mxu1 %vm6210_vm7, %v6926_v55  ;;  %v6333_v55 = vpop.xlane.xlu0 %6332 }
 0x8e0   : > { %14119 = vmatmul.mubr.msk.bf16.vlgmr.msra.gmra.mrb[168].mxu0 %vm6210_vm7, %v6927_v59  ;;  %14123 = vmatpush3.bf16.msra.mxu1 %v7646_v20  ;;  %v6996_v59 = vpack.c.bf16 %v14972_v62, %v14972_v62  ;;  %v22037_v20 = vld [vmem:[#allocation94_spill] sm:$0xff] }
 0x8e1   : > { %14129 = vmatpush3.bf16.msra.mxu0 %v7692_v7  ;;  %15069 = vrot.lane.b32.xlu0 %v22030_v33, %s16597_s21  ;;  %v6443_v7 = vsub.f32 %v22037_v20, %v6333_v55  ;;  %v6545_v33 = vmul.f32 1.442695, %v6442_v4  ;;  %v22044_v4 = vld [vmem:[#allocation102_spill] sm:$0xff]  ;;  %v22045_v55 = vld [vmem:[#allocation100_spill] sm:$0xff] }
 0x8e2   : > { %14124 = vmatprep.mubr.msk.bf16.mxu1 %vm16594_vm4, %v22027_v27  ;;  %v15394_v28 = vpop.eup %15393  ;;  %14130 = vmatprep.mubr.msk.bf16.mxu0 %vm16594_vm4, %v22027_v27  ;;  %v7830_v48 = vsel %vm7046_vm8, %v6996_v59, 0 }
 0x8e3   : > { %v6642_v58 = vpop.xlane.xlu1 %6641  ;;  %14134 = vmatprep.subr.bf16.mxu1 %v22027_v27  ;;  %14140 = vmatprep.subr.bf16.mxu0 %v22027_v27  ;;  %v6864_v53 = vmul.f32 %v15394_v28, %v22033_v0  ;;  %v6339_v28 = vpop.xlane.xlu0 %6338  ;;  %v6447_v0 = vsub.f32 %v22040_v49, %v19442_v15 }
 0x8e4   : > { %15064 = vrot.lane.b32.xlu1 %v22032_v23, %s16597_s21  ;;  %15395 = vrcp.f32 %v6642_v58  ;;  %v6547_v58 = vmul.f32 1.442695, %v6443_v7  ;;  %v6553_v23 = vmul.f32 1.442695, %v6446_v26 }
 0x8e5   : > { %v6928_v18 = vpack.c.bf16 %v6864_v53, %v6864_v53  ;;  %15397 = vpow2.f32 %v6543_v45 }
 0x8e6   : > { %15399 = vpow2.f32 %v6545_v33 }
 0x8e7   : > { %14125 = vmatmul.mubr.msk.bf16.vlgmr.msra.gmra.mrb[184].mxu1 %vm6210_vm7, %v6928_v18  ;;  %v6354_v46 = vpop.xlane.xlu1 %6353  ;;  %v6351_v53 = vpop.xlane.xlu0 %6350  ;;  %15401 = vpow2.f32 %v6547_v58  ;;  %v6445_v18 = vsub.f32 %v22041_v32, %v6339_v28  ;;  %v22047_v58 = vld [vmem:[#allocation103_spill] sm:$0xff] }
 0x8e8   : > { %14131 = vmatmul.mubr.msk.bf16.vlgmr.msra.gmra.mrb[172].mxu0 %vm6210_vm7, %v6929_v30  ;;  %14135 = vmatpush3.bf16.msra.mxu1 %v7738_v29  ;;  %15403 = vpow2.f32 %v6553_v23  ;;  %v6555_v30 = vmul.f32 1.442695, %v6447_v0  ;;  %v22042_v29 = vld [vmem:[#allocation101_spill] sm:$0xff]  ;;  %v6449_v59 = vsub.f32 %v22045_v55, %v6351_v53  ;;  %v22048_v0 = vld [vmem:[#allocation106_spill] sm:$0xff] }
 0x8e9   : > { %14141 = vmatpush3.bf16.msra.mxu0 %v7784_v10  ;;  %14136 = vmatprep.mubr.msk.bf16.mxu1 %vm16594_vm4, %v22027_v27  ;;  %v6450_v10 = vsub.f32 %v22042_v29, %v6354_v46  ;;  %v6551_v62 = vmul.f32 1.442695, %v6445_v18 }
 0x8ea   : > { %14146 = vmatprep.subr.bf16.mxu1 %v22027_v27  ;;  %14142 = vmatprep.mubr.msk.bf16.mxu0 %vm16594_vm4, %v22027_v27 }
 0x8eb   : > { %14152 = vmatprep.subr.bf16.mxu0 %v22027_v27  ;;  %v6357_v43 = vpop.xlane.xlu1 %6356  ;;  %v6561_v15 = vmul.f32 1.442695, %v6450_v10  ;;  %v22049_v10 = vld [vmem:[#allocation104_spill] sm:$0xff] }
 0x8ec   : > { %v6451_v45 = vsub.f32 %v22044_v4, %v6357_v43 }
 0x8ee   : > { %v15396_v9 = vpop.eup %15395  ;;  %v6563_v33 = vmul.f32 1.442695, %v6451_v45 }
 0x8ef   : > { %v6866_v31 = vmul.f32 %v15396_v9, %v19143_v17  ;;  %v6444_v17 = vsub.f32 %v22039_v3, %v19396_v54  ;;  %v6360_v42 = vpop.xlane.xlu1 %6359  ;;  %v19502_v54 = vpop.eup %15397  ;;  %v22043_v9 = vld [vmem:[#allocation99_spill] sm:$0xff] }
 0x8f0   : > { %v6448_v21 = vsub.f32 %v22043_v9, %v19451_v11  ;;  %v6709_v20 = vsel %vm6210_vm7, %v19502_v54, 0.0  ;;  %v19510_v46 = vpop.eup %15399  ;;  %v6452_v23 = vsub.f32 %v22047_v58, %v6360_v42 }
 0x8f1   : > { %v6930_v40 = vpack.c.bf16 %v6866_v31, %v6866_v31  ;;  %v6549_v44 = vmul.f32 1.442695, %v6444_v17  ;;  %v19513_v26 = vpop.eup %15401  ;;  %v6712_v28 = vsel %vm6210_vm7, %v19510_v46, 0.0 }
 0x8f2   : > { %v6366_v1 = vpop.xlane.xlu0 %6365  ;;  %v19519_v3 = vpop.eup %15403 }
 0x8f3   : > { %14137 = vmatmul.mubr.msk.bf16.vlgmr.msra.gmra.mrb[188].mxu1 %vm6210_vm7, %v6930_v40  ;;  %v6363_v63 = vpop.xlane.xlu1 %6362  ;;  %15405 = vpow2.f32 %v6549_v44  ;;  %v6557_v40 = vmul.f32 1.442695, %v6448_v21  ;;  %v6454_v11 = vsub.f32 %v22046_v22, %v6366_v1  ;;  %v6715_v44 = vsel %vm6210_vm7, %v19513_v26, 0.0 }
 0x8f4   : > { %14147 = vmatpush3.bf16.msra.mxu1 %v7830_v48  ;;  %14148 = vmatprep.mubr.msk.bf16.mxu1 %vm16594_vm4, %v22027_v27  ;;  %15407 = vpow2.f32 %v6555_v30  ;;  %v6559_v48 = vmul.f32 1.442695, %v6449_v59  ;;  %v6724_v18 = vsel %vm6210_vm7, %v19519_v3, 0.0  ;;  %v6453_v1 = vsub.f32 %v22049_v10, %v6363_v63 }
 0x8f5   : > { %14158 = vmatprep.subr.bf16.mxu1 %v22027_v27  ;;  %15409 = vpow2.f32 %v6551_v62  ;;  %v6569_v49 = vmul.f32 1.442695, %v6454_v11  ;;  %v6565_v62 = vmul.f32 1.442695, %v6452_v23 }
 0x8f6   : > { %15411 = vpow2.f32 %v6561_v15  ;;  %v6567_v59 = vmul.f32 1.442695, %v6453_v1 }
 0x8f7   : > { %15413 = vpow2.f32 %v6557_v40 }
 0x8f8   : > { %15415 = vpow2.f32 %v6563_v33 }
 0x8f9   : > { %15417 = vpow2.f32 %v6559_v48 }
 0x8fa   : > { %v6369_v31 = vpop.xlane.xlu1 %6368  ;;  %v6372_v7 = vpop.xlane.xlu0 %6371 }
 0x8fb   : > { %v6455_v53 = vsub.f32 %v22048_v0, %v6369_v31 }
 0x8fd   : > { %v19525_v32 = vpop.eup %15405  ;;  %v6571_v21 = vmul.f32 1.442695, %v6455_v53 }
 0x8fe   : > { %v19529_v29 = vpop.eup %15407  ;;  %v6718_v15 = vsel %vm6210_vm7, %v19525_v32, 0.0 }
 0x8ff   : > { %v19535_v4 = vpop.eup %15409  ;;  %v6727_v45 = vsel %vm6210_vm7, %v19529_v29, 0.0 }
 0x900   : > { %6710 = vadd.xlane.f32.xlu0 %v6709_v20  ;;  %v19539_v63 = vpop.eup %15411  ;;  %v6721_v33 = vsel %vm6210_vm7, %v19535_v4, 0.0 }
 0x901   : > { %v19547_v22 = vpop.eup %15413  ;;  %v6736_v11 = vsel %vm6210_vm7, %v19539_v63, 0.0 }
 0x902   : > { %v19515_v43 = vpop.xlane.xlu1 %6374  ;;  %v6378_v17 = vpop.xlane.xlu0 %6377 }
 0x903   : > { %v6458_v9 = vsub.f32 %v19193_v50, %v6378_v17  ;;  %v6456_v50 = vsub.f32 %v19181_v2, %v6372_v7  ;;  %v19551_v48 = vpop.eup %15415 }
 0x904   : > { %6713 = vadd.xlane.f32.xlu0 %v6712_v28  ;;  %v22050_v28 = vld [vmem:[#allocation79_spill] sm:$0xff] }
 0x905   : > { %v6577_v20 = vmul.f32 1.442695, %v6458_v9  ;;  %v14977_v17 = vunpack.i.h.bf16 %v22050_v28  ;;  %v14976_v58 = vunpack.i.l.bf16 %v22050_v28  ;;  %v6573_v23 = vmul.f32 1.442695, %v6456_v50 }
 0x908   : > { %v6648_v30 = vpop.xlane.xlu1 %6647  ;;  %6716 = vadd.xlane.f32.xlu1 %v6715_v44  ;;  %6725 = vadd.xlane.f32.xlu0 %v6724_v18  ;;  %v6730_v44 = vsel %vm6210_vm7, %v19547_v22, 0.0 }
 0x909   : > { %v6645_v42 = vpop.xlane.xlu0 %6644  ;;  %15419 = vrcp.f32 %v6648_v30  ;;  %v6739_v30 = vsel %vm6210_vm7, %v19551_v48, 0.0 }
 0x90a   : > { %15421 = vrcp.f32 %v6645_v42  ;;  %v6998_v42 = vpack.c.bf16 %v14977_v17, %v14977_v17 }
 0x90b   : > { %15423 = vpow2.f32 %v6569_v49  ;;  %v6457_v49 = vsub.f32 %v19190_v52, %v19515_v43  ;;  %v22051_v43 = vld [vmem:[#allocation107_spill] sm:$0xff] }
 0x90c   : > { %v6381_v55 = vpop.xlane.xlu1 %6380  ;;  %6719 = vadd.xlane.f32.xlu1 %v6718_v15  ;;  %6728 = vadd.xlane.f32.xlu0 %v6727_v45  ;;  %15425 = vpow2.f32 %v6565_v62  ;;  %v6997_v62 = vpack.c.bf16 %v14976_v58, %v14976_v58 }
 0x90d   : > { %v19541_v31 = vpop.xlane.xlu0 %6383  ;;  %15427 = vpow2.f32 %v6571_v21  ;;  %v6459_v40 = vsub.f32 %v19206_v56, %v6381_v55  ;;  %v19555_v56 = vpop.eup %15417  ;;  %v6575_v15 = vmul.f32 1.442695, %v6457_v49 }
 0x90e   : > { %15429 = vpow2.f32 %v6567_v59  ;;  %v22052_v59 = vld [vmem:[#allocation108_spill] sm:$0xff] }
 0x90f   : > { %15431 = vpow2.f32 %v6577_v20  ;;  %v6579_v53 = vmul.f32 1.442695, %v6459_v40  ;;  %v6460_v50 = vsub.f32 %v22052_v59, %v19541_v31  ;;  %v7876_v31 = vsel %vm7046_vm8, %v6997_v62, 0 }
 0x910   : > { %6722 = vadd.xlane.f32.xlu1 %v6721_v33  ;;  %6737 = vadd.xlane.f32.xlu0 %v6736_v11 }
 0x911   : > { %v6651_v2 = vpop.xlane.xlu0 %6650  ;;  %v6654_v7 = vpop.xlane.xlu1 %6653 }
 0x912   : > { %15433 = vrcp.f32 %v6651_v2  ;;  %v7922_v2 = vsel %vm7046_vm8, %v6998_v42, 0 }
 0x913   : > { %v15420_v0 = vpop.eup %15419  ;;  %15435 = vrcp.f32 %v6654_v7 }
 0x914   : > { %v15422_v18 = vpop.eup %15421  ;;  %6731 = vadd.xlane.f32.xlu1 %v6730_v44  ;;  %v6868_v10 = vmul.f32 %v15420_v0, %v19201_v5  ;;  %6740 = vadd.xlane.f32.xlu0 %v6739_v30  ;;  %15437 = vpow2.f32 %v6573_v23  ;;  %v6733_v5 = vsel %vm6210_vm7, %v19555_v56, 0.0 }
 0x915   : > { %v19564_v1 = vpop.eup %15423  ;;  %v6390_v9 = vpop.xlane.xlu0 %6389  ;;  %v6867_v21 = vmul.f32 %v15422_v18, %v22051_v43  ;;  %15439 = vpow2.f32 %v6579_v53  ;;  %v6581_v53 = vmul.f32 1.442695, %v6460_v50  ;;  %v22056_v50 = vld [vmem:[#allocation110_spill] sm:$0xff] }
 0x916   : > { %v6387_v52 = vpop.xlane.xlu1 %6386  ;;  %v6462_v45 = vsub.f32 %v19228_v14, %v6390_v9  ;;  %v6932_v55 = vpack.c.bf16 %v6868_v10, %v6868_v10  ;;  %v19572_v40 = vpop.eup %15425  ;;  %v6748_v11 = vsel %vm6210_vm7, %v19564_v1, 0.0  ;;  %v22053_v14 = vld [vmem:[#allocation73_spill] sm:$0xff]  ;;  %15441 = vpow2.f32 %v6575_v15 }
 0x917   : > { %v6931_v20 = vpack.c.bf16 %v6867_v21, %v6867_v21  ;;  %v19577_v28 = vpop.eup %15427  ;;  %v14982_v17 = vunpack.i.h.bf16 %v22053_v14  ;;  %v14981_v23 = vunpack.i.l.bf16 %v22053_v14  ;;  %v6461_v49 = vsub.f32 %v19231_v24, %v6387_v52  ;;  %v22054_v15 = vld [vmem:[#allocation109_spill] sm:$0xff] }
 0x918   : > { %v6585_v33 = vmul.f32 1.442695, %v6462_v45  ;;  %14149 = vmatmul.mubr.msk.bf16.vlgmr.msra.gmra.mrb[192].mxu1 %vm6210_vm7, %v6932_v55  ;;  %6734 = vadd.xlane.f32.xlu1 %v6733_v5  ;;  %v19585_v0 = vpop.eup %15429  ;;  %v6742_v44 = vsel %vm6210_vm7, %v19572_v40, 0.0  ;;  %v6751_v24 = vsel %vm6210_vm7, %v19577_v28, 0.0  ;;  %v22055_v55 = vld [vmem:[#allocation113_spill] sm:$0xff] }
 0x919   : > { %14143 = vmatmul.mubr.msk.bf16.vlgmr.msra.gmra.mrb[176].mxu0 %vm6210_vm7, %v6931_v20  ;;  %v6657_v58 = vpop.xlane.xlu0 %6656  ;;  %6749 = vadd.xlane.f32.xlu0 %v6748_v11  ;;  %v19593_v18 = vpop.eup %15431  ;;  %v7000_v10 = vpack.c.bf16 %v14982_v17, %v14982_v17  ;;  %v6999_v52 = vpack.c.bf16 %v14981_v23, %v14981_v23  ;;  %v6583_v43 = vmul.f32 1.442695, %v6461_v49  ;;  %v6745_v5 = vsel %vm6210_vm7, %v19585_v0, 0.0 }
 0x91a   : > { %v6660_v7 = vpop.xlane.xlu1 %6659  ;;  %14153 = vmatpush3.bf16.msra.mxu0 %v7876_v31  ;;  %14159 = vmatpush3.bf16.msra.mxu1 %v7922_v2  ;;  %15443 = vpow2.f32 %v6585_v33  ;;  %v6760_v17 = vsel %vm6210_vm7, %v19593_v18, 0.0  ;;  %v22057_v2 = vld [vmem:[#allocation74_spill] sm:$0xff] }
 0x91b   : > { %14154 = vmatprep.mubr.msk.bf16.mxu0 %vm16594_vm4, %v22027_v27  ;;  %14160 = vmatprep.mubr.msk.bf16.mxu1 %vm16594_vm4, %v22027_v27  ;;  %15445 = vrcp.f32 %v6657_v58  ;;  %v7968_v23 = vsel %vm7046_vm8, %v6999_v52, 0 }
 0x91c   : > { %6743 = vadd.xlane.f32.xlu1 %v6742_v44  ;;  %14164 = vmatprep.subr.bf16.mxu0 %v22027_v27  ;;  %v15434_v30 = vpop.eup %15433  ;;  %15447 = vrcp.f32 %v6660_v7  ;;  %v14986_v7 = vunpack.i.l.bf16 %v22057_v2 }
 0x91d   : > { %v6396_v42 = vpop.xlane.xlu0 %6395  ;;  %6752 = vadd.xlane.f32.xlu0 %v6751_v24  ;;  %14170 = vmatprep.subr.bf16.mxu1 %v22027_v27  ;;  %v15436_v9 = vpop.eup %15435  ;;  %v6869_v45 = vmul.f32 %v15434_v30, %v22054_v15  ;;  %15449 = vpow2.f32 %v6581_v53  ;;  %v8014_v53 = vsel %vm7046_vm8, %v7000_v10, 0  ;;  %v14987_v30 = vunpack.i.h.bf16 %v22057_v2  ;;  %v22058_v15 = vld [vmem:[#allocation111_spill] sm:$0xff] }
 0x91e   : > { %v6393_v62 = vpop.xlane.xlu1 %6392  ;;  %v6464_v59 = vsub.f32 %v22055_v55, %v6396_v42  ;;  %v6870_v20 = vmul.f32 %v15436_v9, %v22056_v50  ;;  %v19605_v33 = vpop.eup %15437  ;;  %15451 = vpow2.f32 %v6583_v43 }
 0x91f   : > { %v6463_v21 = vsub.f32 %v19251_v12, %v6393_v62  ;;  %v6933_v14 = vpack.c.bf16 %v6869_v45, %v6869_v45  ;;  %v19609_v31 = vpop.eup %15439  ;;  %v6754_v44 = vsel %vm6210_vm7, %v19605_v33, 0.0 }
 0x920   : > { %6746 = vadd.xlane.f32.xlu1 %v6745_v5  ;;  %v6934_v12 = vpack.c.bf16 %v6870_v20, %v6870_v20  ;;  %v6589_v49 = vmul.f32 1.442695, %v6464_v59  ;;  %v19618_v24 = vpop.eup %15441  ;;  %v6763_v62 = vsel %vm6210_vm7, %v19609_v31, 0.0  ;;  %v7002_v59 = vpack.c.bf16 %v14987_v30, %v14987_v30  ;;  %v22059_v5 = vld [vmem:[#allocation112_spill] sm:$0xff] }
 0x921   : > { %v6587_v11 = vmul.f32 1.442695, %v6463_v21  ;;  %6761 = vadd.xlane.f32.xlu0 %v6760_v17  ;;  %14155 = vmatmul.mubr.msk.bf16.vlgmr.msra.gmra.mrb[180].mxu0 %vm6210_vm7, %v6933_v14  ;;  %v7001_v21 = vpack.c.bf16 %v14986_v7, %v14986_v7  ;;  %v6757_v55 = vsel %vm6210_vm7, %v19618_v24, 0.0 }
 0x922   : > { %v6663_v58 = vpop.xlane.xlu1 %6662  ;;  %14165 = vmatpush3.bf16.msra.mxu0 %v7968_v23  ;;  %14161 = vmatmul.mubr.msk.bf16.vlgmr.msra.gmra.mrb[196].mxu1 %vm6210_vm7, %v6934_v12  ;;  %v19621_v42 = vpop.xlane.xlu0 %6401 }
 0x923   : > { %15453 = vpow2.f32 %v6587_v11  ;;  %14171 = vmatpush3.bf16.msra.mxu1 %v8014_v53  ;;  %14166 = vmatprep.mubr.msk.bf16.mxu0 %vm16594_vm4, %v22027_v27  ;;  %v8060_v7 = vsel %vm7046_vm8, %v7001_v21, 0 }
 0x924   : > { %15455 = vrcp.f32 %v6663_v58  ;;  %6755 = vadd.xlane.f32.xlu1 %v6754_v44  ;;  %v19625_v9 = vpop.eup %15443  ;;  %14172 = vmatprep.mubr.msk.bf16.mxu1 %vm16594_vm4, %v22027_v27  ;;  %v22060_v58 = vld [vmem:[#allocation80_spill] sm:$0xff] }
 0x925   : > { %6764 = vadd.xlane.f32.xlu0 %v6763_v62  ;;  %v15446_v10 = vpop.eup %15445  ;;  %14176 = vmatprep.subr.bf16.mxu0 %v22027_v27  ;;  %v6772_v20 = vsel %vm6210_vm7, %v19625_v9, 0.0  ;;  %v14991_v2 = vunpack.i.l.bf16 %v22060_v58 }
 0x926   : > { %v6666_v52 = vpop.xlane.xlu1 %6665  ;;  %v15448_v43 = vpop.eup %15447  ;;  %14182 = vmatprep.subr.bf16.mxu1 %v22027_v27  ;;  %v6871_v45 = vmul.f32 %v15446_v10, %v22058_v15 }
 0x927   : > { %15457 = vrcp.f32 %v6666_v52  ;;  %v6872_v11 = vmul.f32 %v15448_v43, %v22059_v5  ;;  %v19639_v14 = vpop.eup %15449  ;;  %v14992_v52 = vunpack.i.h.bf16 %v22060_v58  ;;  %v7003_v21 = vpack.c.bf16 %v14991_v2, %v14991_v2 }
 0x928   : > { %15459 = vpow2.f32 %v6589_v49  ;;  %v6669_v50 = vpop.xlane.xlu0 %6668  ;;  %6758 = vadd.xlane.f32.xlu1 %v6757_v55  ;;  %v6935_v17 = vpack.c.bf16 %v6871_v45, %v6871_v45  ;;  %v19644_v23 = vpop.eup %15451  ;;  %v8106_v49 = vsel %vm7046_vm8, %v7002_v59, 0  ;;  %v6766_v30 = vsel %vm6210_vm7, %v19639_v14, 0.0 }
 0x929   : > { %15461 = vrcp.f32 %v6669_v50  ;;  %6773 = vadd.xlane.f32.xlu0 %v6772_v20  ;;  %v6936_v12 = vpack.c.bf16 %v6872_v11, %v6872_v11  ;;  %v6769_v55 = vsel %vm6210_vm7, %v19644_v23, 0.0  ;;  %v7004_v20 = vpack.c.bf16 %v14992_v52, %v14992_v52 }
 0x92a   : > { %14167 = vmatmul.mubr.msk.bf16.vlgmr.msra.gmra.mrb[184].mxu0 %vm6210_vm7, %v6935_v17  ;;  %v19648_v53 = vpop.xlane.xlu1 %6398  ;;  %v8152_v58 = vsel %vm7046_vm8, %v7003_v21, 0 }
 0x92b   : > { %14177 = vmatpush3.bf16.msra.mxu0 %v8060_v7  ;;  %14173 = vmatmul.mubr.msk.bf16.vlgmr.msra.gmra.mrb[200].mxu1 %vm6210_vm7, %v6936_v12 }
 0x92c   : > { %v6672_v44 = vpop.xlane.xlu0 %6671  ;;  %14183 = vmatpush3.bf16.msra.mxu1 %v8106_v49  ;;  %6767 = vadd.xlane.f32.xlu1 %v6766_v30  ;;  %v8198_v30 = vsel %vm7046_vm8, %v7004_v20, 0 }
 0x92d   : > { %v19652_v62 = vpop.eup %15453  ;;  %15463 = vrcp.f32 %v6672_v44  ;;  %14178 = vmatprep.mubr.msk.bf16.mxu0 %vm16594_vm4, %v22027_v27  ;;  %14188 = vmatprep.subr.bf16.mxu0 %v22027_v27 }
 0x92e   : > { %v15456_v10 = vpop.eup %15455  ;;  %v6775_v43 = vsel %vm6210_vm7, %v19652_v62, 0.0  ;;  %14184 = vmatprep.mubr.msk.bf16.mxu1 %vm16594_vm4, %v22027_v27  ;;  %14194 = vmatprep.subr.bf16.mxu1 %v22027_v27 }
 0x92f   : > { %6776 = vadd.xlane.f32.xlu0 %v6775_v43  ;;  %v6873_v15 = vmul.f32 %v15456_v10, %v19261_v8  ;;  %v22061_v8 = vld [vmem:[#allocation75_spill] sm:$0xff] }
 0x930   : > { %v6675_v59 = vpop.xlane.xlu1 %6674  ;;  %6770 = vadd.xlane.f32.xlu1 %v6769_v55  ;;  %v14996_v12 = vunpack.i.l.bf16 %v22061_v8 }
 0x931   : > { %v15458_v45 = vpop.eup %15457  ;;  %v6937_v5 = vpack.c.bf16 %v6873_v15, %v6873_v15  ;;  %15465 = vrcp.f32 %v6675_v59  ;;  %v22062_v59 = vld [vmem:[#allocation88_spill] sm:$0xff] }
 0x932   : > { %v19666_v50 = vpop.eup %15459  ;;  %v6874_v11 = vmul.f32 %v15458_v45, %v19269_v51  ;;  %v14997_v51 = vunpack.i.h.bf16 %v22061_v8  ;;  %v7005_v10 = vpack.c.bf16 %v14996_v12, %v14996_v12  ;;  %v15056_v20 = vunpack.i.l.bf16 %v22062_v59 }
 0x933   : > { %v15462_v17 = vpop.eup %15461  ;;  %14179 = vmatmul.mubr.msk.bf16.vlgmr.msra.gmra.mrb[188].mxu0 %vm6210_vm7, %v6937_v5  ;;  %v6778_v7 = vsel %vm6210_vm7, %v19666_v50, 0.0  ;;  %v15057_v8 = vunpack.i.h.bf16 %v22062_v59 }
 0x934   : > { %v6938_v2 = vpack.c.bf16 %v6874_v11, %v6874_v11  ;;  %14189 = vmatpush3.bf16.msra.mxu0 %v8152_v58  ;;  %v6678_v49 = vpop.xlane.xlu1 %6677  ;;  %14190 = vmatprep.mubr.msk.bf16.mxu0 %vm16594_vm4, %v22027_v27  ;;  %v6875_v44 = vmul.f32 %v15462_v17, %v19279_v16  ;;  %v7006_v15 = vpack.c.bf16 %v14997_v51, %v14997_v51  ;;  %v8244_v5 = vsel %vm7046_vm8, %v7005_v10, 0 }
 0x935   : > { %6779 = vadd.xlane.f32.xlu1 %v6778_v7  ;;  %15467 = vrcp.f32 %v6678_v49  ;;  %14200 = vmatprep.subr.bf16.mxu0 %v22027_v27  ;;  %v7008_v49 = vpack.c.bf16 %v15057_v8, %v15057_v8 }
 0x936   : > { %14185 = vmatmul.mubr.msk.bf16.vlgmr.msra.gmra.mrb[204].mxu1 %vm6210_vm7, %v6938_v2  ;;  %v6939_v43 = vpack.c.bf16 %v6875_v44, %v6875_v44 }
 0x937   : > { %14195 = vmatpush3.bf16.msra.mxu1 %v8198_v30  ;;  %v15464_v52 = vpop.eup %15463  ;;  %14196 = vmatprep.mubr.msk.bf16.mxu1 %vm16594_vm4, %v22027_v27  ;;  %v22063_v30 = vld [vmem:[#allocation76_spill] sm:$0xff] }
 0x938   : > { %14206 = vmatprep.subr.bf16.mxu1 %v22027_v27  ;;  %v6681_v16 = vpop.xlane.xlu1 %6680  ;;  %v6876_v21 = vmul.f32 %v15464_v52, %v19283_v6  ;;  %v8290_v6 = vsel %vm7046_vm8, %v7006_v15, 0  ;;  %v15001_v52 = vunpack.i.l.bf16 %v22063_v30  ;;  %v8382_v15 = vsel %vm7046_vm8, %v7008_v49, 0 }
 0x939   : > { %15469 = vrcp.f32 %v6681_v16 }
 0x93a   : > { %v6940_v45 = vpack.c.bf16 %v6876_v21, %v6876_v21  ;;  %v22064_v21 = vld [vmem:[#allocation66_spill] sm:$0xff] }
 0x93b   : > { %v15466_v55 = vpop.eup %15465  ;;  %14191 = vmatmul.mubr.msk.bf16.vlgmr.msra.gmra.mrb[192].mxu0 %vm6210_vm7, %v6939_v43 }
 0x93c   : > { %v6877_v11 = vmul.f32 %v15466_v55, %v19291_v34  ;;  %14201 = vmatpush3.bf16.msra.mxu0 %v8244_v5  ;;  %v6684_v17 = vpop.xlane.xlu1 %6683  ;;  %14202 = vmatprep.mubr.msk.bf16.mxu0 %vm16594_vm4, %v22027_v27  ;;  %v7007_v34 = vpack.c.bf16 %v15056_v20, %v15056_v20  ;;  %v7009_v55 = vpack.c.bf16 %v15001_v52, %v15001_v52 }
 0x93d   : > { %15471 = vrcp.f32 %v6684_v17  ;;  %14212 = vmatprep.subr.bf16.mxu0 %v22027_v27 }
 0x93e   : > { %14197 = vmatmul.mubr.msk.bf16.vlgmr.msra.gmra.mrb[208].mxu1 %vm6210_vm7, %v6940_v45  ;;  %v6941_v58 = vpack.c.bf16 %v6877_v11, %v6877_v11  ;;  %v8336_v10 = vsel %vm7046_vm8, %v7007_v34, 0  ;;  %v22065_v45 = vld [vmem:[#allocation67_spill] sm:$0xff]  ;;  %v8428_v34 = vsel %vm7046_vm8, %v7009_v55, 0 }
 0x93f   : > { %14207 = vmatpush3.bf16.msra.mxu1 %v8290_v6  ;;  %14208 = vmatprep.mubr.msk.bf16.mxu1 %vm16594_vm4, %v22027_v27  ;;  %v15468_v12 = vpop.eup %15467  ;;  %v22066_v11 = vld [vmem:[#allocation71_spill] sm:$0xff]  ;;  %v22067_v6 = vld [vmem:[#allocation81_spill] sm:$0xff] }
 0x940   : > { %14218 = vmatprep.subr.bf16.mxu1 %v22027_v27  ;;  %v6878_v2 = vmul.f32 %v15468_v12, %v19293_v35  ;;  %v6687_v7 = vpop.xlane.xlu0 %6686  ;;  %v15002_v35 = vunpack.i.h.bf16 %v22063_v30  ;;  %v15006_v12 = vunpack.i.l.bf16 %v22067_v6 }
 0x941   : > { %15473 = vrcp.f32 %v6687_v7 }
 0x942   : > { %v6942_v44 = vpack.c.bf16 %v6878_v2, %v6878_v2  ;;  %v7010_v5 = vpack.c.bf16 %v15002_v35, %v15002_v35  ;;  %v15007_v2 = vunpack.i.h.bf16 %v22067_v6  ;;  %v22068_v35 = vld [vmem:[#allocation77_spill] sm:$0xff] }
 0x943   : > { %v15470_v51 = vpop.eup %15469  ;;  %14203 = vmatmul.mubr.msk.bf16.vlgmr.msra.gmra.mrb[196].mxu0 %vm6210_vm7, %v6941_v58 }
 0x944   : > { %v6879_v43 = vmul.f32 %v15470_v51, %v19306_v36  ;;  %14213 = vmatpush3.bf16.msra.mxu0 %v8336_v10  ;;  %v6690_v16 = vpop.xlane.xlu0 %6689  ;;  %14214 = vmatprep.mubr.msk.bf16.mxu0 %vm16594_vm4, %v22027_v27  ;;  %v8474_v7 = vsel %vm7046_vm8, %v7010_v5, 0  ;;  %v7012_v52 = vpack.c.bf16 %v15007_v2, %v15007_v2  ;;  %v6466_v10 = vsub.f32 %v19266_v19, %v19621_v42 }
 0x945   : > { %15079 = vrot.lane.b32.xlu0 %v22064_v21, %s16597_s21  ;;  %15475 = vrcp.f32 %v6690_v16  ;;  %14224 = vmatprep.subr.bf16.mxu0 %v22027_v27  ;;  %v15011_v21 = vunpack.i.l.bf16 %v22068_v35 }
 0x946   : > { %14209 = vmatmul.mubr.msk.bf16.vlgmr.msra.gmra.mrb[212].mxu1 %vm6210_vm7, %v6942_v44  ;;  %15074 = vrot.lane.b32.xlu1 %v22065_v45, %s16597_s21  ;;  %v6943_v59 = vpack.c.bf16 %v6879_v43, %v6879_v43  ;;  %v7011_v44 = vpack.c.bf16 %v15006_v12, %v15006_v12  ;;  %v8566_v19 = vsel %vm7046_vm8, %v7012_v52, 0  ;;  %v22070_v52 = vld [vmem:[#allocation78_spill] sm:$0xff] }
 0x947   : > { %14219 = vmatpush3.bf16.msra.mxu1 %v8382_v15  ;;  %v15472_v36 = vpop.eup %15471  ;;  %14220 = vmatprep.mubr.msk.bf16.mxu1 %vm16594_vm4, %v22027_v27  ;;  %v6465_v15 = vsub.f32 %v19275_v38, %v19648_v53  ;;  %v15012_v38 = vunpack.i.h.bf16 %v22068_v35  ;;  %v7013_v53 = vpack.c.bf16 %v15011_v21, %v15011_v21 }
 0x948   : > { %v6880_v20 = vmul.f32 %v15472_v36, %v19310_v13  ;;  %14230 = vmatprep.subr.bf16.mxu1 %v22027_v27  ;;  %v8520_v16 = vsel %vm7046_vm8, %v7011_v44, 0 }
 0x949   : > { %15084 = vrot.lane.b32.xlu0 %v22066_v11, %s16597_s21  ;;  %v6591_v36 = vmul.f32 1.442695, %v6465_v15  ;;  %v22069_v11 = vld [vmem:[#allocation82_spill] sm:$0xff]  ;;  %v8612_v12 = vsel %vm7046_vm8, %v7013_v53, 0 }
 0x94a   : > { %v6944_v17 = vpack.c.bf16 %v6880_v20, %v6880_v20 }
 0x94b   : > { %v15474_v8 = vpop.eup %15473  ;;  %14215 = vmatmul.mubr.msk.bf16.vlgmr.msra.gmra.mrb[200].mxu0 %vm6210_vm7, %v6943_v59 }
 0x94c   : > { %14225 = vmatpush3.bf16.msra.mxu0 %v8428_v34  ;;  %v6693_v58 = vpop.xlane.xlu1 %6692  ;;  %14226 = vmatprep.mubr.msk.bf16.mxu0 %vm16594_vm4, %v22027_v27  ;;  %v6881_v13 = vmul.f32 %v15474_v8, %v19324_v57  ;;  %v7014_v8 = vpack.c.bf16 %v15012_v38, %v15012_v38 }
 0x94d   : > { %15477 = vrcp.f32 %v6693_v58  ;;  %14236 = vmatprep.subr.bf16.mxu0 %v22027_v27 }
 0x94e   : > { %14221 = vmatmul.mubr.msk.bf16.vlgmr.msra.gmra.mrb[216].mxu1 %vm6210_vm7, %v6944_v17  ;;  %v6945_v51 = vpack.c.bf16 %v6881_v13, %v6881_v13  ;;  %v15016_v17 = vunpack.i.l.bf16 %v22069_v11  ;;  %v15017_v13 = vunpack.i.h.bf16 %v22069_v11 }
 0x94f   : > { %14231 = vmatpush3.bf16.msra.mxu1 %v8474_v7  ;;  %14232 = vmatprep.mubr.msk.bf16.mxu1 %vm16594_vm4, %v22027_v27  ;;  %v15476_v49 = vpop.eup %15475 }
 0x950   : > { %14242 = vmatprep.subr.bf16.mxu1 %v22027_v27  ;;  %v6696_v30 = vpop.xlane.xlu1 %6695  ;;  %v6882_v57 = vmul.f32 %v15476_v49, %v19328_v25  ;;  %v6593_v25 = vmul.f32 1.442695, %v6466_v10  ;;  %v7015_v2 = vpack.c.bf16 %v15016_v17, %v15016_v17  ;;  %v15021_v10 = vunpack.i.l.bf16 %v22070_v52  ;;  %v22071_v17 = vld [vmem:[#allocation70_spill] sm:$0xff] }
 0x951   : > { %15479 = vrcp.f32 %v6696_v30 }
 0x952   : > { %v6946_v43 = vpack.c.bf16 %v6882_v57, %v6882_v57  ;;  %v7016_v57 = vpack.c.bf16 %v15017_v13, %v15017_v13 }
 0x953   : > { %14227 = vmatmul.mubr.msk.bf16.vlgmr.msra.gmra.mrb[204].mxu0 %vm6210_vm7, %v6945_v51 }
 0x954   : > { %14237 = vmatpush3.bf16.msra.mxu0 %v8520_v16  ;;  %v6699_v45 = vpop.xlane.xlu0 %6698  ;;  %14238 = vmatprep.mubr.msk.bf16.mxu0 %vm16594_vm4, %v22027_v27 }
 0x955   : > { %15481 = vrcp.f32 %v6699_v45  ;;  %14248 = vmatprep.subr.bf16.mxu0 %v22027_v27  ;;  %v15022_v45 = vunpack.i.h.bf16 %v22070_v52 }
 0x956   : > { %14233 = vmatmul.mubr.msk.bf16.vlgmr.msra.gmra.mrb[220].mxu1 %vm6210_vm7, %v6946_v43  ;;  %v8704_v43 = vsel %vm7046_vm8, %v7015_v2, 0 }
 0x957   : > { %14243 = vmatpush3.bf16.msra.mxu1 %v8566_v19  ;;  %14244 = vmatprep.mubr.msk.bf16.mxu1 %vm16594_vm4, %v22027_v27  ;;  %v15478_v42 = vpop.eup %15477 }
 0x958   : > { %14254 = vmatprep.subr.bf16.mxu1 %v22027_v27  ;;  %v6883_v55 = vmul.f32 %v15478_v42, %v19351_v37  ;;  %v6702_v59 = vpop.xlane.xlu0 %6701 }
 0x959   : > { %15483 = vrcp.f32 %v6702_v59 }
 0x95a   : > { %15485 = vpow2.f32 %v6593_v25  ;;  %v6947_v20 = vpack.c.bf16 %v6883_v55, %v6883_v55  ;;  %v8750_v25 = vsel %vm7046_vm8, %v7016_v57, 0 }
 0x95b   : > { %v15480_v5 = vpop.eup %15479  ;;  %15487 = vpow2.f32 %v6591_v36  ;;  %v7018_v36 = vpack.c.bf16 %v15022_v45, %v15022_v45 }
 0x95c   : > { %v6884_v6 = vmul.f32 %v15480_v5, %v19356_v60  ;;  %14239 = vmatmul.mubr.msk.bf16.vlgmr.msra.gmra.mrb[208].mxu0 %vm6210_vm7, %v6947_v20  ;;  %v6705_v34 = vpop.xlane.xlu1 %6704  ;;  %v8658_v60 = vsel %vm7046_vm8, %v7014_v8, 0 }
 0x95d   : > { %14249 = vmatpush3.bf16.msra.mxu0 %v8612_v12  ;;  %15489 = vrcp.f32 %v6705_v34  ;;  %14250 = vmatprep.mubr.msk.bf16.mxu0 %vm16594_vm4, %v22027_v27  ;;  %v8842_v20 = vsel %vm7046_vm8, %v7018_v36, 0 }
 0x95e   : > { %v6948_v37 = vpack.c.bf16 %v6884_v6, %v6884_v6  ;;  %14260 = vmatprep.subr.bf16.mxu0 %v22027_v27 }
 0x95f   : > { %v15482_v58 = vpop.eup %15481 }
 0x960   : > { %v6885_v7 = vmul.f32 %v15482_v58, %v19379_v47  ;;  %14245 = vmatmul.mubr.msk.bf16.vlgmr.msra.gmra.mrb[224].mxu1 %vm6210_vm7, %v6948_v37  ;;  %v6708_v49 = vpop.xlane.xlu1 %6707  ;;  %v19803_v58 = vpop.permute.xlu0 %15069 }
 0x961   : > { %14255 = vmatpush3.bf16.msra.mxu1 %v8658_v60  ;;  %15491 = vrcp.f32 %v6708_v49  ;;  %14256 = vmatprep.mubr.msk.bf16.mxu1 %vm16594_vm4, %v22027_v27 }
 0x962   : > { %v6949_v44 = vpack.c.bf16 %v6885_v7, %v6885_v7  ;;  %14266 = vmatprep.subr.bf16.mxu1 %v22027_v27 }
 0x963   : > { %v15484_v51 = vpop.eup %15483 }
 0x964   : > { %v19764_v30 = vpop.eup %15485  ;;  %v6886_v47 = vmul.f32 %v15484_v51, %v19383_v41  ;;  %14251 = vmatmul.mubr.msk.bf16.vlgmr.msra.gmra.mrb[212].mxu0 %vm6210_vm7, %v6949_v44  ;;  %v7017_v41 = vpack.c.bf16 %v15021_v10, %v15021_v10  ;;  %v19807_v44 = vpop.permute.xlu1 %15064 }
 0x965   : > { %14261 = vmatpush3.bf16.msra.mxu0 %v8704_v43  ;;  %14262 = vmatprep.mubr.msk.bf16.mxu0 %vm16594_vm4, %v22027_v27  ;;  %v19772_v16 = vpop.eup %15487  ;;  %v6784_v15 = vsel %vm6210_vm7, %v19764_v30, 0.0 }
 0x966   : > { %v6950_v35 = vpack.c.bf16 %v6886_v47, %v6886_v47  ;;  %14272 = vmatprep.subr.bf16.mxu0 %v22027_v27  ;;  %v6781_v42 = vsel %vm6210_vm7, %v19772_v16, 0.0  ;;  %v8796_v55 = vsel %vm7046_vm8, %v7017_v41, 0 }
 0x967   : > { %v15490_v21 = vpop.eup %15489 }
 0x968   : > { %v6887_v19 = vmul.f32 %v15490_v21, %v19407_v61  ;;  %6785 = vadd.xlane.f32.xlu0 %v6784_v15  ;;  %14257 = vmatmul.mubr.msk.bf16.vlgmr.msra.gmra.mrb[228].mxu1 %vm6210_vm7, %v6950_v35  ;;  %v22072_v21 = vld [vmem:[#allocation83_spill] sm:$0xff] }
 0x969   : > { %14267 = vmatpush3.bf16.msra.mxu1 %v8750_v25  ;;  %14268 = vmatprep.mubr.msk.bf16.mxu1 %vm16594_vm4, %v22027_v27  ;;  %v15026_v15 = vunpack.i.l.bf16 %v22072_v21 }
 0x96a   : > { %6782 = vadd.xlane.f32.xlu1 %v6781_v42  ;;  %v6951_v38 = vpack.c.bf16 %v6887_v19, %v6887_v19  ;;  %14278 = vmatprep.subr.bf16.mxu1 %v22027_v27  ;;  %v15027_v42 = vunpack.i.h.bf16 %v22072_v21 }
 0x96b   : > { %v15492_v53 = vpop.eup %15491 }
 0x96c   : > { %v6888_v61 = vmul.f32 %v15492_v53, %v19411_v39  ;;  %14263 = vmatmul.mubr.msk.bf16.vlgmr.msra.gmra.mrb[216].mxu0 %vm6210_vm7, %v6951_v38  ;;  %v7019_v38 = vpack.c.bf16 %v15026_v15, %v15026_v15 }
 0x96d   : > { %14273 = vmatpush3.bf16.msra.mxu0 %v8796_v55  ;;  %14274 = vmatprep.mubr.msk.bf16.mxu0 %vm16594_vm4, %v22027_v27 }
 0x96e   : > { %v6952_v59 = vpack.c.bf16 %v6888_v61, %v6888_v61  ;;  %14284 = vmatprep.subr.bf16.mxu0 %v22027_v27 }
 0x970   : > { %14269 = vmatmul.mubr.msk.bf16.vlgmr.msra.gmra.mrb[232].mxu1 %vm6210_vm7, %v6952_v59 }
 0x971   : > { %14279 = vmatpush3.bf16.msra.mxu1 %v8842_v20  ;;  %14280 = vmatprep.mubr.msk.bf16.mxu1 %vm16594_vm4, %v22027_v27 }
 0x972   : > { %14290 = vmatprep.subr.bf16.mxu1 %v22027_v27 }
 0x97b   : > { %v19797_v39 = vpop.f32.mrb[144].mxu0 }
 0x97c   : > { %v14048_v5 = vpop.f32.mrb[145].mxu0 }
 0x97d   : > { %v7087_v11 = vpop.f32.mrb[146].mxu0 }
 0x97e   : > { %15089 = vrot.lane.b32.xlu0 %v22071_v17, %s16597_s21  ;;  %v14049_v8 = vpop.f32.mrb[147].mxu0 }
 0x97f   : > { %v7020_v8 = vpack.c.bf16 %v15027_v42, %v15027_v42 }
 0x983   : > { %v19801_v6 = vpop.f32.mrb[160].mxu1 }
 0x984   : > { %v14054_v12 = vpop.f32.mrb[161].mxu1 }
 0x985   : > { %v7133_v34 = vpop.f32.mrb[162].mxu1 }
 0x986   : > { %v14055_v37 = vpop.f32.mrb[163].mxu1 }
 0x98b   : > { %v19805_v13 = vpop.f32.mrb[148].mxu0 }
 0x98c   : > { %v14060_v2 = vpop.f32.mrb[149].mxu0 }
 0x98d   : > { %v7179_v7 = vpop.f32.mrb[150].mxu0  ;;  %v6711_v49 = vpop.xlane.xlu0 %6710 }
 0x98e   : > { %v14061_v60 = vpop.f32.mrb[151].mxu0  ;;  %15493 = vrcp.f32 %v6711_v49 }
 0x98f   : > { %v22073_v60 = vld [vmem:[#allocation84_spill] sm:$0xff] }
 0x990   : > { %v15036_v49 = vunpack.i.l.bf16 %v22073_v60  ;;  %v15037_v15 = vunpack.i.h.bf16 %v22073_v60 }
 0x991   : > { %v6714_v51 = vpop.xlane.xlu0 %6713 }
 0x992   : > { %v19809_v57 = vpop.f32.mrb[164].mxu1  ;;  %15495 = vrcp.f32 %v6714_v51 }
 0x993   : > { %v19811_v52 = vpop.f32.mrb[152].mxu0  ;;  %v14066_v10 = vpop.f32.mrb[165].mxu1 }
 0x994   : > { %v14072_v47 = vpop.f32.mrb[153].mxu0  ;;  %v7225_v43 = vpop.f32.mrb[166].mxu1 }
 0x995   : > { %v7271_v35 = vpop.f32.mrb[154].mxu0  ;;  %v14067_v45 = vpop.f32.mrb[167].mxu1  ;;  %v8934_v47 = vsel %vm7046_vm8, %v7020_v8, 0 }
 0x996   : > { %v14073_v41 = vpop.f32.mrb[155].mxu0  ;;  %v6717_v19 = vpop.xlane.xlu1 %6716  ;;  %v7021_v45 = vpack.c.bf16 %v15036_v49, %v15036_v49 }
 0x997   : > { %15497 = vrcp.f32 %v6717_v19  ;;  %v6726_v36 = vpop.xlane.xlu0 %6725 }
 0x998   : > { %v15494_v25 = vpop.eup %15493  ;;  %v8980_v8 = vsel %vm7046_vm8, %v7021_v45, 0 }
 0x999   : > { %v6889_v53 = vmul.f32 %v15494_v25, %v19502_v54  ;;  %v8888_v54 = vsel %vm7046_vm8, %v7019_v38, 0 }
 0x99a   : > { %v19816_v61 = vpop.f32.mrb[168].mxu1  ;;  %v6720_v55 = vpop.xlane.xlu1 %6719 }
 0x99b   : > { %v19818_v59 = vpop.f32.mrb[156].mxu0  ;;  %v6953_v20 = vpack.c.bf16 %v6889_v53, %v6889_v53  ;;  %15499 = vrcp.f32 %v6720_v55  ;;  %v14078_v11 = vpop.f32.mrb[169].mxu1 }
 0x99c   : > { %v15496_v5 = vpop.eup %15495  ;;  %v14084_v17 = vpop.f32.mrb[157].mxu0  ;;  %15501 = vrcp.f32 %v6726_v36  ;;  %v7022_v11 = vpack.c.bf16 %v15037_v15, %v15037_v15 }
 0x99d   : > { %v6890_v12 = vmul.f32 %v15496_v5, %v19510_v46  ;;  %v7317_v34 = vpop.f32.mrb[170].mxu1  ;;  %v7363_v37 = vpop.f32.mrb[158].mxu0  ;;  %14275 = vmatmul.mubr.msk.bf16.vlgmr.msra.gmra.mrb[220].mxu0 %vm6210_vm7, %v6953_v20 }
 0x99e   : > { %v14079_v2 = vpop.f32.mrb[171].mxu1  ;;  %v14085_v7 = vpop.f32.mrb[159].mxu0  ;;  %14285 = vmatpush3.bf16.msra.mxu0 %v8888_v54  ;;  %14286 = vmatprep.mubr.msk.bf16.mxu0 %vm16594_vm4, %v22027_v27 }
 0x99f   : > { %v6723_v51 = vpop.xlane.xlu1 %6722  ;;  %v6954_v10 = vpack.c.bf16 %v6890_v12, %v6890_v12  ;;  %14296 = vmatprep.subr.bf16.mxu0 %v22027_v27  ;;  %v6729_v46 = vpop.xlane.xlu0 %6728  ;;  %v22074_v12 = vld [vmem:[#allocation89_spill] sm:$0xff] }
 0x9a0   : > { %15503 = vrcp.f32 %v6723_v51  ;;  %v15061_v34 = vunpack.i.l.bf16 %v22074_v12  ;;  %v15062_v60 = vunpack.i.h.bf16 %v22074_v12  ;;  %v9026_v51 = vsel %vm7046_vm8, %v7022_v11, 0 }
 0x9a1   : > { %14281 = vmatmul.mubr.msk.bf16.vlgmr.msra.gmra.mrb[236].mxu1 %vm6210_vm7, %v6954_v10  ;;  %v15498_v43 = vpop.eup %15497  ;;  %15505 = vrcp.f32 %v6729_v46 }
 0x9a2   : > { %v19829_v35 = vpop.f32.mrb[172].mxu1  ;;  %14291 = vmatpush3.bf16.msra.mxu1 %v8934_v47  ;;  %14292 = vmatprep.mubr.msk.bf16.mxu1 %vm16594_vm4, %v22027_v27  ;;  %v6891_v41 = vmul.f32 %v15498_v43, %v19513_v26  ;;  %v7023_v46 = vpack.c.bf16 %v15061_v34, %v15061_v34 }
 0x9a3   : > { %v19831_v21 = vpop.f32.mrb[160].mxu0  ;;  %v6732_v19 = vpop.xlane.xlu1 %6731  ;;  %14302 = vmatprep.subr.bf16.mxu1 %v22027_v27 }
 0x9a4   : > { %v14090_v25 = vpop.f32.mrb[173].mxu1  ;;  %v14096_v42 = vpop.f32.mrb[161].mxu0  ;;  %v6955_v36 = vpack.c.bf16 %v6891_v41, %v6891_v41  ;;  %15507 = vrcp.f32 %v6732_v19 }
 0x9a5   : > { %v7409_v38 = vpop.f32.mrb[174].mxu1  ;;  %v7455_v53 = vpop.f32.mrb[162].mxu0 }
 0x9a6   : > { %v15500_v55 = vpop.eup %15499  ;;  %v14091_v20 = vpop.f32.mrb[175].mxu1  ;;  %14287 = vmatmul.mubr.msk.bf16.vlgmr.msra.gmra.mrb[224].mxu0 %vm6210_vm7, %v6955_v36  ;;  %v7024_v36 = vpack.c.bf16 %v15062_v60, %v15062_v60 }
 0x9a7   : > { %v14097_v5 = vpop.f32.mrb[163].mxu0  ;;  %v6892_v17 = vmul.f32 %v15500_v55, %v19525_v32  ;;  %v6735_v26 = vpop.xlane.xlu1 %6734  ;;  %14297 = vmatpush3.bf16.msra.mxu0 %v8980_v8  ;;  %14298 = vmatprep.mubr.msk.bf16.mxu0 %vm16594_vm4, %v22027_v27 }
 0x9a8   : > { %14308 = vmatprep.subr.bf16.mxu0 %v22027_v27  ;;  %v15502_v54 = vpop.eup %15501  ;;  %v6738_v49 = vpop.xlane.xlu0 %6737  ;;  %15509 = vrcp.f32 %v6735_v26  ;;  %v9072_v5 = vsel %vm7046_vm8, %v7023_v46, 0 }
 0x9a9   : > { %v6956_v37 = vpack.c.bf16 %v6892_v17, %v6892_v17  ;;  %v6894_v45 = vmul.f32 %v15502_v54, %v19519_v3  ;;  %15511 = vrcp.f32 %v6738_v49 }
 0x9aa   : > { %v19845_v2 = vpop.f32.mrb[176].mxu1  ;;  %v15504_v32 = vpop.eup %15503 }
 0x9ab   : > { %v19847_v7 = vpop.f32.mrb[164].mxu0  ;;  %14293 = vmatmul.mubr.msk.bf16.vlgmr.msra.gmra.mrb[240].mxu1 %vm6210_vm7, %v6956_v37  ;;  %v6744_v10 = vpop.xlane.xlu1 %6743  ;;  %v6893_v47 = vmul.f32 %v15504_v32, %v19535_v4  ;;  %v22075_v4 = vld [vmem:[#allocation85_spill] sm:$0xff]  ;;  %v6958_v3 = vpack.c.bf16 %v6894_v45, %v6894_v45  ;;  %v9118_v37 = vsel %vm7046_vm8, %v7024_v36, 0 }
 0x9ac   : > { %14303 = vmatpush3.bf16.msra.mxu1 %v9026_v51  ;;  %v14102_v43 = vpop.f32.mrb[177].mxu1  ;;  %v14108_v15 = vpop.f32.mrb[165].mxu0  ;;  %14304 = vmatprep.mubr.msk.bf16.mxu1 %vm16594_vm4, %v22027_v27  ;;  %v15041_v20 = vunpack.i.l.bf16 %v22075_v4  ;;  %v15042_v34 = vunpack.i.h.bf16 %v22075_v4 }
 0x9ad   : > { %v7501_v41 = vpop.f32.mrb[178].mxu1  ;;  %v7547_v19 = vpop.f32.mrb[166].mxu0  ;;  %14314 = vmatprep.subr.bf16.mxu1 %v22027_v27  ;;  %v6957_v38 = vpack.c.bf16 %v6893_v47, %v6893_v47 }
 0x9ae   : > { %v14103_v25 = vpop.f32.mrb[179].mxu1  ;;  %v14109_v42 = vpop.f32.mrb[167].mxu0  ;;  %v7025_v32 = vpack.c.bf16 %v15041_v20, %v15041_v20  ;;  %v7026_v41 = vpack.c.bf16 %v15042_v34, %v15042_v34  ;;  %v22076_v19 = vld [vmem:[#allocation86_spill] sm:$0xff] }
 0x9af   : > { %v15506_v53 = vpop.eup %15505  ;;  %v6747_v55 = vpop.xlane.xlu1 %6746  ;;  %14299 = vmatmul.mubr.msk.bf16.vlgmr.msra.gmra.mrb[228].mxu0 %vm6210_vm7, %v6957_v38  ;;  %v15046_v25 = vunpack.i.l.bf16 %v22076_v19 }
 0x9b0   : > { %v6741_v11 = vpop.xlane.xlu0 %6740  ;;  %14309 = vmatpush3.bf16.msra.mxu0 %v9072_v5  ;;  %14310 = vmatprep.mubr.msk.bf16.mxu0 %vm16594_vm4, %v22027_v27  ;;  %v15508_v17 = vpop.eup %15507  ;;  %v6895_v8 = vmul.f32 %v15506_v53, %v19529_v29  ;;  %v9164_v42 = vsel %vm7046_vm8, %v7025_v32, 0  ;;  %v9210_v5 = vsel %vm7046_vm8, %v7026_v41, 0 }
 0x9b1   : > { %14320 = vmatprep.subr.bf16.mxu0 %v22027_v27  ;;  %15513 = vrcp.f32 %v6741_v11  ;;  %v6896_v29 = vmul.f32 %v15508_v17, %v19547_v22 }
 0x9b2   : > { %v19863_v26 = vpop.f32.mrb[180].mxu1  ;;  %v6959_v15 = vpack.c.bf16 %v6895_v8, %v6895_v8  ;;  %v15510_v45 = vpop.eup %15509  ;;  %15515 = vrcp.f32 %v6744_v10  ;;  %v15047_v10 = vunpack.i.h.bf16 %v22076_v19 }
 0x9b3   : > { %v19865_v12 = vpop.f32.mrb[168].mxu0  ;;  %14305 = vmatmul.mubr.msk.bf16.vlgmr.msra.gmra.mrb[244].mxu1 %vm6210_vm7, %v6958_v3  ;;  %v19871_v54 = vpop.xlane.xlu1 %6755  ;;  %v6960_v53 = vpack.c.bf16 %v6896_v29, %v6896_v29  ;;  %v6897_v36 = vmul.f32 %v15510_v45, %v19555_v56  ;;  %v7027_v3 = vpack.c.bf16 %v15046_v25, %v15046_v25  ;;  %15517 = vrcp.f32 %v6747_v55 }
 0x9b4   : > { %14315 = vmatpush3.bf16.msra.mxu1 %v9118_v37  ;;  %v14114_v60 = vpop.f32.mrb[181].mxu1  ;;  %v14120_v49 = vpop.f32.mrb[169].mxu0  ;;  %14316 = vmatprep.mubr.msk.bf16.mxu1 %vm16594_vm4, %v22027_v27 }
 0x9b5   : > { %v7593_v51 = vpop.f32.mrb[182].mxu1  ;;  %v7639_v46 = vpop.f32.mrb[170].mxu0  ;;  %14326 = vmatprep.subr.bf16.mxu1 %v22027_v27  ;;  %v6961_v49 = vpack.c.bf16 %v6897_v36, %v6897_v36 }
 0x9b6   : > { %v14115_v47 = vpop.f32.mrb[183].mxu1  ;;  %v14121_v43 = vpop.f32.mrb[171].mxu0  ;;  %v7028_v51 = vpack.c.bf16 %v15047_v10, %v15047_v10 }
 0x9b7   : > { %14311 = vmatmul.mubr.msk.bf16.vlgmr.msra.gmra.mrb[232].mxu0 %vm6210_vm7, %v6959_v15  ;;  %v6750_v38 = vpop.xlane.xlu0 %6749  ;;  %v15512_v22 = vpop.eup %15511  ;;  %v22077_v47 = vld [vmem:[#allocation87_spill] sm:$0xff]  ;;  %v9256_v15 = vsel %vm7046_vm8, %v7027_v3, 0 }
 0x9b8   : > { %14321 = vmatpush3.bf16.msra.mxu0 %v9164_v42  ;;  %14322 = vmatprep.mubr.msk.bf16.mxu0 %vm16594_vm4, %v22027_v27  ;;  %v6759_v17 = vpop.xlane.xlu1 %6758  ;;  %v6898_v56 = vmul.f32 %v15512_v22, %v19539_v63  ;;  %v15051_v43 = vunpack.i.l.bf16 %v22077_v47  ;;  %15519 = vrcp.f32 %v6750_v38  ;;  %v15052_v41 = vunpack.i.h.bf16 %v22077_v47 }
 0x9b9   : > { %14332 = vmatprep.subr.bf16.mxu0 %v22027_v27  ;;  %v9302_v25 = vsel %vm7046_vm8, %v7028_v51, 0 }
 0x9ba   : > { %v19883_v4 = vpop.f32.mrb[184].mxu1  ;;  %v6962_v63 = vpack.c.bf16 %v6898_v56, %v6898_v56  ;;  %v7029_v42 = vpack.c.bf16 %v15051_v43, %v15051_v43  ;;  %v7030_v10 = vpack.c.bf16 %v15052_v41, %v15052_v41 }
 0x9bb   : > { %v19885_v20 = vpop.f32.mrb[172].mxu0  ;;  %14317 = vmatmul.mubr.msk.bf16.vlgmr.msra.gmra.mrb[248].mxu1 %vm6210_vm7, %v6960_v53  ;;  %v14126_v11 = vpop.f32.mrb[185].mxu1 }
 0x9bc   : > { %14327 = vmatpush3.bf16.msra.mxu1 %v9210_v5  ;;  %v14132_v8 = vpop.f32.mrb[173].mxu0  ;;  %14328 = vmatprep.mubr.msk.bf16.mxu1 %vm16594_vm4, %v22027_v27  ;;  %v7685_v34 = vpop.f32.mrb[186].mxu1  ;;  %v15066_v11 = vunpack.i.l.bf16 %v19807_v44  ;;  %v9348_v3 = vsel %vm7046_vm8, %v7029_v42, 0 }
 0x9bd   : > { %v7731_v37 = vpop.f32.mrb[174].mxu0  ;;  %14338 = vmatprep.subr.bf16.mxu1 %v22027_v27  ;;  %v14127_v32 = vpop.f32.mrb[187].mxu1 }
 0x9be   : > { %v14133_v60 = vpop.f32.mrb[175].mxu0  ;;  %v15514_v29 = vpop.eup %15513 }
 0x9bf   : > { %v6753_v46 = vpop.xlane.xlu0 %6752  ;;  %14323 = vmatmul.mubr.msk.bf16.vlgmr.msra.gmra.mrb[236].mxu0 %vm6210_vm7, %v6961_v49  ;;  %v15516_v55 = vpop.eup %15515  ;;  %v6899_v45 = vmul.f32 %v15514_v29, %v19551_v48  ;;  %v9394_v49 = vsel %vm7046_vm8, %v7030_v10, 0  ;;  %v7031_v29 = vpack.c.bf16 %v15066_v11, %v15066_v11 }
 0x9c0   : > { %14333 = vmatpush3.bf16.msra.mxu0 %v9256_v15  ;;  %14334 = vmatprep.mubr.msk.bf16.mxu0 %vm16594_vm4, %v22027_v27  ;;  %v19903_v19 = vpop.xlane.xlu1 %6767  ;;  %15521 = vrcp.f32 %v6753_v46  ;;  %v6900_v38 = vmul.f32 %v15516_v55, %v19572_v40  ;;  %v15518_v36 = vpop.eup %15517 }
 0x9c1   : > { %14344 = vmatprep.subr.bf16.mxu0 %v22027_v27  ;;  %v6963_v22 = vpack.c.bf16 %v6899_v45, %v6899_v45  ;;  %15523 = vrcp.f32 %v19871_v54  ;;  %v6901_v32 = vmul.f32 %v15518_v36, %v19585_v0  ;;  %v15067_v54 = vunpack.i.h.bf16 %v19807_v44 }
 0x9c2   : > { %v6964_v56 = vpack.c.bf16 %v6900_v38, %v6900_v38  ;;  %v15520_v37 = vpop.eup %15519  ;;  %15525 = vrcp.f32 %v6759_v17  ;;  %v15071_v44 = vunpack.i.l.bf16 %v19803_v58  ;;  %v9440_v15 = vsel %vm7046_vm8, %v7031_v29, 0 }
 0x9c3   : > { %14329 = vmatmul.mubr.msk.bf16.vlgmr.msra.gmra.mrb[252].mxu1 %vm6210_vm7, %v6962_v63  ;;  %v6762_v53 = vpop.xlane.xlu0 %6761  ;;  %v6902_v51 = vmul.f32 %v15520_v37, %v19564_v1  ;;  %v6965_v0 = vpack.c.bf16 %v6901_v32, %v6901_v32  ;;  %v7032_v47 = vpack.c.bf16 %v15067_v54, %v15067_v54  ;;  %v15072_v45 = vunpack.i.h.bf16 %v19803_v58 }
 0x9c4   : > { %14339 = vmatpush3.bf16.msra.mxu1 %v9302_v25  ;;  %14340 = vmatprep.mubr.msk.bf16.mxu1 %vm16594_vm4, %v22027_v27  ;;  %v19917_v40 = vpop.xlane.xlu1 %6770  ;;  %15527 = vrcp.f32 %v6762_v53  ;;  %v7033_v25 = vpack.c.bf16 %v15071_v44, %v15071_v44 }
 0x9c5   : > { %14350 = vmatprep.subr.bf16.mxu1 %v22027_v27  ;;  %v6966_v63 = vpack.c.bf16 %v6902_v51, %v6902_v51  ;;  %v9486_v41 = vsel %vm7046_vm8, %v7032_v47, 0 }
 0x9c6   : > { %v19911_v48 = vpop.f32.mrb[188].mxu1  ;;  %v9532_v10 = vsel %vm7046_vm8, %v7033_v25, 0 }
 0x9c7   : > { %v14138_v5 = vpop.f32.mrb[189].mxu1  ;;  %14335 = vmatmul.mubr.msk.bf16.vlgmr.msra.gmra.mrb[240].mxu0 %vm6210_vm7, %v6963_v22  ;;  %v6765_v60 = vpop.xlane.xlu0 %6764  ;;  %v7034_v22 = vpack.c.bf16 %v15072_v45, %v15072_v45 }
 0x9c8   : > { %v7777_v8 = vpop.f32.mrb[190].mxu1  ;;  %14345 = vmatpush3.bf16.msra.mxu0 %v9348_v3  ;;  %14346 = vmatprep.mubr.msk.bf16.mxu0 %vm16594_vm4, %v22027_v27  ;;  %v19930_v43 = vpop.xlane.xlu1 %6779  ;;  %15529 = vrcp.f32 %v6765_v60 }
 0x9c9   : > { %v14139_v34 = vpop.f32.mrb[191].mxu1  ;;  %14356 = vmatprep.subr.bf16.mxu0 %v22027_v27  ;;  %15531 = vrcp.f32 %v19903_v19  ;;  %v9578_v19 = vsel %vm7046_vm8, %v7034_v22, 0 }
 0x9ca   : > { %v15522_v46 = vpop.eup %15521  ;;  %15533 = vrcp.f32 %v19917_v40 }
 0x9cb   : > { %14341 = vmatmul.mubr.msk.bf16.vlgmr.msra.gmra.mrb[0].mxu1 %vm6210_vm7, %v6964_v56  ;;  %v6774_v55 = vpop.xlane.xlu0 %6773  ;;  %v15524_v1 = vpop.eup %15523  ;;  %v6903_v17 = vmul.f32 %v15522_v46, %v19577_v28 }
 0x9cc   : > { %14351 = vmatpush3.bf16.msra.mxu1 %v9394_v49  ;;  %14352 = vmatprep.mubr.msk.bf16.mxu1 %vm16594_vm4, %v22027_v27  ;;  %v6904_v42 = vmul.f32 %v15524_v1, %v19605_v33  ;;  %v15075_v38 = vpop.permute.xlu1 %15074  ;;  %v15526_v53 = vpop.eup %15525  ;;  %15535 = vrcp.f32 %v6774_v55 }
 0x9cd   : > { %14362 = vmatprep.subr.bf16.mxu1 %v22027_v27  ;;  %v6967_v28 = vpack.c.bf16 %v6903_v17, %v6903_v17  ;;  %v15076_v58 = vunpack.i.l.bf16 %v15075_v38  ;;  %v6905_v11 = vmul.f32 %v15526_v53, %v19618_v24  ;;  %v15077_v3 = vunpack.i.h.bf16 %v15075_v38 }
 0x9ce   : > { %v6968_v5 = vpack.c.bf16 %v6904_v42, %v6904_v42  ;;  %v15528_v33 = vpop.eup %15527 }
 0x9cf   : > { %14347 = vmatmul.mubr.msk.bf16.vlgmr.msra.gmra.mrb[244].mxu0 %vm6210_vm7, %v6965_v0  ;;  %v6777_v36 = vpop.xlane.xlu0 %6776  ;;  %v7035_v8 = vpack.c.bf16 %v15076_v58, %v15076_v58  ;;  %v6906_v56 = vmul.f32 %v15528_v33, %v19593_v18  ;;  %v6969_v24 = vpack.c.bf16 %v6905_v11, %v6905_v11  ;;  %v7036_v32 = vpack.c.bf16 %v15077_v3, %v15077_v3 }
 0x9d0   : > { %14357 = vmatpush3.bf16.msra.mxu0 %v9440_v15  ;;  %14358 = vmatprep.mubr.msk.bf16.mxu0 %vm16594_vm4, %v22027_v27  ;;  %15537 = vrcp.f32 %v6777_v36 }
 0x9d1   : > { %14368 = vmatprep.subr.bf16.mxu0 %v22027_v27  ;;  %v9624_v60 = vsel %vm7046_vm8, %v7035_v8, 0  ;;  %v6970_v49 = vpack.c.bf16 %v6906_v56, %v6906_v56  ;;  %v9670_v51 = vsel %vm7046_vm8, %v7036_v32, 0  ;;  %15539 = vrcp.f32 %v19930_v43 }
 0x9d2   : > { %v15530_v37 = vpop.eup %15529 }
 0x9d3   : > { %14353 = vmatmul.mubr.msk.bf16.vlgmr.msra.gmra.mrb[4].mxu1 %vm6210_vm7, %v6966_v63  ;;  %v15080_v34 = vpop.permute.xlu0 %15079  ;;  %v15532_v18 = vpop.eup %15531  ;;  %v6907_v40 = vmul.f32 %v15530_v37, %v19609_v31 }
 0x9d4   : > { %14363 = vmatpush3.bf16.msra.mxu1 %v9486_v41  ;;  %14364 = vmatprep.mubr.msk.bf16.mxu1 %vm16594_vm4, %v22027_v27  ;;  %v15081_v54 = vunpack.i.l.bf16 %v15080_v34  ;;  %v15082_v29 = vunpack.i.h.bf16 %v15080_v34  ;;  %v6908_v46 = vmul.f32 %v15532_v18, %v19639_v14  ;;  %v15534_v31 = vpop.eup %15533 }
 0x9d5   : > { %14374 = vmatprep.subr.bf16.mxu1 %v22027_v27  ;;  %v6971_v44 = vpack.c.bf16 %v6907_v40, %v6907_v40  ;;  %v6909_v17 = vmul.f32 %v15534_v31, %v19644_v23 }
 0x9d6   : > { %v7037_v0 = vpack.c.bf16 %v15081_v54, %v15081_v54  ;;  %v7038_v15 = vpack.c.bf16 %v15082_v29, %v15082_v29  ;;  %v6972_v1 = vpack.c.bf16 %v6908_v46, %v6908_v46  ;;  %v15536_v14 = vpop.eup %15535 }
 0x9d7   : > { %14359 = vmatmul.mubr.msk.bf16.vlgmr.msra.gmra.mrb[248].mxu0 %vm6210_vm7, %v6967_v28  ;;  %v15085_v47 = vpop.permute.xlu0 %15084  ;;  %v6910_v23 = vmul.f32 %v15536_v14, %v19625_v9 }
 0x9d8   : > { %14369 = vmatpush3.bf16.msra.mxu0 %v9532_v10  ;;  %14370 = vmatprep.mubr.msk.bf16.mxu0 %vm16594_vm4, %v22027_v27  ;;  %v15086_v63 = vunpack.i.l.bf16 %v15085_v47  ;;  %v9716_v55 = vsel %vm7046_vm8, %v7037_v0, 0  ;;  %v15087_v41 = vunpack.i.h.bf16 %v15085_v47  ;;  %v9762_v43 = vsel %vm7046_vm8, %v7038_v15, 0 }
 0x9d9   : > { %14380 = vmatprep.subr.bf16.mxu0 %v22027_v27  ;;  %v6973_v10 = vpack.c.bf16 %v6909_v17, %v6909_v17 }
 0x9da   : > { %v7039_v38 = vpack.c.bf16 %v15086_v63, %v15086_v63  ;;  %v15538_v33 = vpop.eup %15537  ;;  %v7040_v11 = vpack.c.bf16 %v15087_v41, %v15087_v41 }
 0x9db   : > { %14365 = vmatmul.mubr.msk.bf16.vlgmr.msra.gmra.mrb[8].mxu1 %vm6210_vm7, %v6968_v5  ;;  %v15540_v9 = vpop.eup %15539  ;;  %v6911_v8 = vmul.f32 %v15538_v33, %v19652_v62 }
 0x9dc   : > { %14375 = vmatpush3.bf16.msra.mxu1 %v9578_v19  ;;  %14376 = vmatprep.mubr.msk.bf16.mxu1 %vm16594_vm4, %v22027_v27  ;;  %v9808_v3 = vsel %vm7046_vm8, %v7039_v38, 0  ;;  %v6974_v19 = vpack.c.bf16 %v6910_v23, %v6910_v23  ;;  %v9854_v56 = vsel %vm7046_vm8, %v7040_v11, 0  ;;  %v6912_v37 = vmul.f32 %v15540_v9, %v19666_v50 }
 0x9dd   : > { %14386 = vmatprep.subr.bf16.mxu1 %v22027_v27  ;;  %v6975_v62 = vpack.c.bf16 %v6911_v8, %v6911_v8 }
 0x9de   : > { %v6976_v46 = vpack.c.bf16 %v6912_v37, %v6912_v37 }
 0x9df   : > { %14371 = vmatmul.mubr.msk.bf16.vlgmr.msra.gmra.mrb[252].mxu0 %vm6210_vm7, %v6969_v24 }
 0x9e0   : > { %14381 = vmatpush3.bf16.msra.mxu0 %v9624_v60  ;;  %14382 = vmatprep.mubr.msk.bf16.mxu0 %vm16594_vm4, %v22027_v27 }
 0x9e1   : > { %14392 = vmatprep.subr.bf16.mxu0 %v22027_v27 }
 0x9e3   : > { %14377 = vmatmul.mubr.msk.bf16.vlgmr.msra.gmra.mrb[12].mxu1 %vm6210_vm7, %v6970_v49 }
 0x9e4   : > { %14387 = vmatpush3.bf16.msra.mxu1 %v9670_v51  ;;  %14388 = vmatprep.mubr.msk.bf16.mxu1 %vm16594_vm4, %v22027_v27 }
 0x9e5   : > { %14398 = vmatprep.subr.bf16.mxu1 %v22027_v27 }
 0x9e7   : > { %14383 = vmatmul.mubr.msk.bf16.vlgmr.msra.gmra.mrb[0].mxu0 %vm6210_vm7, %v6971_v44 }
 0x9e8   : > { %14393 = vmatpush3.bf16.msra.mxu0 %v9716_v55  ;;  %14394 = vmatprep.mubr.msk.bf16.mxu0 %vm16594_vm4, %v22027_v27 }
 0x9e9   : > { %14404 = vmatprep.subr.bf16.mxu0 %v22027_v27 }
 0x9eb   : > { %v7866_v45 = vpop.f32.mrb[192].mxu1  ;;  %14389 = vmatmul.mubr.msk.bf16.vlgmr.msra.gmra.mrb[16].mxu1 %vm6210_vm7, %v6972_v1 }
 0x9ec   : > { %v7820_v25 = vpop.f32.mrb[176].mxu0  ;;  %v14150_v42 = vpop.f32.mrb[193].mxu1  ;;  %14399 = vmatpush3.bf16.msra.mxu1 %v9762_v43  ;;  %14400 = vmatprep.mubr.msk.bf16.mxu1 %vm16594_vm4, %v22027_v27 }
 0x9ed   : > { %v15093_v28 = vpack.i.bf16 %v7866_v45, %v7820_v25  ;;  %v14144_v53 = vpop.f32.mrb[177].mxu0  ;;  %v7869_v22 = vpop.f32.mrb[194].mxu1  ;;  %14410 = vmatprep.subr.bf16.mxu1 %v22027_v27 }
 0x9ee   : > { %v7823_v36 = vpop.f32.mrb[178].mxu0  ;;  %v14151_v58 = vpop.f32.mrb[195].mxu1 }
 0x9ef   : > { %15094 = vrot.lane.b32.xlu1 %v15093_v28, %s16599_s20  ;;  %v14145_v5 = vpop.f32.mrb[179].mxu0  ;;  %14395 = vmatmul.mubr.msk.bf16.vlgmr.msra.gmra.mrb[4].mxu0 %vm6210_vm7, %v6973_v10 }
 0x9f0   : > { %14405 = vmatpush3.bf16.msra.mxu0 %v9808_v3  ;;  %14406 = vmatprep.mubr.msk.bf16.mxu0 %vm16594_vm4, %v22027_v27 }
 0x9f1   : > { %14416 = vmatprep.subr.bf16.mxu0 %v22027_v27 }
 0x9f3   : > { %14401 = vmatmul.mubr.msk.bf16.vlgmr.msra.gmra.mrb[20].mxu1 %vm6210_vm7, %v6974_v19 }
 0x9f4   : > { %14411 = vmatpush3.bf16.msra.mxu1 %v9854_v56  ;;  %v7912_v24 = vpop.f32.mrb[180].mxu0  ;;  %14412 = vmatprep.mubr.msk.bf16.mxu1 %vm16594_vm4, %v22027_v27 }
 0x9f5   : > { %v6786_v34 = vpop.xlane.xlu0 %6785  ;;  %v7958_v32 = vpop.f32.mrb[196].mxu1  ;;  %14422 = vmatprep.subr.bf16.mxu1 %v22027_v27 }
 0x9f6   : > { %15541 = vrcp.f32 %v6786_v34  ;;  %v14156_v54 = vpop.f32.mrb[181].mxu0  ;;  %v15098_v60 = vpack.i.bf16 %v7958_v32, %v7912_v24  ;;  %v14162_v49 = vpop.f32.mrb[197].mxu1 }
 0x9f7   : > { %v7915_v18 = vpop.f32.mrb[182].mxu0  ;;  %v7961_v40 = vpop.f32.mrb[198].mxu1  ;;  %14407 = vmatmul.mubr.msk.bf16.vlgmr.msra.gmra.mrb[8].mxu0 %vm6210_vm7, %v6975_v62 }
 0x9f8   : > { %v6783_v29 = vpop.xlane.xlu1 %6782  ;;  %v14163_v51 = vpop.f32.mrb[199].mxu1  ;;  %15099 = vrot.lane.b32.xlu0 %v15098_v60, %s16599_s20  ;;  %14418 = vmatprep.mubr.msk.bf16.mxu0 %vm16594_vm4, %v22027_v27 }
 0x9f9   : > { %15543 = vrcp.f32 %v6783_v29  ;;  %v14157_v0 = vpop.f32.mrb[183].mxu0  ;;  %v15090_v50 = vpop.permute.xlu0 %15089 }
 0x9fa   : > { %v15092_v47 = vunpack.i.h.bf16 %v15090_v50  ;;  %v15091_v44 = vunpack.i.l.bf16 %v15090_v50 }
 0x9fb   : > { %14413 = vmatmul.mubr.msk.bf16.vlgmr.msra.gmra.mrb[24].mxu1 %vm6210_vm7, %v6976_v46 }
 0x9fc   : > { %v7042_v31 = vpack.c.bf16 %v15092_v47, %v15092_v47  ;;  %v7041_v15 = vpack.c.bf16 %v15091_v44, %v15091_v44  ;;  %14424 = vmatprep.mubr.msk.bf16.mxu1 %vm16594_vm4, %v22027_v27 }
 0x9fd   : > { %v20005_v63 = vpop.f32.mrb[184].mxu0 }
 0x9fe   : > { %v20007_v55 = vpop.f32.mrb[200].mxu1  ;;  %v14168_v1 = vpop.f32.mrb[185].mxu0  ;;  %v9900_v14 = vsel %vm7046_vm8, %v7041_v15, 0  ;;  %v9946_v17 = vsel %vm7046_vm8, %v7042_v31, 0 }
 0x9ff   : > { %v15123_v41 = vpack.i.bf16 %v20007_v55, %v20005_v63  ;;  %v14174_v43 = vpop.f32.mrb[201].mxu1  ;;  %v8007_v25 = vpop.f32.mrb[186].mxu0  ;;  %14417 = vmatpush3.bf16.msra.mxu0 %v9900_v14  ;;  %14423 = vmatpush3.bf16.msra.mxu1 %v9946_v17 }
 0xa00   : > { %v15542_v45 = vpop.eup %15541  ;;  %v8053_v27 = vpop.f32.mrb[202].mxu1 }
 0xa01   : > { %v6914_v42 = vmul.f32 %v15542_v45, %v19764_v30  ;;  %v14169_v38 = vpop.f32.mrb[187].mxu0  ;;  %v14175_v28 = vpop.f32.mrb[203].mxu1 }
 0xa03   : > { %v15544_v53 = vpop.eup %15543  ;;  %v6978_v22 = vpack.c.bf16 %v6914_v42, %v6914_v42 }
 0xa04   : > { %v6913_v23 = vmul.f32 %v15544_v53, %v19772_v16  ;;  %v15228_v53 = vld [vmem:[%s17550_s2 + $0x18] sm:$0xff]  }
 0xa05   : > { %14425 = vmatmul.mubr.msk.bf16.vlgmr.msra.gmra.mrb[28].mxu1 %vm6210_vm7, %v6978_v22 }
 0xa06   : > { %v6977_v36 = vpack.c.bf16 %v6913_v23, %v6913_v23  ;;  %v20016_v58 = vpop.f32.mrb[188].mxu0 }
 0xa07   : > { %v14180_v10 = vpop.f32.mrb[189].mxu0 }
 0xa08   : > { %v8099_v5 = vpop.f32.mrb[190].mxu0  ;;  %14419 = vmatmul.mubr.msk.bf16.vlgmr.msra.gmra.mrb[12].mxu0 %vm6210_vm7, %v6977_v36 }
 0xa09   : > { %v20019_v33 = vpop.f32.mrb[204].mxu1  ;;  %v14181_v11 = vpop.f32.mrb[191].mxu0 }
 0xa0a   : > { %v15128_v30 = vpack.i.bf16 %v20019_v33, %v20016_v58  ;;  %v14186_v3 = vpop.f32.mrb[205].mxu1 }
 0xa0b   : > { %v8145_v19 = vpop.f32.mrb[206].mxu1 }
 0xa0c   : > { %v14187_v9 = vpop.f32.mrb[207].mxu1 }
 0xa0e   : > { %v20023_v8 = vpop.f32.mrb[192].mxu0 }
 0xa0f   : > { %v14192_v16 = vpop.f32.mrb[193].mxu0 }
 0xa10   : > { %v8191_v56 = vpop.f32.mrb[194].mxu0 }
 0xa11   : > { %v20025_v34 = vpop.f32.mrb[208].mxu1  ;;  %v14193_v24 = vpop.f32.mrb[195].mxu0 }
 0xa12   : > { %v15153_v37 = vpack.i.bf16 %v20025_v34, %v20023_v8  ;;  %v14198_v32 = vpop.f32.mrb[209].mxu1 }
 0xa13   : > { %v8237_v54 = vpop.f32.mrb[210].mxu1 }
 0xa14   : > { %v14199_v62 = vpop.f32.mrb[211].mxu1 }
 0xa16   : > { %v20029_v60 = vpop.f32.mrb[196].mxu0 }
 0xa17   : > { %v14204_v49 = vpop.f32.mrb[197].mxu0 }
 0xa18   : > { %v8283_v18 = vpop.f32.mrb[198].mxu0 }
 0xa19   : > { %v20031_v40 = vpop.f32.mrb[212].mxu1  ;;  %v14205_v29 = vpop.f32.mrb[199].mxu0 }
 0xa1a   : > { %v15158_v51 = vpack.i.bf16 %v20031_v40, %v20029_v60  ;;  %v14210_v0 = vpop.f32.mrb[213].mxu1 }
 0xa1b   : > { %v8329_v46 = vpop.f32.mrb[214].mxu1 }
 0xa1c   : > { %v14211_v50 = vpop.f32.mrb[215].mxu1 }
 0xa1e   : > { %v20035_v47 = vpop.f32.mrb[200].mxu0 }
 0xa1f   : > { %v14216_v44 = vpop.f32.mrb[201].mxu0 }
 0xa20   : > { %v8375_v31 = vpop.f32.mrb[202].mxu0 }
 0xa21   : > { %v20037_v15 = vpop.f32.mrb[216].mxu1  ;;  %v14217_v1 = vpop.f32.mrb[203].mxu0 }
 0xa22   : > { %v15183_v14 = vpack.i.bf16 %v20037_v15, %v20035_v47  ;;  %v14222_v17 = vpop.f32.mrb[217].mxu1 }
 0xa23   : > { %v8421_v45 = vpop.f32.mrb[218].mxu1 }
 0xa24   : > { %v14223_v43 = vpop.f32.mrb[219].mxu1 }
 0xa26   : > { %v20041_v25 = vpop.f32.mrb[204].mxu0 }
 0xa27   : > { %v14228_v42 = vpop.f32.mrb[205].mxu0 }
 0xa28   : > { %v8467_v27 = vpop.f32.mrb[206].mxu0 }
 0xa29   : > { %v20043_v38 = vpop.f32.mrb[220].mxu1  ;;  %v14229_v28 = vpop.f32.mrb[207].mxu0 }
 0xa2a   : > { %v14234_v22 = vpop.f32.mrb[221].mxu1  ;;  %v22079_v47 = vpack.i.bf16 %v20043_v38, %v20041_v25 }
 0xa2b   : > { %v8513_v23 = vpop.f32.mrb[222].mxu1  ;;  %v15225_v22 = vld [vmem:[%s17550_s2] sm:$0xff]  }
 0xa2c   : > { %v14235_v36 = vpop.f32.mrb[223].mxu1  ;;  %14428 = vmatprep.subr.bf16.mxu0 %v15225_v22 }
 0xa2d   : > { %14429 = vmatpush3.bf16.msra.mxu0 %v15225_v22 }
 0xa2f   : > { %v8556_v10 = vpop.f32.mrb[208].mxu0 }
 0xa30   : > { %v14240_v5 = vpop.f32.mrb[209].mxu0 }
 0xa31   : > { %v8559_v11 = vpop.f32.mrb[210].mxu0 }
 0xa32   : > { %v14241_v3 = vpop.f32.mrb[211].mxu0 }
 0xa33   : > { %v8602_v19 = vpop.f32.mrb[224].mxu1 }
 0xa34   : > { %v15103_v9 = vpack.i.bf16 %v8602_v19, %v8556_v10  ;;  %v14246_v16 = vpop.f32.mrb[225].mxu1 }
 0xa35   : > { %v8605_v56 = vpop.f32.mrb[226].mxu1 }
 0xa36   : > { %v14247_v24 = vpop.f32.mrb[227].mxu1  ;;  %15104 = vrot.lane.b32.xlu0 %v15103_v9, %s16600_s14 }
 0xa37   : > { %v8648_v32 = vpop.f32.mrb[212].mxu0 }
 0xa38   : > { %v14252_v54 = vpop.f32.mrb[213].mxu0 }
 0xa39   : > { %v8651_v62 = vpop.f32.mrb[214].mxu0 }
 0xa3a   : > { %v14253_v49 = vpop.f32.mrb[215].mxu0 }
 0xa3b   : > { %v8694_v18 = vpop.f32.mrb[228].mxu1 }
 0xa3c   : > { %v15108_v29 = vpack.i.bf16 %v8694_v18, %v8648_v32  ;;  %v14258_v0 = vpop.f32.mrb[229].mxu1 }
 0xa3d   : > { %v8697_v46 = vpop.f32.mrb[230].mxu1 }
 0xa3e   : > { %v14259_v50 = vpop.f32.mrb[231].mxu1  ;;  %15109 = vrot.lane.b32.xlu0 %v15108_v29, %s16600_s14 }
 0xa3f   : > { %v20049_v44 = vpop.f32.mrb[216].mxu0 }
 0xa40   : > { %v14264_v31 = vpop.f32.mrb[217].mxu0 }
 0xa41   : > { %v8743_v1 = vpop.f32.mrb[218].mxu0 }
 0xa42   : > { %v14265_v17 = vpop.f32.mrb[219].mxu0 }
 0xa43   : > { %v20051_v45 = vpop.f32.mrb[232].mxu1 }
 0xa44   : > { %v15133_v43 = vpack.i.bf16 %v20051_v45, %v20049_v44  ;;  %v14270_v42 = vpop.f32.mrb[233].mxu1 }
 0xa45   : > { %v8789_v27 = vpop.f32.mrb[234].mxu1 }
 0xa46   : > { %v14271_v28 = vpop.f32.mrb[235].mxu1 }
 0xa70   : > { %v20056_v23 = vpop.f32.mrb[220].mxu0 }
 0xa71   : > { %v14276_v36 = vpop.f32.mrb[221].mxu0 }
 0xa72   : > { %v8835_v10 = vpop.f32.mrb[222].mxu0 }
 0xa73   : > { %v14277_v5 = vpop.f32.mrb[223].mxu0 }
 0xa74   : > { %v20058_v11 = vpop.f32.mrb[236].mxu1 }
 0xa75   : > { %v15138_v3 = vpack.i.bf16 %v20058_v11, %v20056_v23  ;;  %v14282_v19 = vpop.f32.mrb[237].mxu1 }
 0xa76   : > { %v8881_v9 = vpop.f32.mrb[238].mxu1 }
 0xa77   : > { %v14283_v16 = vpop.f32.mrb[239].mxu1 }
 0xa79   : > { %v20062_v56 = vpop.f32.mrb[224].mxu0 }
 0xa7a   : > { %v14288_v24 = vpop.f32.mrb[225].mxu0 }
 0xa7b   : > { %v8927_v32 = vpop.f32.mrb[226].mxu0 }
 0xa7c   : > { %v14289_v54 = vpop.f32.mrb[227].mxu0 }
 0xa7e   : > { %v20064_v62 = vpop.f32.mrb[240].mxu1 }
 0xa7f   : > { %v15163_v49 = vpack.i.bf16 %v20064_v62, %v20062_v56  ;;  %v14294_v18 = vpop.f32.mrb[241].mxu1 }
 0xa80   : > { %v8973_v29 = vpop.f32.mrb[242].mxu1 }
 0xa81   : > { %v14295_v0 = vpop.f32.mrb[243].mxu1 }
 0xa82   : > { %v20068_v46 = vpop.f32.mrb[228].mxu0 }
 0xa83   : > { %v14300_v50 = vpop.f32.mrb[229].mxu0 }
 0xa84   : > { %v9019_v31 = vpop.f32.mrb[230].mxu0 }
 0xa85   : > { %v14301_v1 = vpop.f32.mrb[231].mxu0 }
 0xa86   : > { %v20070_v17 = vpop.f32.mrb[244].mxu1 }
 0xa87   : > { %v15168_v42 = vpack.i.bf16 %v20070_v17, %v20068_v46  ;;  %v14306_v27 = vpop.f32.mrb[245].mxu1 }
 0xa88   : > { %v9065_v28 = vpop.f32.mrb[246].mxu1 }
 0xa89   : > { %v14307_v22 = vpop.f32.mrb[247].mxu1  ;;  %v15226_v28 = vld [vmem:[%s17550_s2 + $0x8] sm:$0xff]  }
 0xa8a   : > { %v20074_v36 = vpop.f32.mrb[232].mxu0  ;;  %14430 = vmatprep.subr.bf16.mxu0 %v15226_v28 }
 0xa8b   : > { %v14312_v10 = vpop.f32.mrb[233].mxu0  ;;  %14431 = vmatpush3.bf16.msra.mxu0 %v15226_v28 }
 0xa8c   : > { %v9111_v5 = vpop.f32.mrb[234].mxu0 }
 0xa8d   : > { %v14313_v19 = vpop.f32.mrb[235].mxu0  ;;  %v15227_v5 = vld [vmem:[%s17550_s2 + $0x10] sm:$0xff]   ;;  %s22081_s2 = scalar_lea.vmem [#allocation26], %s17515_s29 }
 0xa8e   : > { %v20076_v9 = vpop.f32.mrb[248].mxu1  ;;  %14432 = vmatprep.subr.bf16.mxu0 %v15227_v5 }
 0xa8f   : > { %v14318_v24 = vpop.f32.mrb[249].mxu1  ;;  %14433 = vmatpush3.bf16.msra.mxu0 %v15227_v5  ;;  %v22078_v46 = vpack.i.bf16 %v20076_v9, %v20074_v36 }
 0xa90   : > { %v9157_v32 = vpop.f32.mrb[250].mxu1  ;;  %14434 = vmatprep.subr.bf16.mxu0 %v15228_v53 }
 0xa91   : > { %v14319_v54 = vpop.f32.mrb[251].mxu1 }
 0xa92   : > { %v20080_v18 = vpop.f32.mrb[236].mxu0 }
 0xa93   : > { %v14324_v29 = vpop.f32.mrb[237].mxu0  ;;  %14435 = vmatpush3.bf16.msra.mxu0 %v15228_v53 }
 0xa94   : > { %v9203_v0 = vpop.f32.mrb[238].mxu0 }
 0xa95   : > { %v14325_v50 = vpop.f32.mrb[239].mxu0 }
 0xa96   : > { %v20082_v31 = vpop.f32.mrb[252].mxu1 }
 0xa97   : > { %v14330_v27 = vpop.f32.mrb[253].mxu1  ;;  %v22080_v36 = vpack.i.bf16 %v20082_v31, %v20080_v18 }
 0xa98   : > { %v9249_v22 = vpop.f32.mrb[254].mxu1 }
 0xa99   : > { %v14331_v10 = vpop.f32.mrb[255].mxu1 }
 0xa9a   : > { %v9292_v19 = vpop.f32.mrb[240].mxu0 }
 0xa9b   : > { %v14336_v24 = vpop.f32.mrb[241].mxu0 }
 0xa9c   : > { %v9295_v32 = vpop.f32.mrb[242].mxu0 }
 0xa9d   : > { %v14337_v54 = vpop.f32.mrb[243].mxu0 }
 0xa9e   : > { %v9338_v29 = vpop.f32.mrb[0].mxu1 }
 0xa9f   : > { %v15113_v0 = vpack.i.bf16 %v9338_v29, %v9292_v19  ;;  %v14342_v50 = vpop.f32.mrb[1].mxu1 }
 0xaa0   : > { %v9341_v16 = vpop.f32.mrb[2].mxu1 }
 0xaa1   : > { %v14343_v1 = vpop.f32.mrb[3].mxu1  ;;  %15114 = vrot.lane.b32.xlu0 %v15113_v0, %s16601_s9 }
 0xaa2   : > { %v9384_v27 = vpop.f32.mrb[244].mxu0 }
 0xaa3   : > { %v14348_v28 = vpop.f32.mrb[245].mxu0 }
 0xaa4   : > { %v9387_v22 = vpop.f32.mrb[246].mxu0 }
 0xaa5   : > { %15124 = vrot.lane.b32.xlu0 %v15123_v41, %s16599_s20  ;;  %v14349_v10 = vpop.f32.mrb[247].mxu0 }
 0xaa6   : > { %v9430_v5 = vpop.f32.mrb[4].mxu1 }
 0xaa7   : > { %v15118_v19 = vpack.i.bf16 %v9430_v5, %v9384_v27  ;;  %v14354_v24 = vpop.f32.mrb[5].mxu1 }
 0xaa8   : > { %v9433_v32 = vpop.f32.mrb[6].mxu1 }
 0xaa9   : > { %v14355_v16 = vpop.f32.mrb[7].mxu1  ;;  %15134 = vrot.lane.b32.xlu0 %v15133_v43, %s16600_s14  ;;  %15119 = vrot.lane.b32.xlu1 %v15118_v19, %s16601_s9 }
 0xaaa   : > { %v9476_v53 = vpop.f32.mrb[248].mxu0 }
 0xaab   : > { %v14360_v1 = vpop.f32.mrb[249].mxu0 }
 0xaac   : > { %v9479_v54 = vpop.f32.mrb[250].mxu0 }
 0xaad   : > { %15129 = vrot.lane.b32.xlu1 %v15128_v30, %s16599_s20  ;;  %v14361_v63 = vpop.f32.mrb[251].mxu0 }
 0xaae   : > { %v9522_v55 = vpop.f32.mrb[8].mxu1 }
 0xaaf   : > { %v15143_v41 = vpack.i.bf16 %v9522_v55, %v9476_v53  ;;  %v14366_v29 = vpop.f32.mrb[9].mxu1 }
 0xab0   : > { %v9525_v0 = vpop.f32.mrb[10].mxu1 }
 0xab1   : > { %v14367_v50 = vpop.f32.mrb[11].mxu1  ;;  %15139 = vrot.lane.b32.xlu1 %v15138_v3, %s16600_s14  ;;  %15144 = vrot.lane.b32.xlu0 %v15143_v41, %s16601_s9 }
 0xab2   : > { %v9568_v44 = vpop.f32.mrb[252].mxu0 }
 0xab3   : > { %v14372_v45 = vpop.f32.mrb[253].mxu0 }
 0xab4   : > { %v9571_v43 = vpop.f32.mrb[254].mxu0 }
 0xab5   : > { %15154 = vrot.lane.b32.xlu0 %v15153_v37, %s16599_s20  ;;  %v14373_v58 = vpop.f32.mrb[255].mxu0  ;;  %v15100_v43 = vpop.permute.xlu0 %15099 }
 0xab6   : > { %v9614_v33 = vpop.f32.mrb[12].mxu1 }
 0xab7   : > { %v15148_v30 = vpack.i.bf16 %v9614_v33, %v9568_v44  ;;  %v14378_v27 = vpop.f32.mrb[13].mxu1  ;;  %v15095_v33 = vpop.permute.xlu1 %15094 }
 0xab8   : > { %v9617_v28 = vpop.f32.mrb[14].mxu1  ;;  %v15097_v27 = vunpack.i.h.bf16 %v15095_v33  ;;  %v15096_v18 = vunpack.i.l.bf16 %v15095_v33 }
 0xab9   : > { %v14379_v22 = vpop.f32.mrb[15].mxu1  ;;  %15164 = vrot.lane.b32.xlu0 %v15163_v49, %s16600_s14  ;;  %15149 = vrot.lane.b32.xlu1 %v15148_v30, %s16601_s9  ;;  %v15105_v58 = vpop.permute.xlu0 %15104 }
 0xaba   : > { %v9660_v23 = vpop.f32.mrb[0].mxu0  ;;  %v15107_v31 = vunpack.i.h.bf16 %v15105_v58  ;;  %v15106_v28 = vunpack.i.l.bf16 %v15105_v58 }
 0xabb   : > { %v14384_v11 = vpop.f32.mrb[1].mxu0 }
 0xabc   : > { %v9663_v3 = vpop.f32.mrb[2].mxu0  ;;  %v10180_v11 = vsel %vm3137_vm5, %v19797_v39, %v15096_v18 }
 0xabd   : > { %15159 = vrot.lane.b32.xlu1 %v15158_v51, %s16599_s20  ;;  %v14385_v8 = vpop.f32.mrb[3].mxu0  ;;  %v15110_v30 = vpop.permute.xlu0 %15109 }
 0xabe   : > { %v9706_v34 = vpop.f32.mrb[16].mxu1 }
 0xabf   : > { %v15173_v37 = vpack.i.bf16 %v9706_v34, %v9660_v23  ;;  %v14390_v10 = vpop.f32.mrb[17].mxu1  ;;  %v10181_v23 = vsel %vm3137_vm5, %v19801_v6, %v15097_v27 }
 0xac0   : > { %v9709_v5 = vpop.f32.mrb[18].mxu1  ;;  %v10198_v34 = vsel %vm10196_vm9, %v10181_v23, %v15107_v31 }
 0xac1   : > { %v14391_v19 = vpop.f32.mrb[19].mxu1  ;;  %15169 = vrot.lane.b32.xlu1 %v15168_v42, %s16600_s14  ;;  %15174 = vrot.lane.b32.xlu0 %v15173_v37, %s16601_s9  ;;  %v10197_v37 = vsel %vm10196_vm9, %v10180_v11, %v15106_v28 }
 0xac2   : > { %v9752_v56 = vpop.f32.mrb[4].mxu0 }
 0xac3   : > { %v14396_v62 = vpop.f32.mrb[5].mxu0 }
 0xac4   : > { %v9755_v49 = vpop.f32.mrb[6].mxu0  ;;  %v15101_v62 = vunpack.i.l.bf16 %v15100_v43 }
 0xac5   : > { %15184 = vrot.lane.b32.xlu0 %v15183_v14, %s16599_s20  ;;  %v14397_v60 = vpop.f32.mrb[7].mxu0 }
 0xac6   : > { %v9798_v40 = vpop.f32.mrb[20].mxu1  ;;  %v15112_v60 = vunpack.i.h.bf16 %v15110_v30 }
 0xac7   : > { %v15178_v51 = vpack.i.bf16 %v9798_v40, %v9752_v56  ;;  %v14402_v24 = vpop.f32.mrb[21].mxu1  ;;  %v15102_v56 = vunpack.i.h.bf16 %v15100_v43  ;;  %v15111_v40 = vunpack.i.l.bf16 %v15110_v30 }
 0xac8   : > { %v9801_v32 = vpop.f32.mrb[22].mxu1 }
 0xac9   : > { %v14403_v16 = vpop.f32.mrb[23].mxu1  ;;  %15194 = vrot.lane.b32.xlu0 %v22078_v46, %s16600_s14  ;;  %15179 = vrot.lane.b32.xlu1 %v15178_v51, %s16601_s9  ;;  %v10183_v39 = vsel %vm3137_vm5, %v19809_v57, %v15102_v56  ;;  %v10182_v51 = vsel %vm3137_vm5, %v19805_v13, %v15101_v62 }
 0xaca   : > { %v9844_v17 = vpop.f32.mrb[8].mxu0  ;;  %v10200_v16 = vsel %vm10196_vm9, %v10183_v39, %v15112_v60  ;;  %v10199_v46 = vsel %vm10196_vm9, %v10182_v51, %v15111_v40 }
 0xacb   : > { %v14408_v42 = vpop.f32.mrb[9].mxu0 }
 0xacc   : > { %v9847_v53 = vpop.f32.mrb[10].mxu0 }
 0xacd   : > { %15189 = vrot.lane.b32.xlu1 %v22079_v47, %s16599_s20  ;;  %v14409_v15 = vpop.f32.mrb[11].mxu0 }
 0xace   : > { %v9890_v14 = vpop.f32.mrb[24].mxu1 }
 0xacf   : > { %v15203_v1 = vpack.i.bf16 %v9890_v14, %v9844_v17  ;;  %v14414_v54 = vpop.f32.mrb[25].mxu1 }
 0xad0   : > { %v9893_v63 = vpop.f32.mrb[26].mxu1 }
 0xad1   : > { %v14415_v55 = vpop.f32.mrb[27].mxu1  ;;  %15199 = vrot.lane.b32.xlu1 %v22080_v36, %s16600_s14  ;;  %15204 = vrot.lane.b32.xlu0 %v15203_v1, %s16601_s9 }
 0xad8   : > { %v9982_v9 = vpop.f32.mrb[28].mxu1 }
 0xad9   : > { %v14426_v41 = vpop.f32.mrb[29].mxu1 }
 0xada   : > { %v9985_v29 = vpop.f32.mrb[30].mxu1 }
 0xadb   : > { %v9936_v0 = vpop.f32.mrb[12].mxu0  ;;  %v14427_v50 = vpop.f32.mrb[31].mxu1 }
 0xadc   : > { %v15208_v25 = vpack.i.bf16 %v9982_v9, %v9936_v0  ;;  %v14420_v38 = vpop.f32.mrb[13].mxu0 }
 0xadd   : > { %v9939_v44 = vpop.f32.mrb[14].mxu0 }
 0xade   : > { %15209 = vrot.lane.b32.xlu1 %v15208_v25, %s16601_s9  ;;  %v14421_v45 = vpop.f32.mrb[15].mxu0 }
 0xb13   : > { %v15115_v22 = vpop.permute.xlu0 %15114 }
 0xb14   : > { %v15117_v3 = vunpack.i.h.bf16 %v15115_v22  ;;  %v15116_v8 = vunpack.i.l.bf16 %v15115_v22 }
 0xb16   : > { %v10215_v10 = vsel %vm10213_vm10, %v10198_v34, %v15117_v3  ;;  %v10214_v5 = vsel %vm10213_vm10, %v10197_v37, %v15116_v8 }
 0xb17   : > { %v10230_v19 = vpack.c.bf16 %v10215_v10, %v10214_v5  ;;  %v15125_v49 = vpop.permute.xlu0 %15124 }
 0xb18   : > { %v15127_v15 = vunpack.i.h.bf16 %v15125_v49  ;;  %v15126_v14 = vunpack.i.l.bf16 %v15125_v49 }
 0xb19   : > { %14436 = vmatprep.mubr.msk.bf16.mxu0 %vm1831_vm3, %v10230_v19 }
 0xb1a   : > { %v10185_v63 = vsel %vm3137_vm5, %v19816_v61, %v15127_v15  ;;  %v10184_v55 = vsel %vm3137_vm5, %v19811_v52, %v15126_v14 }
 0xb1b   : > { %v15120_v6 = vpop.permute.xlu1 %15119  ;;  %v15135_v17 = vpop.permute.xlu0 %15134 }
 0xb1c   : > { %v15122_v24 = vunpack.i.h.bf16 %v15120_v6  ;;  %v15121_v32 = vunpack.i.l.bf16 %v15120_v6  ;;  %v15137_v54 = vunpack.i.h.bf16 %v15135_v17  ;;  %v15136_v57 = vunpack.i.l.bf16 %v15135_v17 }
 0xb1e   : > { %v10217_v42 = vsel %vm10213_vm10, %v10200_v16, %v15122_v24  ;;  %v10216_v53 = vsel %vm10213_vm10, %v10199_v46, %v15121_v32  ;;  %v10201_v41 = vsel %vm10196_vm9, %v10184_v55, %v15136_v57  ;;  %v10202_v29 = vsel %vm10196_vm9, %v10185_v63, %v15137_v54 }
 0xb1f   : > { %v10231_v47 = vpack.c.bf16 %v10217_v42, %v10216_v53  ;;  %v15130_v1 = vpop.permute.xlu1 %15129 }
 0xb20   : > { %v15132_v44 = vunpack.i.h.bf16 %v15130_v1  ;;  %v15131_v45 = vunpack.i.l.bf16 %v15130_v1 }
 0xb21   : > { %14437 = vmatmul.mubr.msk.bf16.vlgmr.msra.gmra.mrb[16].mxu0 %vm1831_vm3, %v10231_v47 }
 0xb22   : > { %v10187_v33 = vsel %vm3137_vm5, %v19829_v35, %v15132_v44  ;;  %v10186_v30 = vsel %vm3137_vm5, %v19818_v59, %v15131_v45 }
 0xb23   : > { %v15145_v13 = vpop.permute.xlu0 %15144  ;;  %v15140_v0 = vpop.permute.xlu1 %15139 }
 0xb24   : > { %v15147_v36 = vunpack.i.h.bf16 %v15145_v13  ;;  %v15146_v9 = vunpack.i.l.bf16 %v15145_v13  ;;  %v15142_v58 = vunpack.i.h.bf16 %v15140_v0  ;;  %v15141_v61 = vunpack.i.l.bf16 %v15140_v0 }
 0xb26   : > { %v10219_v50 = vsel %vm10213_vm10, %v10202_v29, %v15147_v36  ;;  %v10218_v25 = vsel %vm10213_vm10, %v10201_v41, %v15146_v9  ;;  %v10203_v31 = vsel %vm10196_vm9, %v10186_v30, %v15141_v61  ;;  %v10204_v28 = vsel %vm10196_vm9, %v10187_v33, %v15142_v58 }
 0xb27   : > { %v10232_v38 = vpack.c.bf16 %v10219_v50, %v10218_v25  ;;  %v15155_v43 = vpop.permute.xlu0 %15154 }
 0xb28   : > { %v15157_v8 = vunpack.i.h.bf16 %v15155_v43  ;;  %v15156_v34 = vunpack.i.l.bf16 %v15155_v43 }
 0xb29   : > { %14440 = vmatprep.mubr.msk.bf16.mxu0 %vm1831_vm3, %v10232_v38 }
 0xb2a   : > { %v10189_v5 = vsel %vm3137_vm5, %v19845_v2, %v15157_v8  ;;  %v10188_v19 = vsel %vm3137_vm5, %v19831_v21, %v15156_v34  ;;  %v20219_v34 = vld [vmem:[%s22081_s2] ss:$0 sm:$0xff] }
 0xb2b   : > { %v15150_v52 = vpop.permute.xlu1 %15149  ;;  %v15165_v22 = vpop.permute.xlu0 %15164 }
 0xb2c   : > { %v15152_v27 = vunpack.i.h.bf16 %v15150_v52  ;;  %v15151_v18 = vunpack.i.l.bf16 %v15150_v52  ;;  %v15167_v10 = vunpack.i.h.bf16 %v15165_v22  ;;  %v15166_v35 = vunpack.i.l.bf16 %v15165_v22 }
 0xb2e   : > { %v10221_v23 = vsel %vm10213_vm10, %v10204_v28, %v15152_v27  ;;  %v10220_v11 = vsel %vm10213_vm10, %v10203_v31, %v15151_v18  ;;  %v10205_v49 = vsel %vm10196_vm9, %v10188_v19, %v15166_v35  ;;  %v10206_v60 = vsel %vm10196_vm9, %v10189_v5, %v15167_v10  ;;  %v15706_v10 = vld [vmem:[#allocation2] sm:$0xff] }
 0xb2f   : > { %v10233_v3 = vpack.c.bf16 %v10221_v23, %v10220_v11  ;;  %v15160_v37 = vpop.permute.xlu1 %15159 }
 0xb30   : > { %v15162_v24 = vunpack.i.h.bf16 %v15160_v37  ;;  %v15161_v32 = vunpack.i.l.bf16 %v15160_v37  ;;  %v15705_v37 = vld [vmem:[#allocation2 + $0x10] sm:$0xff] }
 0xb31   : > { %14441 = vmatmul.mubr.msk.bf16.gmra.mrb[20].mxu0 %vm1831_vm3, %v10233_v3 }
 0xb32   : > { %v10191_v17 = vsel %vm3137_vm5, %v19863_v26, %v15162_v24  ;;  %v10190_v42 = vsel %vm3137_vm5, %v19847_v7, %v15161_v32 }
 0xb33   : > { %v15175_v59 = vpop.permute.xlu0 %15174  ;;  %v15170_v40 = vpop.permute.xlu1 %15169 }
 0xb34   : > { %v15177_v56 = vunpack.i.h.bf16 %v15175_v59  ;;  %v15176_v62 = vunpack.i.l.bf16 %v15175_v59  ;;  %v15172_v46 = vunpack.i.h.bf16 %v15170_v40  ;;  %v15171_v2 = vunpack.i.l.bf16 %v15170_v40 }
 0xb36   : > { %v10223_v6 = vsel %vm10213_vm10, %v10206_v60, %v15177_v56  ;;  %v10222_v39 = vsel %vm10213_vm10, %v10205_v49, %v15176_v62  ;;  %v10207_v15 = vsel %vm10196_vm9, %v10190_v42, %v15171_v2  ;;  %v10208_v14 = vsel %vm10196_vm9, %v10191_v17, %v15172_v46  ;;  %v15707_v56 = vld [vmem:[#allocation2 + $0x8] sm:$0xff]  ;;  %v15708_v60 = vld [vmem:[#allocation2 + $0x18] sm:$0xff]  ;;  %v15710_v42 = vld [vmem:[#allocation2 + $0x20] sm:$0xff] }
 0xb37   : > { %v10234_v51 = vpack.c.bf16 %v10223_v6, %v10222_v39  ;;  %v15185_v16 = vpop.permute.xlu0 %15184 }
 0xb38   : > { %v15187_v63 = vunpack.i.h.bf16 %v15185_v16  ;;  %v15186_v55 = vunpack.i.l.bf16 %v15185_v16 }
 0xb39   : > { %14444 = vmatprep.mubr.msk.bf16.mxu0 %vm1831_vm3, %v10234_v51 }
 0xb3a   : > { %v10193_v7 = vsel %vm3137_vm5, %v19883_v4, %v15187_v63  ;;  %v10192_v41 = vsel %vm3137_vm5, %v19865_v12, %v15186_v55 }
 0xb3b   : > { %v15180_v21 = vpop.permute.xlu1 %15179  ;;  %v15195_v1 = vpop.permute.xlu0 %15194 }
 0xb3c   : > { %v15182_v53 = vunpack.i.h.bf16 %v15180_v21  ;;  %v15181_v47 = vunpack.i.l.bf16 %v15180_v21  ;;  %v15197_v36 = vunpack.i.h.bf16 %v15195_v1  ;;  %v15196_v9 = vunpack.i.l.bf16 %v15195_v1  ;;  %v15709_v21 = vld [vmem:[#allocation2 + $0x30] sm:$0xff]  ;;  %v15711_v1 = vld [vmem:[#allocation2 + $0x38] sm:$0xff] }
 0xb3e   : > { %v10225_v54 = vsel %vm10213_vm10, %v10208_v14, %v15182_v53  ;;  %v10224_v57 = vsel %vm10213_vm10, %v10207_v15, %v15181_v47  ;;  %v10209_v25 = vsel %vm10196_vm9, %v10192_v41, %v15196_v9  ;;  %v10210_v38 = vsel %vm10196_vm9, %v10193_v7, %v15197_v36 }
 0xb3f   : > { %v10235_v13 = vpack.c.bf16 %v10225_v54, %v10224_v57  ;;  %v15190_v29 = vpop.permute.xlu1 %15189  ;;  %v15712_v57 = vld [vmem:[#allocation2 + $0x28] sm:$0xff] }
 0xb40   : > { %v15192_v61 = vunpack.i.h.bf16 %v15190_v29  ;;  %v15191_v4 = vunpack.i.l.bf16 %v15190_v29 }
 0xb41   : > { %14445 = vmatmul.mubr.msk.bf16.gmra.mrb[24].mxu0 %vm1831_vm3, %v10235_v13 }
 0xb42   : > { %v10195_v30 = vsel %vm3137_vm5, %v19911_v48, %v15192_v61  ;;  %v10194_v27 = vsel %vm3137_vm5, %v19885_v20, %v15191_v4  ;;  %v15715_v61 = vld [vmem:[#allocation2 + $0x58] sm:$0xff] }
 0xb43   : > { %v15205_v26 = vpop.permute.xlu0 %15204  ;;  %v15200_v58 = vpop.permute.xlu1 %15199 }
 0xb44   : > { %v15207_v0 = vunpack.i.h.bf16 %v15205_v26  ;;  %v15206_v50 = vunpack.i.l.bf16 %v15205_v26  ;;  %v15202_v52 = vunpack.i.h.bf16 %v15200_v58  ;;  %v15201_v12 = vunpack.i.l.bf16 %v15200_v58 }
 0xb46   : > { %v10227_v44 = vsel %vm10213_vm10, %v10210_v38, %v15207_v0  ;;  %v10226_v45 = vsel %vm10213_vm10, %v10209_v25, %v15206_v50  ;;  %v10211_v28 = vsel %vm10196_vm9, %v10194_v27, %v15201_v12  ;;  %v10212_v22 = vsel %vm10196_vm9, %v10195_v30, %v15202_v52  ;;  %v15713_v50 = vld [vmem:[#allocation2 + $0x50] sm:$0xff]  ;;  %v15714_v38 = vld [vmem:[#allocation2 + $0x40] sm:$0xff]  ;;  %v15716_v52 = vld [vmem:[#allocation2 + $0x48] sm:$0xff] }
 0xb47   : > { %v10236_v43 = vpack.c.bf16 %v10227_v44, %v10226_v45 }
 0xb49   : > { %14448 = vmatprep.mubr.msk.bf16.mxu0 %vm1831_vm3, %v10236_v43 }
 0xb50   : > { %v15210_v33 = vpop.permute.xlu1 %15209 }
 0xb51   : > { %v15212_v18 = vunpack.i.h.bf16 %v15210_v33  ;;  %v15211_v31 = vunpack.i.l.bf16 %v15210_v33 }
 0xb53   : > { %v10229_v23 = vsel %vm10213_vm10, %v10212_v22, %v15212_v18  ;;  %v10228_v11 = vsel %vm10213_vm10, %v10211_v28, %v15211_v31 }
 0xb54   : > { %v10237_v3 = vpack.c.bf16 %v10229_v23, %v10228_v11 }
 0xb56   : > { %14449 = vmatmul.mubr.msk.bf16.gmra.mrb[28].mxu0 %vm1831_vm3, %v10237_v3  ;;  %v15717_v3 = vld [vmem:[#allocation2 + $0x70] sm:$0xff] }
 0xbf4   : > { %v14438_v8 = vpop.f32.mrb[16].mxu0 }
 0xbf5   : > { %v10328_v48 = vpop.f32.mrb[17].mxu0  ;;  %v10393_v20 = vadd.f32 %v15705_v37, %v14438_v8 }
 0xbf6   : > { %v10391_v35 = vadd.f32 %v15706_v10, %v10328_v48  ;;  %v14439_v59 = vpop.f32.mrb[18].mxu0  ;;  %v15718_v48 = vld [vmem:[#allocation2 + $0x60] sm:$0xff] }
 0xbf7   : > { %v10331_v5 = vpop.f32.mrb[19].mxu0  ;;  %v20225_v49 = vadd.f32 %v20219_v34, %v10393_v20  ;;  %v10394_v40 = vadd.f32 %v15708_v60, %v14439_v59  ;;  %v15719_v59 = vld [vmem:[#allocation2 + $0x78] sm:$0xff] }
 0xbf8   : > { %v20222_v19 = vadd.f32 %v20219_v34, %v10391_v35  ;;  %v10392_v62 = vadd.f32 %v15707_v56, %v10331_v5  ;;  %v15720_v56 = vld [vmem:[#allocation2 + $0x68] sm:$0xff] }
 0xbf9   : > { %22083 = vst [vmem:[#allocation72_spill] sm:$0xff] %v20225_v49  ;;  %v20235_v24 = vadd.f32 %v20219_v34, %v10394_v40  ;;  %v10438_v32 = vsel %vm1831_vm3, %v20225_v49, 0.0 }
 0xbfa   : > { %22082 = vst [vmem:[#allocation68_spill] sm:$0xff] %v20222_v19  ;;  %v20228_v6 = vadd.f32 %v20219_v34, %v10392_v62  ;;  %v10432_v39 = vsel %vm1831_vm3, %v20222_v19, 0.0 }
 0xbfb   : > { %10433 = vadd.xlane.f32.xlu0 %v10432_v39  ;;  %22085 = vst [vmem:[#allocation92_spill] sm:$0xff] %v20235_v24  ;;  %v10441_v16 = vsel %vm1831_vm3, %v20235_v24, 0.0 }
 0xbfc   : > { %22084 = vst [vmem:[#allocation65_spill] sm:$0xff] %v20228_v6  ;;  %v10435_v51 = vsel %vm1831_vm3, %v20228_v6, 0.0 }
 0xbfd   : > { %10436 = vadd.xlane.f32.xlu1 %v10435_v51 }
 0xbff   : > { %10439 = vadd.xlane.f32.xlu0 %v10438_v32 }
 0xc03   : > { %10442 = vadd.xlane.f32.xlu0 %v10441_v16 }
 0xc04   : > { %v14442_v46 = vpop.f32.mrb[20].mxu0 }
 0xc05   : > { %v10344_v2 = vpop.f32.mrb[21].mxu0  ;;  %v10397_v17 = vadd.f32 %v15709_v21, %v14442_v46 }
 0xc06   : > { %v10395_v53 = vadd.f32 %v15710_v42, %v10344_v2  ;;  %v14443_v47 = vpop.f32.mrb[22].mxu0 }
 0xc07   : > { %v10347_v15 = vpop.f32.mrb[23].mxu0  ;;  %v10398_v54 = vadd.f32 %v15711_v1, %v14443_v47  ;;  %v20245_v63 = vadd.f32 %v20219_v34, %v10397_v17 }
 0xc08   : > { %v20242_v14 = vadd.f32 %v20219_v34, %v10395_v53  ;;  %v10396_v13 = vadd.f32 %v15712_v57, %v10347_v15 }
 0xc09   : > { %22087 = vst [vmem:[#allocation97_spill] sm:$0xff] %v20245_v63  ;;  %v20253_v9 = vadd.f32 %v20219_v34, %v10398_v54  ;;  %v10450_v7 = vsel %vm1831_vm3, %v20245_v63, 0.0 }
 0xc0a   : > { %22086 = vst [vmem:[#allocation64_spill] sm:$0xff] %v20242_v14  ;;  %v20248_v55 = vadd.f32 %v20219_v34, %v10396_v13  ;;  %v10444_v36 = vsel %vm1831_vm3, %v20242_v14, 0.0 }
 0xc0b   : > { %10445 = vadd.xlane.f32.xlu0 %v10444_v36  ;;  %22089 = vst [vmem:[#allocation91_spill] sm:$0xff] %v20253_v9  ;;  %v10453_v41 = vsel %vm1831_vm3, %v20253_v9, 0.0 }
 0xc0c   : > { %22088 = vst [vmem:[#allocation69_spill] sm:$0xff] %v20248_v55  ;;  %v10447_v26 = vsel %vm1831_vm3, %v20248_v55, 0.0 }
 0xc0d   : > { %10448 = vadd.xlane.f32.xlu1 %v10447_v26 }
 0xc0f   : > { %10451 = vadd.xlane.f32.xlu0 %v10450_v7 }
 0xc11   : > { %10454 = vadd.xlane.f32.xlu1 %v10453_v41 }
 0xc14   : > { %v14446_v29 = vpop.f32.mrb[24].mxu0 }
 0xc15   : > { %v10360_v0 = vpop.f32.mrb[25].mxu0  ;;  %v10401_v25 = vadd.f32 %v15713_v50, %v14446_v29 }
 0xc16   : > { %v10399_v44 = vadd.f32 %v15714_v38, %v10360_v0  ;;  %v14447_v45 = vpop.f32.mrb[26].mxu0 }
 0xc17   : > { %v10363_v43 = vpop.f32.mrb[27].mxu0  ;;  %v10402_v4 = vadd.f32 %v15715_v61, %v14447_v45  ;;  %v20265_v33 = vadd.f32 %v20219_v34, %v10401_v25 }
 0xc18   : > { %v20262_v58 = vadd.f32 %v20219_v34, %v10399_v44  ;;  %v10400_v12 = vadd.f32 %v15716_v52, %v10363_v43 }
 0xc19   : > { %22091 = vst [vmem:[#allocation94_spill] sm:$0xff] %v20265_v33  ;;  %v20273_v18 = vadd.f32 %v20219_v34, %v10402_v4  ;;  %v10462_v28 = vsel %vm1831_vm3, %v20265_v33, 0.0 }
 0xc1a   : > { %22090 = vst [vmem:[#allocation90_spill] sm:$0xff] %v20262_v58  ;;  %v20268_v30 = vadd.f32 %v20219_v34, %v10400_v12  ;;  %v10456_v27 = vsel %vm1831_vm3, %v20262_v58, 0.0 }
 0xc1b   : > { %10457 = vadd.xlane.f32.xlu0 %v10456_v27  ;;  %22093 = vst [vmem:[#allocation93_spill] sm:$0xff] %v20273_v18  ;;  %v10465_v22 = vsel %vm1831_vm3, %v20273_v18, 0.0 }
 0xc1c   : > { %22092 = vst [vmem:[#allocation96_spill] sm:$0xff] %v20268_v30  ;;  %v10459_v31 = vsel %vm1831_vm3, %v20268_v30, 0.0 }
 0xc1d   : > { %10460 = vadd.xlane.f32.xlu1 %v10459_v31 }
 0xc1f   : > { %10463 = vadd.xlane.f32.xlu0 %v10462_v28 }
 0xc21   : > { %10466 = vadd.xlane.f32.xlu1 %v10465_v22 }
 0xc29   : > { %v14450_v23 = vpop.f32.mrb[28].mxu0 }
 0xc2a   : > { %v10376_v11 = vpop.f32.mrb[29].mxu0  ;;  %v10405_v8 = vadd.f32 %v15717_v3, %v14450_v23 }
 0xc2b   : > { %v10403_v37 = vadd.f32 %v15718_v48, %v10376_v11  ;;  %v14451_v20 = vpop.f32.mrb[30].mxu0 }
 0xc2c   : > { %v10379_v10 = vpop.f32.mrb[31].mxu0  ;;  %v10406_v5 = vadd.f32 %v15719_v59, %v14451_v20  ;;  %v20285_v60 = vadd.f32 %v20219_v34, %v10405_v8 }
 0xc2d   : > { %v20282_v35 = vadd.f32 %v20219_v34, %v10403_v37  ;;  %v10404_v62 = vadd.f32 %v15720_v56, %v10379_v10 }
 0xc2e   : > { %22095 = vst [vmem:[#allocation95_spill] sm:$0xff] %v20285_v60  ;;  %v20293_v51 = vadd.f32 %v20219_v34, %v10406_v5  ;;  %v10474_v16 = vsel %vm1831_vm3, %v20285_v60, 0.0 }
 0xc2f   : > { %22094 = vst [vmem:[#allocation98_spill] sm:$0xff] %v20282_v35  ;;  %v20288_v40 = vadd.f32 %v20219_v34, %v10404_v62  ;;  %v10468_v39 = vsel %vm1831_vm3, %v20282_v35, 0.0 }
 0xc30   : > { %10469 = vadd.xlane.f32.xlu0 %v10468_v39  ;;  %22097 = vst [vmem:[#allocation99_spill] sm:$0xff] %v20293_v51  ;;  %v10477_v46 = vsel %vm1831_vm3, %v20293_v51, 0.0 }
 0xc31   : > { %22096 = vst [vmem:[#allocation101_spill] sm:$0xff] %v20288_v40  ;;  %v10471_v32 = vsel %vm1831_vm3, %v20288_v40, 0.0 }
 0xc32   : > { %10472 = vadd.xlane.f32.xlu1 %v10471_v32 }
 0xc34   : > { %10475 = vadd.xlane.f32.xlu0 %v10474_v16 }
 0xc36   : > { %10478 = vadd.xlane.f32.xlu1 %v10477_v46 }
 0xc88   : > { %v10434_v2 = vpop.xlane.xlu0 %10433 }
 0xc89   : > { %v10480_v21 = vmul.f32 0.015625, %v10434_v2 }
 0xc8a   : > { %v10437_v17 = vpop.xlane.xlu1 %10436 }
 0xc8b   : > { %v20302_v42 = vsub.f32 %v20222_v19, %v10480_v21  ;;  %v10481_v34 = vmul.f32 0.015625, %v10437_v17 }
 0xc8c   : > { %v10440_v53 = vpop.xlane.xlu0 %10439 }
 0xc8d   : > { %v20305_v47 = vsub.f32 %v20228_v6, %v10481_v34  ;;  %v10482_v15 = vmul.f32 0.015625, %v10440_v53  ;;  %v10512_v1 = vmul.f32 %v20302_v42, %v20302_v42 }
 0xc8f   : > { %v20310_v54 = vsub.f32 %v20225_v49, %v10482_v15  ;;  %v10528_v57 = vsel %vm1831_vm3, %v10512_v1, 0.0  ;;  %v10513_v13 = vmul.f32 %v20305_v47, %v20305_v47  ;;  %v15231_v1 = vld [vmem:[%s17566_s11 + $0x4] ss:$8 sps:$4 sm:$0xff]  }
 0xc90   : > { %v10443_v36 = vpop.xlane.xlu0 %10442  ;;  %10529 = vadd.xlane.f32.xlu0 %v10528_v57  ;;  %v15229_v57 = vld [vmem:[%s17566_s11] ss:$8 sps:$4 sm:$0xff]   ;;  %10776 = vmatprep.subr.bf16.mxu1 %v15231_v1 }
 0xc91   : > { %v10483_v26 = vmul.f32 0.015625, %v10443_v36  ;;  %v10531_v7 = vsel %vm1831_vm3, %v10513_v13, 0.0  ;;  %v10514_v41 = vmul.f32 %v20310_v54, %v20310_v54  ;;  %10777 = vmatpush1.bf16.msra.mxu1 %v15229_v57 }
 0xc92   : > { %10532 = vadd.xlane.f32.xlu1 %v10531_v7 }
 0xc93   : > { %v20319_v29 = vsub.f32 %v20235_v24, %v10483_v26  ;;  %v10534_v0 = vsel %vm1831_vm3, %v10514_v41, 0.0 }
 0xc94   : > { %10535 = vadd.xlane.f32.xlu0 %v10534_v0  ;;  %v15234_v0 = vld [vmem:[%s17566_s11 + $0x14] ss:$8 sps:$4 sm:$0xff]  }
 0xc95   : > { %v10515_v50 = vmul.f32 %v20319_v29, %v20319_v29  ;;  %10778 = vmatprep.subr.bf16.mxu1 %v15234_v0 }
 0xc97   : > { %v10537_v25 = vsel %vm1831_vm3, %v10515_v50, 0.0  ;;  %v15232_v50 = vld [vmem:[%s17566_s11 + $0x10] ss:$8 sps:$4 sm:$0xff]  }
 0xc98   : > { %v10446_v38 = vpop.xlane.xlu0 %10445  ;;  %10538 = vadd.xlane.f32.xlu1 %v10537_v25  ;;  %10779 = vmatpush1.bf16.msra.mxu1 %v15232_v50 }
 0xc99   : > { %v10484_v44 = vmul.f32 0.015625, %v10446_v38  ;;  %v15237_v38 = vld [vmem:[%s17566_s11 + $0x24] ss:$8 sps:$4 sm:$0xff]  }
 0xc9a   : > { %v10449_v45 = vpop.xlane.xlu1 %10448  ;;  %10780 = vmatprep.subr.bf16.mxu1 %v15237_v38 }
 0xc9b   : > { %v20326_v43 = vsub.f32 %v20242_v14, %v10484_v44  ;;  %v10485_v61 = vmul.f32 0.015625, %v10449_v45  ;;  %v15235_v44 = vld [vmem:[%s17566_s11 + $0x20] ss:$8 sps:$4 sm:$0xff]   ;;  %v15240_v45 = vld [vmem:[%s17566_s11 + $0x34] ss:$8 sps:$4 sm:$0xff]  }
 0xc9c   : > { %v10452_v4 = vpop.xlane.xlu0 %10451  ;;  %10781 = vmatpush1.bf16.msra.mxu1 %v15235_v44 }
 0xc9d   : > { %v20329_v52 = vsub.f32 %v20248_v55, %v10485_v61  ;;  %v10486_v12 = vmul.f32 0.015625, %v10452_v4  ;;  %v10516_v27 = vmul.f32 %v20326_v43, %v20326_v43  ;;  %v15238_v4 = vld [vmem:[%s17566_s11 + $0x30] ss:$8 sps:$4 sm:$0xff]   ;;  %10782 = vmatprep.subr.bf16.mxu1 %v15240_v45  ;;  %s22098_s11 = scalar_lea.vmem [#allocation27], %s17515_s29 }
 0xc9e   : > { %v10455_v31 = vpop.xlane.xlu1 %10454  ;;  %v20408_v45 = vld [vmem:[%s22098_s11] ss:$0 sm:$0xff] }
 0xc9f   : > { %v20334_v28 = vsub.f32 %v20245_v63, %v10486_v12  ;;  %v10487_v22 = vmul.f32 0.015625, %v10455_v31  ;;  %v10540_v23 = vsel %vm1831_vm3, %v10516_v27, 0.0  ;;  %v10517_v11 = vmul.f32 %v20329_v52, %v20329_v52 }
 0xca0   : > { %10541 = vadd.xlane.f32.xlu0 %v10540_v23  ;;  %10783 = vmatpush1.bf16.msra.mxu1 %v15238_v4 }
 0xca1   : > { %v20340_v3 = vsub.f32 %v20253_v9, %v10487_v22  ;;  %v10543_v8 = vsel %vm1831_vm3, %v10517_v11, 0.0  ;;  %v10518_v48 = vmul.f32 %v20334_v28, %v20334_v28  ;;  %v16602_v11 = vmov 0  }
 0xca2   : > { %10544 = vadd.xlane.f32.xlu1 %v10543_v8  ;;  %10808 = vmatprep.mubr.bf16.mxu1 %v16602_v11 }
 0xca3   : > { %v10546_v37 = vsel %vm1831_vm3, %v10518_v48, 0.0  ;;  %v10519_v20 = vmul.f32 %v20340_v3, %v20340_v3 }
 0xca4   : > { %10547 = vadd.xlane.f32.xlu0 %v10546_v37 }
 0xca5   : > { %v10549_v10 = vsel %vm1831_vm3, %v10519_v20, 0.0 }
 0xca6   : > { %10550 = vadd.xlane.f32.xlu1 %v10549_v10 }
 0xca8   : > { %v10458_v59 = vpop.xlane.xlu0 %10457 }
 0xca9   : > { %v10488_v5 = vmul.f32 0.015625, %v10458_v59 }
 0xcaa   : > { %v10461_v56 = vpop.xlane.xlu1 %10460 }
 0xcab   : > { %v20350_v62 = vsub.f32 %v20262_v58, %v10488_v5  ;;  %v10489_v39 = vmul.f32 0.015625, %v10461_v56 }
 0xcac   : > { %v10464_v32 = vpop.xlane.xlu0 %10463 }
 0xcad   : > { %v20353_v16 = vsub.f32 %v20268_v30, %v10489_v39  ;;  %v10490_v46 = vmul.f32 0.015625, %v10464_v32  ;;  %v10520_v2 = vmul.f32 %v20350_v62, %v20350_v62 }
 0xcae   : > { %v10467_v21 = vpop.xlane.xlu1 %10466 }
 0xcaf   : > { %v20358_v17 = vsub.f32 %v20265_v33, %v10490_v46  ;;  %v10491_v34 = vmul.f32 0.015625, %v10467_v21  ;;  %v10552_v53 = vsel %vm1831_vm3, %v10520_v2, 0.0  ;;  %v10521_v15 = vmul.f32 %v20353_v16, %v20353_v16 }
 0xcb0   : > { %10553 = vadd.xlane.f32.xlu0 %v10552_v53 }
 0xcb1   : > { %v20366_v13 = vsub.f32 %v20273_v18, %v10491_v34  ;;  %v10555_v36 = vsel %vm1831_vm3, %v10521_v15, 0.0  ;;  %v10522_v26 = vmul.f32 %v20358_v17, %v20358_v17 }
 0xcb2   : > { %10556 = vadd.xlane.f32.xlu1 %v10555_v36 }
 0xcb3   : > { %v10558_v7 = vsel %vm1831_vm3, %v10522_v26, 0.0  ;;  %v10523_v41 = vmul.f32 %v20366_v13, %v20366_v13 }
 0xcb4   : > { %10559 = vadd.xlane.f32.xlu0 %v10558_v7 }
 0xcb5   : > { %v10561_v25 = vsel %vm1831_vm3, %v10523_v41, 0.0 }
 0xcb6   : > { %10562 = vadd.xlane.f32.xlu1 %v10561_v25 }
 0xcbd   : > { %v10470_v61 = vpop.xlane.xlu0 %10469 }
 0xcbe   : > { %v10492_v12 = vmul.f32 0.015625, %v10470_v61 }
 0xcbf   : > { %v10473_v27 = vpop.xlane.xlu1 %10472 }
 0xcc0   : > { %v20382_v31 = vsub.f32 %v20282_v35, %v10492_v12  ;;  %v10493_v22 = vmul.f32 0.015625, %v10473_v27 }
 0xcc1   : > { %v10476_v23 = vpop.xlane.xlu0 %10475 }
 0xcc2   : > { %v20386_v8 = vsub.f32 %v20288_v40, %v10493_v22  ;;  %v10494_v48 = vmul.f32 0.015625, %v10476_v23  ;;  %v10524_v37 = vmul.f32 %v20382_v31, %v20382_v31 }
 0xcc3   : > { %v10479_v20 = vpop.xlane.xlu1 %10478 }
 0xcc4   : > { %v20391_v10 = vsub.f32 %v20285_v60, %v10494_v48  ;;  %v10495_v59 = vmul.f32 0.015625, %v10479_v20  ;;  %v10564_v5 = vsel %vm1831_vm3, %v10524_v37, 0.0  ;;  %v10525_v56 = vmul.f32 %v20386_v8, %v20386_v8  ;;  %v20415_v20 = vld [vmem:[%s1257_s30] ss:$0 sm:$0xff] }
 0xcc5   : > { %10565 = vadd.xlane.f32.xlu0 %v10564_v5 }
 0xcc6   : > { %v20397_v39 = vsub.f32 %v20293_v51, %v10495_v59  ;;  %v10567_v32 = vsel %vm1831_vm3, %v10525_v56, 0.0  ;;  %v10526_v46 = vmul.f32 %v20391_v10, %v20391_v10 }
 0xcc7   : > { %10568 = vadd.xlane.f32.xlu1 %v10567_v32 }
 0xcc8   : > { %v10570_v2 = vsel %vm1831_vm3, %v10526_v46, 0.0  ;;  %v10527_v21 = vmul.f32 %v20397_v39, %v20397_v39 }
 0xcc9   : > { %10571 = vadd.xlane.f32.xlu0 %v10570_v2 }
 0xcca   : > { %v10573_v34 = vsel %vm1831_vm3, %v10527_v21, 0.0 }
 0xccb   : > { %10574 = vadd.xlane.f32.xlu1 %v10573_v34 }
 0xd1d   : > { %v10530_v53 = vpop.xlane.xlu0 %10529 }
 0xd1e   : > { %v10576_v15 = vmul.f32 0.015625, %v10530_v53 }
 0xd1f   : > { %v10533_v1 = vpop.xlane.xlu1 %10532 }
 0xd20   : > { %v10592_v57 = vadd.f32 1e-06, %v10576_v15  ;;  %v10577_v36 = vmul.f32 0.015625, %v10533_v1 }
 0xd21   : > { %v10536_v26 = vpop.xlane.xlu0 %10535 }
 0xd22   : > { %15545 = vrsqrt.f32 %v10592_v57  ;;  %v10593_v7 = vadd.f32 1e-06, %v10577_v36  ;;  %v10578_v41 = vmul.f32 0.015625, %v10536_v26 }
 0xd24   : > { %15547 = vrsqrt.f32 %v10593_v7  ;;  %v10594_v0 = vadd.f32 1e-06, %v10578_v41 }
 0xd25   : > { %v10539_v50 = vpop.xlane.xlu1 %10538 }
 0xd26   : > { %15549 = vrsqrt.f32 %v10594_v0  ;;  %v10579_v25 = vmul.f32 0.015625, %v10539_v50 }
 0xd28   : > { %v10595_v38 = vadd.f32 1e-06, %v10579_v25 }
 0xd2a   : > { %15551 = vrsqrt.f32 %v10595_v38 }
 0xd2c   : > { %v15546_v44 = vpop.eup %15545 }
 0xd2d   : > { %v10624_v61 = vmul.f32 %v15546_v44, %v20302_v42  ;;  %v10542_v4 = vpop.xlane.xlu0 %10541 }
 0xd2e   : > { %v15548_v12 = vpop.eup %15547  ;;  %v10580_v27 = vmul.f32 0.015625, %v10542_v4 }
 0xd2f   : > { %v10646_v22 = vmul.f32 %v20408_v45, %v10624_v61  ;;  %v10625_v23 = vmul.f32 %v15548_v12, %v20305_v47  ;;  %v10545_v48 = vpop.xlane.xlu1 %10544 }
 0xd30   : > { %v15550_v37 = vpop.eup %15549  ;;  %v10596_v59 = vadd.f32 1e-06, %v10580_v27  ;;  %v10581_v5 = vmul.f32 0.015625, %v10545_v48 }
 0xd31   : > { %v10647_v56 = vmul.f32 %v20408_v45, %v10625_v23  ;;  %v10548_v32 = vpop.xlane.xlu0 %10547  ;;  %v10668_v2 = vadd.f32 %v20415_v20, %v10646_v22  ;;  %v10626_v34 = vmul.f32 %v15550_v37, %v20310_v54 }
 0xd32   : > { %15553 = vrsqrt.f32 %v10596_v59  ;;  %v10597_v46 = vadd.f32 1e-06, %v10581_v5  ;;  %v10582_v42 = vmul.f32 0.015625, %v10548_v32 }
 0xd33   : > { %v10669_v21 = vadd.f32 %v20415_v20, %v10647_v56  ;;  %v10551_v47 = vpop.xlane.xlu1 %10550  ;;  %v10648_v7 = vmul.f32 %v20408_v45, %v10626_v34 }
 0xd34   : > { %v15552_v53 = vpop.eup %15551  ;;  %15555 = vrsqrt.f32 %v10597_v46  ;;  %v10598_v15 = vadd.f32 1e-06, %v10582_v42  ;;  %v10583_v1 = vmul.f32 0.015625, %v10551_v47 }
 0xd35   : > { %v10684_v57 = vpack.c.bf16 %v10669_v21, %v10668_v2  ;;  %v10627_v36 = vmul.f32 %v15552_v53, %v20319_v29  ;;  %v10670_v0 = vadd.f32 %v20415_v20, %v10648_v7 }
 0xd36   : > { %15557 = vrsqrt.f32 %v10598_v15  ;;  %v10599_v26 = vadd.f32 1e-06, %v10583_v1 }
 0xd37   : > { %v10649_v41 = vmul.f32 %v20408_v45, %v10627_v36  ;;  %13170 = vmatmul.mubr.msk.bf16.vlgmr.msra.gmra.mrb[32].mxu1 %vm1831_vm3, %v10684_v57 }
 0xd38   : > { %15559 = vrsqrt.f32 %v10599_v26  ;;  %10818 = vmatprep.mubr.bf16.mxu1 %v16602_v11 }
 0xd39   : > { %v10671_v54 = vadd.f32 %v20415_v20, %v10649_v41 }
 0xd3b   : > { %v10685_v25 = vpack.c.bf16 %v10671_v54, %v10670_v0 }
 0xd3c   : > { %v15554_v50 = vpop.eup %15553 }
 0xd3d   : > { %v10628_v38 = vmul.f32 %v15554_v50, %v20326_v43  ;;  %v10554_v29 = vpop.xlane.xlu0 %10553 }
 0xd3e   : > { %v15556_v44 = vpop.eup %15555  ;;  %v10584_v61 = vmul.f32 0.015625, %v10554_v29 }
 0xd3f   : > { %v10650_v4 = vmul.f32 %v20408_v45, %v10628_v38  ;;  %v10629_v12 = vmul.f32 %v15556_v44, %v20329_v52  ;;  %13171 = vmatmul.mubr.msk.bf16.gmra.mrb[36].mxu1 %vm1831_vm3, %v10685_v25  ;;  %v10557_v27 = vpop.xlane.xlu1 %10556 }
 0xd40   : > { %v15558_v22 = vpop.eup %15557  ;;  %v10600_v23 = vadd.f32 1e-06, %v10584_v61  ;;  %v10585_v48 = vmul.f32 0.015625, %v10557_v27  ;;  %10828 = vmatprep.mubr.bf16.mxu1 %v16602_v11 }
 0xd41   : > { %v10651_v37 = vmul.f32 %v20408_v45, %v10629_v12  ;;  %v10560_v59 = vpop.xlane.xlu0 %10559  ;;  %v10672_v32 = vadd.f32 %v20415_v20, %v10650_v4  ;;  %v10630_v52 = vmul.f32 %v15558_v22, %v20334_v28 }
 0xd42   : > { %v15560_v5 = vpop.eup %15559  ;;  %15561 = vrsqrt.f32 %v10600_v23  ;;  %v10601_v43 = vadd.f32 1e-06, %v10585_v48  ;;  %v10586_v56 = vmul.f32 0.015625, %v10560_v59 }
 0xd43   : > { %v10673_v46 = vadd.f32 %v20415_v20, %v10651_v37  ;;  %v10631_v42 = vmul.f32 %v15560_v5, %v20340_v3  ;;  %v10563_v2 = vpop.xlane.xlu1 %10562  ;;  %v10652_v1 = vmul.f32 %v20408_v45, %v10630_v52 }
 0xd44   : > { %15563 = vrsqrt.f32 %v10601_v43  ;;  %v10602_v21 = vadd.f32 1e-06, %v10586_v56  ;;  %v10587_v34 = vmul.f32 0.015625, %v10563_v2 }
 0xd45   : > { %v10686_v47 = vpack.c.bf16 %v10673_v46, %v10672_v32  ;;  %v10653_v53 = vmul.f32 %v20408_v45, %v10631_v42  ;;  %v10674_v3 = vadd.f32 %v20415_v20, %v10652_v1 }
 0xd46   : > { %15565 = vrsqrt.f32 %v10602_v21  ;;  %v10603_v15 = vadd.f32 1e-06, %v10587_v34 }
 0xd47   : > { %13172 = vmatmul.mubr.msk.bf16.gmra.mrb[40].mxu1 %vm1831_vm3, %v10686_v47  ;;  %v10675_v28 = vadd.f32 %v20415_v20, %v10653_v53 }
 0xd48   : > { %15567 = vrsqrt.f32 %v10603_v15  ;;  %10838 = vmatprep.mubr.bf16.mxu1 %v16602_v11 }
 0xd49   : > { %v10687_v36 = vpack.c.bf16 %v10675_v28, %v10674_v3 }
 0xd4c   : > { %v15562_v57 = vpop.eup %15561 }
 0xd4d   : > { %v10632_v26 = vmul.f32 %v15562_v57, %v20350_v62 }
 0xd4e   : > { %v15564_v7 = vpop.eup %15563 }
 0xd4f   : > { %v10654_v41 = vmul.f32 %v20408_v45, %v10632_v26  ;;  %v10633_v54 = vmul.f32 %v15564_v7, %v20353_v16  ;;  %13173 = vmatmul.mubr.msk.bf16.gmra.mrb[44].mxu1 %vm1831_vm3, %v10687_v36 }
 0xd50   : > { %v15566_v0 = vpop.eup %15565  ;;  %10848 = vmatprep.mubr.bf16.mxu1 %v16602_v11 }
 0xd51   : > { %v10655_v50 = vmul.f32 %v20408_v45, %v10633_v54  ;;  %v10676_v44 = vadd.f32 %v20415_v20, %v10654_v41  ;;  %v10634_v62 = vmul.f32 %v15566_v0, %v20358_v17  ;;  %v15242_v54 = vld [vmem:[%s17577_s13] sm:$0xff]   ;;  %v15244_v0 = vld [vmem:[%s17577_s13 + $0x8] sm:$0xff]  }
 0xd52   : > { %v10566_v25 = vpop.xlane.xlu0 %10565  ;;  %v15568_v38 = vpop.eup %15567 }
 0xd53   : > { %v10588_v29 = vmul.f32 0.015625, %v10566_v25  ;;  %v10677_v61 = vadd.f32 %v20415_v20, %v10655_v50  ;;  %v10635_v4 = vmul.f32 %v15568_v38, %v20366_v13  ;;  %v10656_v5 = vmul.f32 %v20408_v45, %v10634_v62  ;;  %v15246_v50 = vld [vmem:[%s17577_s13 + $0x10] sm:$0xff]   ;;  %v15247_v38 = vld [vmem:[%s17577_s13 + $0x58] sm:$0xff]  }
 0xd54   : > { %v10569_v12 = vpop.xlane.xlu1 %10568 }
 0xd55   : > { %v10604_v16 = vadd.f32 1e-06, %v10588_v29  ;;  %v10589_v27 = vmul.f32 0.015625, %v10569_v12  ;;  %v10688_v22 = vpack.c.bf16 %v10677_v61, %v10676_v44  ;;  %v10657_v23 = vmul.f32 %v20408_v45, %v10635_v4  ;;  %v15248_v29 = vld [vmem:[%s17577_s13 + $0x18] sm:$0xff]   ;;  %v15249_v12 = vld [vmem:[%s17577_s13 + $0x60] sm:$0xff]  }
 0xd56   : > { %v10572_v48 = vpop.xlane.xlu0 %10571  ;;  %v10678_v46 = vadd.f32 %v20415_v20, %v10656_v5  ;;  %v10700_v61 = vld [vmem:[%s17574_s5] sm:$0x3] }
 0xd57   : > { %15569 = vrsqrt.f32 %v10604_v16  ;;  %v10605_v37 = vadd.f32 1e-06, %v10589_v27  ;;  %v10590_v59 = vmul.f32 0.015625, %v10572_v48  ;;  %13174 = vmatmul.mubr.msk.bf16.gmra.mrb[48].mxu1 %vm1831_vm3, %v10688_v22  ;;  %v10679_v13 = vadd.f32 %v20415_v20, %v10657_v23 }
 0xd58   : > { %v10575_v43 = vpop.xlane.xlu1 %10574  ;;  %10858 = vmatprep.mubr.bf16.mxu1 %v16602_v11 }
 0xd59   : > { %15571 = vrsqrt.f32 %v10605_v37  ;;  %v10606_v56 = vadd.f32 1e-06, %v10590_v59  ;;  %v10591_v17 = vmul.f32 0.015625, %v10575_v43  ;;  %v10689_v52 = vpack.c.bf16 %v10679_v13, %v10678_v46  ;;  %v15250_v13 = vld [vmem:[%s17577_s13 + $0x20] sm:$0xff]  }
 0xd5b   : > { %15573 = vrsqrt.f32 %v10606_v56  ;;  %v10607_v32 = vadd.f32 1e-06, %v10591_v17 }
 0xd5d   : > { %15575 = vrsqrt.f32 %v10607_v32 }
 0xd5f   : > { %13175 = vmatmul.mubr.msk.bf16.gmra.mrb[52].mxu1 %vm1831_vm3, %v10689_v52 }
 0xd60   : > { %10868 = vmatprep.mubr.bf16.mxu1 %v16602_v11 }
 0xd61   : > { %v15570_v42 = vpop.eup %15569 }
 0xd62   : > { %v10636_v2 = vmul.f32 %v15570_v42, %v20382_v31 }
 0xd63   : > { %v15572_v21 = vpop.eup %15571 }
 0xd64   : > { %v10658_v34 = vmul.f32 %v20408_v45, %v10636_v2  ;;  %v10637_v47 = vmul.f32 %v15572_v21, %v20386_v8 }
 0xd65   : > { %v15574_v53 = vpop.eup %15573 }
 0xd66   : > { %v10659_v15 = vmul.f32 %v20408_v45, %v10637_v47  ;;  %v10680_v28 = vadd.f32 %v20415_v20, %v10658_v34  ;;  %v10638_v57 = vmul.f32 %v15574_v53, %v20391_v10 }
 0xd67   : > { %v15576_v1 = vpop.eup %15575 }
 0xd68   : > { %v10681_v3 = vadd.f32 %v20415_v20, %v10659_v15  ;;  %v10639_v31 = vmul.f32 %v15576_v1, %v20397_v39  ;;  %v10660_v8 = vmul.f32 %v20408_v45, %v10638_v57  ;;  %v15241_v39 = vld [vmem:[%s17577_s13 + $0x40] sm:$0xff]  }
 0xd69   : > { %13519 = vmatprep.subr.bf16.mxu0 %v15241_v39 }
 0xd6a   : > { %v10690_v36 = vpack.c.bf16 %v10681_v3, %v10680_v28  ;;  %v10661_v26 = vmul.f32 %v20408_v45, %v10639_v31  ;;  %v10682_v41 = vadd.f32 %v20415_v20, %v10660_v8  ;;  %13520 = vmatpush3.bf16.msra.mxu0 %v15242_v54  ;;  %v15243_v45 = vld [vmem:[%s17577_s13 + $0x48] sm:$0xff]  }
 0xd6b   : > { %13521 = vmatprep.subr.bf16.mxu0 %v15243_v45 }
 0xd6c   : > { %13176 = vmatmul.mubr.msk.bf16.gmra.mrb[56].mxu1 %vm1831_vm3, %v10690_v36  ;;  %v10683_v7 = vadd.f32 %v20415_v20, %v10661_v26  ;;  %v22099_v20 = vlaneseq  ;;  %v15251_v26 = vld [vmem:[%s17577_s13 + $0x68] sm:$0xff]  }
 0xd6d   : > { %10878 = vmatprep.mubr.bf16.mxu1 %v16602_v11  ;;  %v15245_v11 = vld [vmem:[%s17577_s13 + $0x50] sm:$0xff]  }
 0xd6e   : > { %v10691_v10 = vpack.c.bf16 %v10683_v7, %v10682_v41  ;;  %13522 = vmatpush3.bf16.msra.mxu0 %v15244_v0  ;;  %v10703_v25 = vshrl.u32 %v22099_v20, 7  ;;  %v15252_v7 = vld [vmem:[%s17577_s13 + $0x28] sm:$0xff]  }
 0xd6f   : > { %13523 = vmatprep.subr.bf16.mxu0 %v15245_v11  ;;  %v15253_v11 = vld [vmem:[%s17577_s13 + $0x70] sm:$0xff]  }
 0xd70   : > { %v10704_v44 = vsub.s32 0, %v10703_v25  ;;  %v10708_v62 = vsub.s32 1, %v10703_v25 }
 0xd72   : > { %13524 = vmatpush3.bf16.msra.mxu0 %v15246_v50  ;;  %v20487_v4 = vrot.slane %v10700_v61, %v10704_v44  ;;  %v20490_v16 = vrot.slane %v10700_v61, %v10708_v62  ;;  %v15254_v61 = vld [vmem:[%s17577_s13 + $0x30] sm:$0xff]  }
 0xd73   : > { %13525 = vmatprep.subr.bf16.mxu0 %v15247_v38 }
 0xd74   : > { %13177 = vmatmul.mubr.msk.bf16.gmra.mrb[60].mxu1 %vm1831_vm3, %v10691_v10 }
 0xd76   : > { %13526 = vmatpush3.bf16.msra.mxu0 %v15248_v29 }
 0xd77   : > { %13527 = vmatprep.subr.bf16.mxu0 %v15249_v12 }
 0xd7a   : > { %13528 = vmatpush3.bf16.msra.mxu0 %v15250_v13 }
 0xd7b   : > { %13529 = vmatprep.subr.bf16.mxu0 %v15251_v26 }
 0xd7e   : > { %13530 = vmatpush3.bf16.msra.mxu0 %v15252_v7 }
 0xd7f   : > { %13531 = vmatprep.subr.bf16.mxu0 %v15253_v11 }
 0xd82   : > { %13532 = vmatpush3.bf16.msra.mxu0 %v15254_v61 }
 0xe0a   : > { %v10810_v27 = vpop.f32.mrb[32].mxu1 }
 0xe0b   : > { %v20493_v22 = vadd.f32 %v10810_v27, %v20487_v4  ;;  %v10812_v23 = vpop.f32.mrb[33].mxu1 }
 0xe0c   : > { %v20496_v48 = vadd.f32 %v10812_v23, %v20490_v16  ;;  %v10814_v37 = vpop.f32.mrb[34].mxu1 }
 0xe0d   : > { %v20499_v59 = vmul.f32 0.70710677, %v20493_v22  ;;  %v20502_v5 = vadd.f32 %v10814_v37, %v20487_v4  ;;  %v10816_v43 = vpop.f32.mrb[35].mxu1 }
 0xe0e   : > { %v20505_v56 = vmul.f32 0.70710677, %v20496_v48  ;;  %v20508_v17 = vadd.f32 %v10816_v43, %v20490_v16 }
 0xe0f   : > { %v10953_v32 = vand.u32 2147483647, %v20499_v59  ;;  %v20513_v46 = vmul.f32 0.70710677, %v20502_v5  ;;  %vm11561_vm11 = vcmp.ge.f32.partialorder %v20499_v59, 0.0 }
 0xe10   : > { %v20516_v52 = vand.u32 2147483647, %v20505_v56  ;;  %v20519_v42 = vmul.f32 0.70710677, %v20508_v17  ;;  %vm11562_vm15 = vcmp.ge.f32.partialorder %v20505_v56, 0.0 }
 0xe11   : > { %v10985_v2 = vmul.f32 0.3275911, %v10953_v32  ;;  %v20522_v21 = vand.u32 2147483647, %v20513_v46  ;;  %v11369_v38 = vsub.f32 0.0, %v10953_v32  ;;  %vm11563_vm12 = vcmp.ge.f32.partialorder %v20513_v46, 0.0 }
 0xe12   : > { %v10986_v34 = vmul.f32 0.3275911, %v20516_v52  ;;  %v20526_v47 = vand.u32 2147483647, %v20519_v42  ;;  %v10820_v1 = vpop.f32.mrb[36].mxu1  ;;  %v11370_v40 = vsub.f32 0.0, %v20516_v52 }
 0xe13   : > { %v11017_v53 = vadd.f32 1.0, %v10985_v2  ;;  %v10987_v15 = vmul.f32 0.3275911, %v20522_v21  ;;  %v10822_v57 = vpop.f32.mrb[37].mxu1  ;;  %v20533_v10 = vadd.f32 %v10820_v1, %v20487_v4  ;;  %vm11564_vm0 = vcmp.ge.f32.partialorder %v20519_v42, 0.0 }
 0xe14   : > { %v11018_v28 = vadd.f32 1.0, %v10986_v34  ;;  %v10988_v3 = vmul.f32 0.3275911, %v20526_v47  ;;  %v10824_v36 = vpop.f32.mrb[38].mxu1  ;;  %v20536_v39 = vadd.f32 %v10822_v57, %v20490_v16  ;;  %v11401_v34 = vmul.f32 %v11369_v38, %v10953_v32 }
 0xe15   : > { %15577 = vrcp.f32 %v11017_v53  ;;  %v11019_v31 = vadd.f32 1.0, %v10987_v15  ;;  %v10826_v8 = vpop.f32.mrb[39].mxu1  ;;  %v20539_v54 = vadd.f32 %v10824_v36, %v20487_v4  ;;  %v20542_v45 = vmul.f32 0.70710677, %v20533_v10 }
 0xe16   : > { %15579 = vrcp.f32 %v11018_v28  ;;  %v11020_v41 = vadd.f32 1.0, %v10988_v3  ;;  %v20545_v0 = vadd.f32 %v10826_v8, %v20490_v16  ;;  %v20549_v50 = vmul.f32 0.70710677, %v20536_v39  ;;  %v15255_v3 = vld [vmem:[%s17577_s13 + $0x78] sm:$0xff]  }
 0xe17   : > { %15581 = vrcp.f32 %v11019_v31  ;;  %v20552_v20 = vmul.f32 0.70710677, %v20539_v54  ;;  %v10957_v29 = vand.u32 2147483647, %v20542_v45  ;;  %v11371_v53 = vsub.f32 0.0, %v20522_v21  ;;  %13533 = vmatprep.subr.bf16.mxu0 %v15255_v3 }
 0xe18   : > { %15583 = vrcp.f32 %v11020_v41  ;;  %v20559_v62 = vand.u32 2147483647, %v20549_v50  ;;  %v20567_v37 = vmul.f32 0.70710677, %v20545_v0  ;;  %v11433_v11 = vmul.f32 1.442695, %v11401_v34 }
 0xe19   : > { %v20562_v12 = vand.u32 2147483647, %v20552_v20  ;;  %v10989_v23 = vmul.f32 0.3275911, %v10957_v29  ;;  %v11403_v61 = vmul.f32 %v11371_v53, %v20522_v21  ;;  %vm11565_vm13 = vcmp.ge.f32.partialorder %v20542_v45, 0.0 }
 0xe1a   : > { %v10830_v25 = vpop.f32.mrb[40].mxu1  ;;  %v10990_v43 = vmul.f32 0.3275911, %v20559_v62  ;;  %v20575_v1 = vand.u32 2147483647, %v20567_v37  ;;  %vm11567_vm14 = vcmp.ge.f32.partialorder %v20552_v20, 0.0 }
 0xe1b   : > { %v20555_v44 = vpop.f32.mrb[41].mxu1  ;;  %v10991_v13 = vmul.f32 0.3275911, %v20562_v12  ;;  %v11021_v15 = vadd.f32 1.0, %v10989_v23  ;;  %v11373_v23 = vsub.f32 0.0, %v10957_v29  ;;  %v20599_v34 = vadd.f32 %v10830_v25, %v20487_v4 }
 0xe1c   : > { %v20564_v27 = vpop.f32.mrb[42].mxu1  ;;  %v11022_v36 = vadd.f32 1.0, %v10990_v43  ;;  %v10992_v7 = vmul.f32 0.3275911, %v20575_v1  ;;  %v11437_v35 = vmul.f32 1.442695, %v11403_v61 }
 0xe1d   : > { %v20577_v28 = vpop.f32.mrb[43].mxu1  ;;  %15585 = vrcp.f32 %v11021_v15  ;;  %v11023_v8 = vadd.f32 1.0, %v10991_v13  ;;  %v15256_v13 = vld [vmem:[%s17577_s13 + $0x38] sm:$0xff]   ;;  %v11405_v18 = vmul.f32 %v11373_v23, %v10957_v29  ;;  %v11402_v23 = vmul.f32 %v11370_v40, %v20516_v52  ;;  %s22157_s13 = sld [smem:[#allocation58_spill]] }
 0xe1e   : > { %15587 = vrcp.f32 %v11022_v36  ;;  %v11024_v36 = vadd.f32 1.0, %v10992_v7  ;;  %13534 = vmatpush3.bf16.msra.mxu0 %v15256_v13  ;;  %v11372_v40 = vsub.f32 0.0, %v20526_v47  ;;  %vm11566_vm1 = vcmp.ge.f32.partialorder %v20549_v50, 0.0 }
 0xe1f   : > { %v20571_v2 = vpop.eup %15577  ;;  %15589 = vrcp.f32 %v11023_v8  ;;  %v11435_v49 = vmul.f32 1.442695, %v11402_v23  ;;  %v20804_v42 = vmul.f32 0.5, %v20599_v34  ;;  %vm11568_vm2 = vcmp.ge.f32.partialorder %v20567_v37, 0.0 }
 0xe20   : > { %v20580_v57 = vpop.eup %15579  ;;  %v11081_v31 = vmul.f32 1.0614054, %v20571_v2  ;;  %15591 = vpow2.f32 %v11433_v11 }
 0xe21   : > { %v11082_v26 = vmul.f32 1.0614054, %v20580_v57  ;;  %v20585_v41 = vpop.eup %15581  ;;  %15593 = vrcp.f32 %v11024_v36 }
 0xe22   : > { %v11113_v32 = vadd.f32 -1.4531521, %v11081_v31  ;;  %v20588_v51 = vpop.f32.mrb[44].mxu1  ;;  %v11083_v60 = vmul.f32 1.0614054, %v20585_v41  ;;  %v20595_v3 = vpop.eup %15583  ;;  %15595 = vpow2.f32 %v11437_v35 }
 0xe23   : > { %v11114_v38 = vadd.f32 -1.4531521, %v11082_v26  ;;  %v20592_v15 = vpop.f32.mrb[45].mxu1  ;;  %v20751_v20 = vadd.f32 %v20588_v51, %v20487_v4  ;;  %p13195_p3 = scmp.ne.s32.totalorder %s22157_s13, 1 }
 0xe24   : > { %v11145_v43 = vmul.f32 %v20571_v2, %v11113_v32  ;;  %v20601_v21 = vpop.f32.mrb[46].mxu1  ;;  %v11115_v26 = vadd.f32 -1.4531521, %v11083_v60  ;;  %v11084_v32 = vmul.f32 1.0614054, %v20595_v3  ;;  %v20613_v60 = vmul.f32 0.5, %v20493_v22 }
 0xe25   : > { %v11146_v31 = vmul.f32 %v20580_v57, %v11114_v38  ;;  %v20605_v33 = vpop.f32.mrb[47].mxu1  ;;  %v20610_v38 = vmul.f32 0.70710677, %v20599_v34  ;;  %v20765_v51 = vmul.f32 0.70710677, %v20751_v20 }
 0xe26   : > { %v11177_v53 = vadd.f32 1.4214138, %v11145_v43  ;;  %v11147_v7 = vmul.f32 %v20585_v41, %v11115_v26  ;;  %v11116_v25 = vadd.f32 -1.4531521, %v11084_v32  ;;  %v11375_v26 = vsub.f32 0.0, %v20562_v12 }
 0xe27   : > { %v11178_v43 = vadd.f32 1.4214138, %v11146_v31  ;;  %v20616_v61 = vand.u32 2147483647, %v20610_v38  ;;  %v20618_v29 = vpop.eup %15585  ;;  %vm11569_vm4 = vcmp.ge.f32.partialorder %v20610_v38, 0.0  ;;  %vm11573_vm6 = vcmp.ge.f32.partialorder %v20765_v51, 0.0 }
 0xe28   : > { %v11209_v8 = vmul.f32 %v20571_v2, %v11177_v53  ;;  %v11179_v13 = vadd.f32 1.4214138, %v11147_v7  ;;  %v11148_v53 = vmul.f32 %v20595_v3, %v11116_v25  ;;  %v20623_v32 = vpop.eup %15587  ;;  %v11085_v36 = vmul.f32 1.0614054, %v20618_v29 }
 0xe29   : > { %v11210_v30 = vmul.f32 %v20580_v57, %v11178_v43  ;;  %v11086_v35 = vmul.f32 1.0614054, %v20623_v32  ;;  %v10993_v52 = vmul.f32 0.3275911, %v20616_v61  ;;  %v20636_v63 = vpop.eup %15589  ;;  %v11407_v55 = vmul.f32 %v11375_v26, %v20562_v12 }
 0xe2a   : > { %v11241_v11 = vadd.f32 -0.28449672, %v11209_v8  ;;  %v11211_v31 = vmul.f32 %v20585_v41, %v11179_v13  ;;  %v11441_v8 = vmul.f32 1.442695, %v11405_v18  ;;  %v20628_v7 = vpop.f32.mrb[48].mxu1 }
 0xe2b   : > { %v20634_v25 = vpop.f32.mrb[49].mxu1  ;;  %v11180_v18 = vadd.f32 1.4214138, %v11148_v53  ;;  %v11118_v13 = vadd.f32 -1.4531521, %v11086_v35  ;;  %v11025_v43 = vadd.f32 1.0, %v10993_v52  ;;  %v11404_v35 = vmul.f32 %v11372_v40, %v20526_v47 }
 0xe2c   : > { %v11273_v22 = vmul.f32 %v20571_v2, %v11241_v11  ;;  %22100 = vst [vmem:[#allocation102_spill] sm:$0xff] %v20634_v25  ;;  %v11243_v9 = vadd.f32 -0.28449672, %v11211_v31  ;;  %v11117_v11 = vadd.f32 -1.4531521, %v11085_v36  ;;  %v20640_v14 = vpop.f32.mrb[50].mxu1  ;;  %v15592_v36 = vpop.eup %15591 }
 0xe2d   : > { %v20645_v31 = vpop.f32.mrb[51].mxu1  ;;  %v11242_v19 = vadd.f32 -0.28449672, %v11210_v30  ;;  %v11150_v25 = vmul.f32 %v20623_v32, %v11118_v13  ;;  %v11087_v53 = vmul.f32 1.0614054, %v20636_v63  ;;  %15597 = vrcp.f32 %v11025_v43 }
 0xe2e   : > { %v11305_v58 = vadd.f32 0.2548296, %v11273_v22  ;;  %v11275_v6 = vmul.f32 %v20585_v41, %v11243_v9  ;;  %v11149_v22 = vmul.f32 %v20618_v29, %v11117_v11  ;;  %22101 = vst [vmem:[#allocation100_spill] sm:$0xff] %v20645_v31  ;;  %v11212_v9 = vmul.f32 %v20595_v3, %v11180_v18 }
 0xe2f   : > { %15599 = vpow2.f32 %v11441_v8  ;;  %v11119_v23 = vadd.f32 -1.4531521, %v11087_v53  ;;  %v11445_v11 = vmul.f32 1.442695, %v11407_v55  ;;  %v11182_v43 = vadd.f32 1.4214138, %v11150_v25 }
 0xe30   : > { %v11337_v24 = vmul.f32 %v20571_v2, %v11305_v58  ;;  %v11307_v26 = vadd.f32 0.2548296, %v11275_v6  ;;  %v11181_v52 = vadd.f32 1.4214138, %v11149_v22  ;;  %v20652_v2 = vpop.eup %15593  ;;  %v11274_v47 = vmul.f32 %v20580_v57, %v11242_v19 }
 0xe31   : > { %v15596_v6 = vpop.eup %15595  ;;  %15601 = vpow2.f32 %v11435_v49  ;;  %v11374_v40 = vsub.f32 0.0, %v20559_v62  ;;  %v11151_v22 = vmul.f32 %v20636_v63, %v11119_v23  ;;  %v11244_v25 = vadd.f32 -0.28449672, %v11212_v9 }
 0xe32   : > { %v11497_v12 = vmul.f32 %v15592_v36, %v11337_v24  ;;  %v20650_v58 = vpop.f32.mrb[52].mxu1  ;;  %v11339_v13 = vmul.f32 %v20585_v41, %v11307_v26  ;;  %v11213_v31 = vmul.f32 %v20618_v29, %v11181_v52  ;;  %v11088_v41 = vmul.f32 1.0614054, %v20652_v2 }
 0xe33   : > { %v20657_v24 = vpop.f32.mrb[53].mxu1  ;;  %v11183_v26 = vadd.f32 1.4214138, %v11151_v22  ;;  %15603 = vpow2.f32 %v11445_v11  ;;  %v11214_v23 = vmul.f32 %v20623_v32, %v11182_v43  ;;  %v11276_v43 = vmul.f32 %v20595_v3, %v11244_v25 }
 0xe34   : > { %v11529_v30 = vsub.f32 1.0, %v11497_v12  ;;  %v20662_v18 = vpop.f32.mrb[54].mxu1  ;;  %v11499_v55 = vmul.f32 %v15596_v6, %v11339_v13  ;;  %v11245_v36 = vadd.f32 -0.28449672, %v11213_v31  ;;  %v11439_v12 = vmul.f32 1.442695, %v11404_v35 }
 0xe35   : > { %22102 = vst [vmem:[#allocation105_spill] sm:$0xff] %v20662_v18  ;;  %v20665_v53 = vpop.f32.mrb[55].mxu1  ;;  %v11306_v18 = vadd.f32 0.2548296, %v11274_v47  ;;  %v11406_v13 = vmul.f32 %v11374_v40, %v20559_v62  ;;  %v11215_v31 = vmul.f32 %v20636_v63, %v11183_v26  ;;  %v20675_v6 = vadd.f32 %v20555_v44, %v20490_v16 }
 0xe36   : > { %v11593_v8 = vsub.f32 0.0, %v11529_v30  ;;  %v11531_v49 = vsub.f32 1.0, %v11499_v55  ;;  %v11277_v52 = vmul.f32 %v20618_v29, %v11245_v36  ;;  %v10891_v35 = vmul.f32 0.5, %v20502_v5 }
 0xe37   : > { %v11120_v59 = vadd.f32 -1.4531521, %v11088_v41  ;;  %v11247_v47 = vadd.f32 -0.28449672, %v11215_v31  ;;  %15605 = vpow2.f32 %v11439_v12  ;;  %v11443_v36 = vmul.f32 1.442695, %v11406_v13 }
 0xe38   : > { %v11625_v19 = vsel %vm11561_vm11, %v11529_v30, %v11593_v8  ;;  %v11595_v9 = vsub.f32 0.0, %v11531_v49  ;;  %v11309_v11 = vadd.f32 0.2548296, %v11277_v52  ;;  %v20678_v30 = vpop.eup %15597  ;;  %v11246_v8 = vadd.f32 -0.28449672, %v11214_v23 }
 0xe39   : > { %v11657_v22 = vadd.f32 1.0, %v11625_v19  ;;  %v15600_v44 = vpop.eup %15599  ;;  %v11279_v5 = vmul.f32 %v20636_v63, %v11247_v47  ;;  %v20685_v41 = vmul.f32 0.70710677, %v20675_v6  ;;  %v11338_v26 = vmul.f32 %v20580_v57, %v11306_v18 }
 0xe3a   : > { %v11627_v62 = vsel %vm11563_vm12, %v11531_v49, %v11595_v9  ;;  %v11341_v40 = vmul.f32 %v20618_v29, %v11309_v11  ;;  %v11152_v46 = vmul.f32 %v20652_v2, %v11120_v59  ;;  %v11089_v25 = vmul.f32 1.0614054, %v20678_v30 }
 0xe3b   : > { %v11659_v55 = vadd.f32 1.0, %v11627_v62  ;;  %v15602_v12 = vpop.eup %15601  ;;  %v20693_v29 = vmul.f32 %v11657_v22, %v20613_v60  ;;  %v11308_v23 = vadd.f32 0.2548296, %v11276_v43  ;;  %v11311_v13 = vadd.f32 0.2548296, %v11279_v5 }
 0xe3c   : > { %v11501_v19 = vmul.f32 %v15600_v44, %v11341_v40  ;;  %v20700_v9 = vmul.f32 0.5, %v20496_v48  ;;  %v11278_v18 = vmul.f32 %v20623_v32, %v11246_v8  ;;  %v11121_v11 = vadd.f32 -1.4531521, %v11089_v25 }
 0xe3d   : > { %22103 = vst [vmem:[#allocation103_spill] sm:$0xff] %v20693_v29  ;;  %v20695_v52 = vmul.f32 %v11659_v55, %v10891_v35  ;;  %v15604_v47 = vpop.eup %15603  ;;  %15607 = vpow2.f32 %v11443_v36  ;;  %v11343_v35 = vmul.f32 %v20636_v63, %v11311_v13  ;;  %v11376_v22 = vsub.f32 0.0, %v20575_v1 }
 0xe3e   : > { %v11533_v57 = vsub.f32 1.0, %v11501_v19  ;;  %v11184_v48 = vadd.f32 1.4214138, %v11152_v46  ;;  %v11153_v40 = vmul.f32 %v20678_v30, %v11121_v11  ;;  %v20713_v8 = vand.u32 2147483647, %v20685_v41 }
 0xe3f   : > { %v20690_v49 = vpop.f32.mrb[56].mxu1  ;;  %22104 = vst [vmem:[#allocation106_spill] sm:$0xff] %v20695_v52  ;;  %v11498_v44 = vmul.f32 %v15602_v12, %v11338_v26  ;;  %v11340_v55 = vmul.f32 %v20595_v3, %v11308_v23  ;;  %v11503_v5 = vmul.f32 %v15604_v47, %v11343_v35  ;;  %v20718_v36 = vadd.f32 %v20564_v27, %v20487_v4 }
 0xe40   : > { %v20697_v31 = vpop.f32.mrb[57].mxu1  ;;  %v11597_v62 = vsub.f32 0.0, %v11533_v57  ;;  %v11310_v63 = vadd.f32 0.2548296, %v11278_v18  ;;  %v11377_v19 = vsub.f32 0.0, %v20616_v61  ;;  %v10893_v25 = vmul.f32 0.5, %v20533_v10 }
 0xe41   : > { %22105 = vst [vmem:[#allocation104_spill] sm:$0xff] %v20697_v31  ;;  %v20703_v59 = vpop.f32.mrb[58].mxu1  ;;  %v10994_v46 = vmul.f32 0.3275911, %v20713_v8  ;;  %v11535_v11 = vsub.f32 1.0, %v11503_v5  ;;  %v15606_v26 = vpop.eup %15605  ;;  %v11216_v3 = vmul.f32 %v20652_v2, %v11184_v48  ;;  %v11408_v27 = vmul.f32 %v11376_v22, %v20575_v1 }
 0xe42   : > { %22106 = vst [vmem:[#allocation79_spill] sm:$0xff] %v20703_v59  ;;  %v20709_v43 = vpop.f32.mrb[59].mxu1  ;;  %v11629_v13 = vsel %vm11565_vm13, %v11533_v57, %v11597_v62  ;;  %v11185_v60 = vadd.f32 1.4214138, %v11153_v40  ;;  %v11530_v45 = vsub.f32 1.0, %v11498_v44  ;;  %v11500_v18 = vmul.f32 %v15606_v26, %v11340_v55 }
 0xe43   : > { %22107 = vst [vmem:[#allocation107_spill] sm:$0xff] %v20709_v43  ;;  %v11026_v12 = vadd.f32 1.0, %v10994_v46  ;;  %v11599_v47 = vsub.f32 0.0, %v11535_v11  ;;  %v20730_v35 = vmul.f32 0.70710677, %v20718_v36  ;;  %v11661_v57 = vadd.f32 1.0, %v11629_v13 }
 0xe44   : > { %v11342_v62 = vmul.f32 %v20623_v32, %v11310_v63  ;;  %v11409_v40 = vmul.f32 %v11377_v19, %v20616_v61  ;;  %v10895_v1 = vmul.f32 0.5, %v20539_v54  ;;  %v11217_v44 = vmul.f32 %v20678_v30, %v11185_v60 }
 0xe45   : > { %15609 = vrcp.f32 %v11026_v12  ;;  %v11631_v22 = vsel %vm11567_vm14, %v11535_v11, %v11599_v47  ;;  %v10963_v55 = vand.u32 2147483647, %v20730_v35  ;;  %v11248_v13 = vadd.f32 -0.28449672, %v11216_v3 }
 0xe46   : > { %v11663_v46 = vadd.f32 1.0, %v11631_v22  ;;  %v11447_v26 = vmul.f32 1.442695, %v11408_v27  ;;  %v20747_v61 = vadd.f32 %v20577_v28, %v20490_v16  ;;  %v11594_v63 = vsub.f32 0.0, %v11530_v45 }
 0xe47   : > { %v20727_v23 = vpop.f32.mrb[60].mxu1  ;;  %v15608_v32 = vpop.eup %15607  ;;  %v11532_v19 = vsub.f32 1.0, %v11500_v18  ;;  %v10995_v54 = vmul.f32 0.3275911, %v10963_v55  ;;  %v20753_v60 = vmul.f32 %v11661_v57, %v10893_v25  ;;  %v11449_v47 = vmul.f32 1.442695, %v11409_v40 }
 0xe48   : > { %22108 = vst [vmem:[#allocation108_spill] sm:$0xff] %v20727_v23  ;;  %v20732_v10 = vpop.f32.mrb[61].mxu1  ;;  %v11502_v11 = vmul.f32 %v15608_v32, %v11342_v62  ;;  %v20755_v12 = vmul.f32 %v11663_v46, %v10895_v1  ;;  %v11249_v3 = vadd.f32 -0.28449672, %v11217_v44  ;;  %v20759_v28 = vmul.f32 0.70710677, %v20747_v61 }
 0xe49   : > { %22109 = vst [vmem:[#allocation73_spill] sm:$0xff] %v20732_v10  ;;  %v20736_v48 = vpop.f32.mrb[62].mxu1  ;;  %22112 = vst [vmem:[#allocation110_spill] sm:$0xff] %v20753_v60  ;;  %v11027_v27 = vadd.f32 1.0, %v10995_v54  ;;  %v11280_v22 = vmul.f32 %v20652_v2, %v11248_v13  ;;  %15611 = vpow2.f32 %v11447_v26  ;;  %v10892_v25 = vmul.f32 0.5, %v20508_v17  ;;  %v22117_v23 = vld [vmem:[#allocation102_spill] sm:$0xff] }
 0xe4a   : > { %22110 = vst [vmem:[#allocation109_spill] sm:$0xff] %v20736_v48  ;;  %v20743_v5 = vpop.f32.mrb[63].mxu1  ;;  %22113 = vst [vmem:[#allocation74_spill] sm:$0xff] %v20755_v12  ;;  %v20770_v56 = vand.u32 2147483647, %v20759_v28  ;;  %v11626_v57 = vsel %vm11562_vm15, %v11530_v45, %v11594_v63  ;;  %v11596_v62 = vsub.f32 0.0, %v11532_v19  ;;  %v11281_v46 = vmul.f32 %v20678_v30, %v11249_v3 }
 0xe4b   : > { %22111 = vst [vmem:[#allocation113_spill] sm:$0xff] %v20743_v5  ;;  %15613 = vrcp.f32 %v11027_v27  ;;  %v11534_v40 = vsub.f32 1.0, %v11502_v11  ;;  %v20773_v1 = vand.u32 2147483647, %v20765_v51  ;;  %v20776_v44 = vmul.f32 0.5, %v20536_v39 }
 0xe4c   : > { %15615 = vpow2.f32 %v11449_v47  ;;  %v10996_v17 = vmul.f32 0.3275911, %v20770_v56  ;;  %v11312_v26 = vadd.f32 0.2548296, %v11280_v22  ;;  %v11379_v32 = vsub.f32 0.0, %v10963_v55 }
 0xe4d   : > { %v10997_v54 = vmul.f32 0.3275911, %v20773_v1  ;;  %v20785_v45 = vadd.f32 %v20592_v15, %v20490_v16  ;;  %v11658_v63 = vadd.f32 1.0, %v11626_v57  ;;  %v20788_v11 = vmul.f32 0.5, %v20545_v0 }
 0xe4e   : > { %v11028_v3 = vadd.f32 1.0, %v10996_v17  ;;  %v11628_v47 = vsel %vm11564_vm0, %v11532_v19, %v11596_v62  ;;  %v11598_v27 = vsub.f32 0.0, %v11534_v40  ;;  %v20795_v22 = vadd.f32 %v20601_v21, %v20487_v4 }
 0xe4f   : > { %v20780_v13 = vpop.eup %15609  ;;  %v11029_v18 = vadd.f32 1.0, %v10997_v54  ;;  %v11313_v60 = vadd.f32 0.2548296, %v11281_v46  ;;  %v11378_v15 = vsub.f32 0.0, %v20713_v8  ;;  %v20799_v57 = vmul.f32 0.70710677, %v20785_v45 }
 0xe50   : > { %v11090_v39 = vmul.f32 1.0614054, %v20780_v13  ;;  %15617 = vrcp.f32 %v11028_v3  ;;  %v11344_v0 = vmul.f32 %v20652_v2, %v11312_v26  ;;  %v11411_v17 = vmul.f32 %v11379_v32, %v10963_v55 }
 0xe51   : > { %15619 = vrcp.f32 %v11029_v18  ;;  %v20807_v19 = vmul.f32 0.5, %v20675_v6  ;;  %v20810_v62 = vand.u32 2147483647, %v20799_v57  ;;  %v20813_v54 = vmul.f32 %v11658_v63, %v20700_v9 }
 0xe52   : > { %v11122_v21 = vadd.f32 -1.4531521, %v11090_v39  ;;  %v11660_v3 = vadd.f32 1.0, %v11628_v47  ;;  %v20816_v50 = vmul.f32 0.70710677, %v20795_v22  ;;  %v20820_v2 = vadd.f32 %v20605_v33, %v20490_v16 }
 0xe53   : > { %v15612_v46 = vpop.eup %15611  ;;  %22114 = vst [vmem:[#allocation111_spill] sm:$0xff] %v20813_v54  ;;  %v11630_v6 = vsel %vm11566_vm1, %v11534_v40, %v11598_v27  ;;  %v11345_v55 = vmul.f32 %v20678_v30, %v11313_v60  ;;  %v11410_v18 = vmul.f32 %v11378_v15, %v20713_v8  ;;  %v10998_v26 = vmul.f32 0.3275911, %v20810_v62 }
 0xe54   : > { %v20827_v32 = vmul.f32 %v15612_v46, %v11344_v0  ;;  %v11453_v63 = vmul.f32 1.442695, %v11411_v17  ;;  %v20831_v39 = vand.u32 2147483647, %v20816_v50  ;;  %v11154_v33 = vmul.f32 %v20780_v13, %v11122_v21 }
 0xe55   : > { %v20822_v34 = vpop.eup %15613  ;;  %v11381_v12 = vsub.f32 0.0, %v20773_v1  ;;  %v11030_v40 = vadd.f32 1.0, %v10998_v26  ;;  %v20836_v30 = vmul.f32 0.70710677, %v20820_v2  ;;  %v20838_v8 = vmul.f32 %v11660_v3, %v10892_v25 }
 0xe56   : > { %v11091_v9 = vmul.f32 1.0614054, %v20822_v34  ;;  %v15616_v47 = vpop.eup %15615  ;;  %v20841_v60 = vmul.f32 0.5, %v20718_v36  ;;  %v10999_v15 = vmul.f32 0.3275911, %v20831_v39  ;;  %v11662_v0 = vadd.f32 1.0, %v11630_v6 }
 0xe57   : > { %22115 = vst [vmem:[#allocation112_spill] sm:$0xff] %v20838_v8  ;;  %v11505_v17 = vmul.f32 %v15616_v47, %v11345_v55  ;;  %15621 = vrcp.f32 %v11030_v40  ;;  %v20845_v46 = vand.u32 2147483647, %v20836_v30  ;;  %v11536_v21 = vsub.f32 1.0, %v20827_v32 }
 0xe58   : > { %v11123_v27 = vadd.f32 -1.4531521, %v11091_v9  ;;  %v11451_v26 = vmul.f32 1.442695, %v11410_v18  ;;  %v11031_v48 = vadd.f32 1.0, %v10999_v15  ;;  %15623 = vpow2.f32 %v11453_v63 }
 0xe59   : > { %v11186_v3 = vadd.f32 1.4214138, %v11154_v33  ;;  %v11413_v36 = vmul.f32 %v11381_v12, %v20773_v1  ;;  %v11000_v9 = vmul.f32 0.3275911, %v20845_v46  ;;  %v20860_v32 = vadd.f32 %v20628_v7, %v20487_v4 }
 0xe5a   : > { %v11155_v5 = vmul.f32 %v20822_v34, %v11123_v27  ;;  %v20849_v25 = vpop.eup %15617  ;;  %15625 = vrcp.f32 %v11031_v48  ;;  %v11537_v47 = vsub.f32 1.0, %v11505_v17  ;;  %v11380_v63 = vsub.f32 0.0, %v20770_v56 }
 0xe5b   : > { %v20853_v6 = vpop.eup %15619  ;;  %v11092_v18 = vmul.f32 1.0614054, %v20849_v25  ;;  %v11032_v1 = vadd.f32 1.0, %v11000_v9  ;;  %v20865_v33 = vmul.f32 %v11662_v0, %v20776_v44  ;;  %v11600_v40 = vsub.f32 0.0, %v11536_v21 }
 0xe5c   : > { %v11187_v55 = vadd.f32 1.4214138, %v11155_v5  ;;  %v11093_v12 = vmul.f32 1.0614054, %v20853_v6  ;;  %15627 = vpow2.f32 %v11451_v26  ;;  %v11218_v27 = vmul.f32 %v20780_v13, %v11186_v3 }
 0xe5d   : > { %22116 = vst [vmem:[#allocation80_spill] sm:$0xff] %v20865_v33  ;;  %v11457_v15 = vmul.f32 1.442695, %v11413_v36  ;;  %15629 = vrcp.f32 %v11032_v1  ;;  %v11124_v10 = vadd.f32 -1.4531521, %v11092_v18  ;;  %v20874_v9 = vadd.f32 %v22117_v23, %v20490_v16 }
 0xe5e   : > { %v11219_v5 = vmul.f32 %v20822_v34, %v11187_v55  ;;  %v11125_v48 = vadd.f32 -1.4531521, %v11093_v12  ;;  %v20870_v17 = vmul.f32 0.70710677, %v20860_v32  ;;  %v11601_v44 = vsub.f32 0.0, %v11537_v47 }
 0xe5f   : > { %v20877_v0 = vmul.f32 0.5, %v20747_v61  ;;  %v11412_v26 = vmul.f32 %v11380_v63, %v20770_v56  ;;  %v20883_v55 = vmul.f32 0.5, %v20751_v20  ;;  %v11383_v18 = vsub.f32 0.0, %v20831_v39 }
 0xe60   : > { %v11251_v7 = vadd.f32 -0.28449672, %v11219_v5  ;;  %v11157_v3 = vmul.f32 %v20853_v6, %v11125_v48  ;;  %v20887_v12 = vand.u32 2147483647, %v20870_v17  ;;  %v11250_v1 = vadd.f32 -0.28449672, %v11218_v27 }
 0xe61   : > { %v20889_v23 = vpop.eup %15621  ;;  %15631 = vpow2.f32 %v11457_v15  ;;  %v20892_v61 = vmul.f32 0.70710677, %v20874_v9  ;;  %v11156_v63 = vmul.f32 %v20849_v25, %v11124_v10  ;;  %v11632_v33 = vsel %vm11568_vm2, %v11536_v21, %v11600_v40 }
 0xe62   : > { %v11283_v36 = vmul.f32 %v20822_v34, %v11251_v7  ;;  %v11189_v5 = vadd.f32 1.4214138, %v11157_v3  ;;  %v11094_v48 = vmul.f32 1.0614054, %v20889_v23  ;;  %v11001_v20 = vmul.f32 0.3275911, %v20887_v12  ;;  %v15624_v7 = vpop.eup %15623 }
 0xe63   : > { %22118 = vst [vmem:[#allocation75_spill] sm:$0xff] %v20892_v61  ;;  %v11633_v29 = vsel %vm11569_vm4, %v11537_v47, %v11601_v44  ;;  %vm11571_vm5 = vcmp.ge.f32.partialorder %v20730_v35, 0.0  ;;  %v20902_v27 = vmul.f32 1.442695, %v11412_v26  ;;  %v11415_v52 = vmul.f32 %v11383_v18, %v20831_v39 }
 0xe64   : > { %v11315_v56 = vadd.f32 0.2548296, %v11283_v36  ;;  %v11221_v15 = vmul.f32 %v20853_v6, %v11189_v5  ;;  %v20905_v3 = vpop.eup %15625  ;;  %v11126_v36 = vadd.f32 -1.4531521, %v11094_v48  ;;  %v11033_v8 = vadd.f32 1.0, %v11001_v20 }
 0xe65   : > { %v11282_v37 = vmul.f32 %v20780_v13, %v11250_v1  ;;  %v11382_v38 = vsub.f32 0.0, %v20810_v62  ;;  %v11095_v47 = vmul.f32 1.0614054, %v20905_v3  ;;  %v11188_v26 = vadd.f32 1.4214138, %v11156_v63 }
 0xe66   : > { %v11347_v10 = vmul.f32 %v20822_v34, %v11315_v56  ;;  %v11253_v21 = vadd.f32 -0.28449672, %v11221_v15  ;;  %v15628_v40 = vpop.eup %15627  ;;  %v11158_v5 = vmul.f32 %v20889_v23, %v11126_v36  ;;  %v20914_v54 = vand.u32 2147483647, %v20892_v61 }
 0xe67   : > { %v20916_v34 = vpop.eup %15629  ;;  %v11665_v56 = vadd.f32 1.0, %v11633_v29  ;;  %v11127_v18 = vadd.f32 -1.4531521, %v11095_v47  ;;  %15633 = vrcp.f32 %v11033_v8  ;;  %v11461_v20 = vmul.f32 1.442695, %v11415_v52 }
 0xe68   : > { %v11507_v44 = vmul.f32 %v15624_v7, %v11347_v10  ;;  %v11285_v39 = vmul.f32 %v20853_v6, %v11253_v21  ;;  %v11190_v48 = vadd.f32 1.4214138, %v11158_v5  ;;  %v11384_v15 = vsub.f32 0.0, %v20845_v46 }
 0xe69   : > { %v11414_v63 = vmul.f32 %v11382_v38, %v20810_v62  ;;  %v11159_v7 = vmul.f32 %v20905_v3, %v11127_v18  ;;  %v11096_v10 = vmul.f32 1.0614054, %v20916_v34  ;;  %v11314_v36 = vadd.f32 0.2548296, %v11282_v37 }
 0xe6a   : > { %v11539_v1 = vsub.f32 1.0, %v11507_v44  ;;  %v11317_v43 = vadd.f32 0.2548296, %v11285_v39  ;;  %v11220_v29 = vmul.f32 %v20849_v25, %v11188_v26  ;;  %v11002_v21 = vmul.f32 0.3275911, %v20914_v54 }
 0xe6b   : > { %v15632_v47 = vpop.eup %15631  ;;  %v11222_v52 = vmul.f32 %v20889_v23, %v11190_v48  ;;  %v11191_v44 = vadd.f32 1.4214138, %v11159_v7  ;;  %v11128_v5 = vadd.f32 -1.4531521, %v11096_v10  ;;  %15635 = vpow2.f32 %v11461_v20 }
 0xe6c   : > { %v11603_v61 = vsub.f32 0.0, %v11539_v1  ;;  %v11349_v8 = vmul.f32 %v20853_v6, %v11317_v43  ;;  %v11416_v38 = vmul.f32 %v11384_v15, %v20845_v46  ;;  %v11034_v39 = vadd.f32 1.0, %v11002_v21 }
 0xe6d   : > { %v11223_v26 = vmul.f32 %v20905_v3, %v11191_v44  ;;  %v11160_v59 = vmul.f32 %v20916_v34, %v11128_v5  ;;  %v20933_v31 = vmul.f32 %v11665_v56, %v20804_v42  ;;  %v11346_v43 = vmul.f32 %v20780_v13, %v11314_v36 }
 0xe6e   : > { %v11635_v62 = vsel %vm11571_vm5, %v11539_v1, %v11603_v61  ;;  %v11509_v18 = vmul.f32 %v15632_v47, %v11349_v8  ;;  %v11252_v6 = vadd.f32 -0.28449672, %v11220_v29  ;;  %15637 = vrcp.f32 %v11034_v39  ;;  %v22119_v39 = vld [vmem:[#allocation100_spill] sm:$0xff] }
 0xe6f   : > { %v11667_v37 = vadd.f32 1.0, %v11635_v62  ;;  %v11254_v61 = vadd.f32 -0.28449672, %v11222_v52  ;;  %v11255_v1 = vadd.f32 -0.28449672, %v11223_v26  ;;  %v11664_v48 = vadd.f32 1.0, %v11632_v33 }
 0xe70   : > { %v11192_v46 = vadd.f32 1.4214138, %v11160_v59  ;;  %v11541_v20 = vsub.f32 1.0, %v11509_v18  ;;  %v11459_v15 = vmul.f32 1.442695, %v11414_v63  ;;  %v20949_v36 = vmul.f32 %v15628_v40, %v11346_v43 }
 0xe71   : > { %v20937_v35 = vmul.f32 %v11667_v37, %v20841_v60  ;;  %v11463_v7 = vmul.f32 1.442695, %v11416_v38  ;;  %v20939_v10 = vpop.eup %15633  ;;  %v11287_v56 = vmul.f32 %v20905_v3, %v11255_v1  ;;  %v20947_v60 = vadd.f32 %v20640_v14, %v20487_v4 }
 0xe72   : > { %v11224_v13 = vmul.f32 %v20916_v34, %v11192_v46  ;;  %v11284_v59 = vmul.f32 %v20849_v25, %v11252_v6  ;;  %15639 = vpow2.f32 %v20902_v27  ;;  %v11097_v33 = vmul.f32 1.0614054, %v20939_v10 }
 0xe73   : > { %v11286_v63 = vmul.f32 %v20889_v23, %v11254_v61  ;;  %v11319_v29 = vadd.f32 0.2548296, %v11287_v56  ;;  %v11385_v47 = vsub.f32 0.0, %v20887_v12  ;;  %v11605_v8 = vsub.f32 0.0, %v11541_v20 }
 0xe74   : > { %v11256_v21 = vadd.f32 -0.28449672, %v11224_v13  ;;  %15641 = vpow2.f32 %v11459_v15  ;;  %v11129_v14 = vadd.f32 -1.4531521, %v11097_v33  ;;  %v20960_v27 = vmul.f32 0.70710677, %v20947_v60 }
 0xe75   : > { %v11351_v40 = vmul.f32 %v20905_v3, %v11319_v29  ;;  %15643 = vpow2.f32 %v11463_v7  ;;  %v15636_v44 = vpop.eup %15635  ;;  %v11538_v5 = vsub.f32 1.0, %v20949_v36  ;;  %v11316_v62 = vadd.f32 0.2548296, %v11284_v59 }
 0xe76   : > { %v11288_v52 = vmul.f32 %v20916_v34, %v11256_v21  ;;  %v11161_v38 = vmul.f32 %v20939_v10, %v11129_v14  ;;  %v20966_v37 = vadd.f32 %v22119_v39, %v20490_v16  ;;  %vm11570_vm7 = vcmp.ge.f32.partialorder %v20685_v41, 0.0 }
 0xe77   : > { %v11318_v18 = vadd.f32 0.2548296, %v11286_v63  ;;  %v11511_v3 = vmul.f32 %v15636_v44, %v11351_v40  ;;  %v11417_v26 = vmul.f32 %v11385_v47, %v20887_v12  ;;  %v20971_v43 = vand.u32 2147483647, %v20960_v27 }
 0xe78   : > { %v20973_v6 = vpop.eup %15637  ;;  %v11637_v61 = vsel %vm11573_vm6, %v11541_v20, %v11605_v8  ;;  %v11320_v1 = vadd.f32 0.2548296, %v11288_v52  ;;  %v11193_v46 = vadd.f32 1.4214138, %v11161_v38  ;;  %v20978_v15 = vmul.f32 0.70710677, %v20966_v37 }
 0xe79   : > { %v11543_v7 = vsub.f32 1.0, %v11511_v3  ;;  %vm11575_vm8 = vcmp.ge.f32.partialorder %v20816_v50, 0.0  ;;  %v11098_v56 = vmul.f32 1.0614054, %v20973_v6  ;;  %v11003_v12 = vmul.f32 0.3275911, %v20971_v43 }
 0xe7a   : > { %v11602_v13 = vsub.f32 0.0, %v11538_v5  ;;  %v11348_v36 = vmul.f32 %v20849_v25, %v11316_v62  ;;  %v11225_v59 = vmul.f32 %v20939_v10, %v11193_v46  ;;  %v20986_v51 = vand.u32 2147483647, %v20978_v15 }
 0xe7b   : > { %v11669_v20 = vadd.f32 1.0, %v11637_v61  ;;  %v11350_v33 = vmul.f32 %v20889_v23, %v11318_v18  ;;  %v11607_v63 = vsub.f32 0.0, %v11543_v7  ;;  %v11465_v29 = vmul.f32 1.442695, %v11417_v26 }
 0xe7c   : > { %v15640_v21 = vpop.eup %15639  ;;  %v11352_v47 = vmul.f32 %v20916_v34, %v11320_v1  ;;  %v11257_v8 = vadd.f32 -0.28449672, %v11225_v59  ;;  %v11035_v14 = vadd.f32 1.0, %v11003_v12  ;;  %v11004_v40 = vmul.f32 0.3275911, %v20986_v51 }
 0xe7d   : > { %v20992_v52 = vmul.f32 %v11664_v48, %v20788_v11  ;;  %v10903_v25 = vmul.f32 0.5, %v20795_v22  ;;  %v11639_v44 = vsel %vm11575_vm8, %v11543_v7, %v11607_v63  ;;  %v11130_v62 = vadd.f32 -1.4531521, %v11098_v56 }
 0xe7e   : > { %v15642_v38 = vpop.eup %15641  ;;  %v11508_v23 = vmul.f32 %v15640_v21, %v11348_v36  ;;  %v11671_v39 = vadd.f32 1.0, %v11639_v44  ;;  %v11289_v18 = vmul.f32 %v20939_v10, %v11257_v8  ;;  %15645 = vrcp.f32 %v11035_v14 }
 0xe7f   : > { %v15644_v34 = vpop.eup %15643  ;;  %v20999_v3 = vmul.f32 0.5, %v20785_v45  ;;  %v11510_v26 = vmul.f32 %v15642_v38, %v11350_v33  ;;  %15647 = vpow2.f32 %v11465_v29  ;;  %v11036_v11 = vadd.f32 1.0, %v11004_v40 }
 0xe80   : > { %v11634_v22 = vsel %vm11570_vm7, %v11538_v5, %v11602_v13  ;;  %v21004_v50 = vmul.f32 %v11669_v20, %v20883_v55  ;;  %v21006_v48 = vmul.f32 %v11671_v39, %v10903_v25  ;;  %v11512_v61 = vmul.f32 %v15644_v34, %v11352_v47  ;;  %v22120_v20 = vld [vmem:[#allocation105_spill] sm:$0xff] }
 0xe81   : > { %vm11572_vm9 = vcmp.ge.f32.partialorder %v20759_v28, 0.0  ;;  %v21010_v1 = vmul.f32 0.5, %v20820_v2  ;;  %v11162_v45 = vmul.f32 %v20973_v6, %v11130_v62  ;;  %v11386_v46 = vsub.f32 0.0, %v20914_v54 }
 0xe82   : > { %15649 = vrcp.f32 %v11036_v11  ;;  %v11540_v7 = vsub.f32 1.0, %v11508_v23  ;;  %vm11574_vm10 = vcmp.ge.f32.partialorder %v20799_v57, 0.0  ;;  %v11321_v55 = vadd.f32 0.2548296, %v11289_v18 }
 0xe83   : > { %v21019_v5 = vadd.f32 %v20650_v58, %v20487_v4  ;;  %v11666_v56 = vadd.f32 1.0, %v11634_v22  ;;  %v11542_v12 = vsub.f32 1.0, %v11510_v26  ;;  %v11387_v2 = vsub.f32 0.0, %v20971_v43 }
 0xe84   : > { %v21024_v13 = vadd.f32 %v20657_v24, %v20490_v16  ;;  %v11544_v36 = vsub.f32 1.0, %v11512_v61  ;;  %vm11576_vm11 = vcmp.ge.f32.partialorder %v20836_v30, 0.0  ;;  %v21032_v33 = vadd.f32 %v22120_v20, %v20487_v4 }
 0xe85   : > { %v21028_v59 = vmul.f32 0.70710677, %v21019_v5  ;;  %v21035_v58 = vmul.f32 0.5, %v20860_v32  ;;  %v11194_v63 = vadd.f32 1.4214138, %v11162_v45  ;;  %v11418_v29 = vmul.f32 %v11386_v46, %v20914_v54 }
 0xe86   : > { %v21039_v21 = vmul.f32 0.70710677, %v21024_v13  ;;  %v11604_v24 = vsub.f32 0.0, %v11540_v7  ;;  %v11353_v47 = vmul.f32 %v20939_v10, %v11321_v55  ;;  %v21043_v8 = vmul.f32 0.5, %v20874_v9 }
 0xe87   : > { %v10973_v14 = vand.u32 2147483647, %v21028_v59  ;;  %v21047_v40 = vmul.f32 %v11666_v56, %v20807_v19  ;;  %v11606_v25 = vsub.f32 0.0, %v11542_v12  ;;  %v11419_v32 = vmul.f32 %v11387_v2, %v20971_v43 }
 0xe88   : > { %v21051_v44 = vand.u32 2147483647, %v21039_v21  ;;  %v21053_v54 = vpop.eup %15645  ;;  %v11608_v62 = vsub.f32 0.0, %v11544_v36  ;;  %v11388_v38 = vsub.f32 0.0, %v20986_v51  ;;  %v21057_v9 = vmul.f32 0.70710677, %v21032_v33 }
 0xe89   : > { %v11005_v10 = vmul.f32 0.3275911, %v10973_v14  ;;  %v15648_v23 = vpop.eup %15647  ;;  %v11226_v39 = vmul.f32 %v20973_v6, %v11194_v63  ;;  %v11467_v19 = vmul.f32 1.442695, %v11418_v29  ;;  %v11099_v18 = vmul.f32 1.0614054, %v21053_v54 }
 0xe8a   : > { %v11006_v43 = vmul.f32 0.3275911, %v21051_v44  ;;  %v11636_v34 = vsel %vm11572_vm9, %v11540_v7, %v11604_v24  ;;  %v11513_v26 = vmul.f32 %v15648_v23, %v11353_v47  ;;  %v21065_v22 = vand.u32 2147483647, %v21057_v9 }
 0xe8b   : > { %v11037_v11 = vadd.f32 1.0, %v11005_v10  ;;  %v11638_v45 = vsel %vm11574_vm10, %v11542_v12, %v11606_v25  ;;  %v11131_v46 = vadd.f32 -1.4531521, %v11099_v18  ;;  %v11469_v55 = vmul.f32 1.442695, %v11419_v32 }
 0xe8c   : > { %v21067_v61 = vpop.eup %15649  ;;  %v11038_v56 = vadd.f32 1.0, %v11006_v43  ;;  %v11640_v2 = vsel %vm11576_vm11, %v11544_v36, %v11608_v62  ;;  %v11420_v28 = vmul.f32 %v11388_v38, %v20986_v51  ;;  %vm11577_vm12 = vcmp.ge.f32.partialorder %v20870_v17, 0.0 }
 0xe8d   : > { %v11100_v20 = vmul.f32 1.0614054, %v21067_v61  ;;  %15651 = vrcp.f32 %v11037_v11  ;;  %v11258_v7 = vadd.f32 -0.28449672, %v11226_v39  ;;  %v11163_v63 = vmul.f32 %v21053_v54, %v11131_v46 }
 0xe8e   : > { %15653 = vrcp.f32 %v11038_v56  ;;  %v21079_v57 = vadd.f32 %v20665_v53, %v20490_v16  ;;  %v11545_v12 = vsub.f32 1.0, %v11513_v26  ;;  %v11007_v30 = vmul.f32 0.3275911, %v21065_v22 }
 0xe8f   : > { %15655 = vpow2.f32 %v11467_v19  ;;  %v11132_v29 = vadd.f32 -1.4531521, %v11100_v20  ;;  %v11668_v36 = vadd.f32 1.0, %v11636_v34  ;;  %v11670_v24 = vadd.f32 1.0, %v11638_v45 }
 0xe90   : > { %v21083_v51 = vmul.f32 0.5, %v20947_v60  ;;  %v11195_v47 = vadd.f32 1.4214138, %v11163_v63  ;;  %v11672_v25 = vadd.f32 1.0, %v11640_v2  ;;  %15657 = vpow2.f32 %v11469_v55 }
 0xe91   : > { %v11389_v32 = vsub.f32 0.0, %v10973_v14  ;;  %v11039_v62 = vadd.f32 1.0, %v11007_v30  ;;  %v11290_v38 = vmul.f32 %v20973_v6, %v11258_v7  ;;  %v11471_v10 = vmul.f32 1.442695, %v11420_v28 }
 0xe92   : > { %v11227_v53 = vmul.f32 %v21053_v54, %v11195_v47  ;;  %v21088_v23 = vmul.f32 0.70710677, %v21079_v57  ;;  %v11609_v39 = vsub.f32 0.0, %v11545_v12  ;;  %v11164_v19 = vmul.f32 %v21067_v61, %v11132_v29 }
 0xe93   : > { %15659 = vrcp.f32 %v11039_v62  ;;  %v21093_v60 = vadd.f32 %v20690_v49, %v20487_v4  ;;  %v21096_v18 = vmul.f32 %v11668_v36, %v20877_v0  ;;  %v21099_v34 = vmul.f32 0.5, %v20966_v37  ;;  %v22121_v36 = vld [vmem:[#allocation104_spill] sm:$0xff] }
 0xe94   : > { %v11259_v43 = vadd.f32 -0.28449672, %v11227_v53  ;;  %v21102_v26 = vand.u32 2147483647, %v21088_v23  ;;  %v21105_v11 = vmul.f32 %v11670_v24, %v20999_v3  ;;  %v21108_v45 = vmul.f32 %v11672_v25, %v21010_v1 }
 0xe95   : > { %v21111_v46 = vmul.f32 0.5, %v21019_v5  ;;  %v11421_v49 = vmul.f32 %v11389_v32, %v10973_v14  ;;  %v11322_v55 = vadd.f32 0.2548296, %v11290_v38  ;;  %15661 = vpow2.f32 %v11471_v10 }
 0xe96   : > { %v11291_v0 = vmul.f32 %v21053_v54, %v11259_v43  ;;  %v11008_v37 = vmul.f32 0.3275911, %v21102_v26  ;;  %v11641_v2 = vsel %vm11577_vm12, %v11545_v12, %v11609_v39  ;;  %v11196_v3 = vadd.f32 1.4214138, %v11164_v19 }
 0xe97   : > { %v21115_v56 = vpop.eup %15651  ;;  %v11390_v20 = vsub.f32 0.0, %v21051_v44  ;;  %v21121_v1 = vmul.f32 0.70710677, %v21093_v60  ;;  %v11391_v7 = vsub.f32 0.0, %v21065_v22  ;;  %vm11579_vm13 = vcmp.ge.f32.partialorder %v20960_v27, 0.0 }
 0xe98   : > { %v21123_v5 = vpop.eup %15653  ;;  %v11323_v14 = vadd.f32 0.2548296, %v11291_v0  ;;  %v11101_v28 = vmul.f32 1.0614054, %v21115_v56  ;;  %v11040_v63 = vadd.f32 1.0, %v11008_v37  ;;  %v21134_v24 = vadd.f32 %v22121_v36, %v20490_v16 }
 0xe99   : > { %v15656_v29 = vpop.eup %15655  ;;  %v11473_v30 = vmul.f32 1.442695, %v11421_v49  ;;  %v11102_v17 = vmul.f32 1.0614054, %v21123_v5  ;;  %v21130_v12 = vand.u32 2147483647, %v21121_v1  ;;  %v11354_v47 = vmul.f32 %v20973_v6, %v11322_v55 }
 0xe9a   : > { %v11355_v25 = vmul.f32 %v21053_v54, %v11323_v14  ;;  %v11133_v32 = vadd.f32 -1.4531521, %v11101_v28  ;;  %15663 = vrcp.f32 %v11040_v63  ;;  %v15658_v62 = vpop.eup %15657  ;;  %v11673_v38 = vadd.f32 1.0, %v11641_v2 }
 0xe9b   : > { %v11228_v53 = vmul.f32 %v21067_v61, %v11196_v3  ;;  %v11134_v10 = vadd.f32 -1.4531521, %v11102_v17  ;;  %v11009_v39 = vmul.f32 0.3275911, %v21130_v12  ;;  %v11422_v49 = vmul.f32 %v11390_v20, %v21051_v44 }
 0xe9c   : > { %v11515_v19 = vmul.f32 %v15658_v62, %v11355_v25  ;;  %v11165_v43 = vmul.f32 %v21115_v56, %v11133_v32  ;;  %v11423_v0 = vmul.f32 %v11391_v7, %v21065_v22  ;;  %15665 = vpow2.f32 %v11473_v30 }
 0xe9d   : > { %v21143_v37 = vpop.eup %15659  ;;  %v11166_v6 = vmul.f32 %v21123_v5, %v11134_v10  ;;  %v11041_v54 = vadd.f32 1.0, %v11009_v39  ;;  %v21147_v55 = vmul.f32 0.70710677, %v21134_v24  ;;  %v11392_v28 = vsub.f32 0.0, %v21102_v26 }
 0xe9e   : > { %v11547_v2 = vsub.f32 1.0, %v11515_v19  ;;  %v11197_v3 = vadd.f32 1.4214138, %v11165_v43  ;;  %v11103_v14 = vmul.f32 1.0614054, %v21143_v37  ;;  %v21157_v25 = vmul.f32 %v15656_v29, %v11354_v47 }
 0xe9f   : > { %v11260_v63 = vadd.f32 -0.28449672, %v11228_v53  ;;  %v11198_v17 = vadd.f32 1.4214138, %v11166_v6  ;;  %15667 = vrcp.f32 %v11041_v54  ;;  %v21152_v44 = vand.u32 2147483647, %v21147_v55  ;;  %v21154_v22 = vpop.eup %15661 }
 0xea0   : > { %v11611_v20 = vsub.f32 0.0, %v11547_v2  ;;  %v11229_v7 = vmul.f32 %v21115_v56, %v11197_v3  ;;  %v11135_v30 = vadd.f32 -1.4531521, %v11103_v14  ;;  %v11477_v36 = vmul.f32 1.442695, %v11423_v0 }
 0xea1   : > { %v21160_v32 = vmul.f32 0.5, %v21024_v13  ;;  %v11230_v62 = vmul.f32 %v21123_v5, %v11198_v17  ;;  %v11010_v53 = vmul.f32 0.3275911, %v21152_v44  ;;  %v21165_v10 = vmul.f32 %v11673_v38, %v21035_v58 }
 0xea2   : > { %v11643_v39 = vsel %vm11579_vm13, %v11547_v2, %v11611_v20  ;;  %v11261_v19 = vadd.f32 -0.28449672, %v11229_v7  ;;  %v11167_v43 = vmul.f32 %v21143_v37, %v11135_v30  ;;  %v11292_v29 = vmul.f32 %v21067_v61, %v11260_v63  ;;  %v22122_v2 = vld [vmem:[#allocation79_spill] sm:$0xff] }
 0xea3   : > { %v11675_v6 = vadd.f32 1.0, %v11643_v39  ;;  %v11424_v47 = vmul.f32 %v11392_v28, %v21102_v26  ;;  %v11042_v13 = vadd.f32 1.0, %v11010_v53  ;;  %v11475_v3 = vmul.f32 1.442695, %v11422_v49 }
 0xea4   : > { %v21172_v0 = vpop.eup %15663  ;;  %v11293_v54 = vmul.f32 %v21115_v56, %v11261_v19  ;;  %v11199_v14 = vadd.f32 1.4214138, %v11167_v43  ;;  %15669 = vpow2.f32 %v11477_v36  ;;  %v11262_v27 = vadd.f32 -0.28449672, %v11230_v62 }
 0xea5   : > { %v21176_v58 = vmul.f32 %v11675_v6, %v21083_v51  ;;  %v11104_v38 = vmul.f32 1.0614054, %v21172_v0  ;;  %v21181_v17 = vadd.f32 %v22122_v2, %v20487_v4  ;;  %v21184_v26 = vmul.f32 0.5, %v21032_v33 }
 0xea6   : > { %v11325_v63 = vadd.f32 0.2548296, %v11293_v54  ;;  %v11231_v28 = vmul.f32 %v21143_v37, %v11199_v14  ;;  %15671 = vrcp.f32 %v11042_v13  ;;  %v15666_v49 = vpop.eup %15665  ;;  %v11324_v51 = vadd.f32 0.2548296, %v11292_v29  ;;  %v22123_v29 = vld [vmem:[#allocation75_spill] sm:$0xff] }
 0xea7   : > { %v11136_v7 = vadd.f32 -1.4531521, %v11104_v38  ;;  %v11479_v30 = vmul.f32 1.442695, %v11424_v47  ;;  %v11546_v36 = vsub.f32 1.0, %v21157_v25  ;;  %15673 = vpow2.f32 %v11475_v3  ;;  %v22124_v13 = vld [vmem:[#allocation107_spill] sm:$0xff] }
 0xea8   : > { %v11357_v62 = vmul.f32 %v21115_v56, %v11325_v63  ;;  %v11263_v53 = vadd.f32 -0.28449672, %v11231_v28  ;;  %vm11581_vm14 = vcmp.ge.f32.partialorder %v21028_v59, 0.0  ;;  %v11294_v33 = vmul.f32 %v21123_v5, %v11262_v27  ;;  %v22125_v28 = vld [vmem:[#allocation111_spill] sm:$0xff] }
 0xea9   : > { %v21191_v39 = vpop.eup %15667  ;;  %v11168_v19 = vmul.f32 %v21172_v0, %v11136_v7  ;;  %v11393_v43 = vsub.f32 0.0, %v21130_v12  ;;  %v21198_v6 = vmul.f32 0.70710677, %v21181_v17  ;;  %vm11578_vm15 = vcmp.ge.f32.partialorder %v22123_v29, 0.0 }
 0xeaa   : > { %v11517_v25 = vmul.f32 %v15666_v49, %v11357_v62  ;;  %v11295_v56 = vmul.f32 %v21143_v37, %v11263_v53  ;;  %v11105_v47 = vmul.f32 1.0614054, %v21191_v39  ;;  %v21205_v54 = vadd.f32 %v22124_v13, %v20490_v16  ;;  %v22126_v49 = vld [vmem:[#allocation112_spill] sm:$0xff] }
 0xeab   : > { %v11356_v3 = vmul.f32 %v21067_v61, %v11324_v51  ;;  %v11200_v14 = vadd.f32 1.4214138, %v11168_v19  ;;  %15675 = vpow2.f32 %v11479_v30  ;;  %v21209_v27 = vand.u32 2147483647, %v21198_v6 }
 0xeac   : > { %v11549_v38 = vsub.f32 1.0, %v11517_v25  ;;  %v11327_v2 = vadd.f32 0.2548296, %v11295_v56  ;;  %v11137_v63 = vadd.f32 -1.4531521, %v11105_v47  ;;  %v11722_v7 = vpack.c.bf16 %v22126_v49, %v22125_v28  ;;  %v22127_v47 = vld [vmem:[#allocation106_spill] sm:$0xff] }
 0xead   : > { %v11326_v62 = vadd.f32 0.2548296, %v11294_v33  ;;  %v11232_v53 = vmul.f32 %v21172_v0, %v11200_v14  ;;  %v11425_v20 = vmul.f32 %v11393_v43, %v21130_v12  ;;  %v11011_v13 = vmul.f32 0.3275911, %v21209_v27  ;;  %v22128_v14 = vld [vmem:[#allocation103_spill] sm:$0xff] }
 0xeae   : > { %v15670_v41 = vpop.eup %15669  ;;  %v11613_v61 = vsub.f32 0.0, %v11549_v38  ;;  %v11359_v51 = vmul.f32 %v21143_v37, %v11327_v2  ;;  %v11169_v30 = vmul.f32 %v21191_v39, %v11137_v63  ;;  %v21219_v19 = vmul.f32 0.70710677, %v21205_v54  ;;  %11904 = vmatprep.mubr.bf16.mxu0 %v11722_v7 }
 0xeaf   : > { %v11610_v25 = vsub.f32 0.0, %v11546_v36  ;;  %vm11583_vm0 = vcmp.ge.f32.partialorder %v21057_v9, 0.0  ;;  %v11264_v33 = vadd.f32 -0.28449672, %v11232_v53  ;;  %v11043_v56 = vadd.f32 1.0, %v11011_v13  ;;  %v22131_v9 = vld [vmem:[#allocation73_spill] sm:$0xff] }
 0xeb0   : > { %v22129_v12 = vpack.c.bf16 %v22127_v47, %v22128_v14  ;;  %v21225_v43 = vpop.eup %15671  ;;  %v21228_v28 = vmul.f32 %v21154_v22, %v11356_v3  ;;  %v11519_v37 = vmul.f32 %v15670_v41, %v11359_v51  ;;  %v11201_v2 = vadd.f32 1.4214138, %v11169_v30 }
 0xeb1   : > { %v21231_v63 = vand.u32 2147483647, %v21219_v19  ;;  %v11358_v49 = vmul.f32 %v21123_v5, %v11326_v62  ;;  %v11296_v7 = vmul.f32 %v21172_v0, %v11264_v33  ;;  %v11481_v53 = vmul.f32 1.442695, %v11425_v20  ;;  %v15674_v42 = vpop.eup %15673 }
 0xeb2   : > { %11905 = vmatmul.mubr.bf16.vlgmr.msra.gmra.mrb[32].mxu0 %v22129_v12  ;;  %v11106_v13 = vmul.f32 1.0614054, %v21225_v43  ;;  %v11645_v47 = vsel %vm11581_vm14, %v11549_v38, %v11613_v61  ;;  %v11551_v14 = vsub.f32 1.0, %v11519_v37  ;;  %v11233_v22 = vmul.f32 %v21191_v39, %v11201_v2 }
 0xeb3   : > { %15677 = vrcp.f32 %v11043_v56  ;;  %v11642_v41 = vsel %vm11578_vm15, %v11546_v36, %v11610_v25  ;;  %v11328_v3 = vadd.f32 0.2548296, %v11296_v7  ;;  %v11394_v5 = vsub.f32 0.0, %v21152_v44 }
 0xeb4   : > { %v11138_v51 = vadd.f32 -1.4531521, %v11106_v13  ;;  %v11548_v62 = vsub.f32 1.0, %v21228_v28  ;;  %v11615_v20 = vsub.f32 0.0, %v11551_v14  ;;  %v11265_v30 = vadd.f32 -0.28449672, %v11233_v22 }
 0xeb5   : > { %v11012_v33 = vmul.f32 0.3275911, %v21231_v63  ;;  %v15676_v12 = vpop.eup %15675  ;;  %v11677_v59 = vadd.f32 1.0, %v11645_v47  ;;  %v11518_v38 = vmul.f32 %v15674_v42, %v11358_v49  ;;  %v11360_v61 = vmul.f32 %v21172_v0, %v11328_v3  ;;  %v22130_v0 = vld [vmem:[#allocation108_spill] sm:$0xff] }
 0xeb6   : > { %v11170_v56 = vmul.f32 %v21225_v43, %v11138_v51  ;;  %v11647_v36 = vsel %vm11583_vm0, %v11551_v14, %v11615_v20  ;;  %v11297_v29 = vmul.f32 %v21191_v39, %v11265_v30  ;;  %15679 = vpow2.f32 %v11481_v53 }
 0xeb7   : > { %v11044_v25 = vadd.f32 1.0, %v11012_v33  ;;  %vm11580_vm1 = vcmp.ge.f32.partialorder %v20978_v15, 0.0  ;;  %v11679_v28 = vadd.f32 1.0, %v11647_v36  ;;  %v11426_v2 = vmul.f32 %v11394_v5, %v21152_v44  ;;  %v22132_v15 = vld [vmem:[#allocation109_spill] sm:$0xff] }
 0xeb8   : > { %v11202_v37 = vadd.f32 1.4214138, %v11170_v56  ;;  %v11395_v7 = vsub.f32 0.0, %v21209_v27  ;;  %v11520_v42 = vmul.f32 %v15676_v12, %v11360_v61  ;;  %v21254_v49 = vadd.f32 %v22130_v0, %v20487_v4 }
 0xeb9   : > { %15681 = vrcp.f32 %v11044_v25  ;;  %v21258_v13 = vadd.f32 %v22131_v9, %v20490_v16  ;;  %v21261_v53 = vmul.f32 %v11677_v59, %v21111_v46  ;;  %v11550_v47 = vsub.f32 1.0, %v11518_v38 }
 0xeba   : > { %v21264_v14 = vmul.f32 %v11679_v28, %v21184_v26  ;;  %v11234_v44 = vmul.f32 %v21225_v43, %v11202_v37  ;;  %v11674_v22 = vadd.f32 1.0, %v11642_v41  ;;  %vm11582_vm2 = vcmp.ge.f32.partialorder %v21039_v21, 0.0 }
 0xebb   : > { %v11329_v3 = vadd.f32 0.2548296, %v11297_v29  ;;  %v21269_v51 = vmul.f32 0.70710677, %v21254_v49  ;;  %v11612_v5 = vsub.f32 0.0, %v11548_v62  ;;  %v11552_v12 = vsub.f32 1.0, %v11520_v42 }
 0xebc   : > { %v11731_v20 = vpack.c.bf16 %v21264_v14, %v21261_v53  ;;  %v11266_v30 = vadd.f32 -0.28449672, %v11234_v44  ;;  %v11483_v46 = vmul.f32 1.442695, %v11426_v2  ;;  %v11427_v26 = vmul.f32 %v11395_v7, %v21209_v27 }
 0xebd   : > { %v21273_v33 = vpop.eup %15677  ;;  %v21277_v59 = vand.u32 2147483647, %v21269_v51  ;;  %v21280_v41 = vmul.f32 0.70710677, %v21258_v13  ;;  %v11614_v38 = vsub.f32 0.0, %v11550_v47  ;;  %v10912_v61 = vmul.f32 0.5, %v21079_v57 }
 0xebe   : > { %v11107_v56 = vmul.f32 1.0614054, %v21273_v33  ;;  %v11396_v36 = vsub.f32 0.0, %v21231_v63  ;;  %v21286_v29 = vmul.f32 %v11674_v22, %v21043_v8  ;;  %v11361_v25 = vmul.f32 %v21191_v39, %v11329_v3 }
 0xebf   : > { %v11298_v27 = vmul.f32 %v21225_v43, %v11266_v30  ;;  %v11013_v28 = vmul.f32 0.3275911, %v21277_v59  ;;  %vm11584_vm4 = vcmp.ge.f32.partialorder %v21088_v23, 0.0  ;;  %15683 = vpow2.f32 %v11483_v46 }
 0xec0   : > { %v11139_v37 = vadd.f32 -1.4531521, %v11107_v56  ;;  %v21293_v2 = vand.u32 2147483647, %v21280_v41  ;;  %v15680_v57 = vpop.eup %15679  ;;  %v11644_v7 = vsel %vm11580_vm1, %v11548_v62, %v11612_v5  ;;  %v11616_v42 = vsub.f32 0.0, %v11552_v12 }
 0xec1   : > { %v11485_v8 = vmul.f32 1.442695, %v11427_v26  ;;  %v11045_v0 = vadd.f32 1.0, %v11013_v28  ;;  %v11646_v39 = vsel %vm11582_vm2, %v11550_v47, %v11614_v38  ;;  %v11428_v44 = vmul.f32 %v11396_v36, %v21231_v63  ;;  %v22133_v26 = vld [vmem:[#allocation113_spill] sm:$0xff] }
 0xec2   : > { %v11171_v9 = vmul.f32 %v21273_v33, %v11139_v37  ;;  %v11014_v22 = vmul.f32 0.3275911, %v21293_v2  ;;  %v11521_v30 = vmul.f32 %v15680_v57, %v11361_v25  ;;  %v11330_v46 = vadd.f32 0.2548296, %v11298_v27 }
 0xec3   : > { %v21302_v3 = vpop.eup %15681  ;;  %15685 = vrcp.f32 %v11045_v0  ;;  %v21306_v62 = vadd.f32 %v22132_v15, %v20487_v4  ;;  %v21309_v5 = vmul.f32 0.5, %v21093_v60  ;;  %v21314_v63 = vadd.f32 %v22133_v26, %v20490_v16 }
 0xec4   : > { %v11203_v21 = vadd.f32 1.4214138, %v11171_v9  ;;  %v11108_v47 = vmul.f32 1.0614054, %v21302_v3  ;;  %v11676_v38 = vadd.f32 1.0, %v11644_v7  ;;  %v11648_v56 = vsel %vm11584_vm4, %v11552_v12, %v11616_v42 }
 0xec5   : > { %15687 = vpow2.f32 %v11485_v8  ;;  %v11046_v36 = vadd.f32 1.0, %v11014_v22  ;;  %v11678_v25 = vadd.f32 1.0, %v11646_v39  ;;  %vm11585_vm5 = vcmp.ge.f32.partialorder %v21121_v1, 0.0 }
 0xec6   : > { %v11235_v4 = vmul.f32 %v21273_v33, %v11203_v21  ;;  %v11140_v60 = vadd.f32 -1.4531521, %v11108_v47  ;;  %v11487_v27 = vmul.f32 1.442695, %v11428_v44  ;;  %v11553_v28 = vsub.f32 1.0, %v11521_v30 }
 0xec7   : > { %v11362_v37 = vmul.f32 %v21225_v43, %v11330_v46  ;;  %15689 = vrcp.f32 %v11046_v36  ;;  %v21322_v16 = vmul.f32 0.70710677, %v21306_v62  ;;  %v11680_v57 = vadd.f32 1.0, %v11648_v56  ;;  %v22134_v43 = vld [vmem:[#allocation80_spill] sm:$0xff]  ;;  %v22136_v56 = vld [vmem:[#allocation110_spill] sm:$0xff] }
 0xec8   : > { %v11267_v7 = vadd.f32 -0.28449672, %v11235_v4  ;;  %v11172_v23 = vmul.f32 %v21302_v3, %v11140_v60  ;;  %v21326_v12 = vmul.f32 0.70710677, %v21314_v63  ;;  %v21329_v42 = vmul.f32 %v11676_v38, %v21099_v34  ;;  %v22135_v38 = vld [vmem:[#allocation74_spill] sm:$0xff] }
 0xec9   : > { %v11397_v8 = vsub.f32 0.0, %v21277_v59  ;;  %v21333_v0 = vand.u32 2147483647, %v21322_v16  ;;  %v11724_v39 = vpack.c.bf16 %v20992_v52, %v22134_v43  ;;  %v15684_v9 = vpop.eup %15683  ;;  %v21338_v44 = vmul.f32 %v11678_v25, %v21160_v32 }
 0xeca   : > { %v11299_v22 = vmul.f32 %v21273_v33, %v11267_v7  ;;  %v11204_v30 = vadd.f32 1.4214138, %v11172_v23  ;;  %v21342_v46 = vand.u32 2147483647, %v21326_v12  ;;  %v11617_v34 = vsub.f32 0.0, %v11553_v28 }
 0xecb   : > { %v11522_v15 = vmul.f32 %v15684_v9, %v11362_v37  ;;  %15691 = vpow2.f32 %v11487_v27  ;;  %v11015_v21 = vmul.f32 0.3275911, %v21333_v0  ;;  %11912 = vmatprep.mubr.bf16.mxu0 %v11724_v39  ;;  %v21345_v47 = vmul.f32 %v11680_v57, %v10912_v61 }
 0xecc   : > { %v11331_v26 = vadd.f32 0.2548296, %v11299_v22  ;;  %v11236_v52 = vmul.f32 %v21302_v3, %v11204_v30  ;;  %v11016_v32 = vmul.f32 0.3275911, %v21342_v46  ;;  %v22137_v36 = vpack.c.bf16 %v22135_v38, %v22136_v56 }
 0xecd   : > { %v21352_v25 = vpop.eup %15685  ;;  %v11429_v4 = vmul.f32 %v11397_v8, %v21277_v59  ;;  %v11398_v60 = vsub.f32 0.0, %v21293_v2  ;;  %v11047_v27 = vadd.f32 1.0, %v11015_v21  ;;  %v11726_v61 = vpack.c.bf16 %v21096_v18, %v21047_v40 }
 0xece   : > { %11913 = vmatmul.mubr.bf16.gmra.mrb[36].mxu0 %v22137_v36  ;;  %v11363_v37 = vmul.f32 %v21273_v33, %v11331_v26  ;;  %v11268_v57 = vadd.f32 -0.28449672, %v11236_v52  ;;  %v11109_v7 = vmul.f32 1.0614054, %v21352_v25  ;;  %v11048_v23 = vadd.f32 1.0, %v11016_v32 }
 0xecf   : > { %v15688_v43 = vpop.eup %15687  ;;  %v11649_v39 = vsel %vm11585_vm5, %v11553_v28, %v11617_v34  ;;  %v11554_v9 = vsub.f32 1.0, %v11522_v15  ;;  %15693 = vrcp.f32 %v11047_v27  ;;  %11920 = vmatprep.mubr.bf16.mxu0 %v11726_v61  ;;  %v11728_v59 = vpack.c.bf16 %v21108_v45, %v21105_v11 }
 0xed0   : > { %v11523_v8 = vmul.f32 %v15688_v43, %v11363_v37  ;;  %v11300_v22 = vmul.f32 %v21302_v3, %v11268_v57  ;;  %v11141_v40 = vadd.f32 -1.4531521, %v11109_v7  ;;  %15695 = vrcp.f32 %v11048_v23 }
 0xed1   : > { %v21365_v18 = vpop.eup %15689  ;;  %v21368_v33 = vmul.f32 0.5, %v21134_v24  ;;  %v11430_v30 = vmul.f32 %v11398_v60, %v21293_v2  ;;  %v11730_v1 = vpack.c.bf16 %v21329_v42, %v21286_v29  ;;  %v11732_v28 = vpack.c.bf16 %v21345_v47, %v21338_v44 }
 0xed2   : > { %v11555_v34 = vsub.f32 1.0, %v11523_v8  ;;  %v11332_v11 = vadd.f32 0.2548296, %v11300_v22  ;;  %v11173_v45 = vmul.f32 %v21352_v25, %v11141_v40  ;;  %v11110_v15 = vmul.f32 1.0614054, %v21365_v18 }
 0xed3   : > { %v11681_v21 = vadd.f32 1.0, %v11649_v39  ;;  %vm11586_vm6 = vcmp.ge.f32.partialorder %v21147_v55, 0.0  ;;  %v11618_v26 = vsub.f32 0.0, %v11554_v9  ;;  %v11489_v24 = vmul.f32 1.442695, %v11429_v4 }
 0xed4   : > { %v11619_v52 = vsub.f32 0.0, %v11555_v34  ;;  %v11364_v2 = vmul.f32 %v21302_v3, %v11332_v11  ;;  %v11205_v32 = vadd.f32 1.4214138, %v11173_v45  ;;  %v11142_v38 = vadd.f32 -1.4531521, %v11110_v15 }
 0xed5   : > { %v22138_v29 = vpack.c.bf16 %v20937_v35, %v20933_v31  ;;  %v15692_v42 = vpop.eup %15691  ;;  %vm11587_vm7 = vcmp.ge.f32.partialorder %v21198_v6, 0.0  ;;  %v11491_v56 = vmul.f32 1.442695, %v11430_v30  ;;  %v11399_v36 = vsub.f32 0.0, %v21333_v0 }
 0xed6   : > { %v11400_v60 = vsub.f32 0.0, %v21342_v46  ;;  %v11651_v27 = vsel %vm11587_vm7, %v11555_v34, %v11619_v52  ;;  %v11524_v4 = vmul.f32 %v15692_v42, %v11364_v2  ;;  %v11237_v61 = vmul.f32 %v21352_v25, %v11205_v32 }
 0xed7   : > { %11921 = vmatmul.mubr.bf16.gmra.mrb[40].mxu0 %v22138_v29  ;;  %v11174_v3 = vmul.f32 %v21365_v18, %v11142_v38  ;;  %v21388_v37 = vmul.f32 %v11681_v21, %v21309_v5  ;;  %v10915_v31 = vmul.f32 0.5, %v21181_v17  ;;  %v11683_v35 = vadd.f32 1.0, %v11651_v27 }
 0xed8   : > { %11928 = vmatprep.mubr.bf16.mxu0 %v11728_v59  ;;  %15697 = vpow2.f32 %v11489_v24  ;;  %v11650_v6 = vsel %vm11586_vm6, %v11554_v9, %v11618_v26  ;;  %v11556_v57 = vsub.f32 1.0, %v11524_v4  ;;  %v11269_v7 = vadd.f32 -0.28449672, %v11237_v61 }
 0xed9   : > { %v11206_v23 = vadd.f32 1.4214138, %v11174_v3  ;;  %v15694_v43 = vpop.eup %15693  ;;  %v21393_v39 = vmul.f32 %v11683_v35, %v10915_v31  ;;  %15699 = vpow2.f32 %v11491_v56  ;;  %v11431_v59 = vmul.f32 %v11399_v36, %v21333_v0 }
 0xeda   : > { %v11432_v8 = vmul.f32 %v11400_v60, %v21342_v46  ;;  %v15696_v5 = vpop.eup %15695  ;;  %v11620_v22 = vsub.f32 0.0, %v11556_v57  ;;  %v11301_v17 = vmul.f32 %v21352_v25, %v11269_v7  ;;  %v11111_v30 = vmul.f32 1.0614054, %v15694_v43 }
 0xedb   : > { %v11238_v40 = vmul.f32 %v21365_v18, %v11206_v23  ;;  %v11682_v55 = vadd.f32 1.0, %v11650_v6  ;;  %v11733_v9 = vpack.c.bf16 %v21393_v39, %v21388_v37  ;;  %vm11588_vm8 = vcmp.ge.f32.partialorder %v21219_v19, 0.0  ;;  %v22141_v39 = vld [vmem:[#allocation68_spill] sm:$0xff] }
 0xedc   : > { %v11112_v34 = vmul.f32 1.0614054, %v15696_v5  ;;  %v11652_v11 = vsel %vm11588_vm8, %v11556_v57, %v11620_v22  ;;  %v11333_v45 = vadd.f32 0.2548296, %v11301_v17  ;;  %v11143_v0 = vadd.f32 -1.4531521, %v11111_v30 }
 0xedd   : > { %v11270_v15 = vadd.f32 -0.28449672, %v11238_v40  ;;  %v22139_v46 = vpack.c.bf16 %v21006_v48, %v21004_v50  ;;  %v10916_v21 = vmul.f32 0.5, %v21205_v54  ;;  %v11684_v26 = vadd.f32 1.0, %v11652_v11 }
 0xede   : > { %v11493_v24 = vmul.f32 1.442695, %v11431_v59  ;;  %v11144_v52 = vadd.f32 -1.4531521, %v11112_v34  ;;  %v11365_v2 = vmul.f32 %v21352_v25, %v11333_v45  ;;  %v11175_v19 = vmul.f32 %v15694_v43, %v11143_v0 }
 0xedf   : > { %11929 = vmatmul.mubr.bf16.gmra.mrb[44].mxu0 %v22139_v46  ;;  %v11302_v32 = vmul.f32 %v21365_v18, %v11270_v15  ;;  %v11495_v38 = vmul.f32 1.442695, %v11432_v8  ;;  %v11714_v29 = vmul.f32 %v11682_v55, %v21368_v33  ;;  %v11716_v42 = vmul.f32 %v11684_v26, %v10916_v21 }
 0xee0   : > { %11936 = vmatprep.mubr.bf16.mxu0 %v11730_v1  ;;  %v11176_v56 = vmul.f32 %v15696_v5, %v11144_v52  ;;  %v11207_v60 = vadd.f32 1.4214138, %v11175_v19  ;;  %15701 = vpow2.f32 %v11493_v24  ;;  %v22140_v33 = vpack.c.bf16 %v21176_v58, %v21165_v10  ;;  %v21432_v52 = vld [vmem:[%s1292_s10] ss:$0 sm:$0xff] }
 0xee1   : > { %v11334_v36 = vadd.f32 0.2548296, %v11302_v32  ;;  %v11734_v54 = vpack.c.bf16 %v11716_v42, %v11714_v29  ;;  %15703 = vpow2.f32 %v11495_v38  ;;  %vm11589_vm9 = vcmp.ge.f32.partialorder %v21269_v51, 0.0  ;;  %v22142_v29 = vld [vmem:[#allocation65_spill] sm:$0xff] }
 0xee2   : > { %v15698_v50 = vpop.eup %15697  ;;  %v11208_v48 = vadd.f32 1.4214138, %v11176_v56  ;;  %v11239_v1 = vmul.f32 %v15694_v43, %v11207_v60  ;;  %vm11590_vm10 = vcmp.ge.f32.partialorder %v21280_v41, 0.0  ;;  %vm11591_vm11 = vcmp.ge.f32.partialorder %v21322_v16, 0.0 }
 0xee3   : > { %v11525_v27 = vmul.f32 %v15698_v50, %v11365_v2  ;;  %v11366_v4 = vmul.f32 %v21365_v18, %v11334_v36  ;;  %v15700_v25 = vpop.eup %15699  ;;  %vm11592_vm12 = vcmp.ge.f32.partialorder %v21326_v12, 0.0  ;;  %v10917_v53 = vmul.f32 0.5, %v21254_v49 }
 0xee4   : > { %v11240_v61 = vmul.f32 %v15696_v5, %v11208_v48  ;;  %v11271_v31 = vadd.f32 -0.28449672, %v11239_v1  ;;  %v10919_v14 = vmul.f32 0.5, %v21306_v62  ;;  %v10918_v41 = vmul.f32 0.5, %v21258_v13 }
 0xee5   : > { %v11526_v3 = vmul.f32 %v15700_v25, %v11366_v4  ;;  %v11557_v6 = vsub.f32 1.0, %v11525_v27  ;;  %v10920_v0 = vmul.f32 0.5, %v21314_v63  ;;  %v22143_v4 = vld [vmem:[#allocation72_spill] sm:$0xff]  ;;  %vm12024_vm13 = vcmask (!%p13195_p3), 1041409  }
 0xee6   : > { %v11272_v35 = vadd.f32 -0.28449672, %v11240_v61  ;;  %v11303_v57 = vmul.f32 %v15694_v43, %v11271_v31  ;;  %v22144_v61 = vld [vmem:[#allocation92_spill] sm:$0xff]  ;;  %vm12027_vm14 = vcmask (!%p13195_p3), 1042434   ;;  %vm12030_vm15 = vcmask (!%p13195_p3), 1043459  }
 0xee7   : > { %11937 = vmatmul.mubr.bf16.gmra.mrb[48].mxu0 %v22140_v33  ;;  %v11558_v7 = vsub.f32 1.0, %v11526_v3  ;;  %v11621_v8 = vsub.f32 0.0, %v11557_v6  ;;  %vm12033_vm0 = vcmask (!%p13195_p3), 1044484   ;;  %vm12036_vm1 = vcmask (!%p13195_p3), 1045509  }
 0xee8   : > { %11944 = vmatprep.mubr.bf16.mxu0 %v11732_v28  ;;  %v11304_v23 = vmul.f32 %v15696_v5, %v11272_v35  ;;  %v11335_v18 = vadd.f32 0.2548296, %v11303_v57  ;;  %vm12039_vm2 = vcmask (!%p13195_p3), 1046534   ;;  %vm12042_vm4 = vcmask (!%p13195_p3), 1047559  }
 0xee9   : > { %v11622_v40 = vsub.f32 0.0, %v11558_v7  ;;  %v11653_v58 = vsel %vm11589_vm9, %v11557_v6, %v11621_v8  ;;  %vm16604_vm5 = vmmov (!%p13195_p3), 0  }
 0xeea   : > { %v11336_v59 = vadd.f32 0.2548296, %v11304_v23  ;;  %v11367_v22 = vmul.f32 %v15694_v43, %v11335_v18  ;;  %v15702_v17 = vpop.eup %15701  ;;  %v11685_v11 = vadd.f32 1.0, %v11653_v58  ;;  %v22145_v18 = vld [vmem:[#allocation64_spill] sm:$0xff] }
 0xeeb   : > { %v15704_v55 = vpop.eup %15703  ;;  %v11654_v47 = vsel %vm11590_vm10, %v11558_v7, %v11622_v40 }
 0xeec   : > { %v11368_v30 = vmul.f32 %v15696_v5, %v11336_v59  ;;  %v11527_v34 = vmul.f32 %v15702_v17, %v11367_v22  ;;  %v11686_v45 = vadd.f32 1.0, %v11654_v47  ;;  %v11717_v16 = vmul.f32 %v11685_v11, %v10917_v53  ;;  %v22146_v22 = vld [vmem:[#allocation69_spill] sm:$0xff]  ;;  %v22148_v11 = vld [vmem:[#allocation91_spill] sm:$0xff] }
 0xeed   : > { %v22147_v47 = vld [vmem:[#allocation97_spill] sm:$0xff] }
 0xeee   : > { %v11528_v10 = vmul.f32 %v15704_v55, %v11368_v30  ;;  %v11559_v44 = vsub.f32 1.0, %v11527_v34  ;;  %v11718_v26 = vmul.f32 %v11686_v45, %v10918_v41 }
 0xeef   : > { %11945 = vmatmul.mubr.bf16.gmra.mrb[52].mxu0 %v11731_v20 }
 0xef0   : > { %11952 = vmatprep.mubr.bf16.mxu0 %v11734_v54  ;;  %v11560_v28 = vsub.f32 1.0, %v11528_v10  ;;  %v11623_v43 = vsub.f32 0.0, %v11559_v44 }
 0xef2   : > { %v11624_v5 = vsub.f32 0.0, %v11560_v28  ;;  %v11655_v15 = vsel %vm11591_vm11, %v11559_v44, %v11623_v43 }
 0xef3   : > { %v11687_v51 = vadd.f32 1.0, %v11655_v15 }
 0xef4   : > { %v11656_v20 = vsel %vm11592_vm12, %v11560_v28, %v11624_v5 }
 0xef5   : > { %v11688_v46 = vadd.f32 1.0, %v11656_v20  ;;  %v11719_v21 = vmul.f32 %v11687_v51, %v10919_v14 }
 0xef7   : > { %11953 = vmatmul.mubr.bf16.gmra.mrb[56].mxu0 %v11733_v9  ;;  %v11720_v12 = vmul.f32 %v11688_v46, %v10920_v0  ;;  %v11735_v24 = vpack.c.bf16 %v11719_v21, %v11717_v16  ;;  %v22149_v0 = vld [vmem:[#allocation90_spill] sm:$0xff]  ;;  %v22150_v21 = vld [vmem:[#allocation96_spill] sm:$0xff] }
 0xef9   : > { %v11736_v49 = vpack.c.bf16 %v11720_v12, %v11718_v26 }
 0xefb   : > { %11960 = vmatprep.mubr.bf16.mxu0 %v11736_v49 }
 0xeff   : > { %11961 = vmatmul.mubr.bf16.gmra.mrb[60].mxu0 %v11735_v24 }
 0xf85   : > { %v13535_v62 = vpop.f32.mrb[32].mxu0 }
 0xf86   : > { %v13536_v13 = vpop.f32.mrb[33].mxu0 }
 0xf87   : > { %v13537_v2 = vadd.f32 %v13536_v13, %v13535_v62  ;;  %v13538_v63 = vpop.f32.mrb[34].mxu0 }
 0xf88   : > { %v13539_v32 = vpop.f32.mrb[35].mxu0 }
 0xf89   : > { %v11907_v19 = vadd.f32 %v13537_v2, %v21432_v52  ;;  %v13540_v37 = vadd.f32 %v13539_v32, %v13538_v63  ;;  %v22151_v32 = vld [vmem:[#allocation94_spill] sm:$0xff] }
 0xf8b   : > { %v21436_v9 = vadd.f32 %v11907_v19, %v22141_v39  ;;  %v11910_v38 = vadd.f32 %v13540_v37, %v21432_v52  ;;  %v22152_v39 = vld [vmem:[#allocation93_spill] sm:$0xff] }
 0xf8d   : > { %11985 = vst.msk [vmem:[#allocation2] sm:$0xff] %vm1831_vm3, %v21436_v9  ;;  %v21442_v42 = vadd.f32 %v11910_v38, %v22142_v29 }
 0xf8f   : > { %11986 = vst.msk [vmem:[#allocation2 + $0x8] sm:$0xff] %vm1831_vm3, %v21442_v42 }
 0xfa1   : > { %v13541_v56 = vpop.f32.mrb[36].mxu0 }
 0xfa2   : > { %v13542_v36 = vpop.f32.mrb[37].mxu0 }
 0xfa3   : > { %v13543_v60 = vadd.f32 %v13542_v36, %v13541_v56  ;;  %v13544_v50 = vpop.f32.mrb[38].mxu0 }
 0xfa4   : > { %v13545_v48 = vpop.f32.mrb[39].mxu0 }
 0xfa5   : > { %v11915_v54 = vadd.f32 %v13543_v60, %v21432_v52  ;;  %v13546_v27 = vadd.f32 %v13545_v48, %v13544_v50 }
 0xfa7   : > { %v21448_v1 = vadd.f32 %v11915_v54, %v22143_v4  ;;  %v11918_v25 = vadd.f32 %v13546_v27, %v21432_v52  ;;  %v22153_v27 = vld [vmem:[#allocation98_spill] sm:$0xff] }
 0xfa9   : > { %11987 = vst.msk [vmem:[#allocation2 + $0x10] sm:$0xff] %vm1831_vm3, %v21448_v1  ;;  %v21454_v3 = vadd.f32 %v11918_v25, %v22144_v61  ;;  %v22154_v61 = vld [vmem:[#allocation101_spill] sm:$0xff] }
 0xfaa   : > { %v13547_v31 = vpop.f32.mrb[40].mxu0 }
 0xfab   : > { %v13548_v33 = vpop.f32.mrb[41].mxu0  ;;  %11988 = vst.msk [vmem:[#allocation2 + $0x18] sm:$0xff] %vm1831_vm3, %v21454_v3 }
 0xfac   : > { %v13549_v35 = vadd.f32 %v13548_v33, %v13547_v31  ;;  %v13550_v6 = vpop.f32.mrb[42].mxu0 }
 0xfad   : > { %v13551_v57 = vpop.f32.mrb[43].mxu0 }
 0xfae   : > { %v11923_v7 = vadd.f32 %v13549_v35, %v21432_v52  ;;  %v13552_v23 = vadd.f32 %v13551_v57, %v13550_v6 }
 0xfb0   : > { %v21460_v59 = vadd.f32 %v11923_v7, %v22145_v18  ;;  %v11926_v8 = vadd.f32 %v13552_v23, %v21432_v52 }
 0xfb2   : > { %11989 = vst.msk [vmem:[#allocation2 + $0x20] sm:$0xff] %vm1831_vm3, %v21460_v59  ;;  %v21466_v17 = vadd.f32 %v11926_v8, %v22146_v22  ;;  %v13553_v40 = vpop.f32.mrb[44].mxu0  ;;  %v22155_v8 = vld [vmem:[#allocation95_spill] sm:$0xff] }
 0xfb3   : > { %v13554_v30 = vpop.f32.mrb[45].mxu0 }
 0xfb4   : > { %11990 = vst.msk [vmem:[#allocation2 + $0x28] sm:$0xff] %vm1831_vm3, %v21466_v17  ;;  %v13555_v55 = vadd.f32 %v13554_v30, %v13553_v40  ;;  %v13556_v34 = vpop.f32.mrb[46].mxu0  ;;  %v22156_v30 = vld [vmem:[#allocation99_spill] sm:$0xff] }
 0xfb5   : > { %v13557_v10 = vpop.f32.mrb[47].mxu0 }
 0xfb6   : > { %v11931_v58 = vadd.f32 %v13555_v55, %v21432_v52  ;;  %v13558_v44 = vadd.f32 %v13557_v10, %v13556_v34  ;;  %v12023_v34 = vrot.slane (!%p13195_p3), %v21442_v42, 7  ;;  %v12026_v10 = vrot.slane (!%p13195_p3), %v21448_v1, 6 }
 0xfb8   : > { %v21472_v28 = vadd.f32 %v11931_v58, %v22147_v47  ;;  %v11934_v43 = vadd.f32 %v13558_v44, %v21432_v52  ;;  %v12032_v58 = vrot.slane (!%p13195_p3), %v21460_v59, 4  ;;  %v12025_v44 = vsel (!%p13195_p3), %vm12024_vm13, %v12023_v34, %v21436_v9 }
 0xfb9   : > { %v12035_v47 = vrot.slane (!%p13195_p3), %v21466_v17, 3 }
 0xfba   : > { %11991 = vst.msk [vmem:[#allocation2 + $0x30] sm:$0xff] %vm1831_vm3, %v21472_v28  ;;  %v21478_v5 = vadd.f32 %v11934_v43, %v22148_v11  ;;  %v13559_v45 = vpop.f32.mrb[48].mxu0  ;;  %v12028_v43 = vsel (!%p13195_p3), %vm12027_vm14, %v12026_v10, %v12025_v44  ;;  %v12038_v11 = vrot.slane (!%p13195_p3), %v21472_v28, 2 }
 0xfbb   : > { %v13560_v15 = vpop.f32.mrb[49].mxu0 }
 0xfbc   : > { %11992 = vst.msk [vmem:[#allocation2 + $0x38] sm:$0xff] %vm1831_vm3, %v21478_v5  ;;  %v13561_v53 = vadd.f32 %v13560_v15, %v13559_v45  ;;  %v13562_v14 = vpop.f32.mrb[50].mxu0  ;;  %v12041_v45 = vrot.slane (!%p13195_p3), %v21478_v5, 1 }
 0xfbd   : > { %v13563_v51 = vpop.f32.mrb[51].mxu0 }
 0xfbe   : > { %v11939_v20 = vadd.f32 %v13561_v53, %v21432_v52  ;;  %v13564_v41 = vadd.f32 %v13563_v51, %v13562_v14 }
 0xfc0   : > { %v21484_v46 = vadd.f32 %v11939_v20, %v22149_v0  ;;  %v11942_v16 = vadd.f32 %v13564_v41, %v21432_v52 }
 0xfc2   : > { %11993 = vst.msk [vmem:[#allocation2 + $0x40] sm:$0xff] %vm1831_vm3, %v21484_v46  ;;  %v21490_v26 = vadd.f32 %v11942_v16, %v22150_v21  ;;  %v13565_v12 = vpop.f32.mrb[52].mxu0 }
 0xfc3   : > { %v13566_v24 = vpop.f32.mrb[53].mxu0 }
 0xfc4   : > { %11994 = vst.msk [vmem:[#allocation2 + $0x48] sm:$0xff] %vm1831_vm3, %v21490_v26  ;;  %v13567_v49 = vadd.f32 %v13566_v24, %v13565_v12  ;;  %v13568_v62 = vpop.f32.mrb[54].mxu0  ;;  %v12044_v53 = vrot.slane (!%p13195_p3), %v21490_v26, 7 }
 0xfc5   : > { %v13569_v13 = vpop.f32.mrb[55].mxu0 }
 0xfc6   : > { %v11947_v2 = vadd.f32 %v13567_v49, %v21432_v52  ;;  %v13570_v63 = vadd.f32 %v13569_v13, %v13568_v62  ;;  %v12045_v16 = vsel (!%p13195_p3), %vm12024_vm13, %v12044_v53, %v21484_v46 }
 0xfc8   : > { %v21496_v19 = vadd.f32 %v11947_v2, %v22151_v32  ;;  %v11950_v37 = vadd.f32 %v13570_v63, %v21432_v52 }
 0xfca   : > { %11995 = vst.msk [vmem:[#allocation2 + $0x50] sm:$0xff] %vm1831_vm3, %v21496_v19  ;;  %v21502_v38 = vadd.f32 %v11950_v37, %v22152_v39  ;;  %v13571_v29 = vpop.f32.mrb[56].mxu0  ;;  %v12046_v14 = vrot.slane (!%p13195_p3), %v21496_v19, 6 }
 0xfcb   : > { %v13572_v56 = vpop.f32.mrb[57].mxu0 }
 0xfcc   : > { %11996 = vst.msk [vmem:[#allocation2 + $0x58] sm:$0xff] %vm1831_vm3, %v21502_v38  ;;  %v13573_v36 = vadd.f32 %v13572_v56, %v13571_v29  ;;  %v13574_v60 = vpop.f32.mrb[58].mxu0  ;;  %v12048_v51 = vrot.slane (!%p13195_p3), %v21502_v38, 5  ;;  %v12047_v24 = vsel (!%p13195_p3), %vm12027_vm14, %v12046_v14, %v12045_v16 }
 0xfcd   : > { %v13575_v50 = vpop.f32.mrb[59].mxu0 }
 0xfce   : > { %v11955_v48 = vadd.f32 %v13573_v36, %v21432_v52  ;;  %v13576_v54 = vadd.f32 %v13575_v50, %v13574_v60  ;;  %v12049_v13 = vsel (!%p13195_p3), %vm12030_vm15, %v12048_v51, %v12047_v24 }
 0xfd0   : > { %v21508_v4 = vadd.f32 %v11955_v48, %v22153_v27  ;;  %v11958_v25 = vadd.f32 %v13576_v54, %v21432_v52 }
 0xfd2   : > { %11997 = vst.msk [vmem:[#allocation2 + $0x60] sm:$0xff] %vm1831_vm3, %v21508_v4  ;;  %v21514_v31 = vadd.f32 %v11958_v25, %v22154_v61  ;;  %v13577_v33 = vpop.f32.mrb[60].mxu0  ;;  %v12050_v41 = vrot.slane (!%p13195_p3), %v21508_v4, 4 }
 0xfd3   : > { %v13578_v35 = vpop.f32.mrb[61].mxu0 }
 0xfd4   : > { %11998 = vst.msk [vmem:[#allocation2 + $0x68] sm:$0xff] %vm1831_vm3, %v21514_v31  ;;  %v13579_v6 = vadd.f32 %v13578_v35, %v13577_v33  ;;  %v13580_v57 = vpop.f32.mrb[62].mxu0  ;;  %v12052_v21 = vrot.slane (!%p13195_p3), %v21514_v31, 3  ;;  %v12051_v32 = vsel (!%p13195_p3), %vm12033_vm0, %v12050_v41, %v12049_v13 }
 0xfd5   : > { %v13581_v7 = vpop.f32.mrb[63].mxu0 }
 0xfd6   : > { %v11963_v23 = vadd.f32 %v13579_v6, %v21432_v52  ;;  %v13582_v18 = vadd.f32 %v13581_v7, %v13580_v57  ;;  %12004 = sbr.rel (%p13195_p3) target bundleno = 4633 (0x1219), region = 228  ;;  %v12053_v37 = vsel (!%p13195_p3), %vm12036_vm1, %v12052_v21, %v12051_v32 }
 0xfd8   : > { %v21520_v22 = vadd.f32 %v11963_v23, %v22155_v8  ;;  %v11966_v40 = vadd.f32 %v13582_v18, %v21432_v52  ;;  %v12029_v52 = vrot.slane (!%p13195_p3), %v21454_v3, 5 }
 0xfda   : > { %11999 = vst.msk [vmem:[#allocation2 + $0x70] sm:$0xff] %vm1831_vm3, %v21520_v22  ;;  %v21526_v55 = vadd.f32 %v11966_v40, %v22156_v30  ;;  %v12031_v15 = vsel (!%p13195_p3), %vm12030_vm15, %v12029_v52, %v12028_v43  ;;  %v12054_v49 = vrot.slane (!%p13195_p3), %v21520_v22, 2 }
 0xfdb   : > { %v12034_v20 = vsel (!%p13195_p3), %vm12033_vm0, %v12032_v58, %v12031_v15 }
 0xfdc   : > { %12000 = vst.msk [vmem:[#allocation2 + $0x78] sm:$0xff] %vm1831_vm3, %v21526_v55  ;;  %v12037_v0 = vsel (!%p13195_p3), %vm12036_vm1, %v12035_v47, %v12034_v20  ;;  %v12056_v2 = vrot.slane (!%p13195_p3), %v21526_v55, 1  ;;  %v12055_v39 = vsel (!%p13195_p3), %vm12039_vm2, %v12054_v49, %v12053_v37 }
 0xfdd   : > { %v12040_v12 = vsel %vm12039_vm2, %v12038_v11, %v12037_v0 }
 0xfde   : > { %v12043_v62 = vsel %vm12042_vm4, %v12041_v45, %v12040_v12  ;;  %v12057_v29 = vsel %vm12042_vm4, %v12056_v2, %v12055_v39 }
 0xfdf   : > { %v12060_v63 = vsel %vm1831_vm3, %v12043_v62, 0.0  ;;  %v12063_v56 = vsel %vm1831_vm3, %v12057_v29, 0.0 }
 0xfe0   : > { %12061 = vadd.xlane.f32.xlu0 %v12060_v63 }
 0xfe4   : > { %12064 = vadd.xlane.f32.xlu0 %v12063_v56 }
0x106d   : > { %v12062_v36 = vpop.xlane.xlu0 %12061 }
0x106e   : > { %v12066_v60 = vmul.f32 0.015625, %v12062_v36 }
0x1070   : > { %v12070_v50 = vrot.slane %v12066_v60, 1  ;;  %v12071_v48 = vrot.slane %v12066_v60, 2  ;;  %v12072_v54 = vrot.slane %v12066_v60, 3  ;;  %v12073_v27 = vrot.slane %v12066_v60, 4 }
0x1071   : > { %v12065_v25 = vpop.xlane.xlu0 %12064  ;;  %v12074_v61 = vrot.slane %v12066_v60, 5  ;;  %v12075_v33 = vrot.slane %v12066_v60, 6  ;;  %v12076_v35 = vrot.slane %v12066_v60, 7  ;;  %v21564_v6 = vsub.f32 %v21436_v9, %v12066_v60 }
0x1072   : > { %v12067_v57 = vmul.f32 0.015625, %v12065_v25  ;;  %v21567_v7 = vsub.f32 %v21442_v42, %v12070_v50  ;;  %v21570_v23 = vsub.f32 %v21448_v1, %v12071_v48  ;;  %v21573_v18 = vsub.f32 %v21454_v3, %v12072_v54 }
0x1073   : > { %v21576_v8 = vsub.f32 %v21460_v59, %v12073_v27  ;;  %v21579_v40 = vsub.f32 %v21466_v17, %v12074_v61  ;;  %v21582_v30 = vsub.f32 %v21472_v28, %v12075_v33  ;;  %v21585_v9 = vsub.f32 %v21478_v5, %v12076_v35 }
0x1074   : > { %v12117_v42 = vmul.f32 %v21567_v7, %v21567_v7  ;;  %v12118_v1 = vmul.f32 %v21570_v23, %v21570_v23  ;;  %v12119_v3 = vmul.f32 %v21573_v18, %v21573_v18  ;;  %v12116_v59 = vmul.f32 %v21564_v6, %v21564_v6 }
0x1075   : > { %v12120_v17 = vmul.f32 %v21576_v8, %v21576_v8  ;;  %v12121_v28 = vmul.f32 %v21579_v40, %v21579_v40  ;;  %v12122_v5 = vmul.f32 %v21582_v30, %v21582_v30  ;;  %v12123_v34 = vmul.f32 %v21585_v9, %v21585_v9 }
0x1076   : > { %v12148_v10 = vrot.slane %v12117_v42, 7  ;;  %v12150_v52 = vrot.slane %v12118_v1, 6  ;;  %v12077_v58 = vrot.slane %v12067_v57, 1  ;;  %v12152_v44 = vrot.slane %v12119_v3, 5 }
0x1077   : > { %v12154_v47 = vrot.slane %v12120_v17, 4  ;;  %v12156_v43 = vrot.slane %v12121_v28, 3  ;;  %v12158_v11 = vrot.slane %v12122_v5, 2  ;;  %v12078_v15 = vrot.slane %v12067_v57, 2  ;;  %v15721_v28 = vld [vmem:[#allocation39] sm:$0xff]  }
0x1078   : > { %v12149_v45 = vsel %vm12024_vm13, %v12148_v10, %v12116_v59  ;;  %v12079_v53 = vrot.slane %v12067_v57, 3  ;;  %v12080_v14 = vrot.slane %v12067_v57, 4  ;;  %v12081_v20 = vrot.slane %v12067_v57, 5  ;;  %v15723_v10 = vld [vmem:[#allocation39 + $0x10] sm:$0xff]  }
0x1079   : > { %v12151_v51 = vsel %vm12027_vm14, %v12150_v52, %v12149_v45  ;;  %v12082_v41 = vrot.slane %v12067_v57, 6  ;;  %v12083_v0 = vrot.slane %v12067_v57, 7  ;;  %v21607_v21 = vsub.f32 %v21484_v46, %v12067_v57  ;;  %v15724_v52 = vld [vmem:[#allocation39 + $0x18] sm:$0xff]  }
0x107a   : > { %v12153_v16 = vsel %vm12030_vm15, %v12152_v44, %v12151_v51  ;;  %v21610_v12 = vsub.f32 %v21490_v26, %v12077_v58  ;;  %v21613_v24 = vsub.f32 %v21496_v19, %v12078_v15  ;;  %v21617_v62 = vsub.f32 %v21502_v38, %v12079_v53  ;;  %v13196_v53 = vld [vmem:[#allocation36] ss:$0 sm:$0xff] }
0x107b   : > { %v12155_v49 = vsel %vm12033_vm0, %v12154_v47, %v12153_v16  ;;  %v21620_v13 = vsub.f32 %v21508_v4, %v12080_v14  ;;  %v21623_v2 = vsub.f32 %v21514_v31, %v12081_v20  ;;  %v12160_v63 = vrot.slane %v12123_v34, 1  ;;  %v15722_v34 = vld [vmem:[#allocation39 + $0x8] sm:$0xff]  }
0x107c   : > { %v12157_v46 = vsel %vm12036_vm1, %v12156_v43, %v12155_v49  ;;  %v21627_v26 = vsub.f32 %v21520_v22, %v12082_v41  ;;  %v21630_v19 = vsub.f32 %v21526_v55, %v12083_v0  ;;  %v12125_v38 = vmul.f32 %v21610_v12, %v21610_v12 }
0x107d   : > { %v12159_v32 = vsel %vm12039_vm2, %v12158_v11, %v12157_v46  ;;  %v12126_v4 = vmul.f32 %v21613_v24, %v21613_v24  ;;  %v12127_v31 = vmul.f32 %v21617_v62, %v21617_v62  ;;  %v12124_v22 = vmul.f32 %v21607_v21, %v21607_v21 }
0x107e   : > { %v12161_v37 = vsel %vm12042_vm4, %v12160_v63, %v12159_v32  ;;  %v12128_v55 = vmul.f32 %v21620_v13, %v21620_v13  ;;  %v12129_v29 = vmul.f32 %v21623_v2, %v21623_v2  ;;  %v12162_v56 = vrot.slane %v12125_v38, 7 }
0x107f   : > { %v12178_v39 = vsel %vm1831_vm3, %v12161_v37, 0.0  ;;  %v12164_v36 = vrot.slane %v12126_v4, 6  ;;  %v12130_v60 = vmul.f32 %v21627_v26, %v21627_v26  ;;  %v12131_v50 = vmul.f32 %v21630_v19, %v21630_v19 }
0x1080   : > { %12179 = vadd.xlane.f32.xlu1 %v12178_v39  ;;  %v12163_v48 = vsel %vm12024_vm13, %v12162_v56, %v12124_v22  ;;  %v12166_v54 = vrot.slane %v12127_v31, 5  ;;  %v12168_v25 = vrot.slane %v12128_v55, 4  ;;  %v12170_v33 = vrot.slane %v12129_v29, 3  ;;  %v13197_v39 = vld [vmem:[#allocation38] ss:$0 sm:$0xff] }
0x1081   : > { %v12165_v27 = vsel %vm12027_vm14, %v12164_v36, %v12163_v48  ;;  %v12172_v57 = vrot.slane %v12130_v60, 2  ;;  %v12174_v1 = vrot.slane %v12131_v50, 1  ;;  %v16603_v5 = vmov 0.0  }
0x1082   : > { %v12167_v61 = vsel %vm12030_vm15, %v12166_v54, %v12165_v27  ;;  %14452 = vmatprep.subr.bf16.mxu0 %v16603_v5  ;;  %14460 = vmatprep.mubr.msk.bf16.mxu0 %vm16604_vm5, %v16603_v5 }
0x1083   : > { %v12169_v35 = vsel %vm12033_vm0, %v12168_v25, %v12167_v61  ;;  %14453 = vmatpush3.bf16.msra.mxu0 %v15721_v28 }
0x1084   : > { %v12171_v42 = vsel %vm12036_vm1, %v12170_v33, %v12169_v35  ;;  %14454 = vmatprep.subr.bf16.mxu0 %v16603_v5 }
0x1085   : > { %v12173_v3 = vsel %vm12039_vm2, %v12172_v57, %v12171_v42 }
0x1086   : > { %v12175_v59 = vsel %vm12042_vm4, %v12174_v1, %v12173_v3 }
0x1087   : > { %v12181_v17 = vsel %vm1831_vm3, %v12175_v59, 0.0  ;;  %14455 = vmatpush3.bf16.msra.mxu0 %v15722_v34 }
0x1088   : > { %12182 = vadd.xlane.f32.xlu1 %v12181_v17  ;;  %14456 = vmatprep.subr.bf16.mxu0 %v16603_v5 }
0x108b   : > { %14457 = vmatpush3.bf16.msra.mxu0 %v15723_v10 }
0x108c   : > { %14458 = vmatprep.subr.bf16.mxu0 %v16603_v5 }
0x108f   : > { %14459 = vmatpush3.bf16.msra.mxu0 %v15724_v52 }
0x110d   : > { %v12180_v58 = vpop.xlane.xlu1 %12179 }
0x110e   : > { %v12184_v44 = vmul.f32 0.015625, %v12180_v58 }
0x1110   : > { %v12186_v47 = vadd.f32 1e-06, %v12184_v44 }
0x1112   : > { %15725 = vrsqrt.f32 %v12186_v47 }
0x1115   : > { %v12183_v43 = vpop.xlane.xlu1 %12182 }
0x1116   : > { %v12185_v11 = vmul.f32 0.015625, %v12183_v43 }
0x1118   : > { %v12187_v45 = vadd.f32 1e-06, %v12185_v11 }
0x111a   : > { %15727 = vrsqrt.f32 %v12187_v45 }
0x111c   : > { %v15726_v15 = vpop.eup %15725 }
0x111d   : > { %v12192_v14 = vrot.slane %v15726_v15, 1  ;;  %v12193_v51 = vrot.slane %v15726_v15, 2  ;;  %v12194_v20 = vrot.slane %v15726_v15, 3  ;;  %v12195_v41 = vrot.slane %v15726_v15, 4 }
0x111e   : > { %v12196_v0 = vrot.slane %v15726_v15, 5  ;;  %v12197_v16 = vrot.slane %v15726_v15, 6  ;;  %v12198_v49 = vrot.slane %v15726_v15, 7  ;;  %v12222_v46 = vmul.f32 %v15726_v15, %v21564_v6 }
0x111f   : > { %v12223_v63 = vmul.f32 %v12192_v14, %v21567_v7  ;;  %v12224_v32 = vmul.f32 %v12193_v51, %v21570_v23  ;;  %v12225_v38 = vmul.f32 %v12194_v20, %v21573_v18  ;;  %v12226_v4 = vmul.f32 %v12195_v41, %v21576_v8 }
0x1120   : > { %v12227_v31 = vmul.f32 %v12196_v0, %v21579_v40  ;;  %v12228_v37 = vmul.f32 %v12197_v16, %v21582_v30  ;;  %v12229_v22 = vmul.f32 %v12198_v49, %v21585_v9  ;;  %v12244_v55 = vmul.f32 %v13196_v53, %v12222_v46 }
0x1121   : > { %v12245_v29 = vmul.f32 %v13196_v53, %v12223_v63  ;;  %v12246_v56 = vmul.f32 %v13196_v53, %v12224_v32  ;;  %v12247_v36 = vmul.f32 %v13196_v53, %v12225_v38  ;;  %v12248_v6 = vmul.f32 %v13196_v53, %v12226_v4 }
0x1122   : > { %v12249_v60 = vmul.f32 %v13196_v53, %v12227_v31  ;;  %v12250_v7 = vmul.f32 %v13196_v53, %v12228_v37  ;;  %v12251_v50 = vmul.f32 %v13196_v53, %v12229_v22  ;;  %v12266_v23 = vadd.f32 %v13197_v39, %v12244_v55 }
0x1123   : > { %v12267_v48 = vadd.f32 %v13197_v39, %v12245_v29  ;;  %v12268_v18 = vadd.f32 %v13197_v39, %v12246_v56  ;;  %v12269_v8 = vadd.f32 %v13197_v39, %v12247_v36  ;;  %v12270_v27 = vadd.f32 %v13197_v39, %v12248_v6 }
0x1124   : > { %v15728_v54 = vpop.eup %15727  ;;  %v12271_v40 = vadd.f32 %v13197_v39, %v12249_v60  ;;  %v12272_v25 = vadd.f32 %v13197_v39, %v12250_v7  ;;  %v12273_v45 = vadd.f32 %v13197_v39, %v12251_v50  ;;  %v12282_v16 = vpack.c.bf16 %v12266_v23, %v12266_v23 }
0x1125   : > { %v12199_v30 = vrot.slane %v15728_v54, 1  ;;  %v12200_v61 = vrot.slane %v15728_v54, 2  ;;  %v12201_v9 = vrot.slane %v15728_v54, 3  ;;  %v12202_v33 = vrot.slane %v15728_v54, 4 }
0x1126   : > { %v12203_v35 = vrot.slane %v15728_v54, 5  ;;  %v12204_v57 = vrot.slane %v15728_v54, 6  ;;  %v12205_v42 = vrot.slane %v15728_v54, 7  ;;  %v12230_v1 = vmul.f32 %v15728_v54, %v21607_v21 }
0x1127   : > { %v12231_v3 = vmul.f32 %v12199_v30, %v21610_v12  ;;  %v12232_v59 = vmul.f32 %v12200_v61, %v21613_v24  ;;  %v12233_v17 = vmul.f32 %v12201_v9, %v21617_v62  ;;  %v12234_v28 = vmul.f32 %v12202_v33, %v21620_v13 }
0x1128   : > { %v12235_v5 = vmul.f32 %v12203_v35, %v21623_v2  ;;  %v12236_v34 = vmul.f32 %v12204_v57, %v21627_v26  ;;  %v12237_v10 = vmul.f32 %v12205_v42, %v21630_v19  ;;  %v12252_v52 = vmul.f32 %v13196_v53, %v12230_v1 }
0x1129   : > { %v12253_v58 = vmul.f32 %v13196_v53, %v12231_v3  ;;  %v12254_v44 = vmul.f32 %v13196_v53, %v12232_v59  ;;  %v12255_v47 = vmul.f32 %v13196_v53, %v12233_v17  ;;  %v12256_v43 = vmul.f32 %v13196_v53, %v12234_v28 }
0x112a   : > { %v12257_v21 = vmul.f32 %v13196_v53, %v12235_v5  ;;  %v12258_v11 = vmul.f32 %v13196_v53, %v12236_v34  ;;  %v12259_v12 = vmul.f32 %v13196_v53, %v12237_v10  ;;  %v12283_v14 = vpack.c.bf16 %v12267_v48, %v12267_v48 }
0x112b   : > { %v12275_v24 = vadd.f32 %v13197_v39, %v12253_v58  ;;  %v12276_v15 = vadd.f32 %v13197_v39, %v12254_v44  ;;  %v12277_v62 = vadd.f32 %v13197_v39, %v12255_v47  ;;  %v12274_v13 = vadd.f32 %v13197_v39, %v12252_v52 }
0x112c   : > { %v12278_v51 = vadd.f32 %v13197_v39, %v12256_v43  ;;  %v12279_v2 = vadd.f32 %v13197_v39, %v12257_v21  ;;  %v12284_v20 = vpack.c.bf16 %v12268_v18, %v12268_v18  ;;  %v12280_v26 = vadd.f32 %v13197_v39, %v12258_v11 }
0x112d   : > { %v12281_v41 = vadd.f32 %v13197_v39, %v12259_v12  ;;  %v12285_v19 = vpack.c.bf16 %v12269_v8, %v12269_v8  ;;  %v12291_v0 = vpack.c.bf16 %v12275_v24, %v12275_v24  ;;  %v12286_v49 = vpack.c.bf16 %v12270_v27, %v12270_v27 }
0x112e   : > { %v12287_v46 = vpack.c.bf16 %v12271_v40, %v12271_v40  ;;  %v12292_v63 = vpack.c.bf16 %v12276_v15, %v12276_v15  ;;  %v12288_v32 = vpack.c.bf16 %v12272_v25, %v12272_v25  ;;  %v12289_v38 = vpack.c.bf16 %v12273_v45, %v12273_v45 }
0x112f   : > { %v12293_v53 = vpack.c.bf16 %v12277_v62, %v12277_v62  ;;  %v12330_v4 = vunpack.c.l.b16 %v12283_v14  ;;  %v12290_v31 = vpack.c.bf16 %v12274_v13, %v12274_v13  ;;  %v12294_v37 = vpack.c.bf16 %v12278_v51, %v12278_v51  ;;  %v13198_v51 = vld [vmem:[#allocation41] ss:$0 sm:$0xff] }
0x1130   : > { %v12295_v22 = vpack.c.bf16 %v12279_v2, %v12279_v2  ;;  %v12331_v55 = vunpack.c.l.b16 %v12284_v20  ;;  %v12296_v29 = vpack.c.bf16 %v12280_v26, %v12280_v26  ;;  %v12297_v56 = vpack.c.bf16 %v12281_v41, %v12281_v41 }
0x1131   : > { %v12332_v36 = vunpack.c.l.b16 %v12285_v19  ;;  %v12338_v6 = vunpack.c.l.b16 %v12291_v0  ;;  %v12329_v60 = vunpack.c.l.b16 %v12282_v16  ;;  %v12333_v39 = vunpack.c.l.b16 %v12286_v49 }
0x1132   : > { %v12334_v7 = vunpack.c.l.b16 %v12287_v46  ;;  %v12339_v50 = vunpack.c.l.b16 %v12292_v63  ;;  %v12335_v23 = vunpack.c.l.b16 %v12288_v32  ;;  %v12340_v48 = vunpack.c.l.b16 %v12293_v53 }
0x1133   : > { %v12345_v18 = vrot.slane %v12330_v4, 7  ;;  %v12347_v54 = vrot.slane %v12331_v55, 6  ;;  %v12336_v8 = vunpack.c.l.b16 %v12289_v38  ;;  %v12337_v27 = vunpack.c.l.b16 %v12290_v31 }
0x1134   : > { %v12341_v40 = vunpack.c.l.b16 %v12294_v37  ;;  %v12342_v25 = vunpack.c.l.b16 %v12295_v22  ;;  %v12349_v61 = vrot.slane %v12332_v36, 5  ;;  %v12359_v9 = vrot.slane %v12338_v6, 7 }
0x1135   : > { %v12346_v30 = vsel %vm12024_vm13, %v12345_v18, %v12329_v60  ;;  %v12361_v33 = vrot.slane %v12339_v50, 6  ;;  %v12343_v35 = vunpack.c.l.b16 %v12296_v29  ;;  %v12344_v57 = vunpack.c.l.b16 %v12297_v56 }
0x1136   : > { %v12348_v42 = vsel %vm12027_vm14, %v12347_v54, %v12346_v30  ;;  %v12351_v1 = vrot.slane %v12333_v39, 4  ;;  %v12353_v59 = vrot.slane %v12334_v7, 3  ;;  %v12360_v17 = vsel %vm12024_vm13, %v12359_v9, %v12337_v27 }
0x1137   : > { %v12350_v3 = vsel %vm12030_vm15, %v12349_v61, %v12348_v42  ;;  %v12363_v28 = vrot.slane %v12340_v48, 5  ;;  %v12355_v34 = vrot.slane %v12335_v23, 2  ;;  %v12362_v10 = vsel %vm12027_vm14, %v12361_v33, %v12360_v17 }
0x1138   : > { %v12352_v5 = vsel %vm12033_vm0, %v12351_v1, %v12350_v3  ;;  %v12365_v52 = vrot.slane %v12341_v40, 4  ;;  %v12367_v47 = vrot.slane %v12342_v25, 3  ;;  %v12369_v11 = vrot.slane %v12343_v35, 2 }
0x1139   : > { %v12354_v58 = vsel %vm12036_vm1, %v12353_v59, %v12352_v5  ;;  %v12364_v44 = vsel %vm12030_vm15, %v12363_v28, %v12362_v10  ;;  %v12357_v12 = vrot.slane %v12336_v8, 1  ;;  %v12371_v24 = vrot.slane %v12344_v57, 1 }
0x113a   : > { %v12356_v43 = vsel %vm12039_vm2, %v12355_v34, %v12354_v58  ;;  %v12366_v21 = vsel %vm12033_vm0, %v12365_v52, %v12364_v44 }
0x113b   : > { %v12368_v45 = vsel %vm12036_vm1, %v12367_v47, %v12366_v21  ;;  %v12358_v62 = vsel %vm12042_vm4, %v12357_v12, %v12356_v43 }
0x113c   : > { %v12370_v15 = vsel %vm12039_vm2, %v12369_v11, %v12368_v45 }
0x113d   : > { %v12372_v14 = vsel %vm12042_vm4, %v12371_v24, %v12370_v15 }
0x113e   : > { %v12373_v13 = vpack.c.b16 %v12372_v14, %v12358_v62 }
0x1140   : > { %14461 = vmatmul.mubr.msk.bf16.vlgmr.msra.gmra.mrb[0].mxu0 %vm1831_vm3, %v12373_v13 }
0x1213   : > { %v12435_v2 = vpop.f32.mrb[0].mxu0 }
0x1214   : > { %v12436_v20 = vadd.f32 %v13198_v51, %v12435_v2  ;;  %v14462_v26 = vpop.f32.mrb[1].mxu0 }
0x1215   : > { %v12438_v41 = vpop.f32.mrb[2].mxu0 }
0x1216   : > { %12442 = vst [vmem:[#allocation42] sm:$0xff] %v12436_v20  ;;  %v12439_v19 = vadd.f32 %v13198_v51, %v12438_v41  ;;  %v14463_v0 = vpop.f32.mrb[3].mxu0 }
0x1218   : > { %12443 = vst [vmem:[#allocation42 + $0x8] sm:$0xff] %v12439_v19 }
0x1219 PF: > { %s22158_s29 = sld [smem:[#allocation59_spill]]  ;;  %s16605_s5 = smov [#allocation42]  }
0x121a   : > { %s12453_s30 = sshll.u32 %s16605_s5, 4  ;;  %s12454_s30 = int_to_ptr.vmem [resolvable:$true] %s12453_s30 }
0x121b   : > { %s16429_s10 = scalar_lea.vmem %s12454_s30, 256  ;;  %p16436_p11 = scmp.lt.s32.totalorder %s12454_s30, %s12454_s30 }
0x121c   : > { %p16430_p6 = scmp.ne.s32.totalorder %s12454_s30, %s16429_s10  ;;  %p16437_p12 = scmp.lt.s32.totalorder %s16429_s10, %s16429_s10 }
0x121e   : > { %p16438_p0 = por %p16437_p12, %p16436_p11 }
0x121f   : > { %p14614_p7 = scmp.eq.s32.totalorder %s22158_s29, 1 }
0x1221   : > { %p16431_p9 = pnand %p16430_p6, %p14614_p7 }
0x1223   : > { %p16432_p5 = pneg %p16431_p9 }
0x1225   : > { %p16439_p1 = pnand %p16438_p0, %p16432_p5 }
0x1227   : > { %16442 = shalt.err (!%p16439_p1)
}
0x1228   : > { %s22159_s8 = sld [smem:[#allocation134_spill]] }
0x122e   : > { %s16443_s1 = scalar_lea.hbm %s22159_s8, 256 }
0x122f   : > { %p16444_p10 = scmp.ne.s32.totalorder %s22159_s8, %s16443_s1  ;;  %p16449_p13 = scmp.lt.u32.totalorder %s16443_s1, %s22159_s8 }
0x1231   : > { %p16445_p8 = pnand %p16444_p10, %p14614_p7 }
0x1233   : > { %p16446_p2 = pneg %p16445_p8 }
0x1235   : > { %p16451_p4 = pnand %p16449_p13, %p16446_p2 }
0x1237   : > { %16454 = shalt.err (!%p16451_p4)
}
0x1238   : > { %s16606_s14 = smov 128   ;;  %s16607_s9 = smov 8  }
0x1239   : > { %14565 = dma.vmem_to_hbm [thread:$0]  (%p14614_p7), %s12454_s30, 256, %s22159_s8, [#allocation5], %s16606_s14, %s16606_s14, %s16607_s9  }
0x123a   : > { %16532 = dma.done.wait (%p14614_p7), [#allocation5], 256  }
0x123b   : > { %16534 = vsyncadd (%p14614_p7), [#allocation5], 4294967040 }
0x123c PF: > { %s65_s3 = sadd.s32 1, %s16557_s3   ;;  %s22160_s29 = sld [smem:[#allocation57_spill]] }
0x123d   : > { %p62_p3 = scmp.ge.s32.totalorder %s65_s3, 4   ;;  %s22161_s13 = sld [smem:[#allocation62_spill]] }
0x123e   : > { %s22162_s5 = sld [smem:[#allocation60_spill]]  ;;  %s22163_s2 = smov %s16545_s6 }
0x123f   : > { %s22165_s30 = smov %s16553_s7  ;;  %64 = sbr.rel (!%p62_p3) target bundleno = 46 (0x2e), region = 383 }
0x1243   : > { %s22164_s6 = smov %s22161_s13 }
0x1244   : > { %s22166_s7 = smov %s22162_s5 }
0x1246   :  { %12469 = vsyncpa [#allocation4], 1 }
0x1247   :  { %12471 = vsyncpa [#allocation4 + $0x1], 1 }
0x1248   :  { %12472 = vsyncpa [#allocation7], 1 }
0x1249   :  { %12473 = vsyncpa [#allocation10], 1 }
0x124a   :  { %12474 = vsyncpa [#allocation13], 1 }
0x124b   :  { %12476 = vsyncpa [#allocation13 + $0x1], 1 }
0x124c   :  { %12477 = vsyncpa [#allocation16], 1 }
0x124d   :  { %12479 = vsyncpa [#allocation16 + $0x1], 1 }
0x124e   :  { %12480 = vsyncpa [#allocation19], 1 }
0x124f   :  { %12482 = vsyncpa [#allocation19 + $0x1], 1 }
0x1250   :  { %12483 = vsyncpa [#allocation22], 1 }
0x1251   :  { %12485 = vsyncpa [#allocation22 + $0x1], 1 }
0x1252   :  { %12486 = vsyncpa [#allocation25], 1 }
0x1253   :  { %12488 = vsyncpa [#allocation25 + $0x1], 1 }
0x1254   :  { %12489 = vsyncpa [#allocation28], 1 }
0x1255   :  { %12491 = vsyncpa [#allocation28 + $0x1], 1 }
0x1256   :  { %12492 = vsyncpa [#allocation31], 1 }
0x1257   :  { %12494 = vsyncpa [#allocation31 + $0x1], 1 }
0x1258   :  { %12495 = vsyncpa [#allocation34], 1 }
0x1259   :  { %12497 = vsyncpa [#allocation34 + $0x1], 1 }
0x125a   :  { %12498 = vsyncpa [#allocation37], 1 }
0x125b   :  { %12499 = vsyncpa [#allocation40], 1 }
0x125c   :  { %12500 = vsyncpa [#allocation5], 1 }
0x125d   :  { %12502 = vsyncpa [#allocation5 + $0x1], 1 }

</bundles_post_ra>
